<compile_context>
chip_gen: v7x
topology: tpu7x:2x2x1
jax: 0.10.0
libtpu: 0.0.40
codegen_flags: <defaults>
</compile_context>

<pallas_src>
import functools

import jax
import jax.numpy as jnp
from jax import lax
from jax.experimental import pallas as pl
from jax.experimental.pallas import tpu as pltpu


def _conv_block_kernel(x_ref, w_ref, b_ref, o_ref, a_ref, *,
                       H, W, K, Cin, Cout, depth):
    """Fused depth x [conv('same', reflect) + ReLU] for one image (grid = batch).

    x_ref: (1, H*W, Cin)            flattened NHWC input image
    w_ref: (depth, Cmax, K*K*Cout)  per-layer weights, (cin, tap*Cout) layout
    b_ref: (depth, 1, Cout)         per-layer biases
    o_ref: (1, H*W, Cout)           flattened NHWC output image
    a_ref: (Hp*Wp, Cmax) f32        VMEM scratch: reflect-padded activation
    """
    pad = K // 2
    Hp, Wp = H + 2 * pad, W + 2 * pad
    Rv = (H - 1) * Wp + W          # flat row range covering every valid output
    KK = K * K

    def write_reflect_padded(src, stride, C):
        """Write `src` (flat value; image row y occupies rows [y*stride, y*stride+W))
        into the scratch as a reflect-padded flat (Hp, Wp) image on channels [:C]."""
        # interior rows, with left/right (W-axis) reflection built on the fly
        for y in range(H):
            base = y * stride
            left = [src[base + pad - p: base + pad - p + 1, :] for p in range(pad)]
            mid = [src[base: base + W, :]]
            right = [src[base + W - 2 - p: base + W - 1 - p, :] for p in range(pad)]
            row = jnp.concatenate(left + mid + right, axis=0)          # (Wp, C)
            a_ref[(pad + y) * Wp: (pad + y + 1) * Wp, :C] = row.astype(a_ref.dtype)
        # top / bottom (H-axis) reflection: copy full padded-width rows
        for j in range(pad):
            a_ref[(pad - 1 - j) * Wp: (pad - j) * Wp, :C] = \
                a_ref[(pad + 1 + j) * Wp: (pad + 2 + j) * Wp, :C]
            a_ref[(pad + H + j) * Wp: (pad + H + 1 + j) * Wp, :C] = \
                a_ref[(pad + H - 2 - j) * Wp: (pad + H - 1 - j) * Wp, :C]

    # Build the padded layer-0 input in VMEM (in-kernel padding, no host jnp.pad).
    write_reflect_padded(x_ref[0], W, Cin)

    for l in range(depth):
        cin_l = Cin if l == 0 else Cout
        xa = a_ref[:, :cin_l]                                # (Hp*Wp, cin_l)
        wr = w_ref[l][:cin_l, :]                             # (cin_l, K*K*Cout)
        # One lane-dense MXU matmul per layer (instead of K*K tiny ones).
        t = jnp.dot(xa, wr, preferred_element_type=jnp.float32)   # (Hp*Wp, KK*Cout)
        # Combine taps with statically shifted VPU adds.
        acc = jnp.zeros((Rv, Cout), jnp.float32)
        for ky in range(K):
            for kx in range(K):
                tap = ky * K + kx
                s = ky * Wp + kx
                acc = acc + t[s: s + Rv, tap * Cout: (tap + 1) * Cout]
        act = jnp.maximum(acc + b_ref[l], 0.0)               # bias + fused ReLU
        if l + 1 < depth:
            write_reflect_padded(act, Wp, Cout)              # next layer stays in VMEM
        else:
            out = jnp.concatenate(
                [act[y * Wp: y * Wp + W, :] for y in range(H)], axis=0)  # (H*W, Cout)
            o_ref[0] = out.astype(o_ref.dtype)


def conv2d_block_forward(x_nchw, params):
    """Conv2dBlock.forward: sequential [conv + relu] x depth.  x: NCHW (PyTorch)."""
    depth = len(params)
    K = params[0][0].shape[0]
    Cin = params[0][0].shape[2]
    Cout = params[0][0].shape[3]
    # torch 'same' padding is asymmetric for even K; only odd K supported here.
    assert K % 2 == 1, "only odd kernel sizes supported"
    N, C, H, W = x_nchw.shape
    assert C == Cin
    pad = K // 2
    Hp, Wp = H + 2 * pad, W + 2 * pad
    Cmax = max(Cin, Cout)

    # NCHW -> flattened channels-last (N, H*W, Cin): spatial on sublanes, C on lanes.
    x_flat = jnp.transpose(x_nchw, (0, 2, 3, 1)).reshape(N, H * W, Cin)

    # Pack weights per layer: HWIO -> (cin, K*K*Cout), zero-pad cin rows to Cmax.
    w_stack, b_stack = [], []
    for (w, b) in params:
        cin_l = w.shape[2]
        wr = jnp.transpose(w, (2, 0, 1, 3)).reshape(cin_l, K * K * Cout)
        wr = jnp.pad(wr, ((0, Cmax - cin_l), (0, 0)))
        w_stack.append(wr)
        b_stack.append(b.reshape(1, Cout))
    w_stack = jnp.stack(w_stack).astype(jnp.float32)         # (depth, Cmax, K*K*Cout)
    b_stack = jnp.stack(b_stack).astype(jnp.float32)         # (depth, 1, Cout)

    kernel = functools.partial(_conv_block_kernel, H=H, W=W, K=K,
                               Cin=Cin, Cout=Cout, depth=depth)
    out = pl.pallas_call(
        kernel,
        out_shape=jax.ShapeDtypeStruct((N, H * W, Cout), x_nchw.dtype),
        grid=(N,),
        in_specs=[
            pl.BlockSpec((1, H * W, Cin), lambda n: (n, 0, 0)),
            pl.BlockSpec((depth, Cmax, K * K * Cout), lambda n: (0, 0, 0)),
            pl.BlockSpec((depth, 1, Cout), lambda n: (0, 0, 0)),
        ],
        out_specs=pl.BlockSpec((1, H * W, Cout), lambda n: (n, 0, 0)),
        scratch_shapes=[pltpu.VMEM((Hp * Wp, Cmax), jnp.float32)],
        compiler_params=pltpu.CompilerParams(dimension_semantics=("parallel",)),
    )(x_flat, w_stack, b_stack)

    return jnp.transpose(out.reshape(N, H, W, Cout), (0, 3, 1, 2))   # NHWC -> NCHW


def init_conv2d_block_params(key, ch_in, ch_out, kernel_size, depth):
    """Deterministic PyTorch-default-like (kaiming-uniform-ish) init. Weights in HWIO."""
    params = []
    c_in = ch_in
    for _ in range(depth):
        key, kw, kb = jax.random.split(key, 3)
        fan_in = c_in * kernel_size * kernel_size
        bound = 1.0 / (fan_in ** 0.5)
        w = jax.random.uniform(kw, (kernel_size, kernel_size, c_in, ch_out),
                               jnp.float32, -bound, bound)
        b = jax.random.uniform(kb, (ch_out,), jnp.float32, -bound, bound)
        params.append((w, b))
        c_in = ch_out
    return params


def _reference_forward(x_nchw, params):
    """Pure-JAX reference (XLA conv) for correctness checking."""
    y = x_nchw
    for w, b in params:
        K = w.shape[0]
        pad = K // 2
        yp = jnp.pad(y, ((0, 0), (0, 0), (pad, pad), (pad, pad)), mode="reflect")
        y = lax.conv_general_dilated(
            yp, w, window_strides=(1, 1), padding="VALID",
            dimension_numbers=("NCHW", "HWIO", "NCHW"))
        y = jnp.maximum(y + b[None, :, None, None], 0.0)
    return y


if __name__ == "__main__":
    # Conv2dBlock(chIn=4, chOut=8, kernelSize=3, depth=2, padding='same',
    #             paddingMode='reflect')
    chIn, chOut, kernelSize, depth = 4, 8, 3, 2
    N, H, W = 2, 16, 16

    key = jax.random.PRNGKey(0)
    k_x, k_p = jax.random.split(key)
    x = jax.random.normal(k_x, (N, chIn, H, W), jnp.float32)   # NCHW like PyTorch
    params = init_conv2d_block_params(k_p, chIn, chOut, kernelSize, depth)

    fwd = jax.jit(conv2d_block_forward)
    y = jax.block_until_ready(fwd(x, params))
    y_ref = jax.block_until_ready(_reference_forward(x, params))

    assert y.shape == (N, chOut, H, W), y.shape
    max_err = float(jnp.max(jnp.abs(y - y_ref)))
    assert jnp.allclose(y, y_ref, rtol=1e-4, atol=1e-4), max_err
    print("KERNEL_OK")
</pallas_src>

<mosaic_0001>
module attributes {stable_mosaic.version = 11 : i64} {
  func.func @_conv_block_kernel(%arg0: i32, %arg1: memref<1x256x4xf32, #tpu.memory_space<vmem>>, %arg2: memref<2x8x72xf32, #tpu.memory_space<vmem>>, %arg3: memref<2x1x8xf32, #tpu.memory_space<vmem>>, %arg4: memref<1x256x8xf32, #tpu.memory_space<vmem>>, %arg5: memref<324x8xf32, #tpu.memory_space<vmem>>) attributes {dimension_semantics = [#tpu.dimension_semantics<parallel>], iteration_bounds = array<i64: 2>, scalar_prefetch = 0 : i64, scratch_operands = 1 : i64, tpu.core_type = #tpu.core_type<tc>, window_params = [{transform_indices = @transform_0, window_bounds = array<i64: 1, 256, 4>}, {pipeline_mode = #tpu.pipeline_mode<synchronous>, transform_indices = @transform_1, window_bounds = array<i64: 2, 8, 72>}, {pipeline_mode = #tpu.pipeline_mode<synchronous>, transform_indices = @transform_2, window_bounds = array<i64: 2, 1, 8>}, {transform_indices = @transform_3, window_bounds = array<i64: 1, 256, 8>}]} {
    %c0 = arith.constant 0 : index
    %c0_0 = arith.constant 0 : index
    %c0_1 = arith.constant 0 : index
    %0 = vector.load %arg1[%c0, %c0_0, %c0_1] : memref<1x256x4xf32, #tpu.memory_space<vmem>>, vector<1x256x4xf32>
    %1 = vector.shape_cast %0 : vector<1x256x4xf32> to vector<256x4xf32>
    %2 = vector.extract_strided_slice %1 {offsets = [1, 0], sizes = [1, 4], strides = [1, 1]} : vector<256x4xf32> to vector<1x4xf32>
    %3 = vector.extract_strided_slice %1 {offsets = [0, 0], sizes = [16, 4], strides = [1, 1]} : vector<256x4xf32> to vector<16x4xf32>
    %4 = vector.extract_strided_slice %1 {offsets = [14, 0], sizes = [1, 4], strides = [1, 1]} : vector<256x4xf32> to vector<1x4xf32>
    %5 = tpu.concatenate %2, %3, %4 in 0 : vector<1x4xf32>, vector<16x4xf32>, vector<1x4xf32> -> vector<18x4xf32>
    %c18 = arith.constant 18 : index
    %c0_2 = arith.constant 0 : index
    %6 = vector.load %arg5[%c18, %c0_2] : memref<324x8xf32, #tpu.memory_space<vmem>>, vector<18x4xf32>
    tpu.vector_store %arg5[%c18, %c0_2], %5 {strides = array<i32>} : memref<324x8xf32, #tpu.memory_space<vmem>>, vector<18x4xf32>,
    %7 = vector.extract_strided_slice %1 {offsets = [17, 0], sizes = [1, 4], strides = [1, 1]} : vector<256x4xf32> to vector<1x4xf32>
    %8 = vector.extract_strided_slice %1 {offsets = [16, 0], sizes = [16, 4], strides = [1, 1]} : vector<256x4xf32> to vector<16x4xf32>
    %9 = vector.extract_strided_slice %1 {offsets = [30, 0], sizes = [1, 4], strides = [1, 1]} : vector<256x4xf32> to vector<1x4xf32>
    %10 = tpu.concatenate %7, %8, %9 in 0 : vector<1x4xf32>, vector<16x4xf32>, vector<1x4xf32> -> vector<18x4xf32>
    %c36 = arith.constant 36 : index
    %c0_3 = arith.constant 0 : index
    %11 = vector.load %arg5[%c36, %c0_3] : memref<324x8xf32, #tpu.memory_space<vmem>>, vector<18x4xf32>
    tpu.vector_store %arg5[%c36, %c0_3], %10 {strides = array<i32>} : memref<324x8xf32, #tpu.memory_space<vmem>>, vector<18x4xf32>,
    %12 = vector.extract_strided_slice %1 {offsets = [33, 0], sizes = [1, 4], strides = [1, 1]} : vector<256x4xf32> to vector<1x4xf32>
    %13 = vector.extract_strided_slice %1 {offsets = [32, 0], sizes = [16, 4], strides = [1, 1]} : vector<256x4xf32> to vector<16x4xf32>
    %14 = vector.extract_strided_slice %1 {offsets = [46, 0], sizes = [1, 4], strides = [1, 1]} : vector<256x4xf32> to vector<1x4xf32>
    %15 = tpu.concatenate %12, %13, %14 in 0 : vector<1x4xf32>, vector<16x4xf32>, vector<1x4xf32> -> vector<18x4xf32>
    %c54 = arith.constant 54 : index
    %c0_4 = arith.constant 0 : index
    %16 = vector.load %arg5[%c54, %c0_4] : memref<324x8xf32, #tpu.memory_space<vmem>>, vector<18x4xf32>
    tpu.vector_store %arg5[%c54, %c0_4], %15 {strides = array<i32>} : memref<324x8xf32, #tpu.memory_space<vmem>>, vector<18x4xf32>,
    %17 = vector.extract_strided_slice %1 {offsets = [49, 0], sizes = [1, 4], strides = [1, 1]} : vector<256x4xf32> to vector<1x4xf32>
    %18 = vector.extract_strided_slice %1 {offsets = [48, 0], sizes = [16, 4], strides = [1, 1]} : vector<256x4xf32> to vector<16x4xf32>
    %19 = vector.extract_strided_slice %1 {offsets = [62, 0], sizes = [1, 4], strides = [1, 1]} : vector<256x4xf32> to vector<1x4xf32>
    %20 = tpu.concatenate %17, %18, %19 in 0 : vector<1x4xf32>, vector<16x4xf32>, vector<1x4xf32> -> vector<18x4xf32>
    %c72 = arith.constant 72 : index
    %c0_5 = arith.constant 0 : index
    %21 = vector.load %arg5[%c72, %c0_5] : memref<324x8xf32, #tpu.memory_space<vmem>>, vector<18x4xf32>
    tpu.vector_store %arg5[%c72, %c0_5], %20 {strides = array<i32>} : memref<324x8xf32, #tpu.memory_space<vmem>>, vector<18x4xf32>,
    %22 = vector.extract_strided_slice %1 {offsets = [65, 0], sizes = [1, 4], strides = [1, 1]} : vector<256x4xf32> to vector<1x4xf32>
    %23 = vector.extract_strided_slice %1 {offsets = [64, 0], sizes = [16, 4], strides = [1, 1]} : vector<256x4xf32> to vector<16x4xf32>
    %24 = vector.extract_strided_slice %1 {offsets = [78, 0], sizes = [1, 4], strides = [1, 1]} : vector<256x4xf32> to vector<1x4xf32>
    %25 = tpu.concatenate %22, %23, %24 in 0 : vector<1x4xf32>, vector<16x4xf32>, vector<1x4xf32> -> vector<18x4xf32>
    %c90 = arith.constant 90 : index
    %c0_6 = arith.constant 0 : index
    %26 = vector.load %arg5[%c90, %c0_6] : memref<324x8xf32, #tpu.memory_space<vmem>>, vector<18x4xf32>
    tpu.vector_store %arg5[%c90, %c0_6], %25 {strides = array<i32>} : memref<324x8xf32, #tpu.memory_space<vmem>>, vector<18x4xf32>,
    %27 = vector.extract_strided_slice %1 {offsets = [81, 0], sizes = [1, 4], strides = [1, 1]} : vector<256x4xf32> to vector<1x4xf32>
    %28 = vector.extract_strided_slice %1 {offsets = [80, 0], sizes = [16, 4], strides = [1, 1]} : vector<256x4xf32> to vector<16x4xf32>
    %29 = vector.extract_strided_slice %1 {offsets = [94, 0], sizes = [1, 4], strides = [1, 1]} : vector<256x4xf32> to vector<1x4xf32>
    %30 = tpu.concatenate %27, %28, %29 in 0 : vector<1x4xf32>, vector<16x4xf32>, vector<1x4xf32> -> vector<18x4xf32>
    %c108 = arith.constant 108 : index
    %c0_7 = arith.constant 0 : index
    %31 = vector.load %arg5[%c108, %c0_7] : memref<324x8xf32, #tpu.memory_space<vmem>>, vector<18x4xf32>
    tpu.vector_store %arg5[%c108, %c0_7], %30 {strides = array<i32>} : memref<324x8xf32, #tpu.memory_space<vmem>>, vector<18x4xf32>,
    %32 = vector.extract_strided_slice %1 {offsets = [97, 0], sizes = [1, 4], strides = [1, 1]} : vector<256x4xf32> to vector<1x4xf32>
    %33 = vector.extract_strided_slice %1 {offsets = [96, 0], sizes = [16, 4], strides = [1, 1]} : vector<256x4xf32> to vector<16x4xf32>
    %34 = vector.extract_strided_slice %1 {offsets = [110, 0], sizes = [1, 4], strides = [1, 1]} : vector<256x4xf32> to vector<1x4xf32>
    %35 = tpu.concatenate %32, %33, %34 in 0 : vector<1x4xf32>, vector<16x4xf32>, vector<1x4xf32> -> vector<18x4xf32>
    %c126 = arith.constant 126 : index
    %c0_8 = arith.constant 0 : index
    %36 = vector.load %arg5[%c126, %c0_8] : memref<324x8xf32, #tpu.memory_space<vmem>>, vector<18x4xf32>
    tpu.vector_store %arg5[%c126, %c0_8], %35 {strides = array<i32>} : memref<324x8xf32, #tpu.memory_space<vmem>>, vector<18x4xf32>,
    %37 = vector.extract_strided_slice %1 {offsets = [113, 0], sizes = [1, 4], strides = [1, 1]} : vector<256x4xf32> to vector<1x4xf32>
    %38 = vector.extract_strided_slice %1 {offsets = [112, 0], sizes = [16, 4], strides = [1, 1]} : vector<256x4xf32> to vector<16x4xf32>
    %39 = vector.extract_strided_slice %1 {offsets = [126, 0], sizes = [1, 4], strides = [1, 1]} : vector<256x4xf32> to vector<1x4xf32>
    %40 = tpu.concatenate %37, %38, %39 in 0 : vector<1x4xf32>, vector<16x4xf32>, vector<1x4xf32> -> vector<18x4xf32>
    %c144 = arith.constant 144 : index
    %c0_9 = arith.constant 0 : index
    %41 = vector.load %arg5[%c144, %c0_9] : memref<324x8xf32, #tpu.memory_space<vmem>>, vector<18x4xf32>
    tpu.vector_store %arg5[%c144, %c0_9], %40 {strides = array<i32>} : memref<324x8xf32, #tpu.memory_space<vmem>>, vector<18x4xf32>,
    %42 = vector.extract_strided_slice %1 {offsets = [129, 0], sizes = [1, 4], strides = [1, 1]} : vector<256x4xf32> to vector<1x4xf32>
    %43 = vector.extract_strided_slice %1 {offsets = [128, 0], sizes = [16, 4], strides = [1, 1]} : vector<256x4xf32> to vector<16x4xf32>
    %44 = vector.extract_strided_slice %1 {offsets = [142, 0], sizes = [1, 4], strides = [1, 1]} : vector<256x4xf32> to vector<1x4xf32>
    %45 = tpu.concatenate %42, %43, %44 in 0 : vector<1x4xf32>, vector<16x4xf32>, vector<1x4xf32> -> vector<18x4xf32>
    %c162 = arith.constant 162 : index
    %c0_10 = arith.constant 0 : index
    %46 = vector.load %arg5[%c162, %c0_10] : memref<324x8xf32, #tpu.memory_space<vmem>>, vector<18x4xf32>
    tpu.vector_store %arg5[%c162, %c0_10], %45 {strides = array<i32>} : memref<324x8xf32, #tpu.memory_space<vmem>>, vector<18x4xf32>,
    %47 = vector.extract_strided_slice %1 {offsets = [145, 0], sizes = [1, 4], strides = [1, 1]} : vector<256x4xf32> to vector<1x4xf32>
    %48 = vector.extract_strided_slice %1 {offsets = [144, 0], sizes = [16, 4], strides = [1, 1]} : vector<256x4xf32> to vector<16x4xf32>
    %49 = vector.extract_strided_slice %1 {offsets = [158, 0], sizes = [1, 4], strides = [1, 1]} : vector<256x4xf32> to vector<1x4xf32>
    %50 = tpu.concatenate %47, %48, %49 in 0 : vector<1x4xf32>, vector<16x4xf32>, vector<1x4xf32> -> vector<18x4xf32>
    %c180 = arith.constant 180 : index
    %c0_11 = arith.constant 0 : index
    %51 = vector.load %arg5[%c180, %c0_11] : memref<324x8xf32, #tpu.memory_space<vmem>>, vector<18x4xf32>
    tpu.vector_store %arg5[%c180, %c0_11], %50 {strides = array<i32>} : memref<324x8xf32, #tpu.memory_space<vmem>>, vector<18x4xf32>,
    %52 = vector.extract_strided_slice %1 {offsets = [161, 0], sizes = [1, 4], strides = [1, 1]} : vector<256x4xf32> to vector<1x4xf32>
    %53 = vector.extract_strided_slice %1 {offsets = [160, 0], sizes = [16, 4], strides = [1, 1]} : vector<256x4xf32> to vector<16x4xf32>
    %54 = vector.extract_strided_slice %1 {offsets = [174, 0], sizes = [1, 4], strides = [1, 1]} : vector<256x4xf32> to vector<1x4xf32>
    %55 = tpu.concatenate %52, %53, %54 in 0 : vector<1x4xf32>, vector<16x4xf32>, vector<1x4xf32> -> vector<18x4xf32>
    %c198 = arith.constant 198 : index
    %c0_12 = arith.constant 0 : index
    %56 = vector.load %arg5[%c198, %c0_12] : memref<324x8xf32, #tpu.memory_space<vmem>>, vector<18x4xf32>
    tpu.vector_store %arg5[%c198, %c0_12], %55 {strides = array<i32>} : memref<324x8xf32, #tpu.memory_space<vmem>>, vector<18x4xf32>,
    %57 = vector.extract_strided_slice %1 {offsets = [177, 0], sizes = [1, 4], strides = [1, 1]} : vector<256x4xf32> to vector<1x4xf32>
    %58 = vector.extract_strided_slice %1 {offsets = [176, 0], sizes = [16, 4], strides = [1, 1]} : vector<256x4xf32> to vector<16x4xf32>
    %59 = vector.extract_strided_slice %1 {offsets = [190, 0], sizes = [1, 4], strides = [1, 1]} : vector<256x4xf32> to vector<1x4xf32>
    %60 = tpu.concatenate %57, %58, %59 in 0 : vector<1x4xf32>, vector<16x4xf32>, vector<1x4xf32> -> vector<18x4xf32>
    %c216 = arith.constant 216 : index
    %c0_13 = arith.constant 0 : index
    %61 = vector.load %arg5[%c216, %c0_13] : memref<324x8xf32, #tpu.memory_space<vmem>>, vector<18x4xf32>
    tpu.vector_store %arg5[%c216, %c0_13], %60 {strides = array<i32>} : memref<324x8xf32, #tpu.memory_space<vmem>>, vector<18x4xf32>,
    %62 = vector.extract_strided_slice %1 {offsets = [193, 0], sizes = [1, 4], strides = [1, 1]} : vector<256x4xf32> to vector<1x4xf32>
    %63 = vector.extract_strided_slice %1 {offsets = [192, 0], sizes = [16, 4], strides = [1, 1]} : vector<256x4xf32> to vector<16x4xf32>
    %64 = vector.extract_strided_slice %1 {offsets = [206, 0], sizes = [1, 4], strides = [1, 1]} : vector<256x4xf32> to vector<1x4xf32>
    %65 = tpu.concatenate %62, %63, %64 in 0 : vector<1x4xf32>, vector<16x4xf32>, vector<1x4xf32> -> vector<18x4xf32>
    %c234 = arith.constant 234 : index
    %c0_14 = arith.constant 0 : index
    %66 = vector.load %arg5[%c234, %c0_14] : memref<324x8xf32, #tpu.memory_space<vmem>>, vector<18x4xf32>
    tpu.vector_store %arg5[%c234, %c0_14], %65 {strides = array<i32>} : memref<324x8xf32, #tpu.memory_space<vmem>>, vector<18x4xf32>,
    %67 = vector.extract_strided_slice %1 {offsets = [209, 0], sizes = [1, 4], strides = [1, 1]} : vector<256x4xf32> to vector<1x4xf32>
    %68 = vector.extract_strided_slice %1 {offsets = [208, 0], sizes = [16, 4], strides = [1, 1]} : vector<256x4xf32> to vector<16x4xf32>
    %69 = vector.extract_strided_slice %1 {offsets = [222, 0], sizes = [1, 4], strides = [1, 1]} : vector<256x4xf32> to vector<1x4xf32>
    %70 = tpu.concatenate %67, %68, %69 in 0 : vector<1x4xf32>, vector<16x4xf32>, vector<1x4xf32> -> vector<18x4xf32>
    %c252 = arith.constant 252 : index
    %c0_15 = arith.constant 0 : index
    %71 = vector.load %arg5[%c252, %c0_15] : memref<324x8xf32, #tpu.memory_space<vmem>>, vector<18x4xf32>
    tpu.vector_store %arg5[%c252, %c0_15], %70 {strides = array<i32>} : memref<324x8xf32, #tpu.memory_space<vmem>>, vector<18x4xf32>,
    %72 = vector.extract_strided_slice %1 {offsets = [225, 0], sizes = [1, 4], strides = [1, 1]} : vector<256x4xf32> to vector<1x4xf32>
    %73 = vector.extract_strided_slice %1 {offsets = [224, 0], sizes = [16, 4], strides = [1, 1]} : vector<256x4xf32> to vector<16x4xf32>
    %74 = vector.extract_strided_slice %1 {offsets = [238, 0], sizes = [1, 4], strides = [1, 1]} : vector<256x4xf32> to vector<1x4xf32>
    %75 = tpu.concatenate %72, %73, %74 in 0 : vector<1x4xf32>, vector<16x4xf32>, vector<1x4xf32> -> vector<18x4xf32>
    %c270 = arith.constant 270 : index
    %c0_16 = arith.constant 0 : index
    %76 = vector.load %arg5[%c270, %c0_16] : memref<324x8xf32, #tpu.memory_space<vmem>>, vector<18x4xf32>
    tpu.vector_store %arg5[%c270, %c0_16], %75 {strides = array<i32>} : memref<324x8xf32, #tpu.memory_space<vmem>>, vector<18x4xf32>,
    %77 = vector.extract_strided_slice %1 {offsets = [241, 0], sizes = [1, 4], strides = [1, 1]} : vector<256x4xf32> to vector<1x4xf32>
    %78 = vector.extract_strided_slice %1 {offsets = [240, 0], sizes = [16, 4], strides = [1, 1]} : vector<256x4xf32> to vector<16x4xf32>
    %79 = vector.extract_strided_slice %1 {offsets = [254, 0], sizes = [1, 4], strides = [1, 1]} : vector<256x4xf32> to vector<1x4xf32>
    %80 = tpu.concatenate %77, %78, %79 in 0 : vector<1x4xf32>, vector<16x4xf32>, vector<1x4xf32> -> vector<18x4xf32>
    %c288 = arith.constant 288 : index
    %c0_17 = arith.constant 0 : index
    %81 = vector.load %arg5[%c288, %c0_17] : memref<324x8xf32, #tpu.memory_space<vmem>>, vector<18x4xf32>
    tpu.vector_store %arg5[%c288, %c0_17], %80 {strides = array<i32>} : memref<324x8xf32, #tpu.memory_space<vmem>>, vector<18x4xf32>,
    %c36_18 = arith.constant 36 : index
    %c0_19 = arith.constant 0 : index
    %82 = vector.load %arg5[%c36_18, %c0_19] : memref<324x8xf32, #tpu.memory_space<vmem>>, vector<18x4xf32>
    %c0_20 = arith.constant 0 : index
    %c0_21 = arith.constant 0 : index
    %83 = vector.load %arg5[%c0_20, %c0_21] : memref<324x8xf32, #tpu.memory_space<vmem>>, vector<18x4xf32>
    tpu.vector_store %arg5[%c0_20, %c0_21], %82 {strides = array<i32>} : memref<324x8xf32, #tpu.memory_space<vmem>>, vector<18x4xf32>,
    %c270_22 = arith.constant 270 : index
    %c0_23 = arith.constant 0 : index
    %84 = vector.load %arg5[%c270_22, %c0_23] : memref<324x8xf32, #tpu.memory_space<vmem>>, vector<18x4xf32>
    %c306 = arith.constant 306 : index
    %c0_24 = arith.constant 0 : index
    %85 = vector.load %arg5[%c306, %c0_24] : memref<324x8xf32, #tpu.memory_space<vmem>>, vector<18x4xf32>
    tpu.vector_store %arg5[%c306, %c0_24], %84 {strides = array<i32>} : memref<324x8xf32, #tpu.memory_space<vmem>>, vector<18x4xf32>,
    %c0_25 = arith.constant 0 : index
    %c0_26 = arith.constant 0 : index
    %86 = vector.load %arg5[%c0_25, %c0_26] : memref<324x8xf32, #tpu.memory_space<vmem>>, vector<324x4xf32>
    %c0_27 = arith.constant 0 : index
    %c0_28 = arith.constant 0 : index
    %c0_29 = arith.constant 0 : index
    %87 = vector.load %arg2[%c0_27, %c0_28, %c0_29] : memref<2x8x72xf32, #tpu.memory_space<vmem>>, vector<1x8x72xf32>
    %88 = vector.shape_cast %87 : vector<1x8x72xf32> to vector<8x72xf32>
    %89 = vector.extract_strided_slice %88 {offsets = [0, 0], sizes = [4, 72], strides = [1, 1]} : vector<8x72xf32> to vector<4x72xf32>
    %cst = arith.constant dense<0.000000e+00> : vector<324x72xf32>
    %90 = tpu.matmul %86, %89, %cst {dimension_numbers = #tpu.dot_dimension_numbers<[1], [0], [0], [1], [0, 0, 1, 1], [], []>} : vector<324x4xf32>, vector<4x72xf32>, vector<324x72xf32> -> vector<324x72xf32>
    %cst_30 = arith.constant 0.000000e+00 : f32
    %91 = vector.broadcast %cst_30 : f32 to vector<286x8xf32>
    %92 = vector.extract_strided_slice %90 {offsets = [0, 0], sizes = [286, 8], strides = [1, 1]} : vector<324x72xf32> to vector<286x8xf32>
    %93 = arith.addf %91, %92 : vector<286x8xf32>
    %94 = vector.extract_strided_slice %90 {offsets = [1, 8], sizes = [286, 8], strides = [1, 1]} : vector<324x72xf32> to vector<286x8xf32>
    %95 = arith.addf %93, %94 : vector<286x8xf32>
    %96 = vector.extract_strided_slice %90 {offsets = [2, 16], sizes = [286, 8], strides = [1, 1]} : vector<324x72xf32> to vector<286x8xf32>
    %97 = arith.addf %95, %96 : vector<286x8xf32>
    %98 = vector.extract_strided_slice %90 {offsets = [18, 24], sizes = [286, 8], strides = [1, 1]} : vector<324x72xf32> to vector<286x8xf32>
    %99 = arith.addf %97, %98 : vector<286x8xf32>
    %100 = vector.extract_strided_slice %90 {offsets = [19, 32], sizes = [286, 8], strides = [1, 1]} : vector<324x72xf32> to vector<286x8xf32>
    %101 = arith.addf %99, %100 : vector<286x8xf32>
    %102 = vector.extract_strided_slice %90 {offsets = [20, 40], sizes = [286, 8], strides = [1, 1]} : vector<324x72xf32> to vector<286x8xf32>
    %103 = arith.addf %101, %102 : vector<286x8xf32>
    %104 = vector.extract_strided_slice %90 {offsets = [36, 48], sizes = [286, 8], strides = [1, 1]} : vector<324x72xf32> to vector<286x8xf32>
    %105 = arith.addf %103, %104 : vector<286x8xf32>
    %106 = vector.extract_strided_slice %90 {offsets = [37, 56], sizes = [286, 8], strides = [1, 1]} : vector<324x72xf32> to vector<286x8xf32>
    %107 = arith.addf %105, %106 : vector<286x8xf32>
    %108 = vector.extract_strided_slice %90 {offsets = [38, 64], sizes = [286, 8], strides = [1, 1]} : vector<324x72xf32> to vector<286x8xf32>
    %109 = arith.addf %107, %108 : vector<286x8xf32>
    %c0_31 = arith.constant 0 : index
    %c0_32 = arith.constant 0 : index
    %c0_33 = arith.constant 0 : index
    %110 = vector.load %arg3[%c0_31, %c0_32, %c0_33] : memref<2x1x8xf32, #tpu.memory_space<vmem>>, vector<1x1x8xf32>
    %111 = vector.shape_cast %110 : vector<1x1x8xf32> to vector<1x8xf32>
    %112 = vector.broadcast %111 : vector<1x8xf32> to vector<286x8xf32>
    %113 = arith.addf %109, %112 : vector<286x8xf32>
    %cst_34 = arith.constant 0.000000e+00 : f32
    %114 = vector.broadcast %cst_34 : f32 to vector<286x8xf32>
    %115 = arith.maximumf %113, %114 : vector<286x8xf32>
    %116 = vector.extract_strided_slice %115 {offsets = [1, 0], sizes = [1, 8], strides = [1, 1]} : vector<286x8xf32> to vector<1x8xf32>
    %117 = vector.extract_strided_slice %115 {offsets = [0, 0], sizes = [16, 8], strides = [1, 1]} : vector<286x8xf32> to vector<16x8xf32>
    %118 = vector.extract_strided_slice %115 {offsets = [14, 0], sizes = [1, 8], strides = [1, 1]} : vector<286x8xf32> to vector<1x8xf32>
    %119 = tpu.concatenate %116, %117, %118 in 0 : vector<1x8xf32>, vector<16x8xf32>, vector<1x8xf32> -> vector<18x8xf32>
    %c18_35 = arith.constant 18 : index
    %c0_36 = arith.constant 0 : index
    %120 = vector.load %arg5[%c18_35, %c0_36] : memref<324x8xf32, #tpu.memory_space<vmem>>, vector<18x8xf32>
    tpu.vector_store %arg5[%c18_35, %c0_36], %119 {strides = array<i32>} : memref<324x8xf32, #tpu.memory_space<vmem>>, vector<18x8xf32>,
    %121 = vector.extract_strided_slice %115 {offsets = [19, 0], sizes = [1, 8], strides = [1, 1]} : vector<286x8xf32> to vector<1x8xf32>
    %122 = vector.extract_strided_slice %115 {offsets = [18, 0], sizes = [16, 8], strides = [1, 1]} : vector<286x8xf32> to vector<16x8xf32>
    %123 = vector.extract_strided_slice %115 {offsets = [32, 0], sizes = [1, 8], strides = [1, 1]} : vector<286x8xf32> to vector<1x8xf32>
    %124 = tpu.concatenate %121, %122, %123 in 0 : vector<1x8xf32>, vector<16x8xf32>, vector<1x8xf32> -> vector<18x8xf32>
    %c36_37 = arith.constant 36 : index
    %c0_38 = arith.constant 0 : index
    %125 = vector.load %arg5[%c36_37, %c0_38] : memref<324x8xf32, #tpu.memory_space<vmem>>, vector<18x8xf32>
    tpu.vector_store %arg5[%c36_37, %c0_38], %124 {strides = array<i32>} : memref<324x8xf32, #tpu.memory_space<vmem>>, vector<18x8xf32>,
    %126 = vector.extract_strided_slice %115 {offsets = [37, 0], sizes = [1, 8], strides = [1, 1]} : vector<286x8xf32> to vector<1x8xf32>
    %127 = vector.extract_strided_slice %115 {offsets = [36, 0], sizes = [16, 8], strides = [1, 1]} : vector<286x8xf32> to vector<16x8xf32>
    %128 = vector.extract_strided_slice %115 {offsets = [50, 0], sizes = [1, 8], strides = [1, 1]} : vector<286x8xf32> to vector<1x8xf32>
    %129 = tpu.concatenate %126, %127, %128 in 0 : vector<1x8xf32>, vector<16x8xf32>, vector<1x8xf32> -> vector<18x8xf32>
    %c54_39 = arith.constant 54 : index
    %c0_40 = arith.constant 0 : index
    %130 = vector.load %arg5[%c54_39, %c0_40] : memref<324x8xf32, #tpu.memory_space<vmem>>, vector<18x8xf32>
    tpu.vector_store %arg5[%c54_39, %c0_40], %129 {strides = array<i32>} : memref<324x8xf32, #tpu.memory_space<vmem>>, vector<18x8xf32>,
    %131 = vector.extract_strided_slice %115 {offsets = [55, 0], sizes = [1, 8], strides = [1, 1]} : vector<286x8xf32> to vector<1x8xf32>
    %132 = vector.extract_strided_slice %115 {offsets = [54, 0], sizes = [16, 8], strides = [1, 1]} : vector<286x8xf32> to vector<16x8xf32>
    %133 = vector.extract_strided_slice %115 {offsets = [68, 0], sizes = [1, 8], strides = [1, 1]} : vector<286x8xf32> to vector<1x8xf32>
    %134 = tpu.concatenate %131, %132, %133 in 0 : vector<1x8xf32>, vector<16x8xf32>, vector<1x8xf32> -> vector<18x8xf32>
    %c72_41 = arith.constant 72 : index
    %c0_42 = arith.constant 0 : index
    %135 = vector.load %arg5[%c72_41, %c0_42] : memref<324x8xf32, #tpu.memory_space<vmem>>, vector<18x8xf32>
    tpu.vector_store %arg5[%c72_41, %c0_42], %134 {strides = array<i32>} : memref<324x8xf32, #tpu.memory_space<vmem>>, vector<18x8xf32>,
    %136 = vector.extract_strided_slice %115 {offsets = [73, 0], sizes = [1, 8], strides = [1, 1]} : vector<286x8xf32> to vector<1x8xf32>
    %137 = vector.extract_strided_slice %115 {offsets = [72, 0], sizes = [16, 8], strides = [1, 1]} : vector<286x8xf32> to vector<16x8xf32>
    %138 = vector.extract_strided_slice %115 {offsets = [86, 0], sizes = [1, 8], strides = [1, 1]} : vector<286x8xf32> to vector<1x8xf32>
    %139 = tpu.concatenate %136, %137, %138 in 0 : vector<1x8xf32>, vector<16x8xf32>, vector<1x8xf32> -> vector<18x8xf32>
    %c90_43 = arith.constant 90 : index
    %c0_44 = arith.constant 0 : index
    %140 = vector.load %arg5[%c90_43, %c0_44] : memref<324x8xf32, #tpu.memory_space<vmem>>, vector<18x8xf32>
    tpu.vector_store %arg5[%c90_43, %c0_44], %139 {strides = array<i32>} : memref<324x8xf32, #tpu.memory_space<vmem>>, vector<18x8xf32>,
    %141 = vector.extract_strided_slice %115 {offsets = [91, 0], sizes = [1, 8], strides = [1, 1]} : vector<286x8xf32> to vector<1x8xf32>
    %142 = vector.extract_strided_slice %115 {offsets = [90, 0], sizes = [16, 8], strides = [1, 1]} : vector<286x8xf32> to vector<16x8xf32>
    %143 = vector.extract_strided_slice %115 {offsets = [104, 0], sizes = [1, 8], strides = [1, 1]} : vector<286x8xf32> to vector<1x8xf32>
    %144 = tpu.concatenate %141, %142, %143 in 0 : vector<1x8xf32>, vector<16x8xf32>, vector<1x8xf32> -> vector<18x8xf32>
    %c108_45 = arith.constant 108 : index
    %c0_46 = arith.constant 0 : index
    %145 = vector.load %arg5[%c108_45, %c0_46] : memref<324x8xf32, #tpu.memory_space<vmem>>, vector<18x8xf32>
    tpu.vector_store %arg5[%c108_45, %c0_46], %144 {strides = array<i32>} : memref<324x8xf32, #tpu.memory_space<vmem>>, vector<18x8xf32>,
    %146 = vector.extract_strided_slice %115 {offsets = [109, 0], sizes = [1, 8], strides = [1, 1]} : vector<286x8xf32> to vector<1x8xf32>
    %147 = vector.extract_strided_slice %115 {offsets = [108, 0], sizes = [16, 8], strides = [1, 1]} : vector<286x8xf32> to vector<16x8xf32>
    %148 = vector.extract_strided_slice %115 {offsets = [122, 0], sizes = [1, 8], strides = [1, 1]} : vector<286x8xf32> to vector<1x8xf32>
    %149 = tpu.concatenate %146, %147, %148 in 0 : vector<1x8xf32>, vector<16x8xf32>, vector<1x8xf32> -> vector<18x8xf32>
    %c126_47 = arith.constant 126 : index
    %c0_48 = arith.constant 0 : index
    %150 = vector.load %arg5[%c126_47, %c0_48] : memref<324x8xf32, #tpu.memory_space<vmem>>, vector<18x8xf32>
    tpu.vector_store %arg5[%c126_47, %c0_48], %149 {strides = array<i32>} : memref<324x8xf32, #tpu.memory_space<vmem>>, vector<18x8xf32>,
    %151 = vector.extract_strided_slice %115 {offsets = [127, 0], sizes = [1, 8], strides = [1, 1]} : vector<286x8xf32> to vector<1x8xf32>
    %152 = vector.extract_strided_slice %115 {offsets = [126, 0], sizes = [16, 8], strides = [1, 1]} : vector<286x8xf32> to vector<16x8xf32>
    %153 = vector.extract_strided_slice %115 {offsets = [140, 0], sizes = [1, 8], strides = [1, 1]} : vector<286x8xf32> to vector<1x8xf32>
    %154 = tpu.concatenate %151, %152, %153 in 0 : vector<1x8xf32>, vector<16x8xf32>, vector<1x8xf32> -> vector<18x8xf32>
    %c144_49 = arith.constant 144 : index
    %c0_50 = arith.constant 0 : index
    %155 = vector.load %arg5[%c144_49, %c0_50] : memref<324x8xf32, #tpu.memory_space<vmem>>, vector<18x8xf32>
    tpu.vector_store %arg5[%c144_49, %c0_50], %154 {strides = array<i32>} : memref<324x8xf32, #tpu.memory_space<vmem>>, vector<18x8xf32>,
    %156 = vector.extract_strided_slice %115 {offsets = [145, 0], sizes = [1, 8], strides = [1, 1]} : vector<286x8xf32> to vector<1x8xf32>
    %157 = vector.extract_strided_slice %115 {offsets = [144, 0], sizes = [16, 8], strides = [1, 1]} : vector<286x8xf32> to vector<16x8xf32>
    %158 = vector.extract_strided_slice %115 {offsets = [158, 0], sizes = [1, 8], strides = [1, 1]} : vector<286x8xf32> to vector<1x8xf32>
    %159 = tpu.concatenate %156, %157, %158 in 0 : vector<1x8xf32>, vector<16x8xf32>, vector<1x8xf32> -> vector<18x8xf32>
    %c162_51 = arith.constant 162 : index
    %c0_52 = arith.constant 0 : index
    %160 = vector.load %arg5[%c162_51, %c0_52] : memref<324x8xf32, #tpu.memory_space<vmem>>, vector<18x8xf32>
    tpu.vector_store %arg5[%c162_51, %c0_52], %159 {strides = array<i32>} : memref<324x8xf32, #tpu.memory_space<vmem>>, vector<18x8xf32>,
    %161 = vector.extract_strided_slice %115 {offsets = [163, 0], sizes = [1, 8], strides = [1, 1]} : vector<286x8xf32> to vector<1x8xf32>
    %162 = vector.extract_strided_slice %115 {offsets = [162, 0], sizes = [16, 8], strides = [1, 1]} : vector<286x8xf32> to vector<16x8xf32>
    %163 = vector.extract_strided_slice %115 {offsets = [176, 0], sizes = [1, 8], strides = [1, 1]} : vector<286x8xf32> to vector<1x8xf32>
    %164 = tpu.concatenate %161, %162, %163 in 0 : vector<1x8xf32>, vector<16x8xf32>, vector<1x8xf32> -> vector<18x8xf32>
    %c180_53 = arith.constant 180 : index
    %c0_54 = arith.constant 0 : index
    %165 = vector.load %arg5[%c180_53, %c0_54] : memref<324x8xf32, #tpu.memory_space<vmem>>, vector<18x8xf32>
    tpu.vector_store %arg5[%c180_53, %c0_54], %164 {strides = array<i32>} : memref<324x8xf32, #tpu.memory_space<vmem>>, vector<18x8xf32>,
    %166 = vector.extract_strided_slice %115 {offsets = [181, 0], sizes = [1, 8], strides = [1, 1]} : vector<286x8xf32> to vector<1x8xf32>
    %167 = vector.extract_strided_slice %115 {offsets = [180, 0], sizes = [16, 8], strides = [1, 1]} : vector<286x8xf32> to vector<16x8xf32>
    %168 = vector.extract_strided_slice %115 {offsets = [194, 0], sizes = [1, 8], strides = [1, 1]} : vector<286x8xf32> to vector<1x8xf32>
    %169 = tpu.concatenate %166, %167, %168 in 0 : vector<1x8xf32>, vector<16x8xf32>, vector<1x8xf32> -> vector<18x8xf32>
    %c198_55 = arith.constant 198 : index
    %c0_56 = arith.constant 0 : index
    %170 = vector.load %arg5[%c198_55, %c0_56] : memref<324x8xf32, #tpu.memory_space<vmem>>, vector<18x8xf32>
    tpu.vector_store %arg5[%c198_55, %c0_56], %169 {strides = array<i32>} : memref<324x8xf32, #tpu.memory_space<vmem>>, vector<18x8xf32>,
    %171 = vector.extract_strided_slice %115 {offsets = [199, 0], sizes = [1, 8], strides = [1, 1]} : vector<286x8xf32> to vector<1x8xf32>
    %172 = vector.extract_strided_slice %115 {offsets = [198, 0], sizes = [16, 8], strides = [1, 1]} : vector<286x8xf32> to vector<16x8xf32>
    %173 = vector.extract_strided_slice %115 {offsets = [212, 0], sizes = [1, 8], strides = [1, 1]} : vector<286x8xf32> to vector<1x8xf32>
    %174 = tpu.concatenate %171, %172, %173 in 0 : vector<1x8xf32>, vector<16x8xf32>, vector<1x8xf32> -> vector<18x8xf32>
    %c216_57 = arith.constant 216 : index
    %c0_58 = arith.constant 0 : index
    %175 = vector.load %arg5[%c216_57, %c0_58] : memref<324x8xf32, #tpu.memory_space<vmem>>, vector<18x8xf32>
    tpu.vector_store %arg5[%c216_57, %c0_58], %174 {strides = array<i32>} : memref<324x8xf32, #tpu.memory_space<vmem>>, vector<18x8xf32>,
    %176 = vector.extract_strided_slice %115 {offsets = [217, 0], sizes = [1, 8], strides = [1, 1]} : vector<286x8xf32> to vector<1x8xf32>
    %177 = vector.extract_strided_slice %115 {offsets = [216, 0], sizes = [16, 8], strides = [1, 1]} : vector<286x8xf32> to vector<16x8xf32>
    %178 = vector.extract_strided_slice %115 {offsets = [230, 0], sizes = [1, 8], strides = [1, 1]} : vector<286x8xf32> to vector<1x8xf32>
    %179 = tpu.concatenate %176, %177, %178 in 0 : vector<1x8xf32>, vector<16x8xf32>, vector<1x8xf32> -> vector<18x8xf32>
    %c234_59 = arith.constant 234 : index
    %c0_60 = arith.constant 0 : index
    %180 = vector.load %arg5[%c234_59, %c0_60] : memref<324x8xf32, #tpu.memory_space<vmem>>, vector<18x8xf32>
    tpu.vector_store %arg5[%c234_59, %c0_60], %179 {strides = array<i32>} : memref<324x8xf32, #tpu.memory_space<vmem>>, vector<18x8xf32>,
    %181 = vector.extract_strided_slice %115 {offsets = [235, 0], sizes = [1, 8], strides = [1, 1]} : vector<286x8xf32> to vector<1x8xf32>
    %182 = vector.extract_strided_slice %115 {offsets = [234, 0], sizes = [16, 8], strides = [1, 1]} : vector<286x8xf32> to vector<16x8xf32>
    %183 = vector.extract_strided_slice %115 {offsets = [248, 0], sizes = [1, 8], strides = [1, 1]} : vector<286x8xf32> to vector<1x8xf32>
    %184 = tpu.concatenate %181, %182, %183 in 0 : vector<1x8xf32>, vector<16x8xf32>, vector<1x8xf32> -> vector<18x8xf32>
    %c252_61 = arith.constant 252 : index
    %c0_62 = arith.constant 0 : index
    %185 = vector.load %arg5[%c252_61, %c0_62] : memref<324x8xf32, #tpu.memory_space<vmem>>, vector<18x8xf32>
    tpu.vector_store %arg5[%c252_61, %c0_62], %184 {strides = array<i32>} : memref<324x8xf32, #tpu.memory_space<vmem>>, vector<18x8xf32>,
    %186 = vector.extract_strided_slice %115 {offsets = [253, 0], sizes = [1, 8], strides = [1, 1]} : vector<286x8xf32> to vector<1x8xf32>
    %187 = vector.extract_strided_slice %115 {offsets = [252, 0], sizes = [16, 8], strides = [1, 1]} : vector<286x8xf32> to vector<16x8xf32>
    %188 = vector.extract_strided_slice %115 {offsets = [266, 0], sizes = [1, 8], strides = [1, 1]} : vector<286x8xf32> to vector<1x8xf32>
    %189 = tpu.concatenate %186, %187, %188 in 0 : vector<1x8xf32>, vector<16x8xf32>, vector<1x8xf32> -> vector<18x8xf32>
    %c270_63 = arith.constant 270 : index
    %c0_64 = arith.constant 0 : index
    %190 = vector.load %arg5[%c270_63, %c0_64] : memref<324x8xf32, #tpu.memory_space<vmem>>, vector<18x8xf32>
    tpu.vector_store %arg5[%c270_63, %c0_64], %189 {strides = array<i32>} : memref<324x8xf32, #tpu.memory_space<vmem>>, vector<18x8xf32>,
    %191 = vector.extract_strided_slice %115 {offsets = [271, 0], sizes = [1, 8], strides = [1, 1]} : vector<286x8xf32> to vector<1x8xf32>
    %192 = vector.extract_strided_slice %115 {offsets = [270, 0], sizes = [16, 8], strides = [1, 1]} : vector<286x8xf32> to vector<16x8xf32>
    %193 = vector.extract_strided_slice %115 {offsets = [284, 0], sizes = [1, 8], strides = [1, 1]} : vector<286x8xf32> to vector<1x8xf32>
    %194 = tpu.concatenate %191, %192, %193 in 0 : vector<1x8xf32>, vector<16x8xf32>, vector<1x8xf32> -> vector<18x8xf32>
    %c288_65 = arith.constant 288 : index
    %c0_66 = arith.constant 0 : index
    %195 = vector.load %arg5[%c288_65, %c0_66] : memref<324x8xf32, #tpu.memory_space<vmem>>, vector<18x8xf32>
    tpu.vector_store %arg5[%c288_65, %c0_66], %194 {strides = array<i32>} : memref<324x8xf32, #tpu.memory_space<vmem>>, vector<18x8xf32>,
    %c36_67 = arith.constant 36 : index
    %c0_68 = arith.constant 0 : index
    %196 = vector.load %arg5[%c36_67, %c0_68] : memref<324x8xf32, #tpu.memory_space<vmem>>, vector<18x8xf32>
    %c0_69 = arith.constant 0 : index
    %c0_70 = arith.constant 0 : index
    %197 = vector.load %arg5[%c0_69, %c0_70] : memref<324x8xf32, #tpu.memory_space<vmem>>, vector<18x8xf32>
    tpu.vector_store %arg5[%c0_69, %c0_70], %196 {strides = array<i32>} : memref<324x8xf32, #tpu.memory_space<vmem>>, vector<18x8xf32>,
    %c270_71 = arith.constant 270 : index
    %c0_72 = arith.constant 0 : index
    %198 = vector.load %arg5[%c270_71, %c0_72] : memref<324x8xf32, #tpu.memory_space<vmem>>, vector<18x8xf32>
    %c306_73 = arith.constant 306 : index
    %c0_74 = arith.constant 0 : index
    %199 = vector.load %arg5[%c306_73, %c0_74] : memref<324x8xf32, #tpu.memory_space<vmem>>, vector<18x8xf32>
    tpu.vector_store %arg5[%c306_73, %c0_74], %198 {strides = array<i32>} : memref<324x8xf32, #tpu.memory_space<vmem>>, vector<18x8xf32>,
    %c0_75 = arith.constant 0 : index
    %c0_76 = arith.constant 0 : index
    %200 = vector.load %arg5[%c0_75, %c0_76] : memref<324x8xf32, #tpu.memory_space<vmem>>, vector<324x8xf32>
    %c1 = arith.constant 1 : index
    %c0_77 = arith.constant 0 : index
    %c0_78 = arith.constant 0 : index
    %201 = vector.load %arg2[%c1, %c0_77, %c0_78] : memref<2x8x72xf32, #tpu.memory_space<vmem>>, vector<1x8x72xf32>
    %202 = vector.shape_cast %201 : vector<1x8x72xf32> to vector<8x72xf32>
    %cst_79 = arith.constant dense<0.000000e+00> : vector<324x72xf32>
    %203 = tpu.matmul %200, %202, %cst_79 {dimension_numbers = #tpu.dot_dimension_numbers<[1], [0], [0], [1], [0, 0, 1, 1], [], []>} : vector<324x8xf32>, vector<8x72xf32>, vector<324x72xf32> -> vector<324x72xf32>
    %cst_80 = arith.constant 0.000000e+00 : f32
    %204 = vector.broadcast %cst_80 : f32 to vector<286x8xf32>
    %205 = vector.extract_strided_slice %203 {offsets = [0, 0], sizes = [286, 8], strides = [1, 1]} : vector<324x72xf32> to vector<286x8xf32>
    %206 = arith.addf %204, %205 : vector<286x8xf32>
    %207 = vector.extract_strided_slice %203 {offsets = [1, 8], sizes = [286, 8], strides = [1, 1]} : vector<324x72xf32> to vector<286x8xf32>
    %208 = arith.addf %206, %207 : vector<286x8xf32>
    %209 = vector.extract_strided_slice %203 {offsets = [2, 16], sizes = [286, 8], strides = [1, 1]} : vector<324x72xf32> to vector<286x8xf32>
    %210 = arith.addf %208, %209 : vector<286x8xf32>
    %211 = vector.extract_strided_slice %203 {offsets = [18, 24], sizes = [286, 8], strides = [1, 1]} : vector<324x72xf32> to vector<286x8xf32>
    %212 = arith.addf %210, %211 : vector<286x8xf32>
    %213 = vector.extract_strided_slice %203 {offsets = [19, 32], sizes = [286, 8], strides = [1, 1]} : vector<324x72xf32> to vector<286x8xf32>
    %214 = arith.addf %212, %213 : vector<286x8xf32>
    %215 = vector.extract_strided_slice %203 {offsets = [20, 40], sizes = [286, 8], strides = [1, 1]} : vector<324x72xf32> to vector<286x8xf32>
    %216 = arith.addf %214, %215 : vector<286x8xf32>
    %217 = vector.extract_strided_slice %203 {offsets = [36, 48], sizes = [286, 8], strides = [1, 1]} : vector<324x72xf32> to vector<286x8xf32>
    %218 = arith.addf %216, %217 : vector<286x8xf32>
    %219 = vector.extract_strided_slice %203 {offsets = [37, 56], sizes = [286, 8], strides = [1, 1]} : vector<324x72xf32> to vector<286x8xf32>
    %220 = arith.addf %218, %219 : vector<286x8xf32>
    %221 = vector.extract_strided_slice %203 {offsets = [38, 64], sizes = [286, 8], strides = [1, 1]} : vector<324x72xf32> to vector<286x8xf32>
    %222 = arith.addf %220, %221 : vector<286x8xf32>
    %c1_81 = arith.constant 1 : index
    %c0_82 = arith.constant 0 : index
    %c0_83 = arith.constant 0 : index
    %223 = vector.load %arg3[%c1_81, %c0_82, %c0_83] : memref<2x1x8xf32, #tpu.memory_space<vmem>>, vector<1x1x8xf32>
    %224 = vector.shape_cast %223 : vector<1x1x8xf32> to vector<1x8xf32>
    %225 = vector.broadcast %224 : vector<1x8xf32> to vector<286x8xf32>
    %226 = arith.addf %222, %225 : vector<286x8xf32>
    %cst_84 = arith.constant 0.000000e+00 : f32
    %227 = vector.broadcast %cst_84 : f32 to vector<286x8xf32>
    %228 = arith.maximumf %226, %227 : vector<286x8xf32>
    %229 = vector.extract_strided_slice %228 {offsets = [0, 0], sizes = [16, 8], strides = [1, 1]} : vector<286x8xf32> to vector<16x8xf32>
    %230 = vector.extract_strided_slice %228 {offsets = [18, 0], sizes = [16, 8], strides = [1, 1]} : vector<286x8xf32> to vector<16x8xf32>
    %231 = vector.extract_strided_slice %228 {offsets = [36, 0], sizes = [16, 8], strides = [1, 1]} : vector<286x8xf32> to vector<16x8xf32>
    %232 = vector.extract_strided_slice %228 {offsets = [54, 0], sizes = [16, 8], strides = [1, 1]} : vector<286x8xf32> to vector<16x8xf32>
    %233 = vector.extract_strided_slice %228 {offsets = [72, 0], sizes = [16, 8], strides = [1, 1]} : vector<286x8xf32> to vector<16x8xf32>
    %234 = vector.extract_strided_slice %228 {offsets = [90, 0], sizes = [16, 8], strides = [1, 1]} : vector<286x8xf32> to vector<16x8xf32>
    %235 = vector.extract_strided_slice %228 {offsets = [108, 0], sizes = [16, 8], strides = [1, 1]} : vector<286x8xf32> to vector<16x8xf32>
    %236 = vector.extract_strided_slice %228 {offsets = [126, 0], sizes = [16, 8], strides = [1, 1]} : vector<286x8xf32> to vector<16x8xf32>
    %237 = vector.extract_strided_slice %228 {offsets = [144, 0], sizes = [16, 8], strides = [1, 1]} : vector<286x8xf32> to vector<16x8xf32>
    %238 = vector.extract_strided_slice %228 {offsets = [162, 0], sizes = [16, 8], strides = [1, 1]} : vector<286x8xf32> to vector<16x8xf32>
    %239 = vector.extract_strided_slice %228 {offsets = [180, 0], sizes = [16, 8], strides = [1, 1]} : vector<286x8xf32> to vector<16x8xf32>
    %240 = vector.extract_strided_slice %228 {offsets = [198, 0], sizes = [16, 8], strides = [1, 1]} : vector<286x8xf32> to vector<16x8xf32>
    %241 = vector.extract_strided_slice %228 {offsets = [216, 0], sizes = [16, 8], strides = [1, 1]} : vector<286x8xf32> to vector<16x8xf32>
    %242 = vector.extract_strided_slice %228 {offsets = [234, 0], sizes = [16, 8], strides = [1, 1]} : vector<286x8xf32> to vector<16x8xf32>
    %243 = vector.extract_strided_slice %228 {offsets = [252, 0], sizes = [16, 8], strides = [1, 1]} : vector<286x8xf32> to vector<16x8xf32>
    %244 = vector.extract_strided_slice %228 {offsets = [270, 0], sizes = [16, 8], strides = [1, 1]} : vector<286x8xf32> to vector<16x8xf32>
    %245 = tpu.concatenate %229, %230, %231, %232, %233, %234, %235, %236, %237, %238, %239, %240, %241, %242, %243, %244 in 0 : vector<16x8xf32>, vector<16x8xf32>, vector<16x8xf32>, vector<16x8xf32>, vector<16x8xf32>, vector<16x8xf32>, vector<16x8xf32>, vector<16x8xf32>, vector<16x8xf32>, vector<16x8xf32>, vector<16x8xf32>, vector<16x8xf32>, vector<16x8xf32>, vector<16x8xf32>, vector<16x8xf32>, vector<16x8xf32> -> vector<256x8xf32>
    %c0_85 = arith.constant 0 : index
    %c0_86 = arith.constant 0 : index
    %c0_87 = arith.constant 0 : index
    %246 = vector.load %arg4[%c0_85, %c0_86, %c0_87] : memref<1x256x8xf32, #tpu.memory_space<vmem>>, vector<1x256x8xf32>
    %247 = vector.shape_cast %246 : vector<1x256x8xf32> to vector<256x8xf32>
    %248 = vector.shape_cast %245 : vector<256x8xf32> to vector<1x256x8xf32>
    tpu.vector_store %arg4[%c0_85, %c0_86, %c0_87], %248 {strides = array<i32>} : memref<1x256x8xf32, #tpu.memory_space<vmem>>, vector<1x256x8xf32>,
    return
  }
  func.func @transform_0(%arg0: i32) -> (i32, i32, i32) {
    %c0_i32 = arith.constant 0 : i32
    %c0_i32_0 = arith.constant 0 : i32
    %c0_i32_1 = arith.constant 0 : i32
    return %arg0, %c0_i32, %c0_i32_0 : i32, i32, i32
  }
  func.func @transform_1(%arg0: i32) -> (i32, i32, i32) {
    %c0_i32 = arith.constant 0 : i32
    %c0_i32_0 = arith.constant 0 : i32
    %c0_i32_1 = arith.constant 0 : i32
    %c0_i32_2 = arith.constant 0 : i32
    return %c0_i32, %c0_i32_0, %c0_i32_1 : i32, i32, i32
  }
  func.func @transform_2(%arg0: i32) -> (i32, i32, i32) {
    %c0_i32 = arith.constant 0 : i32
    %c0_i32_0 = arith.constant 0 : i32
    %c0_i32_1 = arith.constant 0 : i32
    %c0_i32_2 = arith.constant 0 : i32
    return %c0_i32, %c0_i32_0, %c0_i32_1 : i32, i32, i32
  }
  func.func @transform_3(%arg0: i32) -> (i32, i32, i32) {
    %c0_i32 = arith.constant 0 : i32
    %c0_i32_0 = arith.constant 0 : i32
    %c0_i32_1 = arith.constant 0 : i32
    return %arg0, %c0_i32, %c0_i32_0 : i32, i32, i32
  }
}

</mosaic_0001>

<bundles_post_ra>
// kernel: conv2d_block_forward.1
= control target key start
LH: loop header
LB: loop body
LE: loop exit
PB: predicated region body
PF: predicated region fallthrough
CT: control target
= control target key end

     0   :  { %s5874_s12 = smov 0   ;;  %s11311_s0 = inlined_call_operand.vmem [shape: f32[2,256,4], index: 0, kind: input, shape index: {}]   ;;  %s11312_s1 = inlined_call_operand.vmem [shape: f32[2,8,72], index: 1, kind: input, shape index: {}]   ;;  %s11313_s2 = inlined_call_operand.vmem [shape: f32[2,1,8], index: 2, kind: input, shape index: {}]   ;;  %s11314_s3 = inlined_call_operand.vmem [shape: f32[2,256,8], index: 3, kind: output, shape index: {}]  }
   0x1 LB: > { %s5384_s13 = sadd.s32 4294967295, %s5842_s12   ;;  %p5388_p0 = scmp.ge.s32.totalorder %s5842_s12, 1  ;;  %s5842_s12 = sphi %s5874_s12, %s13_s12  }
   0x2   : > { %p137_p1 = scmp.lt.s32.totalorder %s5842_s12, 3 }
   0x4   : > { %p138_p2 = pnand %p5388_p0, %p137_p1 }
   0x6   : > { %141 = sbr.rel (%p138_p2) target bundleno = 1841 (0x731), region = 32 }
   0xd   : > { %v531_v0 = vld [vmem:[%s11312_s1] sm:$0xff]  ;;  %vm655_vm0 = vcmask 1043456   ;;  %p161_p3 = scmp.lt.s32.totalorder %s5384_s13, 1  ;;  %v11315_v1 = vmov 0.0   ;;  %vm5845_vm1 = vmmov 0   ;;  %vm207_vm2 = vcmask 1040384  }
   0xe   : > { %5568 = vmatprep.subr.mxu0 %v11315_v1  ;;  %5570 = vmatprep.mubr.msk.f32.mxu0 %vm5845_vm1, %v11315_v1  ;;  %vm218_vm3 = vcmask 31744   ;;  %vm221_vm4 = vcmask 25600   ;;  %vm1001_vm5 = vcmask 1046528   ;;  %vm1217_vm6 = vcmask 1045504   ;;  %s5846_s20 = smov 120   ;;  %s5847_s21 = smov 112  }
   0xf   : > { %5569 = vmatpush3.msk.msra.mxu0 %vm655_vm0, %v531_v0  ;;  %s12680_s13 = smov (!%p161_p3, %s5384_s13), 1  ;;  %5693 = vmatprep.subr.mxu1 %v11315_v1  ;;  %vm1584_vm7 = vcmask 1044480   ;;  %vm2169_vm8 = vcmask 1042432   ;;  %vm2387_vm9 = vcmask 1041408   ;;  %s5848_s22 = smov 104   ;;  %vm2698_vm10 = vcmask 64512  }
  0x10   : > { %5695 = vmatprep.mubr.msk.f32.mxu1 %vm5845_vm1, %v11315_v1  ;;  %s5482_s16 = sshll.u32 %s12680_s13, 8  ;;  %s5849_s23 = smov 96   ;;  %vm2701_vm11 = vcmask 58368  }
  0x11   : > { %s5900_s19 = scalar_lea.vmem %s11311_s0, %s5482_s16  ;;  %s5850_s24 = smov 88  }
  0x12   : > { %v173_v2 = vld [vmem:[%s5900_s19 + $0x10] sm:$0xff]  ;;  %v174_v3 = vld [vmem:[%s5900_s19 + $0x18] sm:$0xff]  ;;  %v171_v4 = vld [vmem:[%s5900_s19] sm:$0xff]  ;;  %s5851_s25 = smov 80   ;;  %s5852_s26 = smov 72  }
  0x13   : > { %v224_v5 = vrot.slane %v173_v2, 1  ;;  %v227_v6 = vrot.slane %v173_v2, 7  ;;  %v228_v7 = vrot.slane %v174_v3, 7  ;;  %v204_v8 = vrot.slane %v171_v4, 1  ;;  %v172_v9 = vld [vmem:[%s5900_s19 + $0x8] sm:$0xff]  ;;  %v175_v10 = vld [vmem:[%s5900_s19 + $0x20] sm:$0xff]  ;;  %s11135_s9 = scalar_lea.vmem %s11314_s3, %s5482_s16 }
  0x14   : > { %v208_v11 = vrot.slane %v171_v4, 7  ;;  %v233_v12 = vrot.slane %v174_v3, 5  ;;  %v209_v13 = vrot.slane %v172_v9, 7  ;;  %v214_v14 = vrot.slane %v172_v9, 5  ;;  %v176_v15 = vld [vmem:[%s5900_s19 + $0x28] sm:$0xff]  ;;  %v177_v16 = vld [vmem:[%s5900_s19 + $0x30] sm:$0xff] }
  0x15   : > { %v235_v17 = vsel %vm207_vm2, %v224_v5, %v227_v6  ;;  %v229_v18 = vsel %vm207_vm2, %v227_v6, %v228_v7  ;;  %v241_v19 = vrot.slane %v175_v10, 1  ;;  %v244_v20 = vrot.slane %v175_v10, 7  ;;  %v178_v21 = vld [vmem:[%s5900_s19 + $0x38] sm:$0xff]  ;;  %v179_v22 = vld [vmem:[%s5900_s19 + $0x40] sm:$0xff]  ;;  %v180_v27 = vld [vmem:[%s5900_s19 + $0x48] sm:$0xff]  ;;  %s5853_s27 = smov 64  }
  0x16   : > { %237 = vst.msk [vmem:[#allocation2 + $0x24] sm:$0xff] %vm218_vm3, %v235_v17  ;;  %238 = vst.msk [vmem:[#allocation2 + $0x2c] sm:$0xff] %vm218_vm3, %v229_v18  ;;  %v216_v23 = vsel %vm207_vm2, %v204_v8, %v208_v11  ;;  %v236_v24 = vsel %vm207_vm2, %v228_v7, %v233_v12  ;;  %v210_v25 = vsel %vm207_vm2, %v208_v11, %v209_v13  ;;  %v245_v29 = vrot.slane %v176_v15, 7  ;;  %v181_v36 = vld [vmem:[%s5900_s19 + $0x50] sm:$0xff]  ;;  %v182_v41 = vld [vmem:[%s5900_s19 + $0x58] sm:$0xff] }
  0x17   : > { %v217_v26 = vsel %vm207_vm2, %v209_v13, %v214_v14  ;;  %219 = vst.msk [vmem:[#allocation2 + $0x12] sm:$0xff] %vm218_vm3, %v216_v23  ;;  %220 = vst.msk [vmem:[#allocation2 + $0x1a] sm:$0xff] %vm218_vm3, %v210_v25  ;;  %v252_v28 = vsel %vm207_vm2, %v241_v19, %v244_v20  ;;  %v250_v30 = vrot.slane %v176_v15, 5  ;;  %v258_v31 = vrot.slane %v177_v16, 1  ;;  %v183_v42 = vld [vmem:[%s5900_s19 + $0x60] sm:$0xff]  ;;  %v184_v47 = vld [vmem:[%s5900_s19 + $0x68] sm:$0xff] }
  0x18   : > { %239 = vst.msk [vmem:[#allocation2 + $0x34] sm:$0x3] %vm221_vm4, %v236_v24  ;;  %222 = vst.msk [vmem:[#allocation2 + $0x22] sm:$0x3] %vm221_vm4, %v217_v26  ;;  %v261_v32 = vrot.slane %v177_v16, 7  ;;  %v262_v33 = vrot.slane %v178_v21, 7  ;;  %v246_v37 = vsel %vm207_vm2, %v244_v20, %v245_v29 }
  0x19   : > { %254 = vst.msk [vmem:[#allocation2 + $0x36] sm:$0xff] %vm218_vm3, %v252_v28  ;;  %v267_v34 = vrot.slane %v178_v21, 5  ;;  %v275_v35 = vrot.slane %v179_v22, 1  ;;  %v253_v38 = vsel %vm207_vm2, %v245_v29, %v250_v30  ;;  %v278_v39 = vrot.slane %v179_v22, 7  ;;  %255 = vst.msk [vmem:[#allocation2 + $0x3e] sm:$0xff] %vm218_vm3, %v246_v37  ;;  %v185_v52 = vld [vmem:[%s5900_s19 + $0x70] sm:$0xff] }
  0x1a   : > { %v279_v40 = vrot.slane %v180_v27, 7  ;;  %256 = vst.msk [vmem:[#allocation2 + $0x46] sm:$0x3] %vm221_vm4, %v253_v38  ;;  %v269_v43 = vsel %vm207_vm2, %v258_v31, %v261_v32  ;;  %v263_v44 = vsel %vm207_vm2, %v261_v32, %v262_v33  ;;  %v284_v46 = vrot.slane %v180_v27, 5  ;;  %v186_v57 = vld [vmem:[%s5900_s19 + $0x78] sm:$0xff]  ;;  %v187_v0 = vld [vmem:[%s5900_s19 + $0x80] sm:$0xff] }
  0x1b   : > { %v270_v45 = vsel %vm207_vm2, %v262_v33, %v267_v34  ;;  %271 = vst.msk [vmem:[#allocation2 + $0x48] sm:$0xff] %vm218_vm3, %v269_v43  ;;  %272 = vst.msk [vmem:[#allocation2 + $0x50] sm:$0xff] %vm218_vm3, %v263_v44  ;;  %v286_v48 = vsel %vm207_vm2, %v275_v35, %v278_v39  ;;  %v292_v50 = vrot.slane %v181_v36, 1  ;;  %v295_v51 = vrot.slane %v181_v36, 7  ;;  %v5956_v7 = vld [vmem:[%s5900_s19 + $0x88] sm:$0xff]  ;;  %v189_v43 = vld [vmem:[%s5900_s19 + $0x90] sm:$0xff] }
  0x1c   : > { %273 = vst.msk [vmem:[#allocation2 + $0x58] sm:$0x3] %vm221_vm4, %v270_v45  ;;  %v280_v49 = vsel %vm207_vm2, %v278_v39, %v279_v40  ;;  %v287_v53 = vsel %vm207_vm2, %v279_v40, %v284_v46  ;;  %v296_v54 = vrot.slane %v182_v41, 7  ;;  %v301_v55 = vrot.slane %v182_v41, 5 }
  0x1d   : > { %288 = vst.msk [vmem:[#allocation2 + $0x5a] sm:$0xff] %vm218_vm3, %v286_v48  ;;  %289 = vst.msk [vmem:[#allocation2 + $0x62] sm:$0xff] %vm218_vm3, %v280_v49  ;;  %v309_v56 = vrot.slane %v183_v42, 1  ;;  %v478_v58 = vld [vmem:[#allocation2 + $0x24] sm:$0xff]  ;;  %v479_v59 = vld [vmem:[#allocation2 + $0x2c] sm:$0xff]  ;;  %v303_v60 = vsel %vm207_vm2, %v292_v50, %v295_v51  ;;  %v312_v61 = vrot.slane %v183_v42, 7 }
  0x1e   : > { %290 = vst.msk [vmem:[#allocation2 + $0x6a] sm:$0x3] %vm221_vm4, %v287_v53  ;;  %v313_v62 = vrot.slane %v184_v47, 7  ;;  %v318_v63 = vrot.slane %v184_v47, 5  ;;  %v297_v3 = vsel %vm207_vm2, %v295_v51, %v296_v54  ;;  %v304_v4 = vsel %vm207_vm2, %v296_v54, %v301_v55  ;;  %v493_v24 = vld [vmem:[#allocation2 + $0x18] sm:$0xff]  ;;  %v495_v26 = vld [vmem:[#allocation2 + $0x28] sm:$0xff] }
  0x1f   : > { %481 = vst.msk [vmem:[#allocation2] sm:$0xff] %vm218_vm3, %v478_v58  ;;  %482 = vst.msk [vmem:[#allocation2 + $0x8] sm:$0xff] %vm218_vm3, %v479_v59  ;;  %v480_v2 = vld [vmem:[#allocation2 + $0x34] sm:$0x3]  ;;  %v326_v5 = vrot.slane %v185_v52, 1  ;;  %v329_v6 = vrot.slane %v185_v52, 7  ;;  %v320_v8 = vsel %vm207_vm2, %v309_v56, %v312_v61 }
  0x20   : > { %305 = vst.msk [vmem:[#allocation2 + $0x6c] sm:$0xff] %vm218_vm3, %v303_v60  ;;  %306 = vst.msk [vmem:[#allocation2 + $0x74] sm:$0xff] %vm218_vm3, %v297_v3  ;;  %v314_v9 = vsel %vm207_vm2, %v312_v61, %v313_v62  ;;  %v321_v10 = vsel %vm207_vm2, %v313_v62, %v318_v63  ;;  %v330_v11 = vrot.slane %v186_v57, 7  ;;  %v335_v13 = vrot.slane %v186_v57, 5  ;;  %v494_v25 = vld [vmem:[#allocation2 + $0x20] sm:$0xff]  ;;  %v496_v27 = vld [vmem:[#allocation2 + $0x30] sm:$0xff] }
  0x21   : > { %483 = vst.msk [vmem:[#allocation2 + $0x10] sm:$0x3] %vm221_vm4, %v480_v2  ;;  %307 = vst.msk [vmem:[#allocation2 + $0x7c] sm:$0x3] %vm221_vm4, %v304_v4  ;;  %v337_v12 = vsel %vm207_vm2, %v326_v5, %v329_v6  ;;  %v343_v14 = vrot.slane %v187_v0, 1  ;;  %v346_v15 = vrot.slane %v187_v0, 7 }
  0x22   : > { %322 = vst.msk [vmem:[#allocation2 + $0x7e] sm:$0xff] %vm218_vm3, %v320_v8  ;;  %323 = vst.msk [vmem:[#allocation2 + $0x86] sm:$0xff] %vm218_vm3, %v314_v9  ;;  %v331_v16 = vsel %vm207_vm2, %v329_v6, %v330_v11  ;;  %v347_v17 = vrot.slane %v5956_v7, 7  ;;  %v338_v18 = vsel %vm207_vm2, %v330_v11, %v335_v13  ;;  %v497_v28 = vld [vmem:[#allocation2 + $0x38] sm:$0xff]  ;;  %v498_v29 = vld [vmem:[#allocation2 + $0x40] sm:$0xff]  ;;  %v352_v44 = vrot.slane %v5956_v7, 5 }
  0x23   : > { %324 = vst.msk [vmem:[#allocation2 + $0x8e] sm:$0x3] %vm221_vm4, %v321_v10  ;;  %v354_v19 = vsel %vm207_vm2, %v343_v14, %v346_v15  ;;  %341 = vst.msk [vmem:[#allocation2 + $0xa0] sm:$0x3] %vm221_vm4, %v338_v18  ;;  %v499_v30 = vld [vmem:[#allocation2 + $0x48] sm:$0xff]  ;;  %v500_v31 = vld [vmem:[#allocation2 + $0x50] sm:$0xff] }
  0x24   : > { %339 = vst.msk [vmem:[#allocation2 + $0x90] sm:$0xff] %vm218_vm3, %v337_v12  ;;  %340 = vst.msk [vmem:[#allocation2 + $0x98] sm:$0xff] %vm218_vm3, %v331_v16  ;;  %v348_v20 = vsel %vm207_vm2, %v346_v15, %v347_v17  ;;  %v501_v32 = vld [vmem:[#allocation2 + $0x58] sm:$0xff]  ;;  %v502_v33 = vld [vmem:[#allocation2 + $0x60] sm:$0xff]  ;;  %v360_v45 = vrot.slane %v189_v43, 1  ;;  %v363_v46 = vrot.slane %v189_v43, 7  ;;  %v355_v47 = vsel %vm207_vm2, %v347_v17, %v352_v44 }
  0x25   : > { %356 = vst.msk [vmem:[#allocation2 + $0xa2] sm:$0xff] %vm218_vm3, %v354_v19  ;;  %357 = vst.msk [vmem:[#allocation2 + $0xaa] sm:$0xff] %vm218_vm3, %v348_v20  ;;  %v190_v49 = vld [vmem:[%s5900_s19 + $0x98] sm:$0xff]  ;;  %v191_v54 = vld [vmem:[%s5900_s19 + $0xa0] sm:$0xff] }
  0x26   : > { %v490_v21 = vld [vmem:[#allocation2] sm:$0xff]  ;;  %v491_v22 = vld [vmem:[#allocation2 + $0x8] sm:$0xff]  ;;  %v371_v48 = vsel %vm207_vm2, %v360_v45, %v363_v46  ;;  %358 = vst.msk [vmem:[#allocation2 + $0xb2] sm:$0x3] %vm221_vm4, %v355_v47  ;;  %v364_v50 = vrot.slane %v190_v49, 7  ;;  %v369_v55 = vrot.slane %v190_v49, 5 }
  0x27   : > { %5571 = vmatmul.mubr.msk.f32.vlgmr.msra.gmra.mrb[0].mxu0 %vm218_vm3, %v490_v21  ;;  %v503_v34 = vld [vmem:[#allocation2 + $0x68] sm:$0xff]  ;;  %v504_v35 = vld [vmem:[#allocation2 + $0x70] sm:$0xff]  ;;  %373 = vst.msk [vmem:[#allocation2 + $0xb4] sm:$0xff] %vm218_vm3, %v371_v48  ;;  %v377_v56 = vrot.slane %v191_v54, 1  ;;  %v380_v57 = vrot.slane %v191_v54, 7  ;;  %v194_v10 = vld [vmem:[%s5900_s19 + $0xb8] sm:$0xff] }
  0x28   : > { %5573 = vmatprep.mubr.msk.f32.mxu0 %vm5845_vm1, %v11315_v1  ;;  %v492_v23 = vld [vmem:[#allocation2 + $0x10] sm:$0xff]  ;;  %v365_v51 = vsel %vm207_vm2, %v363_v46, %v364_v50  ;;  %v372_v58 = vsel %vm207_vm2, %v364_v50, %v369_v55  ;;  %v192_v60 = vld [vmem:[%s5900_s19 + $0xa8] sm:$0xff]  ;;  %v398_v11 = vrot.slane %v194_v10, 7  ;;  %v195_v13 = vld [vmem:[%s5900_s19 + $0xc0] sm:$0xff]  ;;  %v403_v14 = vrot.slane %v194_v10, 5 }
  0x29   : > { %v505_v36 = vld [vmem:[#allocation2 + $0x78] sm:$0xff]  ;;  %v506_v37 = vld [vmem:[#allocation2 + $0x80] sm:$0xff]  ;;  %374 = vst.msk [vmem:[#allocation2 + $0xbc] sm:$0xff] %vm218_vm3, %v365_v51  ;;  %v388_v59 = vsel %vm207_vm2, %v377_v56, %v380_v57  ;;  %v381_v61 = vrot.slane %v192_v60, 7  ;;  %v386_v2 = vrot.slane %v192_v60, 5  ;;  %v193_v4 = vld [vmem:[%s5900_s19 + $0xb0] sm:$0xff] }
  0x2a   : > { %v507_v38 = vld [vmem:[#allocation2 + $0x88] sm:$0xff]  ;;  %375 = vst.msk [vmem:[#allocation2 + $0xc4] sm:$0x3] %vm221_vm4, %v372_v58  ;;  %v394_v5 = vrot.slane %v193_v4, 1  ;;  %v397_v6 = vrot.slane %v193_v4, 7  ;;  %v411_v15 = vrot.slane %v195_v13, 1  ;;  %v406_v17 = vsel %vm207_vm2, %v398_v11, %v403_v14 }
  0x2b   : > { %5574 = vmatmul.mubr.msk.f32.gmra.mrb[2].mxu0 %vm218_vm3, %v491_v22  ;;  %v508_v39 = vld [vmem:[#allocation2 + $0x90] sm:$0xff]  ;;  %v509_v40 = vld [vmem:[#allocation2 + $0x98] sm:$0xff]  ;;  %390 = vst.msk [vmem:[#allocation2 + $0xc6] sm:$0xff] %vm218_vm3, %v388_v59  ;;  %v382_v62 = vsel %vm207_vm2, %v380_v57, %v381_v61  ;;  %v389_v3 = vsel %vm207_vm2, %v381_v61, %v386_v2  ;;  %v414_v16 = vrot.slane %v195_v13, 7  ;;  %v196_v21 = vld [vmem:[%s5900_s19 + $0xc8] sm:$0xff] }
  0x2c   : > { %5576 = vmatprep.mubr.msk.f32.mxu0 %vm5845_vm1, %v11315_v1  ;;  %v510_v41 = vld [vmem:[#allocation2 + $0xa0] sm:$0xff]  ;;  %v511_v42 = vld [vmem:[#allocation2 + $0xa8] sm:$0xff]  ;;  %391 = vst.msk [vmem:[#allocation2 + $0xce] sm:$0xff] %vm218_vm3, %v382_v62  ;;  %v405_v7 = vsel %vm207_vm2, %v394_v5, %v397_v6  ;;  %v399_v12 = vsel %vm207_vm2, %v397_v6, %v398_v11  ;;  %v415_v22 = vrot.slane %v196_v21, 7 }
  0x2d   : > { %392 = vst.msk [vmem:[#allocation2 + $0xd6] sm:$0x3] %vm221_vm4, %v389_v3  ;;  %v422_v18 = vsel %vm207_vm2, %v411_v15, %v414_v16  ;;  %409 = vst.msk [vmem:[#allocation2 + $0xe8] sm:$0x3] %vm221_vm4, %v406_v17  ;;  %v200_v43 = vld [vmem:[%s5900_s19 + $0xe8] sm:$0xff] }
  0x2e   : > { %v512_v52 = vld [vmem:[#allocation2 + $0xb0] sm:$0xff]  ;;  %407 = vst.msk [vmem:[#allocation2 + $0xd8] sm:$0xff] %vm218_vm3, %v405_v7  ;;  %408 = vst.msk [vmem:[#allocation2 + $0xe0] sm:$0xff] %vm218_vm3, %v399_v12  ;;  %v449_v44 = vrot.slane %v200_v43, 7  ;;  %v454_v46 = vrot.slane %v200_v43, 5 }
  0x2f   : > { %5577 = vmatmul.mubr.msk.f32.gmra.mrb[4].mxu0 %vm218_vm3, %v492_v23  ;;  %424 = vst.msk [vmem:[#allocation2 + $0xea] sm:$0xff] %vm218_vm3, %v422_v18  ;;  %v416_v23 = vsel %vm207_vm2, %v414_v16, %v415_v22 }
  0x30   : > { %5579 = vmatprep.mubr.msk.f32.mxu0 %vm5845_vm1, %v11315_v1  ;;  %v513_v53 = vld [vmem:[#allocation2 + $0xb8] sm:$0xff]  ;;  %425 = vst.msk [vmem:[#allocation2 + $0xf2] sm:$0xff] %vm218_vm3, %v416_v23  ;;  %v457_v48 = vsel %vm207_vm2, %v449_v44, %v454_v46 }
  0x31   : > { %460 = vst.msk [vmem:[#allocation2 + $0x11e] sm:$0x3] %vm221_vm4, %v457_v48 }
  0x32   : > { %v514_v63 = vld [vmem:[#allocation2 + $0xc0] sm:$0xff] }
  0x33   : > { %5580 = vmatmul.mubr.msk.f32.gmra.mrb[6].mxu0 %vm218_vm3, %v493_v24  ;;  %v515_v0 = vld [vmem:[#allocation2 + $0xc8] sm:$0xff]  ;;  %v197_v24 = vld [vmem:[%s5900_s19 + $0xd0] sm:$0xff] }
  0x34   : > { %5582 = vmatprep.mubr.msk.f32.mxu0 %vm5845_vm1, %v11315_v1  ;;  %v516_v8 = vld [vmem:[#allocation2 + $0xd0] sm:$0xff] }
  0x35   : > { %v517_v9 = vld [vmem:[#allocation2 + $0xd8] sm:$0xff]  ;;  %v518_v19 = vld [vmem:[#allocation2 + $0xe0] sm:$0xff] }
  0x36   : > { %v519_v20 = vld [vmem:[#allocation2 + $0xe8] sm:$0xff] }
  0x37   : > { %5583 = vmatmul.mubr.msk.f32.gmra.mrb[8].mxu0 %vm218_vm3, %v494_v25  ;;  %v420_v25 = vrot.slane %v196_v21, 5  ;;  %v201_v21 = vld [vmem:[%s5900_s19 + $0xf0] sm:$0xff] }
  0x38   : > { %5585 = vmatprep.mubr.msk.f32.mxu0 %vm5845_vm1, %v11315_v1  ;;  %v465_v23 = vrot.slane %v201_v21, 7 }
  0x3b   : > { %5586 = vmatmul.mubr.msk.f32.gmra.mrb[10].mxu0 %vm218_vm3, %v495_v26  ;;  %v428_v26 = vrot.slane %v197_v24, 1 }
  0x3c   : > { %5588 = vmatprep.mubr.msk.f32.mxu0 %vm5845_vm1, %v11315_v1 }
  0x3f   : > { %5589 = vmatmul.mubr.msk.f32.gmra.mrb[12].mxu0 %vm218_vm3, %v496_v27  ;;  %v431_v27 = vrot.slane %v197_v24, 7 }
  0x40   : > { %5591 = vmatprep.mubr.msk.f32.mxu0 %vm5845_vm1, %v11315_v1 }
  0x43   : > { %5592 = vmatmul.mubr.msk.f32.gmra.mrb[14].mxu0 %vm218_vm3, %v497_v28  ;;  %v423_v28 = vsel %vm207_vm2, %v415_v22, %v420_v25  ;;  %v462_v22 = vrot.slane %v201_v21, 1 }
  0x44   : > { %5594 = vmatprep.mubr.msk.f32.mxu0 %vm5845_vm1, %v11315_v1  ;;  %426 = vst.msk [vmem:[#allocation2 + $0xfa] sm:$0x3] %vm221_vm4, %v423_v28 }
  0x47   : > { %5595 = vmatmul.mubr.msk.f32.gmra.mrb[16].mxu0 %vm218_vm3, %v498_v29  ;;  %v439_v29 = vsel %vm207_vm2, %v428_v26, %v431_v27 }
  0x48   : > { %5597 = vmatprep.mubr.msk.f32.mxu0 %vm5845_vm1, %v11315_v1  ;;  %441 = vst.msk [vmem:[#allocation2 + $0xfc] sm:$0xff] %vm218_vm3, %v439_v29  ;;  %v473_v29 = vsel %vm207_vm2, %v462_v22, %v465_v23 }
  0x49   : > { %475 = vst.msk [vmem:[#allocation2 + $0x120] sm:$0xff] %vm218_vm3, %v473_v29 }
  0x4b   : > { %5598 = vmatmul.mubr.msk.f32.gmra.mrb[18].mxu0 %vm218_vm3, %v499_v30  ;;  %v520_v30 = vld [vmem:[#allocation2 + $0xf0] sm:$0xff] }
  0x4c   : > { %5600 = vmatprep.mubr.msk.f32.mxu0 %vm5845_vm1, %v11315_v1 }
  0x4f   : > { %5601 = vmatmul.mubr.msk.f32.gmra.mrb[20].mxu0 %vm218_vm3, %v500_v31  ;;  %v521_v31 = vld [vmem:[#allocation2 + $0xf8] sm:$0xff] }
  0x50   : > { %5603 = vmatprep.mubr.msk.f32.mxu0 %vm5845_vm1, %v11315_v1 }
  0x53   : > { %5604 = vmatmul.mubr.msk.f32.gmra.mrb[22].mxu0 %vm218_vm3, %v501_v32  ;;  %v198_v32 = vld [vmem:[%s5900_s19 + $0xd8] sm:$0xff] }
  0x54   : > { %5606 = vmatprep.mubr.msk.f32.mxu0 %vm5845_vm1, %v11315_v1 }
  0x57   : > { %5607 = vmatmul.mubr.msk.f32.gmra.mrb[24].mxu0 %vm218_vm3, %v502_v33  ;;  %v432_v33 = vrot.slane %v198_v32, 7 }
  0x58   : > { %5609 = vmatprep.mubr.msk.f32.mxu0 %vm5845_vm1, %v11315_v1 }
  0x5b   : > { %5610 = vmatmul.mubr.msk.f32.gmra.mrb[26].mxu0 %vm218_vm3, %v503_v34  ;;  %v433_v34 = vsel %vm207_vm2, %v431_v27, %v432_v33 }
  0x5c   : > { %5612 = vmatprep.mubr.msk.f32.mxu0 %vm5845_vm1, %v11315_v1  ;;  %442 = vst.msk [vmem:[#allocation2 + $0x104] sm:$0xff] %vm218_vm3, %v433_v34 }
  0x5f   : > { %5613 = vmatmul.mubr.msk.f32.gmra.mrb[28].mxu0 %vm218_vm3, %v504_v35  ;;  %v199_v35 = vld [vmem:[%s5900_s19 + $0xe0] sm:$0xff] }
  0x60   : > { %5615 = vmatprep.mubr.msk.f32.mxu0 %vm5845_vm1, %v11315_v1 }
  0x63   : > { %5616 = vmatmul.mubr.msk.f32.gmra.mrb[30].mxu0 %vm218_vm3, %v505_v36  ;;  %v437_v36 = vrot.slane %v198_v32, 5 }
  0x64   : > { %5618 = vmatprep.mubr.msk.f32.mxu0 %vm5845_vm1, %v11315_v1 }
  0x67   : > { %5619 = vmatmul.mubr.msk.f32.gmra.mrb[32].mxu0 %vm218_vm3, %v506_v37  ;;  %v445_v37 = vrot.slane %v199_v35, 1 }
  0x68   : > { %5621 = vmatprep.mubr.msk.f32.mxu0 %vm5845_vm1, %v11315_v1 }
  0x6b   : > { %5622 = vmatmul.mubr.msk.f32.gmra.mrb[34].mxu0 %vm218_vm3, %v507_v38  ;;  %v448_v38 = vrot.slane %v199_v35, 7 }
  0x6c   : > { %5624 = vmatprep.mubr.msk.f32.mxu0 %vm5845_vm1, %v11315_v1 }
  0x6d   : > { %v450_v45 = vsel %vm207_vm2, %v448_v38, %v449_v44 }
  0x6e   : > { %459 = vst.msk [vmem:[#allocation2 + $0x116] sm:$0xff] %vm218_vm3, %v450_v45 }
  0x6f   : > { %5625 = vmatmul.mubr.msk.f32.gmra.mrb[36].mxu0 %vm218_vm3, %v508_v39  ;;  %v440_v39 = vsel %vm207_vm2, %v432_v33, %v437_v36 }
  0x70   : > { %5627 = vmatprep.mubr.msk.f32.mxu0 %vm5845_vm1, %v11315_v1  ;;  %443 = vst.msk [vmem:[#allocation2 + $0x10c] sm:$0x3] %vm221_vm4, %v440_v39 }
  0x73   : > { %5628 = vmatmul.mubr.msk.f32.gmra.mrb[38].mxu0 %vm218_vm3, %v509_v40  ;;  %v456_v40 = vsel %vm207_vm2, %v445_v37, %v448_v38 }
  0x74   : > { %5630 = vmatprep.mubr.msk.f32.mxu0 %vm5845_vm1, %v11315_v1  ;;  %458 = vst.msk [vmem:[#allocation2 + $0x10e] sm:$0xff] %vm218_vm3, %v456_v40 }
  0x75   : > { %v525_v60 = vld [vmem:[#allocation2 + $0x118] sm:$0xff] }
  0x77   : > { %5631 = vmatmul.mubr.msk.f32.gmra.mrb[40].mxu0 %vm218_vm3, %v510_v41  ;;  %v522_v41 = vld [vmem:[#allocation2 + $0x100] sm:$0xff] }
  0x78   : > { %5633 = vmatprep.mubr.msk.f32.mxu0 %vm5845_vm1, %v11315_v1 }
  0x7b   : > { %5634 = vmatmul.mubr.msk.f32.gmra.mrb[42].mxu0 %vm218_vm3, %v511_v42  ;;  %v523_v42 = vld [vmem:[#allocation2 + $0x108] sm:$0xff]  ;;  %v524_v51 = vld [vmem:[#allocation2 + $0x110] sm:$0xff] }
  0x7c   : > { %5636 = vmatprep.mubr.msk.f32.mxu0 %vm5845_vm1, %v11315_v1 }
  0x7f   : > { %5637 = vmatmul.mubr.msk.f32.gmra.mrb[44].mxu0 %vm218_vm3, %v512_v52 }
  0x80   : > { %5639 = vmatprep.mubr.msk.f32.mxu0 %vm5845_vm1, %v11315_v1 }
  0x83   : > { %5640 = vmatmul.mubr.msk.f32.gmra.mrb[46].mxu0 %vm218_vm3, %v513_v53 }
  0x84   : > { %5642 = vmatprep.mubr.msk.f32.mxu0 %vm5845_vm1, %v11315_v1 }
  0x87   : > { %5643 = vmatmul.mubr.msk.f32.gmra.mrb[48].mxu0 %vm218_vm3, %v514_v63 }
  0x88   : > { %5645 = vmatprep.mubr.msk.f32.mxu0 %vm5845_vm1, %v11315_v1 }
  0x8b   : > { %5646 = vmatmul.mubr.msk.f32.gmra.mrb[50].mxu0 %vm218_vm3, %v515_v0 }
  0x8c   : > { %5648 = vmatprep.mubr.msk.f32.mxu0 %vm5845_vm1, %v11315_v1 }
  0x8f   : > { %5649 = vmatmul.mubr.msk.f32.gmra.mrb[52].mxu0 %vm218_vm3, %v516_v8 }
  0x90   : > { %5651 = vmatprep.mubr.msk.f32.mxu0 %vm5845_vm1, %v11315_v1 }
  0x93   : > { %5652 = vmatmul.mubr.msk.f32.gmra.mrb[54].mxu0 %vm218_vm3, %v517_v9 }
  0x94   : > { %5654 = vmatprep.mubr.msk.f32.mxu0 %vm5845_vm1, %v11315_v1 }
  0x97   : > { %5655 = vmatmul.mubr.msk.f32.gmra.mrb[56].mxu0 %vm218_vm3, %v518_v19 }
  0x98   : > { %5657 = vmatprep.mubr.msk.f32.mxu0 %vm5845_vm1, %v11315_v1 }
  0x9b   : > { %5658 = vmatmul.mubr.msk.f32.gmra.mrb[58].mxu0 %vm218_vm3, %v519_v20 }
  0x9c   : > { %5660 = vmatprep.mubr.msk.f32.mxu0 %vm5845_vm1, %v11315_v1 }
  0x9f   : > { %5661 = vmatmul.mubr.msk.f32.gmra.mrb[60].mxu0 %vm218_vm3, %v520_v30 }
  0xa0   : > { %5663 = vmatprep.mubr.msk.f32.mxu0 %vm5845_vm1, %v11315_v1 }
  0xa3   : > { %5664 = vmatmul.mubr.msk.f32.gmra.mrb[62].mxu0 %vm218_vm3, %v521_v31 }
  0xa4   : > { %5666 = vmatprep.mubr.msk.f32.mxu0 %vm5845_vm1, %v11315_v1 }
  0xa7   : > { %5667 = vmatmul.mubr.msk.f32.gmra.mrb[64].mxu0 %vm218_vm3, %v522_v41 }
  0xa8   : > { %5669 = vmatprep.mubr.msk.f32.mxu0 %vm5845_vm1, %v11315_v1 }
  0xab   : > { %5670 = vmatmul.mubr.msk.f32.gmra.mrb[66].mxu0 %vm218_vm3, %v523_v42 }
  0xac   : > { %5672 = vmatprep.mubr.msk.f32.mxu0 %vm5845_vm1, %v11315_v1 }
  0xaf   : > { %5673 = vmatmul.mubr.msk.f32.gmra.mrb[68].mxu0 %vm218_vm3, %v524_v51 }
  0xb0   : > { %5675 = vmatprep.mubr.msk.f32.mxu0 %vm5845_vm1, %v11315_v1 }
  0xb3   : > { %5676 = vmatmul.mubr.msk.f32.gmra.mrb[70].mxu0 %vm218_vm3, %v525_v60 }
  0xb4   : > { %5678 = vmatprep.mubr.msk.f32.mxu0 %vm5845_vm1, %v11315_v1 }
  0xfa   : > { %v6133_v47 = vpop.f32.mrb[0].mxu0 }
  0xfb   : > { %11436 = vst [vmem:[#allocation3_spill] sm:$0xff] %v6133_v47  ;;  %v5572_v49 = vpop.f32.mrb[1].mxu0  ;;  %v1002_v52 = vrot.slane %v6133_v47, 1  ;;  %v1218_v53 = vrot.slane %v6133_v47, 2 }
  0xfe   : > { %v6137_v50 = vpop.f32.mrb[2].mxu0 }
  0xff   : > { %11437 = vst [vmem:[#allocation4_spill] sm:$0xff] %v6137_v50  ;;  %v1003_v54 = vrot.slane %v6137_v50, 1  ;;  %v1219_v55 = vrot.slane %v6137_v50, 2  ;;  %v5575_v56 = vpop.f32.mrb[3].mxu0 }
 0x101   : > { %v1004_v57 = vsel %vm1001_vm5, %v1002_v52, %v1003_v54  ;;  %v1220_v58 = vsel %vm1217_vm6, %v1218_v53, %v1219_v55  ;;  %v6232_v53 = vld [vmem:[%s5900_s19 + $0xf8] sm:$0xff] }
 0x102   : > { %1073 = vrot.lane.b32.xlu0 %v1004_v57, %s5846_s20  ;;  %v6149_v59 = vpop.f32.mrb[4].mxu0 }
 0x103   : > { %11438 = vst [vmem:[#allocation5_spill] sm:$0xff] %v6149_v59  ;;  %v5578_v61 = vpop.f32.mrb[5].mxu0  ;;  %v1221_v62 = vrot.slane %v6149_v59, 2  ;;  %v1005_v63 = vrot.slane %v6149_v59, 1  ;;  %v1585_v4 = vrot.slane %v6149_v59, 3  ;;  %v1802_v5 = vrot.slane %v6149_v59, 4 }
 0x105   : > { %v1222_v0 = vsel %vm1217_vm6, %v1219_v55, %v1221_v62  ;;  %v1006_v2 = vsel %vm1001_vm5, %v1003_v54, %v1005_v63  ;;  %v466_v54 = vrot.slane %v6232_v53, 7 }
 0x106   : > { %1289 = vrot.lane.b32.xlu0 %v1220_v58, %s5847_s21  ;;  %1291 = vrot.lane.b32.xlu1 %v1222_v0, %s5847_s21  ;;  %v6160_v3 = vpop.f32.mrb[6].mxu0 }
 0x107   : > { %11439 = vst [vmem:[#allocation6_spill] sm:$0xff] %v6160_v3  ;;  %v5581_v6 = vpop.f32.mrb[7].mxu0  ;;  %v1007_v7 = vrot.slane %v6160_v3, 1  ;;  %v1223_v8 = vrot.slane %v6160_v3, 2  ;;  %v1586_v9 = vrot.slane %v6160_v3, 3  ;;  %v1803_v10 = vrot.slane %v6160_v3, 4 }
 0x108   : > { %v467_v0 = vsel %vm207_vm2, %v465_v23, %v466_v54 }
 0x109   : > { %v1008_v11 = vsel %vm1001_vm5, %v1005_v63, %v1007_v7  ;;  %v1224_v12 = vsel %vm1217_vm6, %v1221_v62, %v1223_v8  ;;  %v1587_v13 = vsel %vm1584_vm7, %v1585_v4, %v1586_v9  ;;  %v6172_v14 = vsel %vm655_vm0, %v1802_v5, %v1803_v10  ;;  %v526_v63 = vld [vmem:[#allocation2 + $0x120] sm:$0xff]  ;;  %476 = vst.msk [vmem:[#allocation2 + $0x128] sm:$0xff] %vm218_vm3, %v467_v0 }
 0x10a   : > { %1075 = vrot.lane.b32.xlu0 %v1006_v2, %s5846_s20  ;;  %1077 = vrot.lane.b32.xlu1 %v1008_v11, %s5846_s20  ;;  %v6176_v15 = vpop.f32.mrb[8].mxu0 }
 0x10b   : > { %11440 = vst [vmem:[#allocation7_spill] sm:$0xff] %v6176_v15  ;;  %v5584_v16 = vpop.f32.mrb[9].mxu0  ;;  %v1009_v17 = vrot.slane %v6176_v15, 1  ;;  %v1225_v18 = vrot.slane %v6176_v15, 2  ;;  %v1588_v19 = vrot.slane %v6176_v15, 3  ;;  %v1805_v20 = vrot.slane %v6176_v15, 4  ;;  %5679 = vmatmul.mubr.msk.f32.gmra.mrb[72].mxu0 %vm218_vm3, %v526_v63 }
 0x10c   : > { %v2170_v35 = vrot.slane %v6176_v15, 5  ;;  %v2388_v37 = vrot.slane %v6176_v15, 6  ;;  %5681 = vmatprep.mubr.msk.f32.mxu0 %vm5845_vm1, %v11315_v1 }
 0x10d   : > { %v1010_v24 = vsel %vm1001_vm5, %v1007_v7, %v1009_v17  ;;  %v1226_v25 = vsel %vm1217_vm6, %v1223_v8, %v1225_v18  ;;  %v6186_v26 = vsel %vm1584_vm7, %v1586_v9, %v1588_v19  ;;  %v6189_v27 = vsel %vm655_vm0, %v1803_v10, %v1805_v20 }
 0x10e   : > { %1293 = vrot.lane.b32.xlu0 %v1224_v12, %s5847_s21  ;;  %1079 = vrot.lane.b32.xlu1 %v1010_v24, %s5846_s20  ;;  %v6193_v28 = vpop.f32.mrb[10].mxu0 }
 0x10f   : > { %11441 = vst [vmem:[#allocation8_spill] sm:$0xff] %v6193_v28  ;;  %v5587_v30 = vpop.f32.mrb[11].mxu0  ;;  %v1011_v31 = vrot.slane %v6193_v28, 1  ;;  %v1227_v32 = vrot.slane %v6193_v28, 2  ;;  %v1590_v33 = vrot.slane %v6193_v28, 3  ;;  %v1807_v34 = vrot.slane %v6193_v28, 4 }
 0x110   : > { %v2171_v36 = vrot.slane %v6193_v28, 5  ;;  %v2389_v38 = vrot.slane %v6193_v28, 6 }
 0x111   : > { %v6206_v39 = vsel %vm1001_vm5, %v1009_v17, %v1011_v31  ;;  %v6209_v40 = vsel %vm1217_vm6, %v1225_v18, %v1227_v32  ;;  %v6212_v41 = vsel %vm1584_vm7, %v1588_v19, %v1590_v33  ;;  %v6215_v42 = vsel %vm655_vm0, %v1805_v20, %v1807_v34 }
 0x112   : > { %1439 = vrot.lane.b32.xlu0 %v1224_v12, %s5848_s22  ;;  %1295 = vrot.lane.b32.xlu1 %v1226_v25, %s5847_s21  ;;  %v6219_v43 = vpop.f32.mrb[12].mxu0  ;;  %v6222_v44 = vsel %vm2169_vm8, %v2170_v35, %v2171_v36  ;;  %v6225_v45 = vsel %vm2387_vm9, %v2388_v37, %v2389_v38 }
 0x113   : > { %11442 = vst [vmem:[#allocation9_spill] sm:$0xff] %v6219_v43  ;;  %11443 = vst [vmem:[#allocation10_spill] sm:$0xff] %v6222_v44  ;;  %v5590_v46 = vpop.f32.mrb[13].mxu0  ;;  %v1013_v48 = vrot.slane %v6219_v43, 1  ;;  %v1229_v49 = vrot.slane %v6219_v43, 2  ;;  %v1592_v51 = vrot.slane %v6219_v43, 3 }
 0x114   : > { %11444 = vst [vmem:[#allocation11_spill] sm:$0xff] %v6225_v45  ;;  %v1809_v52 = vrot.slane %v6219_v43, 4  ;;  %v2173_v55 = vrot.slane %v6219_v43, 5  ;;  %v2391_v56 = vrot.slane %v6219_v43, 6 }
 0x115   : > { %v6238_v57 = vsel %vm1001_vm5, %v1011_v31, %v1013_v48  ;;  %v6241_v58 = vsel %vm1217_vm6, %v1227_v32, %v1229_v49  ;;  %v6244_v60 = vsel %vm1584_vm7, %v1590_v33, %v1592_v51 }
 0x116   : > { %v6247_v61 = vsel %vm655_vm0, %v1807_v34, %v1809_v52  ;;  %1658 = vrot.lane.b32.xlu0 %v1587_v13, %s5849_s23  ;;  %1441 = vrot.lane.b32.xlu1 %v1226_v25, %s5848_s22  ;;  %v6251_v62 = vpop.f32.mrb[14].mxu0  ;;  %v6257_v2 = vsel %vm2169_vm8, %v2171_v36, %v2173_v55  ;;  %v6260_v4 = vsel %vm2387_vm9, %v2389_v38, %v2391_v56  ;;  %v527_v34 = vld [vmem:[#allocation2 + $0x128] sm:$0xff] }
 0x117   : > { %11445 = vst [vmem:[#allocation12_spill] sm:$0xff] %v6251_v62  ;;  %11446 = vst [vmem:[#allocation13_spill] sm:$0xff] %v6257_v2  ;;  %v5593_v5 = vpop.f32.mrb[15].mxu0  ;;  %v1015_v6 = vrot.slane %v6251_v62, 1  ;;  %v1231_v7 = vrot.slane %v6251_v62, 2  ;;  %v1594_v8 = vrot.slane %v6251_v62, 3  ;;  %5682 = vmatmul.mubr.msk.f32.gmra.mrb[74].mxu0 %vm218_vm3, %v527_v34 }
 0x118   : > { %11447 = vst [vmem:[#allocation14_spill] sm:$0xff] %v6260_v4  ;;  %v1811_v9 = vrot.slane %v6251_v62, 4  ;;  %v2175_v10 = vrot.slane %v6251_v62, 5  ;;  %v2393_v11 = vrot.slane %v6251_v62, 6  ;;  %5684 = vmatprep.mubr.msk.f32.mxu0 %vm5845_vm1, %v11315_v1 }
 0x119   : > { %v6273_v12 = vsel %vm1001_vm5, %v1013_v48, %v1015_v6  ;;  %v6276_v13 = vsel %vm1217_vm6, %v1229_v49, %v1231_v7  ;;  %v6279_v16 = vsel %vm1584_vm7, %v1592_v51, %v1594_v8 }
 0x11a   : > { %v6282_v17 = vsel %vm655_vm0, %v1809_v52, %v1811_v9  ;;  %1875 = vrot.lane.b32.xlu0 %v6172_v14, %s5850_s24  ;;  %1660 = vrot.lane.b32.xlu1 %v6186_v26, %s5849_s23  ;;  %v6288_v18 = vpop.f32.mrb[16].mxu0  ;;  %v6291_v19 = vsel %vm2169_vm8, %v2173_v55, %v2175_v10  ;;  %v6294_v20 = vsel %vm2387_vm9, %v2391_v56, %v2393_v11 }
 0x11b   : > { %11448 = vst [vmem:[#allocation15_spill] sm:$0xff] %v6288_v18  ;;  %11449 = vst [vmem:[#allocation16_spill] sm:$0xff] %v6291_v19  ;;  %v5596_v21 = vpop.f32.mrb[17].mxu0  ;;  %v1017_v22 = vrot.slane %v6288_v18, 1  ;;  %v1233_v23 = vrot.slane %v6288_v18, 2  ;;  %v1596_v24 = vrot.slane %v6288_v18, 3 }
 0x11c   : > { %11450 = vst [vmem:[#allocation17_spill] sm:$0xff] %v6294_v20  ;;  %v1813_v14 = vrot.slane %v6288_v18, 4  ;;  %v2177_v25 = vrot.slane %v6288_v18, 5  ;;  %v2395_v26 = vrot.slane %v6288_v18, 6 }
 0x11d   : > { %v6303_v29 = vsel %vm1001_vm5, %v1015_v6, %v1017_v22  ;;  %v6306_v30 = vsel %vm1217_vm6, %v1231_v7, %v1233_v23  ;;  %v6309_v31 = vsel %vm1584_vm7, %v1594_v8, %v1596_v24  ;;  %v484_v6 = vld [vmem:[#allocation2 + $0x10e] sm:$0xff] }
 0x11e   : > { %v6312_v32 = vsel %vm655_vm0, %v1811_v9, %v1813_v14  ;;  %1877 = vrot.lane.b32.xlu1 %v6189_v27, %s5850_s24  ;;  %1081 = vrot.lane.b32.xlu0 %v6206_v39, %s5846_s20  ;;  %v6318_v33 = vpop.f32.mrb[18].mxu0  ;;  %v6321_v35 = vsel %vm2169_vm8, %v2175_v10, %v2177_v25  ;;  %v6324_v36 = vsel %vm2387_vm9, %v2393_v11, %v2395_v26  ;;  %v471_v39 = vrot.slane %v6232_v53, 5 }
 0x11f   : > { %11451 = vst [vmem:[#allocation18_spill] sm:$0xff] %v6318_v33  ;;  %11452 = vst [vmem:[#allocation19_spill] sm:$0xff] %v6321_v35  ;;  %v5599_v37 = vpop.f32.mrb[19].mxu0  ;;  %v1019_v38 = vrot.slane %v6318_v33, 1  ;;  %v1235_v46 = vrot.slane %v6318_v33, 2  ;;  %v1598_v48 = vrot.slane %v6318_v33, 3 }
 0x120   : > { %11453 = vst [vmem:[#allocation20_spill] sm:$0xff] %v6324_v36  ;;  %v1815_v27 = vrot.slane %v6318_v33, 4  ;;  %v2179_v49 = vrot.slane %v6318_v33, 5  ;;  %v2397_v51 = vrot.slane %v6318_v33, 6  ;;  %v474_v5 = vsel %vm207_vm2, %v466_v54, %v471_v39  ;;  %487 = vst.msk [vmem:[#allocation2 + $0x132] sm:$0xff] %vm218_vm3, %v484_v6 }
 0x121   : > { %v6337_v52 = vsel %vm1001_vm5, %v1017_v22, %v1019_v38  ;;  %v6340_v55 = vsel %vm1217_vm6, %v1233_v23, %v1235_v46  ;;  %v6343_v56 = vsel %vm1584_vm7, %v1596_v24, %v1598_v48  ;;  %477 = vst.msk [vmem:[#allocation2 + $0x130] sm:$0x3] %vm221_vm4, %v474_v5 }
 0x122   : > { %v6346_v63 = vsel %vm655_vm0, %v1813_v14, %v1815_v27  ;;  %1297 = vrot.lane.b32.xlu0 %v6209_v40, %s5847_s21  ;;  %1083 = vrot.lane.b32.xlu1 %v6238_v57, %s5846_s20  ;;  %v6352_v0 = vpop.f32.mrb[20].mxu0  ;;  %v6358_v7 = vsel %vm2169_vm8, %v2177_v25, %v2179_v49  ;;  %v6361_v8 = vsel %vm2387_vm9, %v2395_v26, %v2397_v51 }
 0x123   : > { %11454 = vst [vmem:[#allocation21_spill] sm:$0xff] %v6352_v0  ;;  %11455 = vst [vmem:[#allocation22_spill] sm:$0xff] %v6358_v7  ;;  %v5602_v9 = vpop.f32.mrb[21].mxu0  ;;  %v1021_v10 = vrot.slane %v6352_v0, 1  ;;  %v1237_v11 = vrot.slane %v6352_v0, 2  ;;  %v1600_v57 = vrot.slane %v6352_v0, 3 }
 0x124   : > { %11456 = vst [vmem:[#allocation23_spill] sm:$0xff] %v6361_v8  ;;  %v1817_v21 = vrot.slane %v6352_v0, 4  ;;  %v2181_v53 = vrot.slane %v6352_v0, 5  ;;  %v2399_v54 = vrot.slane %v6352_v0, 6 }
 0x125   : > { %v6372_v22 = vsel %vm1001_vm5, %v1019_v38, %v1021_v10  ;;  %v6375_v23 = vsel %vm1217_vm6, %v1235_v46, %v1237_v11  ;;  %v6378_v24 = vsel %vm1584_vm7, %v1598_v48, %v1600_v57 }
 0x126   : > { %v6381_v14 = vsel %vm655_vm0, %v1815_v27, %v1817_v21  ;;  %1443 = vrot.lane.b32.xlu0 %v6209_v40, %s5848_s22  ;;  %1299 = vrot.lane.b32.xlu1 %v6241_v58, %s5847_s21  ;;  %v6387_v25 = vpop.f32.mrb[22].mxu0  ;;  %v6390_v26 = vsel %vm2169_vm8, %v2179_v49, %v2181_v53  ;;  %v6393_v34 = vsel %vm2387_vm9, %v2397_v51, %v2399_v54 }
 0x127   : > { %11457 = vst [vmem:[#allocation24_spill] sm:$0xff] %v6387_v25  ;;  %11458 = vst [vmem:[#allocation25_spill] sm:$0xff] %v6390_v26  ;;  %v5605_v37 = vpop.f32.mrb[23].mxu0  ;;  %v1023_v38 = vrot.slane %v6387_v25, 1  ;;  %v1239_v46 = vrot.slane %v6387_v25, 2  ;;  %v1602_v48 = vrot.slane %v6387_v25, 3 }
 0x128   : > { %11459 = vst [vmem:[#allocation26_spill] sm:$0xff] %v6393_v34  ;;  %v1819_v40 = vrot.slane %v6387_v25, 4  ;;  %v2183_v27 = vrot.slane %v6387_v25, 5  ;;  %v2401_v39 = vrot.slane %v6387_v25, 6  ;;  %v528_v37 = vld [vmem:[#allocation2 + $0x130] sm:$0xff] }
 0x129   : > { %v6402_v5 = vsel %vm1001_vm5, %v1021_v10, %v1023_v38  ;;  %v6405_v49 = vsel %vm1217_vm6, %v1237_v11, %v1239_v46  ;;  %v6408_v51 = vsel %vm1584_vm7, %v1600_v57, %v1602_v48  ;;  %v485_v10 = vld [vmem:[#allocation2 + $0x116] sm:$0xff]  ;;  %5685 = vmatmul.mubr.msk.f32.gmra.mrb[76].mxu0 %vm218_vm3, %v528_v37 }
 0x12a   : > { %v6411_v6 = vsel %vm655_vm0, %v1817_v21, %v1819_v40  ;;  %1662 = vrot.lane.b32.xlu0 %v6212_v41, %s5849_s23  ;;  %1445 = vrot.lane.b32.xlu1 %v6241_v58, %s5848_s22  ;;  %v6417_v9 = vpop.f32.mrb[24].mxu0  ;;  %v6420_v1 = vsel %vm2169_vm8, %v2181_v53, %v2183_v27  ;;  %v6423_v11 = vsel %vm2387_vm9, %v2399_v54, %v2401_v39  ;;  %v11463_v58 = vmov 0.0  }
 0x12b   : > { %11460 = vst [vmem:[#allocation27_spill] sm:$0xff] %v6417_v9  ;;  %11461 = vst [vmem:[#allocation28_spill] sm:$0xff] %v6420_v1  ;;  %v5608_v57 = vpop.f32.mrb[25].mxu0  ;;  %v1025_v21 = vrot.slane %v6417_v9, 1  ;;  %v1241_v25 = vrot.slane %v6417_v9, 2  ;;  %v1604_v41 = vrot.slane %v6417_v9, 3  ;;  %5687 = vmatprep.mubr.msk.f32.mxu0 %vm5845_vm1, %v11463_v58 }
 0x12c   : > { %11462 = vst [vmem:[#allocation29_spill] sm:$0xff] %v6423_v11  ;;  %v1821_v0 = vrot.slane %v6417_v9, 4  ;;  %488 = vst.msk [vmem:[#allocation2 + $0x13a] sm:$0xff] %vm218_vm3, %v485_v10  ;;  %v2185_v53 = vrot.slane %v6417_v9, 5  ;;  %v2403_v54 = vrot.slane %v6417_v9, 6 }
 0x12d   : > { %v6436_v57 = vsel %vm1001_vm5, %v1023_v38, %v1025_v21  ;;  %v6439_v33 = vsel %vm1217_vm6, %v1239_v46, %v1241_v25  ;;  %v6442_v18 = vsel %vm1584_vm7, %v1602_v48, %v1604_v41 }
 0x12e   : > { %v6445_v37 = vsel %vm655_vm0, %v1819_v40, %v1821_v0  ;;  %1879 = vrot.lane.b32.xlu0 %v6215_v42, %s5850_s24  ;;  %1664 = vrot.lane.b32.xlu1 %v6244_v60, %s5849_s23  ;;  %v6451_v10 = vpop.f32.mrb[26].mxu0  ;;  %v6454_v38 = vsel %vm2169_vm8, %v2183_v27, %v2185_v53  ;;  %v6457_v46 = vsel %vm2387_vm9, %v2401_v39, %v2403_v54 }
 0x12f   : > { %11464 = vst [vmem:[#allocation30_spill] sm:$0xff] %v6451_v10  ;;  %11465 = vst [vmem:[#allocation31_spill] sm:$0xff] %v6454_v38  ;;  %v5611_v9 = vpop.f32.mrb[27].mxu0  ;;  %v1027_v48 = vrot.slane %v6451_v10, 1  ;;  %v1243_v40 = vrot.slane %v6451_v10, 2  ;;  %v1606_v62 = vrot.slane %v6451_v10, 3 }
 0x130   : > { %11466 = vst [vmem:[#allocation32_spill] sm:$0xff] %v6457_v46  ;;  %v1823_v43 = vrot.slane %v6451_v10, 4  ;;  %v2187_v28 = vrot.slane %v6451_v10, 5  ;;  %v2405_v60 = vrot.slane %v6451_v10, 6 }
 0x131   : > { %v6466_v15 = vsel %vm1001_vm5, %v1025_v21, %v1027_v48  ;;  %v6469_v27 = vsel %vm1217_vm6, %v1241_v25, %v1243_v40  ;;  %v6472_v39 = vsel %vm1584_vm7, %v1604_v41, %v1606_v62 }
 0x132   : > { %v6475_v9 = vsel %vm655_vm0, %v1821_v0, %v1823_v43  ;;  %2025 = vrot.lane.b32.xlu0 %v6215_v42, %s5851_s25  ;;  %1881 = vrot.lane.b32.xlu1 %v6247_v61, %s5850_s24  ;;  %v6481_v10 = vpop.f32.mrb[28].mxu0  ;;  %v6484_v3 = vsel %vm2169_vm8, %v2185_v53, %v2187_v28  ;;  %v6487_v25 = vsel %vm2387_vm9, %v2403_v54, %v2405_v60 }
 0x133   : > { %11467 = vst [vmem:[#allocation33_spill] sm:$0xff] %v6481_v10  ;;  %v529_v21 = vld [vmem:[#allocation2 + $0x138] sm:$0xff]  ;;  %11468 = vst [vmem:[#allocation34_spill] sm:$0xff] %v6484_v3  ;;  %v5614_v41 = vpop.f32.mrb[29].mxu0  ;;  %v1029_v0 = vrot.slane %v6481_v10, 1  ;;  %v1245_v59 = vrot.slane %v6481_v10, 2 }
 0x134   : > { %11469 = vst [vmem:[#allocation35_spill] sm:$0xff] %v6487_v25  ;;  %v1608_v47 = vrot.slane %v6481_v10, 3  ;;  %v1825_v42 = vrot.slane %v6481_v10, 4  ;;  %5688 = vmatmul.mubr.msk.f32.gmra.mrb[78].mxu0 %vm218_vm3, %v529_v21  ;;  %v2189_v53 = vrot.slane %v6481_v10, 5  ;;  %v2407_v50 = vrot.slane %v6481_v10, 6 }
 0x135   : > { %5690 = vmatprep.mubr.msk.f32.mxu0 %vm5845_vm1, %v11463_v58  ;;  %v6499_v54 = vsel %vm1001_vm5, %v1027_v48, %v1029_v0  ;;  %v6502_v41 = vsel %vm1217_vm6, %v1243_v40, %v1245_v59 }
 0x136   : > { %v6505_v46 = vsel %vm1584_vm7, %v1606_v62, %v1608_v47  ;;  %v6508_v25 = vsel %vm655_vm0, %v1823_v43, %v1825_v42  ;;  %2027 = vrot.lane.b32.xlu1 %v6247_v61, %s5851_s25  ;;  %1085 = vrot.lane.b32.xlu0 %v6273_v12, %s5846_s20  ;;  %v6514_v21 = vpop.f32.mrb[30].mxu0  ;;  %v6517_v48 = vsel %vm2169_vm8, %v2187_v28, %v2189_v53 }
 0x137   : > { %11470 = vst [vmem:[#allocation36_spill] sm:$0xff] %v6514_v21  ;;  %11471 = vst [vmem:[#allocation37_spill] sm:$0xff] %v6517_v48  ;;  %v6520_v40 = vsel %vm2387_vm9, %v2405_v60, %v2407_v50  ;;  %v5617_v58 = vpop.f32.mrb[31].mxu0  ;;  %v1031_v62 = vrot.slane %v6514_v21, 1  ;;  %v1247_v43 = vrot.slane %v6514_v21, 2  ;;  %v1610_v10 = vrot.slane %v6514_v21, 3 }
 0x138   : > { %11472 = vst [vmem:[#allocation38_spill] sm:$0xff] %v6520_v40  ;;  %v1827_v61 = vrot.slane %v6514_v21, 4  ;;  %v2191_v34 = vrot.slane %v6514_v21, 5  ;;  %v2409_v12 = vrot.slane %v6514_v21, 6 }
 0x139   : > { %v6529_v11 = vsel %vm1001_vm5, %v1029_v0, %v1031_v62  ;;  %v6532_v28 = vsel %vm1217_vm6, %v1245_v59, %v1247_v43  ;;  %v6535_v58 = vsel %vm1584_vm7, %v1608_v47, %v1610_v10 }
 0x13a   : > { %v6538_v60 = vsel %vm655_vm0, %v1825_v42, %v1827_v61  ;;  %1301 = vrot.lane.b32.xlu0 %v6276_v13, %s5847_s21  ;;  %1087 = vrot.lane.b32.xlu1 %v6303_v29, %s5846_s20  ;;  %v6544_v40 = vpop.f32.mrb[32].mxu0  ;;  %v6547_v0 = vsel %vm2169_vm8, %v2189_v53, %v2191_v34  ;;  %v6550_v59 = vsel %vm2387_vm9, %v2407_v50, %v2409_v12 }
 0x13b   : > { %11473 = vst [vmem:[#allocation39_spill] sm:$0xff] %v6544_v40  ;;  %11474 = vst [vmem:[#allocation40_spill] sm:$0xff] %v6547_v0  ;;  %v5620_v21 = vpop.f32.mrb[33].mxu0  ;;  %v1033_v47 = vrot.slane %v6544_v40, 1  ;;  %v1249_v42 = vrot.slane %v6544_v40, 2  ;;  %v1612_v36 = vrot.slane %v6544_v40, 3 }
 0x13c   : > { %11475 = vst [vmem:[#allocation41_spill] sm:$0xff] %v6550_v59  ;;  %v1829_v8 = vrot.slane %v6544_v40, 4  ;;  %v2193_v4 = vrot.slane %v6544_v40, 5  ;;  %v2411_v29 = vrot.slane %v6544_v40, 6 }
 0x13d   : > { %v6559_v20 = vsel %vm1001_vm5, %v1031_v62, %v1033_v47  ;;  %v6562_v53 = vsel %vm1217_vm6, %v1247_v43, %v1249_v42  ;;  %v6565_v50 = vsel %vm1584_vm7, %v1610_v10, %v1612_v36 }
 0x13e   : > { %v6568_v21 = vsel %vm655_vm0, %v1827_v61, %v1829_v8  ;;  %1447 = vrot.lane.b32.xlu0 %v6276_v13, %s5848_s22  ;;  %1303 = vrot.lane.b32.xlu1 %v6306_v30, %s5847_s21  ;;  %v6574_v59 = vpop.f32.mrb[34].mxu0  ;;  %v6577_v62 = vsel %vm2169_vm8, %v2191_v34, %v2193_v4  ;;  %v6580_v43 = vsel %vm2387_vm9, %v2409_v12, %v2411_v29 }
 0x13f   : > { %11476 = vst [vmem:[#allocation42_spill] sm:$0xff] %v6574_v59  ;;  %11477 = vst [vmem:[#allocation43_spill] sm:$0xff] %v6577_v62  ;;  %v5623_v40 = vpop.f32.mrb[35].mxu0  ;;  %v1035_v10 = vrot.slane %v6574_v59, 1  ;;  %v1251_v61 = vrot.slane %v6574_v59, 2  ;;  %v1614_v45 = vrot.slane %v6574_v59, 3 }
 0x140   : > { %11478 = vst [vmem:[#allocation44_spill] sm:$0xff] %v6580_v43  ;;  %v1831_v13 = vrot.slane %v6574_v59, 4  ;;  %v2195_v48 = vrot.slane %v6574_v59, 5  ;;  %v2413_v0 = vrot.slane %v6574_v59, 6 }
 0x141   : > { %v6589_v38 = vsel %vm1001_vm5, %v1033_v47, %v1035_v10  ;;  %v6592_v34 = vsel %vm1217_vm6, %v1249_v42, %v1251_v61  ;;  %v6595_v40 = vsel %vm1584_vm7, %v1612_v36, %v1614_v45 }
 0x142   : > { %v6598_v12 = vsel %vm655_vm0, %v1829_v8, %v1831_v13  ;;  %1666 = vrot.lane.b32.xlu0 %v6279_v16, %s5849_s23  ;;  %1449 = vrot.lane.b32.xlu1 %v6306_v30, %s5848_s22  ;;  %v6604_v43 = vpop.f32.mrb[36].mxu0  ;;  %v6607_v47 = vsel %vm2169_vm8, %v2193_v4, %v2195_v48  ;;  %v6610_v42 = vsel %vm2387_vm9, %v2411_v29, %v2413_v0 }
 0x143   : > { %11479 = vst [vmem:[#allocation45_spill] sm:$0xff] %v6604_v43  ;;  %11480 = vst [vmem:[#allocation46_spill] sm:$0xff] %v6607_v47  ;;  %v5626_v59 = vpop.f32.mrb[37].mxu0  ;;  %v1037_v36 = vrot.slane %v6604_v43, 1  ;;  %v1253_v8 = vrot.slane %v6604_v43, 2  ;;  %v1616_v62 = vrot.slane %v6604_v43, 3 }
 0x144   : > { %11481 = vst [vmem:[#allocation47_spill] sm:$0xff] %v6610_v42  ;;  %v1833_v16 = vrot.slane %v6604_v43, 4  ;;  %v2197_v3 = vrot.slane %v6604_v43, 5  ;;  %v2415_v30 = vrot.slane %v6604_v43, 6 }
 0x145   : > { %v6619_v26 = vsel %vm1001_vm5, %v1035_v10, %v1037_v36  ;;  %v6622_v4 = vsel %vm1217_vm6, %v1251_v61, %v1253_v8  ;;  %v6625_v59 = vsel %vm1584_vm7, %v1614_v45, %v1616_v62 }
 0x146   : > { %v6628_v29 = vsel %vm655_vm0, %v1831_v13, %v1833_v16  ;;  %1883 = vrot.lane.b32.xlu0 %v6282_v17, %s5850_s24  ;;  %1668 = vrot.lane.b32.xlu1 %v6309_v31, %s5849_s23  ;;  %v6634_v42 = vpop.f32.mrb[38].mxu0  ;;  %v6637_v10 = vsel %vm2169_vm8, %v2195_v48, %v2197_v3  ;;  %v6640_v61 = vsel %vm2387_vm9, %v2413_v0, %v2415_v30 }
 0x147   : > { %11482 = vst [vmem:[#allocation48_spill] sm:$0xff] %v6634_v42  ;;  %11483 = vst [vmem:[#allocation49_spill] sm:$0xff] %v6637_v10  ;;  %v5629_v43 = vpop.f32.mrb[39].mxu0  ;;  %v1039_v45 = vrot.slane %v6634_v42, 1  ;;  %v1255_v13 = vrot.slane %v6634_v42, 2  ;;  %v1618_v47 = vrot.slane %v6634_v42, 3 }
 0x148   : > { %11484 = vst [vmem:[#allocation50_spill] sm:$0xff] %v6640_v61  ;;  %v1835_v1 = vrot.slane %v6634_v42, 4  ;;  %v2199_v35 = vrot.slane %v6634_v42, 5  ;;  %v2417_v31 = vrot.slane %v6634_v42, 6 }
 0x149   : > { %v6649_v7 = vsel %vm1001_vm5, %v1037_v36, %v1039_v45  ;;  %v6652_v48 = vsel %vm1217_vm6, %v1253_v8, %v1255_v13  ;;  %v6655_v0 = vsel %vm1584_vm7, %v1616_v62, %v1618_v47 }
 0x14a   : > { %v6658_v43 = vsel %vm655_vm0, %v1833_v16, %v1835_v1  ;;  %2029 = vrot.lane.b32.xlu0 %v6282_v17, %s5851_s25  ;;  %1885 = vrot.lane.b32.xlu1 %v6312_v32, %s5850_s24  ;;  %v6664_v61 = vpop.f32.mrb[40].mxu0  ;;  %v6667_v36 = vsel %vm2169_vm8, %v2197_v3, %v2199_v35  ;;  %v6670_v8 = vsel %vm2387_vm9, %v2415_v30, %v2417_v31 }
 0x14b   : > { %11485 = vst [vmem:[#allocation51_spill] sm:$0xff] %v6664_v61  ;;  %11486 = vst [vmem:[#allocation52_spill] sm:$0xff] %v6667_v36  ;;  %v5632_v42 = vpop.f32.mrb[41].mxu0  ;;  %v1041_v62 = vrot.slane %v6664_v61, 1  ;;  %v1257_v16 = vrot.slane %v6664_v61, 2  ;;  %v1620_v10 = vrot.slane %v6664_v61, 3 }
 0x14c   : > { %11487 = vst [vmem:[#allocation53_spill] sm:$0xff] %v6670_v8  ;;  %v1837_v17 = vrot.slane %v6664_v61, 4  ;;  %v2201_v2 = vrot.slane %v6664_v61, 5  ;;  %v2419_v19 = vrot.slane %v6664_v61, 6  ;;  %v486_v61 = vld [vmem:[#allocation2 + $0x11e] sm:$0x3] }
 0x14d   : > { %v6679_v44 = vsel %vm1001_vm5, %v1039_v45, %v1041_v62  ;;  %v6682_v3 = vsel %vm1217_vm6, %v1255_v13, %v1257_v16  ;;  %v6685_v42 = vsel %vm1584_vm7, %v1618_v47, %v1620_v10  ;;  %489 = vst.msk [vmem:[#allocation2 + $0x142] sm:$0x3] %vm221_vm4, %v486_v61 }
 0x14e   : > { %11488 = vst [vmem:[#allocation54_spill] sm:$0xff] %v6685_v42  ;;  %v6688_v30 = vsel %vm655_vm0, %v1835_v1, %v1837_v17  ;;  %2031 = vrot.lane.b32.xlu1 %v6312_v32, %s5851_s25  ;;  %1089 = vrot.lane.b32.xlu0 %v6337_v52, %s5846_s20  ;;  %v6694_v8 = vpop.f32.mrb[42].mxu0  ;;  %v6697_v45 = vsel %vm2169_vm8, %v2199_v35, %v2201_v2 }
 0x14f   : > { %11489 = vst [vmem:[#allocation55_spill] sm:$0xff] %v6688_v30  ;;  %11490 = vst [vmem:[#allocation56_spill] sm:$0xff] %v6694_v8  ;;  %v6700_v13 = vsel %vm2387_vm9, %v2417_v31, %v2419_v19  ;;  %v5635_v47 = vpop.f32.mrb[43].mxu0  ;;  %v1043_v1 = vrot.slane %v6694_v8, 1  ;;  %v1259_v36 = vrot.slane %v6694_v8, 2  ;;  %v1622_v32 = vrot.slane %v6694_v8, 3 }
 0x150   : > { %11491 = vst [vmem:[#allocation57_spill] sm:$0xff] %v6697_v45  ;;  %11492 = vst [vmem:[#allocation58_spill] sm:$0xff] %v6700_v13  ;;  %v1839_v52 = vrot.slane %v6694_v8, 4  ;;  %v2203_v30 = vrot.slane %v6694_v8, 5  ;;  %v2421_v42 = vrot.slane %v6694_v8, 6 }
 0x151   : > { %v6710_v35 = vsel %vm1001_vm5, %v1041_v62, %v1043_v1  ;;  %v6713_v31 = vsel %vm1217_vm6, %v1257_v16, %v1259_v36  ;;  %v6716_v61 = vsel %vm1584_vm7, %v1620_v10, %v1622_v32 }
 0x152   : > { %v6719_v47 = vsel %vm655_vm0, %v1837_v17, %v1839_v52  ;;  %1305 = vrot.lane.b32.xlu0 %v6340_v55, %s5847_s21  ;;  %1091 = vrot.lane.b32.xlu1 %v6372_v22, %s5846_s20  ;;  %v6726_v8 = vsel %vm2169_vm8, %v2201_v2, %v2203_v30  ;;  %v6729_v62 = vsel %vm2387_vm9, %v2419_v19, %v2421_v42  ;;  %v6740_v2 = vpop.f32.mrb[44].mxu0 }
 0x153   : > { %11493 = vst [vmem:[#allocation59_spill] sm:$0xff] %v6719_v47  ;;  %11494 = vst [vmem:[#allocation60_spill] sm:$0xff] %v6726_v8  ;;  %v5638_v22 = vpop.f32.mrb[45].mxu0  ;;  %v1045_v19 = vrot.slane %v6740_v2, 1  ;;  %v1261_v16 = vrot.slane %v6740_v2, 2  ;;  %v1841_v17 = vrot.slane %v6740_v2, 4 }
 0x154   : > { %11495 = vst [vmem:[#allocation61_spill] sm:$0xff] %v6729_v62  ;;  %v530_v10 = vld [vmem:[#allocation2 + $0x140] sm:$0xf]  ;;  %11496 = vst [vmem:[#allocation62_spill] sm:$0xff] %v6740_v2  ;;  %v2205_v13 = vrot.slane %v6740_v2, 5 }
 0x155   : > { %5691 = vmatmul.mubr.msk.f32.gmra.mrb[80].mxu0 %vm218_vm3, %v530_v10  ;;  %v2423_v10 = vrot.slane %v6740_v2, 6  ;;  %v6758_v62 = vsel %vm655_vm0, %v1839_v52, %v1841_v17 }
 0x156   : > { %1451 = vrot.lane.b32.xlu0 %v6340_v55, %s5848_s22  ;;  %1307 = vrot.lane.b32.xlu1 %v6375_v23, %s5847_s21  ;;  %v1624_v55 = vrot.slane %v6740_v2, 3  ;;  %11498 = vst [vmem:[#allocation64_spill] sm:$0xff] %v6758_v62  ;;  %v6764_v45 = vpop.f32.mrb[46].mxu0 }
 0x157   : > { %11499 = vst [vmem:[#allocation65_spill] sm:$0xff] %v6764_v45  ;;  %v5641_v2 = vpop.f32.mrb[47].mxu0  ;;  %v1263_v52 = vrot.slane %v6764_v45, 2  ;;  %v1626_v8 = vrot.slane %v6764_v45, 3  ;;  %v1843_v62 = vrot.slane %v6764_v45, 4 }
 0x158   : > { %v6755_v22 = vsel %vm1584_vm7, %v1622_v32, %v1624_v55  ;;  %v1047_v32 = vrot.slane %v6764_v45, 1 }
 0x159   : > { %11497 = vst [vmem:[#allocation63_spill] sm:$0xff] %v6755_v22  ;;  %v2207_v22 = vrot.slane %v6764_v45, 5  ;;  %v6788_v2 = vsel %vm655_vm0, %v1841_v17, %v1843_v62 }
 0x15a   : > { %1670 = vrot.lane.b32.xlu0 %v6343_v56, %s5849_s23  ;;  %1453 = vrot.lane.b32.xlu1 %v6375_v23, %s5848_s22  ;;  %v6749_v56 = vsel %vm1001_vm5, %v1043_v1, %v1045_v19  ;;  %v6752_v23 = vsel %vm1217_vm6, %v1259_v36, %v1261_v16  ;;  %v6767_v1 = vsel %vm2169_vm8, %v2203_v30, %v2205_v13 }
 0x15b   : > { %11500 = vst [vmem:[#allocation66_spill] sm:$0xff] %v6767_v1  ;;  %v6770_v36 = vsel %vm2387_vm9, %v2421_v42, %v2423_v10  ;;  %v6779_v47 = vsel %vm1001_vm5, %v1045_v19, %v1047_v32  ;;  %v6782_v30 = vsel %vm1217_vm6, %v1261_v16, %v1263_v52  ;;  %v6785_v42 = vsel %vm1584_vm7, %v1624_v55, %v1626_v8 }
 0x15c   : > { %11501 = vst [vmem:[#allocation67_spill] sm:$0xff] %v6770_v36 }
 0x15e   : > { %1887 = vrot.lane.b32.xlu0 %v6346_v63, %s5850_s24  ;;  %1672 = vrot.lane.b32.xlu1 %v6378_v24, %s5849_s23  ;;  %v2425_v24 = vrot.slane %v6764_v45, 6  ;;  %v6795_v45 = vsel %vm2169_vm8, %v2205_v13, %v2207_v22 }
 0x15f   : > { %11502 = vst [vmem:[#allocation68_spill] sm:$0xff] %v6795_v45 }
 0x160   : > { %v6798_v19 = vsel %vm2387_vm9, %v2423_v10, %v2425_v24 }
 0x161   : > { %11503 = vst [vmem:[#allocation69_spill] sm:$0xff] %v6798_v19 }
 0x162   : > { %2033 = vrot.lane.b32.xlu0 %v6346_v63, %s5851_s25  ;;  %1889 = vrot.lane.b32.xlu1 %v6381_v14, %s5850_s24  ;;  %v6812_v63 = vpop.f32.mrb[48].mxu0 }
 0x163   : > { %11504 = vst [vmem:[#allocation70_spill] sm:$0xff] %v6812_v63  ;;  %v5644_v13 = vpop.f32.mrb[49].mxu0  ;;  %v1265_v16 = vrot.slane %v6812_v63, 2  ;;  %v1845_v55 = vrot.slane %v6812_v63, 4  ;;  %v2209_v17 = vrot.slane %v6812_v63, 5 }
 0x164   : > { %v6836_v19 = vpop.f32.mrb[50].mxu0 }
 0x165   : > { %v6824_v10 = vsel %vm1217_vm6, %v1263_v52, %v1265_v16  ;;  %v6830_v36 = vsel %vm655_vm0, %v1843_v62, %v1845_v55  ;;  %11506 = vst [vmem:[#allocation72_spill] sm:$0xff] %v6836_v19  ;;  %v1267_v62 = vrot.slane %v6836_v19, 2  ;;  %v1630_v1 = vrot.slane %v6836_v19, 3 }
 0x166   : > { %2035 = vrot.lane.b32.xlu1 %v6381_v14, %s5851_s25  ;;  %1093 = vrot.lane.b32.xlu0 %v6402_v5, %s5846_s20  ;;  %v1049_v14 = vrot.slane %v6812_v63, 1  ;;  %v1628_v5 = vrot.slane %v6812_v63, 3  ;;  %11505 = vst [vmem:[#allocation71_spill] sm:$0xff] %v6830_v36  ;;  %v2429_v36 = vrot.slane %v6836_v19, 6 }
 0x168   : > { %v6827_v13 = vsel %vm1584_vm7, %v1626_v8, %v1628_v5  ;;  %v1051_v8 = vrot.slane %v6836_v19, 1 }
 0x16a   : > { %1309 = vrot.lane.b32.xlu0 %v6405_v49, %s5847_s21  ;;  %1095 = vrot.lane.b32.xlu1 %v6436_v57, %s5846_s20  ;;  %v2427_v57 = vrot.slane %v6812_v63, 6  ;;  %v5647_v63 = vpop.f32.mrb[51].mxu0 }
 0x16b   : > { %v6859_v63 = vsel %vm1584_vm7, %v1628_v5, %v1630_v1 }
 0x16c   : > { %v6842_v52 = vsel %vm2387_vm9, %v2425_v24, %v2427_v57  ;;  %v6856_v24 = vsel %vm1217_vm6, %v1265_v16, %v1267_v62  ;;  %11510 = vst [vmem:[#allocation76_spill] sm:$0xff] %v6859_v63 }
 0x16d   : > { %11508 = vst [vmem:[#allocation74_spill] sm:$0xff] %v6842_v52 }
 0x16e   : > { %1455 = vrot.lane.b32.xlu0 %v6405_v49, %s5848_s22  ;;  %1311 = vrot.lane.b32.xlu1 %v6439_v33, %s5847_s21  ;;  %v6821_v49 = vsel %vm1001_vm5, %v1047_v32, %v1049_v14  ;;  %v6839_v32 = vsel %vm2169_vm8, %v2207_v22, %v2209_v17  ;;  %v6853_v22 = vsel %vm1001_vm5, %v1049_v14, %v1051_v8 }
 0x16f   : > { %11507 = vst [vmem:[#allocation73_spill] sm:$0xff] %v6839_v32  ;;  %v6872_v14 = vsel %vm2387_vm9, %v2427_v57, %v2429_v36 }
 0x170   : > { %11513 = vst [vmem:[#allocation79_spill] sm:$0xff] %v6872_v14 }
 0x172   : > { %1674 = vrot.lane.b32.xlu0 %v6408_v51, %s5849_s23  ;;  %1457 = vrot.lane.b32.xlu1 %v6439_v33, %s5848_s22  ;;  %v1847_v51 = vrot.slane %v6836_v19, 4  ;;  %v2211_v33 = vrot.slane %v6836_v19, 5 }
 0x174   : > { %v6848_v45 = vpop.permute.xlu0 %1073  ;;  %v6869_v19 = vsel %vm2169_vm8, %v2209_v17, %v2211_v33 }
 0x175   : > { %11509 = vst [vmem:[#allocation75_spill] sm:$0xff] %v6848_v45  ;;  %v6866_v45 = vsel %vm655_vm0, %v1845_v55, %v1847_v51  ;;  %11512 = vst [vmem:[#allocation78_spill] sm:$0xff] %v6869_v19 }
 0x176   : > { %1891 = vrot.lane.b32.xlu0 %v6411_v6, %s5850_s24  ;;  %1676 = vrot.lane.b32.xlu1 %v6442_v18, %s5849_s23  ;;  %11511 = vst [vmem:[#allocation77_spill] sm:$0xff] %v6866_v45 }
 0x178   : > { %v6874_v16 = vpop.permute.xlu0 %1289  ;;  %v6876_v52 = vpop.permute.xlu1 %1291 }
 0x179   : > { %11514 = vst [vmem:[#allocation80_spill] sm:$0xff] %v6874_v16  ;;  %11515 = vst [vmem:[#allocation81_spill] sm:$0xff] %v6876_v52 }
 0x17a   : > { %2037 = vrot.lane.b32.xlu0 %v6411_v6, %s5851_s25  ;;  %1893 = vrot.lane.b32.xlu1 %v6445_v37, %s5850_s24  ;;  %v6898_v6 = vpop.f32.mrb[52].mxu0 }
 0x17b   : > { %11520 = vst [vmem:[#allocation86_spill] sm:$0xff] %v6898_v6  ;;  %v5650_v57 = vpop.f32.mrb[53].mxu0  ;;  %v1053_v52 = vrot.slane %v6898_v6, 1  ;;  %v2213_v16 = vrot.slane %v6898_v6, 5 }
 0x17c   : > { %v6882_v18 = vpop.permute.xlu0 %1075  ;;  %v6884_v5 = vpop.permute.xlu1 %1077 }
 0x17d   : > { %11516 = vst [vmem:[#allocation82_spill] sm:$0xff] %v6882_v18  ;;  %11517 = vst [vmem:[#allocation83_spill] sm:$0xff] %v6884_v5  ;;  %v1632_v5 = vrot.slane %v6898_v6, 3  ;;  %v2431_v18 = vrot.slane %v6898_v6, 6  ;;  %v6920_v14 = vpop.f32.mrb[54].mxu0 }
 0x17e   : > { %2039 = vrot.lane.b32.xlu1 %v6445_v37, %s5851_s25  ;;  %1097 = vrot.lane.b32.xlu0 %v6466_v15, %s5846_s20  ;;  %v1269_v37 = vrot.slane %v6898_v6, 2  ;;  %v1849_v15 = vrot.slane %v6898_v6, 4  ;;  %11523 = vst [vmem:[#allocation89_spill] sm:$0xff] %v6920_v14  ;;  %v5653_v6 = vpop.f32.mrb[55].mxu0  ;;  %v1271_v32 = vrot.slane %v6920_v14, 2  ;;  %v1851_v19 = vrot.slane %v6920_v14, 4 }
 0x180   : > { %v6890_v55 = vpop.permute.xlu0 %1293  ;;  %v6892_v17 = vpop.permute.xlu1 %1079  ;;  %v6914_v57 = vsel %vm1217_vm6, %v1267_v62, %v1269_v37  ;;  %v1055_v62 = vrot.slane %v6920_v14, 1 }
 0x181   : > { %11518 = vst [vmem:[#allocation84_spill] sm:$0xff] %v6890_v55  ;;  %11519 = vst [vmem:[#allocation85_spill] sm:$0xff] %v6892_v17 }
 0x182   : > { %1313 = vrot.lane.b32.xlu0 %v6469_v27, %s5847_s21  ;;  %1099 = vrot.lane.b32.xlu1 %v6499_v54, %s5846_s20  ;;  %v6911_v54 = vsel %vm1001_vm5, %v1051_v8, %v1053_v52  ;;  %v6929_v8 = vsel %vm2169_vm8, %v2211_v33, %v2213_v16  ;;  %v6942_v33 = vsel %vm2387_vm9, %v2429_v36, %v2431_v18 }
 0x183   : > { %11524 = vst [vmem:[#allocation90_spill] sm:$0xff] %v6929_v8  ;;  %11527 = vst [vmem:[#allocation93_spill] sm:$0xff] %v6942_v33  ;;  %v6945_v6 = vsel %vm1001_vm5, %v1053_v52, %v1055_v62  ;;  %v6948_v8 = vsel %vm1217_vm6, %v1269_v37, %v1271_v32 }
 0x184   : > { %v6904_v55 = vpop.permute.xlu0 %1439  ;;  %v6906_v17 = vpop.permute.xlu1 %1295 }
 0x185   : > { %11521 = vst [vmem:[#allocation87_spill] sm:$0xff] %v6904_v55  ;;  %11522 = vst [vmem:[#allocation88_spill] sm:$0xff] %v6906_v17  ;;  %v6923_v17 = vsel %vm1584_vm7, %v1630_v1, %v1632_v5  ;;  %v6926_v55 = vsel %vm655_vm0, %v1847_v51, %v1849_v15  ;;  %v2215_v1 = vrot.slane %v6920_v14, 5  ;;  %v2433_v51 = vrot.slane %v6920_v14, 6 }
 0x186   : > { %1459 = vrot.lane.b32.xlu0 %v6469_v27, %s5848_s22  ;;  %1315 = vrot.lane.b32.xlu1 %v6502_v41, %s5847_s21  ;;  %v1634_v27 = vrot.slane %v6920_v14, 3  ;;  %v6958_v14 = vsel %vm655_vm0, %v1849_v15, %v1851_v19 }
 0x187   : > { %11528 = vst [vmem:[#allocation94_spill] sm:$0xff] %v6958_v14  ;;  %v6961_v36 = vsel %vm2169_vm8, %v2213_v16, %v2215_v1  ;;  %v6964_v52 = vsel %vm2387_vm9, %v2431_v18, %v2433_v51 }
 0x188   : > { %v6935_v45 = vpop.permute.xlu0 %1658  ;;  %v6937_v63 = vpop.permute.xlu1 %1441  ;;  %11529 = vst [vmem:[#allocation95_spill] sm:$0xff] %v6961_v36  ;;  %11530 = vst [vmem:[#allocation96_spill] sm:$0xff] %v6964_v52 }
 0x189   : > { %11525 = vst [vmem:[#allocation91_spill] sm:$0xff] %v6935_v45  ;;  %11526 = vst [vmem:[#allocation92_spill] sm:$0xff] %v6937_v63  ;;  %v6955_v45 = vsel %vm1584_vm7, %v1632_v5, %v1634_v27 }
 0x18a   : > { %1678 = vrot.lane.b32.xlu0 %v6472_v39, %s5849_s23  ;;  %1461 = vrot.lane.b32.xlu1 %v6502_v41, %s5848_s22 }
 0x18c   : > { %v6966_v37 = vpop.permute.xlu0 %1875  ;;  %v6968_v63 = vpop.permute.xlu1 %1660 }
 0x18d   : > { %11531 = vst [vmem:[#allocation97_spill] sm:$0xff] %v6966_v37  ;;  %11532 = vst [vmem:[#allocation98_spill] sm:$0xff] %v6968_v63 }
 0x18e   : > { %1895 = vrot.lane.b32.xlu0 %v6475_v9, %s5850_s24  ;;  %1680 = vrot.lane.b32.xlu1 %v6505_v46, %s5849_s23  ;;  %v6990_v46 = vpop.f32.mrb[56].mxu0 }
 0x18f   : > { %11537 = vst [vmem:[#allocation103_spill] sm:$0xff] %v6990_v46  ;;  %v5656_v5 = vpop.f32.mrb[57].mxu0  ;;  %v1057_v15 = vrot.slane %v6990_v46, 1  ;;  %v1853_v37 = vrot.slane %v6990_v46, 4  ;;  %v2435_v63 = vrot.slane %v6990_v46, 6 }
 0x190   : > { %v6974_v39 = vpop.permute.xlu1 %1877  ;;  %v6976_v41 = vpop.permute.xlu0 %1081 }
 0x191   : > { %11533 = vst [vmem:[#allocation99_spill] sm:$0xff] %v6974_v39  ;;  %11534 = vst [vmem:[#allocation100_spill] sm:$0xff] %v6976_v41  ;;  %v1636_v39 = vrot.slane %v6990_v46, 3  ;;  %v7012_v41 = vpop.f32.mrb[58].mxu0 }
 0x192   : > { %2041 = vrot.lane.b32.xlu0 %v6475_v9, %s5851_s25  ;;  %1897 = vrot.lane.b32.xlu1 %v6508_v25, %s5850_s24  ;;  %v1273_v9 = vrot.slane %v6990_v46, 2  ;;  %11540 = vst [vmem:[#allocation106_spill] sm:$0xff] %v7012_v41  ;;  %v1275_v33 = vrot.slane %v7012_v41, 2  ;;  %v1638_v52 = vrot.slane %v7012_v41, 3 }
 0x194   : > { %v6982_v16 = vpop.permute.xlu0 %1297  ;;  %v6984_v18 = vpop.permute.xlu1 %1083  ;;  %v7006_v5 = vsel %vm1217_vm6, %v1271_v32, %v1273_v9  ;;  %v1059_v32 = vrot.slane %v7012_v41, 1 }
 0x195   : > { %11535 = vst [vmem:[#allocation101_spill] sm:$0xff] %v6982_v16  ;;  %11536 = vst [vmem:[#allocation102_spill] sm:$0xff] %v6984_v18 }
 0x196   : > { %2043 = vrot.lane.b32.xlu1 %v6508_v25, %s5851_s25  ;;  %1101 = vrot.lane.b32.xlu0 %v6529_v11, %s5846_s20  ;;  %v2217_v25 = vrot.slane %v6990_v46, 5  ;;  %v7003_v11 = vsel %vm1001_vm5, %v1055_v62, %v1057_v15  ;;  %v5659_v46 = vpop.f32.mrb[59].mxu0 }
 0x197   : > { %v7037_v46 = vsel %vm1001_vm5, %v1057_v15, %v1059_v32 }
 0x198   : > { %v6996_v16 = vpop.permute.xlu0 %1443  ;;  %v6998_v18 = vpop.permute.xlu1 %1299  ;;  %v7021_v62 = vsel %vm2169_vm8, %v2215_v1, %v2217_v25  ;;  %v7034_v1 = vsel %vm2387_vm9, %v2433_v51, %v2435_v63 }
 0x199   : > { %11538 = vst [vmem:[#allocation104_spill] sm:$0xff] %v6996_v16  ;;  %11539 = vst [vmem:[#allocation105_spill] sm:$0xff] %v6998_v18  ;;  %v7015_v18 = vsel %vm1584_vm7, %v1634_v27, %v1636_v39  ;;  %v7018_v16 = vsel %vm655_vm0, %v1851_v19, %v1853_v37  ;;  %v2219_v27 = vrot.slane %v7012_v41, 5  ;;  %v2437_v19 = vrot.slane %v7012_v41, 6 }
 0x19a   : > { %1317 = vrot.lane.b32.xlu0 %v6532_v28, %s5847_s21  ;;  %1103 = vrot.lane.b32.xlu1 %v6559_v20, %s5846_s20  ;;  %11541 = vst [vmem:[#allocation107_spill] sm:$0xff] %v7021_v62  ;;  %v1855_v20 = vrot.slane %v7012_v41, 4  ;;  %11544 = vst [vmem:[#allocation110_spill] sm:$0xff] %v7034_v1  ;;  %v7040_v62 = vsel %vm1217_vm6, %v1273_v9, %v1275_v33 }
 0x19b   : > { %v7053_v51 = vsel %vm2169_vm8, %v2217_v25, %v2219_v27  ;;  %v7056_v15 = vsel %vm2387_vm9, %v2435_v63, %v2437_v19 }
 0x19c   : > { %v7027_v36 = vpop.permute.xlu0 %1662  ;;  %v7029_v14 = vpop.permute.xlu1 %1445  ;;  %v7050_v41 = vsel %vm655_vm0, %v1853_v37, %v1855_v20  ;;  %11546 = vst [vmem:[#allocation112_spill] sm:$0xff] %v7053_v51  ;;  %11547 = vst [vmem:[#allocation113_spill] sm:$0xff] %v7056_v15 }
 0x19d   : > { %11542 = vst [vmem:[#allocation108_spill] sm:$0xff] %v7027_v36  ;;  %11543 = vst [vmem:[#allocation109_spill] sm:$0xff] %v7029_v14  ;;  %v7047_v14 = vsel %vm1584_vm7, %v1636_v39, %v1638_v52 }
 0x19e   : > { %1463 = vrot.lane.b32.xlu0 %v6532_v28, %s5848_s22  ;;  %1319 = vrot.lane.b32.xlu1 %v6562_v53, %s5847_s21  ;;  %11545 = vst [vmem:[#allocation111_spill] sm:$0xff] %v7050_v41 }
 0x1a0   : > { %v7058_v9 = vpop.permute.xlu0 %1879  ;;  %v7060_v36 = vpop.permute.xlu1 %1664 }
 0x1a1   : > { %11548 = vst [vmem:[#allocation114_spill] sm:$0xff] %v7058_v9  ;;  %11549 = vst [vmem:[#allocation115_spill] sm:$0xff] %v7060_v36 }
 0x1a2   : > { %1682 = vrot.lane.b32.xlu0 %v6535_v58, %s5849_s23  ;;  %1465 = vrot.lane.b32.xlu1 %v6562_v53, %s5848_s22  ;;  %v7082_v58 = vpop.f32.mrb[60].mxu0 }
 0x1a3   : > { %11554 = vst [vmem:[#allocation120_spill] sm:$0xff] %v7082_v58  ;;  %v5662_v53 = vpop.f32.mrb[61].mxu0  ;;  %v1061_v25 = vrot.slane %v7082_v58, 1  ;;  %v2439_v9 = vrot.slane %v7082_v58, 6 }
 0x1a4   : > { %v7066_v28 = vpop.permute.xlu0 %2025  ;;  %v7068_v37 = vpop.permute.xlu1 %1881 }
 0x1a5   : > { %11550 = vst [vmem:[#allocation116_spill] sm:$0xff] %v7066_v28  ;;  %11551 = vst [vmem:[#allocation117_spill] sm:$0xff] %v7068_v37  ;;  %v1277_v37 = vrot.slane %v7082_v58, 2  ;;  %v1640_v28 = vrot.slane %v7082_v58, 3  ;;  %v7104_v1 = vpop.f32.mrb[62].mxu0 }
 0x1a6   : > { %1899 = vrot.lane.b32.xlu0 %v6538_v60, %s5850_s24  ;;  %1684 = vrot.lane.b32.xlu1 %v6565_v50, %s5849_s23  ;;  %v1857_v50 = vrot.slane %v7082_v58, 4  ;;  %11557 = vst [vmem:[#allocation123_spill] sm:$0xff] %v7104_v1  ;;  %v1279_v15 = vrot.slane %v7104_v1, 2 }
 0x1a7   : > { %v7098_v53 = vsel %vm1217_vm6, %v1275_v33, %v1277_v37  ;;  %v1063_v33 = vrot.slane %v7104_v1, 1 }
 0x1a8   : > { %v7074_v63 = vpop.permute.xlu1 %2027  ;;  %v7076_v39 = vpop.permute.xlu0 %1085 }
 0x1a9   : > { %11552 = vst [vmem:[#allocation118_spill] sm:$0xff] %v7074_v63  ;;  %11553 = vst [vmem:[#allocation119_spill] sm:$0xff] %v7076_v39  ;;  %v7095_v39 = vsel %vm1001_vm5, %v1059_v32, %v1061_v25 }
 0x1aa   : > { %2045 = vrot.lane.b32.xlu0 %v6538_v60, %s5851_s25  ;;  %1901 = vrot.lane.b32.xlu1 %v6568_v21, %s5850_s24  ;;  %v2221_v60 = vrot.slane %v7082_v58, 5  ;;  %v5665_v58 = vpop.f32.mrb[63].mxu0 }
 0x1ab   : > { %v7129_v58 = vsel %vm1001_vm5, %v1061_v25, %v1063_v33 }
 0x1ac   : > { %v7088_v63 = vpop.permute.xlu0 %1301  ;;  %v7090_v36 = vpop.permute.xlu1 %1087  ;;  %v7113_v32 = vsel %vm2169_vm8, %v2219_v27, %v2221_v60  ;;  %v7126_v27 = vsel %vm2387_vm9, %v2437_v19, %v2439_v9 }
 0x1ad   : > { %11555 = vst [vmem:[#allocation121_spill] sm:$0xff] %v7088_v63  ;;  %11556 = vst [vmem:[#allocation122_spill] sm:$0xff] %v7090_v36  ;;  %v7107_v63 = vsel %vm1584_vm7, %v1638_v52, %v1640_v28  ;;  %v7110_v36 = vsel %vm655_vm0, %v1855_v20, %v1857_v50  ;;  %v2223_v52 = vrot.slane %v7104_v1, 5  ;;  %v2441_v20 = vrot.slane %v7104_v1, 6 }
 0x1ae   : > { %2047 = vrot.lane.b32.xlu1 %v6568_v21, %s5851_s25  ;;  %1105 = vrot.lane.b32.xlu0 %v6589_v38, %s5846_s20  ;;  %11558 = vst [vmem:[#allocation124_spill] sm:$0xff] %v7113_v32  ;;  %v1642_v21 = vrot.slane %v7104_v1, 3  ;;  %v1859_v38 = vrot.slane %v7104_v1, 4  ;;  %11561 = vst [vmem:[#allocation127_spill] sm:$0xff] %v7126_v27  ;;  %v7132_v32 = vsel %vm1217_vm6, %v1277_v37, %v1279_v15 }
 0x1af   : > { %v7145_v19 = vsel %vm2169_vm8, %v2221_v60, %v2223_v52  ;;  %v7148_v25 = vsel %vm2387_vm9, %v2439_v9, %v2441_v20 }
 0x1b0   : > { %v7119_v51 = vpop.permute.xlu0 %1447  ;;  %v7121_v41 = vpop.permute.xlu1 %1303  ;;  %v7142_v1 = vsel %vm655_vm0, %v1857_v50, %v1859_v38  ;;  %11564 = vst [vmem:[#allocation130_spill] sm:$0xff] %v7145_v19  ;;  %11565 = vst [vmem:[#allocation131_spill] sm:$0xff] %v7148_v25 }
 0x1b1   : > { %11559 = vst [vmem:[#allocation125_spill] sm:$0xff] %v7119_v51  ;;  %11560 = vst [vmem:[#allocation126_spill] sm:$0xff] %v7121_v41  ;;  %v7139_v41 = vsel %vm1584_vm7, %v1640_v28, %v1642_v21 }
 0x1b2   : > { %1321 = vrot.lane.b32.xlu0 %v6592_v34, %s5847_s21  ;;  %1107 = vrot.lane.b32.xlu1 %v6619_v26, %s5846_s20  ;;  %11562 = vst [vmem:[#allocation128_spill] sm:$0xff] %v7139_v41  ;;  %11563 = vst [vmem:[#allocation129_spill] sm:$0xff] %v7142_v1 }
 0x1b4   : > { %v7150_v37 = vpop.permute.xlu0 %1666  ;;  %v7152_v51 = vpop.permute.xlu1 %1449 }
 0x1b5   : > { %11566 = vst [vmem:[#allocation132_spill] sm:$0xff] %v7150_v37  ;;  %11567 = vst [vmem:[#allocation133_spill] sm:$0xff] %v7152_v51 }
 0x1b6   : > { %1467 = vrot.lane.b32.xlu0 %v6592_v34, %s5848_s22  ;;  %1323 = vrot.lane.b32.xlu1 %v6622_v4, %s5847_s21  ;;  %v7174_v34 = vpop.f32.mrb[64].mxu0 }
 0x1b7   : > { %11572 = vst [vmem:[#allocation138_spill] sm:$0xff] %v7174_v34  ;;  %v5668_v60 = vpop.f32.mrb[65].mxu0  ;;  %v2225_v51 = vrot.slane %v7174_v34, 5  ;;  %v2443_v37 = vrot.slane %v7174_v34, 6 }
 0x1b8   : > { %v7158_v26 = vpop.permute.xlu0 %1883  ;;  %v7160_v28 = vpop.permute.xlu1 %1668 }
 0x1b9   : > { %11568 = vst [vmem:[#allocation134_spill] sm:$0xff] %v7158_v26  ;;  %11569 = vst [vmem:[#allocation135_spill] sm:$0xff] %v7160_v28  ;;  %v1065_v28 = vrot.slane %v7174_v34, 1  ;;  %v1644_v26 = vrot.slane %v7174_v34, 3  ;;  %v7196_v27 = vpop.f32.mrb[66].mxu0 }
 0x1ba   : > { %1686 = vrot.lane.b32.xlu0 %v6595_v40, %s5849_s23  ;;  %1469 = vrot.lane.b32.xlu1 %v6622_v4, %s5848_s22  ;;  %v1281_v40 = vrot.slane %v7174_v34, 2  ;;  %v1861_v4 = vrot.slane %v7174_v34, 4  ;;  %11575 = vst [vmem:[#allocation141_spill] sm:$0xff] %v7196_v27  ;;  %v5671_v34 = vpop.f32.mrb[67].mxu0  ;;  %v1283_v25 = vrot.slane %v7196_v27, 2  ;;  %v1863_v19 = vrot.slane %v7196_v27, 4 }
 0x1bc   : > { %v7166_v9 = vpop.permute.xlu0 %2029  ;;  %v7168_v50 = vpop.permute.xlu1 %1885  ;;  %v7190_v60 = vsel %vm1217_vm6, %v1279_v15, %v1281_v40  ;;  %v1067_v15 = vrot.slane %v7196_v27, 1 }
 0x1bd   : > { %11570 = vst [vmem:[#allocation136_spill] sm:$0xff] %v7166_v9  ;;  %11571 = vst [vmem:[#allocation137_spill] sm:$0xff] %v7168_v50 }
 0x1be   : > { %1903 = vrot.lane.b32.xlu0 %v6598_v12, %s5850_s24  ;;  %1688 = vrot.lane.b32.xlu1 %v6625_v59, %s5849_s23  ;;  %v7187_v59 = vsel %vm1001_vm5, %v1063_v33, %v1065_v28  ;;  %v7205_v33 = vsel %vm2169_vm8, %v2223_v52, %v2225_v51  ;;  %v7218_v52 = vsel %vm2387_vm9, %v2441_v20, %v2443_v37 }
 0x1bf   : > { %11576 = vst [vmem:[#allocation142_spill] sm:$0xff] %v7205_v33  ;;  %11579 = vst [vmem:[#allocation145_spill] sm:$0xff] %v7218_v52  ;;  %v7221_v34 = vsel %vm1001_vm5, %v1065_v28, %v1067_v15  ;;  %v7224_v33 = vsel %vm1217_vm6, %v1281_v40, %v1283_v25 }
 0x1c0   : > { %v7180_v9 = vpop.permute.xlu1 %2031  ;;  %v7182_v50 = vpop.permute.xlu0 %1089 }
 0x1c1   : > { %11573 = vst [vmem:[#allocation139_spill] sm:$0xff] %v7180_v9  ;;  %11574 = vst [vmem:[#allocation140_spill] sm:$0xff] %v7182_v50  ;;  %v7199_v9 = vsel %vm1584_vm7, %v1642_v21, %v1644_v26  ;;  %v7202_v50 = vsel %vm655_vm0, %v1859_v38, %v1861_v4  ;;  %v2227_v21 = vrot.slane %v7196_v27, 5  ;;  %v2445_v38 = vrot.slane %v7196_v27, 6 }
 0x1c2   : > { %2049 = vrot.lane.b32.xlu0 %v6598_v12, %s5851_s25  ;;  %1905 = vrot.lane.b32.xlu1 %v6628_v29, %s5850_s24  ;;  %v1646_v12 = vrot.slane %v7196_v27, 3  ;;  %v7234_v27 = vsel %vm655_vm0, %v1861_v4, %v1863_v19 }
 0x1c3   : > { %11580 = vst [vmem:[#allocation146_spill] sm:$0xff] %v7234_v27  ;;  %v7237_v20 = vsel %vm2169_vm8, %v2225_v51, %v2227_v21  ;;  %v7240_v28 = vsel %vm2387_vm9, %v2443_v37, %v2445_v38 }
 0x1c4   : > { %v7211_v1 = vpop.permute.xlu0 %1305  ;;  %v7213_v41 = vpop.permute.xlu1 %1091  ;;  %11581 = vst [vmem:[#allocation147_spill] sm:$0xff] %v7237_v20  ;;  %11582 = vst [vmem:[#allocation148_spill] sm:$0xff] %v7240_v28 }
 0x1c5   : > { %11577 = vst [vmem:[#allocation143_spill] sm:$0xff] %v7211_v1  ;;  %11578 = vst [vmem:[#allocation144_spill] sm:$0xff] %v7213_v41  ;;  %v7231_v1 = vsel %vm1584_vm7, %v1644_v26, %v1646_v12 }
 0x1c6   : > { %2051 = vrot.lane.b32.xlu1 %v6628_v29, %s5851_s25  ;;  %1109 = vrot.lane.b32.xlu0 %v6649_v7, %s5846_s20 }
 0x1c8   : > { %v7242_v40 = vpop.permute.xlu0 %1451  ;;  %v7244_v41 = vpop.permute.xlu1 %1307 }
 0x1c9   : > { %11583 = vst [vmem:[#allocation149_spill] sm:$0xff] %v7242_v40  ;;  %11584 = vst [vmem:[#allocation150_spill] sm:$0xff] %v7244_v41  ;;  %v11592_v40 = vld [vmem:[#allocation54_spill] sm:$0xff] }
 0x1ca   : > { %1325 = vrot.lane.b32.xlu0 %v6652_v48, %s5847_s21  ;;  %1111 = vrot.lane.b32.xlu1 %v6679_v44, %s5846_s20  ;;  %v7266_v44 = vpop.f32.mrb[68].mxu0 }
 0x1cb   : > { %11589 = vst [vmem:[#allocation155_spill] sm:$0xff] %v7266_v44  ;;  %v5674_v26 = vpop.f32.mrb[69].mxu0  ;;  %v1069_v4 = vrot.slane %v7266_v44, 1  ;;  %v1865_v41 = vrot.slane %v7266_v44, 4 }
 0x1cc   : > { %v7250_v7 = vpop.permute.xlu0 %1670  ;;  %v7252_v29 = vpop.permute.xlu1 %1453 }
 0x1cd   : > { %11585 = vst [vmem:[#allocation151_spill] sm:$0xff] %v7250_v7  ;;  %11586 = vst [vmem:[#allocation152_spill] sm:$0xff] %v7252_v29  ;;  %v1648_v7 = vrot.slane %v7266_v44, 3  ;;  %v2447_v29 = vrot.slane %v7266_v44, 6  ;;  %v7288_v52 = vpop.f32.mrb[70].mxu0 }
 0x1ce   : > { %1471 = vrot.lane.b32.xlu0 %v6652_v48, %s5848_s22  ;;  %1327 = vrot.lane.b32.xlu1 %v6682_v3, %s5847_s21  ;;  %v1285_v48 = vrot.slane %v7266_v44, 2  ;;  %11593 = vst [vmem:[#allocation54_spill] sm:$0xff] %v7288_v52  ;;  %v7301_v28 = vrot.slane %v7288_v52, 2  ;;  %v1650_v20 = vrot.slane %v7288_v52, 3 }
 0x1d0   : > { %v7258_v51 = vpop.permute.xlu0 %1887  ;;  %v7260_v37 = vpop.permute.xlu1 %1672  ;;  %v7282_v26 = vsel %vm1217_vm6, %v1283_v25, %v1285_v48  ;;  %v11363_v25 = vrot.slane %v7288_v52, 1 }
 0x1d1   : > { %11587 = vst [vmem:[#allocation153_spill] sm:$0xff] %v7258_v51  ;;  %11588 = vst [vmem:[#allocation154_spill] sm:$0xff] %v7260_v37 }
 0x1d2   : > { %1690 = vrot.lane.b32.xlu0 %v6655_v0, %s5849_s23  ;;  %1473 = vrot.lane.b32.xlu1 %v6682_v3, %s5848_s22  ;;  %v2229_v0 = vrot.slane %v7266_v44, 5  ;;  %v7279_v3 = vsel %vm1001_vm5, %v1067_v15, %v1069_v4  ;;  %v5677_v44 = vpop.f32.mrb[71].mxu0 }
 0x1d3   : > { %v7317_v44 = vsel %vm1001_vm5, %v1069_v4, %v11363_v25 }
 0x1d4   : > { %v7272_v51 = vpop.permute.xlu0 %2033  ;;  %v7274_v37 = vpop.permute.xlu1 %1889  ;;  %v7297_v15 = vsel %vm2169_vm8, %v2227_v21, %v2229_v0  ;;  %v7312_v21 = vsel %vm2387_vm9, %v2445_v38, %v2447_v29 }
 0x1d5   : > { %11590 = vst [vmem:[#allocation156_spill] sm:$0xff] %v7272_v51  ;;  %11591 = vst [vmem:[#allocation157_spill] sm:$0xff] %v7274_v37  ;;  %v7291_v37 = vsel %vm1584_vm7, %v1646_v12, %v1648_v7  ;;  %v7294_v51 = vsel %vm655_vm0, %v1863_v19, %v1865_v41  ;;  %v2231_v19 = vrot.slane %v7288_v52, 5 }
 0x1d6   : > { %1907 = vrot.lane.b32.xlu0 %v6658_v43, %s5850_s24  ;;  %1692 = vrot.lane.b32.xlu1 %v11592_v40, %s5849_s23  ;;  %11594 = vst [vmem:[#allocation158_spill] sm:$0xff] %v7294_v51  ;;  %11595 = vst [vmem:[#allocation159_spill] sm:$0xff] %v7297_v15  ;;  %v1867_v40 = vrot.slane %v7288_v52, 4  ;;  %v2449_v51 = vrot.slane %v7288_v52, 6  ;;  %v7321_v15 = vsel %vm1217_vm6, %v1285_v48, %v7301_v28 }
 0x1d7   : > { %11598 = vst [vmem:[#allocation162_spill] sm:$0xff] %v7312_v21  ;;  %v7334_v21 = vsel %vm2169_vm8, %v2229_v0, %v2231_v19 }
 0x1d8   : > { %v7305_v27 = vpop.permute.xlu1 %2035  ;;  %v7307_v12 = vpop.permute.xlu0 %1093  ;;  %v7331_v38 = vsel %vm655_vm0, %v1865_v41, %v1867_v40  ;;  %v7337_v4 = vsel %vm2387_vm9, %v2447_v29, %v2449_v51 }
 0x1d9   : > { %11596 = vst [vmem:[#allocation160_spill] sm:$0xff] %v7305_v27  ;;  %11597 = vst [vmem:[#allocation161_spill] sm:$0xff] %v7307_v12  ;;  %v11599_v27 = vld [vmem:[#allocation55_spill] sm:$0xff]  ;;  %v7328_v12 = vsel %vm1584_vm7, %v1648_v7, %v1650_v20 }
 0x1da   : > { %2053 = vrot.lane.b32.xlu0 %v6658_v43, %s5851_s25  ;;  %1909 = vrot.lane.b32.xlu1 %v11599_v27, %s5850_s24  ;;  %11600 = vst [vmem:[#allocation55_spill] sm:$0xff] %v7334_v21  ;;  %11601 = vst [vmem:[#allocation163_spill] sm:$0xff] %v7337_v4 }
 0x1dc   : > { %v7339_v48 = vpop.permute.xlu0 %1309  ;;  %v7341_v25 = vpop.permute.xlu1 %1095 }
 0x1dd   : > { %11602 = vst [vmem:[#allocation164_spill] sm:$0xff] %v7339_v48  ;;  %11603 = vst [vmem:[#allocation165_spill] sm:$0xff] %v7341_v25 }
 0x1de   : > { %2055 = vrot.lane.b32.xlu1 %v11599_v27, %s5851_s25  ;;  %1113 = vrot.lane.b32.xlu0 %v6710_v35, %s5846_s20 }
 0x1e0   : > { %v7347_v43 = vpop.permute.xlu0 %1455  ;;  %v7349_v41 = vpop.permute.xlu1 %1311 }
 0x1e1   : > { %11604 = vst [vmem:[#allocation166_spill] sm:$0xff] %v7347_v43  ;;  %11605 = vst [vmem:[#allocation167_spill] sm:$0xff] %v7349_v41 }
 0x1e2   : > { %1329 = vrot.lane.b32.xlu0 %v6713_v31, %s5847_s21  ;;  %1115 = vrot.lane.b32.xlu1 %v6749_v56, %s5846_s20  ;;  %v905_v56 = vpop.f32.mrb[72].mxu0 }
 0x1e3   : > { %v5680_v0 = vpop.f32.mrb[73].mxu0  ;;  %v1435_v41 = vrot.slane %v905_v56, 2  ;;  %v2233_v48 = vrot.slane %v905_v56, 5  ;;  %v2451_v43 = vrot.slane %v905_v56, 6 }
 0x1e4   : > { %v7355_v7 = vpop.permute.xlu0 %1674  ;;  %v7357_v29 = vpop.permute.xlu1 %1457  ;;  %v11613_v0 = vld [vmem:[#allocation63_spill] sm:$0xff] }
 0x1e5   : > { %11606 = vst [vmem:[#allocation168_spill] sm:$0xff] %v7355_v7  ;;  %11607 = vst [vmem:[#allocation169_spill] sm:$0xff] %v7357_v29  ;;  %v1652_v7 = vrot.slane %v905_v56, 3  ;;  %v1869_v29 = vrot.slane %v905_v56, 4  ;;  %v7393_v56 = vsel %vm2387_vm9, %v2449_v51, %v2451_v43 }
 0x1e6   : > { %1475 = vrot.lane.b32.xlu0 %v6713_v31, %s5848_s22  ;;  %1331 = vrot.lane.b32.xlu1 %v6752_v23, %s5847_s21  ;;  %11615 = vst [vmem:[#allocation174_spill] sm:$0xff] %v7393_v56 }
 0x1e8   : > { %v7363_v35 = vpop.permute.xlu0 %1891  ;;  %v7365_v27 = vpop.permute.xlu1 %1676 }
 0x1e9   : > { %11608 = vst [vmem:[#allocation170_spill] sm:$0xff] %v7363_v35  ;;  %11609 = vst [vmem:[#allocation171_spill] sm:$0xff] %v7365_v27  ;;  %v7377_v35 = vsel %vm1217_vm6, %v7301_v28, %v1435_v41  ;;  %v7387_v27 = vsel %vm655_vm0, %v1867_v40, %v1869_v29 }
 0x1ea   : > { %1694 = vrot.lane.b32.xlu0 %v6716_v61, %s5849_s23  ;;  %1477 = vrot.lane.b32.xlu1 %v6752_v23, %s5848_s22  ;;  %v7380_v61 = vsel %vm1584_vm7, %v1650_v20, %v1652_v7  ;;  %v11612_v23 = vld [vmem:[#allocation59_spill] sm:$0xff]  ;;  %v11618_v20 = vld [vmem:[#allocation64_spill] sm:$0xff] }
 0x1ec   : > { %v7371_v25 = vpop.permute.xlu0 %2037  ;;  %v7373_v31 = vpop.permute.xlu1 %1893 }
 0x1ed   : > { %11610 = vst [vmem:[#allocation172_spill] sm:$0xff] %v7371_v25  ;;  %11611 = vst [vmem:[#allocation173_spill] sm:$0xff] %v7373_v31  ;;  %v7390_v31 = vsel %vm2169_vm8, %v2231_v19, %v2233_v48 }
 0x1ee   : > { %1911 = vrot.lane.b32.xlu0 %v11612_v23, %s5850_s24  ;;  %1696 = vrot.lane.b32.xlu1 %v11613_v0, %s5849_s23  ;;  %11614 = vst [vmem:[#allocation63_spill] sm:$0xff] %v7390_v31  ;;  %v7403_v0 = vpop.f32.mrb[74].mxu0 }
 0x1ef   : > { %v5683_v40 = vpop.f32.mrb[75].mxu0  ;;  %v11364_v21 = vrot.slane %v7403_v0, 2  ;;  %v1654_v19 = vrot.slane %v7403_v0, 3  ;;  %v1871_v51 = vrot.slane %v7403_v0, 4  ;;  %v2453_v31 = vrot.slane %v7403_v0, 6 }
 0x1f0   : > { %v7395_v25 = vpop.permute.xlu1 %2039  ;;  %v7397_v4 = vpop.permute.xlu0 %1097 }
 0x1f1   : > { %11616 = vst [vmem:[#allocation175_spill] sm:$0xff] %v7395_v25  ;;  %11617 = vst [vmem:[#allocation176_spill] sm:$0xff] %v7397_v4  ;;  %v2235_v4 = vrot.slane %v7403_v0, 5  ;;  %v7420_v40 = vsel %vm1584_vm7, %v1652_v7, %v1654_v19  ;;  %v7433_v23 = vsel %vm2387_vm9, %v2451_v43, %v2453_v31 }
 0x1f2   : > { %1913 = vrot.lane.b32.xlu1 %v11618_v20, %s5850_s24  ;;  %1117 = vrot.lane.b32.xlu0 %v6779_v47, %s5846_s20  ;;  %v7417_v47 = vsel %vm1217_vm6, %v1435_v41, %v11364_v21  ;;  %11622 = vst [vmem:[#allocation179_spill] sm:$0xff] %v7433_v23 }
 0x1f4   : > { %v7408_v56 = vpop.permute.xlu0 %1313  ;;  %v7410_v25 = vpop.permute.xlu1 %1099 }
 0x1f5   : > { %11619 = vst [vmem:[#allocation64_spill] sm:$0xff] %v7408_v56  ;;  %11620 = vst [vmem:[#allocation177_spill] sm:$0xff] %v7410_v25  ;;  %v7427_v25 = vsel %vm655_vm0, %v1869_v29, %v1871_v51  ;;  %v7430_v56 = vsel %vm2169_vm8, %v2233_v48, %v2235_v4 }
 0x1f6   : > { %1333 = vrot.lane.b32.xlu0 %v6782_v30, %s5847_s21  ;;  %1119 = vrot.lane.b32.xlu1 %v6821_v49, %s5846_s20  ;;  %11621 = vst [vmem:[#allocation178_spill] sm:$0xff] %v7430_v56 }
 0x1f8   : > { %v7435_v41 = vpop.permute.xlu0 %1459  ;;  %v7437_v21 = vpop.permute.xlu1 %1315 }
 0x1f9   : > { %11623 = vst [vmem:[#allocation180_spill] sm:$0xff] %v7435_v41  ;;  %11624 = vst [vmem:[#allocation181_spill] sm:$0xff] %v7437_v21 }
 0x1fa   : > { %1479 = vrot.lane.b32.xlu0 %v6782_v30, %s5848_s22  ;;  %1335 = vrot.lane.b32.xlu1 %v6824_v10, %s5847_s21 }
 0x1fc   : > { %v7443_v49 = vpop.permute.xlu0 %1678  ;;  %v7445_v7 = vpop.permute.xlu1 %1461 }
 0x1fd   : > { %11625 = vst [vmem:[#allocation182_spill] sm:$0xff] %v7443_v49  ;;  %11626 = vst [vmem:[#allocation183_spill] sm:$0xff] %v7445_v7  ;;  %v915_v48 = vpop.f32.mrb[76].mxu0 }
 0x1fe   : > { %1698 = vrot.lane.b32.xlu0 %v6785_v42, %s5849_s23  ;;  %1481 = vrot.lane.b32.xlu1 %v6824_v10, %s5848_s22  ;;  %v1656_v43 = vrot.slane %v915_v48, 3  ;;  %v1873_v29 = vrot.slane %v915_v48, 4  ;;  %v2237_v21 = vrot.slane %v915_v48, 5  ;;  %v2455_v41 = vrot.slane %v915_v48, 6  ;;  %v5686_v23 = vpop.f32.mrb[77].mxu0 }
 0x200   : > { %v7451_v30 = vpop.permute.xlu0 %1895  ;;  %v7453_v56 = vpop.permute.xlu1 %1680  ;;  %v7456_v49 = vsel %vm1584_vm7, %v1654_v19, %v1656_v43  ;;  %v7459_v7 = vsel %vm655_vm0, %v1871_v51, %v1873_v29  ;;  %v7466_v42 = vsel %vm2169_vm8, %v2235_v4, %v2237_v21  ;;  %v7469_v10 = vsel %vm2387_vm9, %v2453_v31, %v2455_v41  ;;  %v11632_v19 = vld [vmem:[#allocation71_spill] sm:$0xff] }
 0x201   : > { %11627 = vst [vmem:[#allocation184_spill] sm:$0xff] %v7451_v30  ;;  %11628 = vst [vmem:[#allocation185_spill] sm:$0xff] %v7453_v56 }
 0x202   : > { %1915 = vrot.lane.b32.xlu0 %v6788_v2, %s5850_s24  ;;  %1700 = vrot.lane.b32.xlu1 %v6827_v13, %s5849_s23  ;;  %11629 = vst [vmem:[#allocation186_spill] sm:$0xff] %v7466_v42 }
 0x204   : > { %v7471_v23 = vpop.permute.xlu0 %2041  ;;  %v7473_v48 = vpop.permute.xlu1 %1897 }
 0x205   : > { %11630 = vst [vmem:[#allocation187_spill] sm:$0xff] %v7471_v23  ;;  %11631 = vst [vmem:[#allocation188_spill] sm:$0xff] %v7473_v48 }
 0x206   : > { %1917 = vrot.lane.b32.xlu1 %v11632_v19, %s5850_s24  ;;  %1121 = vrot.lane.b32.xlu0 %v6853_v22, %s5846_s20 }
 0x207   : > { %v920_v51 = vpop.f32.mrb[78].mxu0 }
 0x208   : > { %v2021_v43 = vrot.slane %v920_v51, 4  ;;  %v2239_v56 = vrot.slane %v920_v51, 5  ;;  %v2457_v13 = vrot.slane %v920_v51, 6  ;;  %v5689_v30 = vpop.f32.mrb[79].mxu0  ;;  %v7479_v4 = vpop.permute.xlu1 %2043 }
 0x209   : > { %11633 = vst [vmem:[#allocation71_spill] sm:$0xff] %v7479_v4  ;;  %v7481_v42 = vpop.permute.xlu0 %1101 }
 0x20a   : > { %v7484_v31 = vsel %vm655_vm0, %v1873_v29, %v2021_v43  ;;  %1337 = vrot.lane.b32.xlu0 %v6856_v24, %s5847_s21  ;;  %1123 = vrot.lane.b32.xlu1 %v6911_v54, %s5846_s20  ;;  %v7491_v22 = vsel %vm2169_vm8, %v2237_v21, %v2239_v56  ;;  %v7494_v48 = vsel %vm2387_vm9, %v2455_v41, %v2457_v13  ;;  %v11635_v54 = vld [vmem:[#allocation76_spill] sm:$0xff] }
 0x20c   : > { %v7498_v51 = vpop.permute.xlu1 %1103 }
 0x20d   : > { %v7496_v30 = vpop.permute.xlu0 %1317 }
 0x20e   : > { %11634 = vst [vmem:[#allocation189_spill] sm:$0xff] %v7496_v30  ;;  %1483 = vrot.lane.b32.xlu0 %v6856_v24, %s5848_s22  ;;  %1339 = vrot.lane.b32.xlu1 %v6914_v57, %s5847_s21  ;;  %v11637_v30 = vld [vmem:[#allocation77_spill] sm:$0xff] }
 0x210   : > { %v7506_v4 = vpop.permute.xlu1 %1319 }
 0x211   : > { %v7504_v29 = vpop.permute.xlu0 %1463 }
 0x212   : > { %1702 = vrot.lane.b32.xlu0 %v11635_v54, %s5849_s23  ;;  %1485 = vrot.lane.b32.xlu1 %v6914_v57, %s5848_s22 }
 0x214   : > { %v7514_v41 = vpop.permute.xlu1 %1465 }
 0x215   : > { %v7512_v21 = vpop.permute.xlu0 %1682  ;;  %11636 = vst [vmem:[#allocation76_spill] sm:$0xff] %v7514_v41 }
 0x216   : > { %1919 = vrot.lane.b32.xlu0 %v11637_v30, %s5850_s24  ;;  %1704 = vrot.lane.b32.xlu1 %v6923_v17, %s5849_s23 }
 0x218   : > { %v7522_v23 = vpop.permute.xlu1 %1684 }
 0x219   : > { %v7520_v24 = vpop.permute.xlu0 %1899  ;;  %11639 = vst [vmem:[#allocation190_spill] sm:$0xff] %v7522_v23 }
 0x21a   : > { %11638 = vst [vmem:[#allocation77_spill] sm:$0xff] %v7520_v24  ;;  %1921 = vrot.lane.b32.xlu1 %v6926_v55, %s5850_s24  ;;  %1125 = vrot.lane.b32.xlu0 %v6945_v6, %s5846_s20 }
 0x21c   : > { %v7530_v54 = vpop.permute.xlu1 %1901 }
 0x21d   : > { %v7528_v57 = vpop.permute.xlu0 %2045  ;;  %11641 = vst [vmem:[#allocation192_spill] sm:$0xff] %v7530_v54  ;;  %v11647_v54 = vld [vmem:[#allocation94_spill] sm:$0xff] }
 0x21e   : > { %11640 = vst [vmem:[#allocation191_spill] sm:$0xff] %v7528_v57  ;;  %1341 = vrot.lane.b32.xlu0 %v6948_v8, %s5847_s21  ;;  %1127 = vrot.lane.b32.xlu1 %v7003_v11, %s5846_s20 }
 0x220   : > { %v7536_v17 = vpop.permute.xlu1 %2047 }
 0x221   : > { %11642 = vst [vmem:[#allocation193_spill] sm:$0xff] %v7536_v17  ;;  %v7538_v24 = vpop.permute.xlu0 %1105 }
 0x222   : > { %11643 = vst [vmem:[#allocation194_spill] sm:$0xff] %v7538_v24  ;;  %1487 = vrot.lane.b32.xlu0 %v6948_v8, %s5848_s22  ;;  %1343 = vrot.lane.b32.xlu1 %v7006_v5, %s5847_s21 }
 0x224   : > { %v7546_v57 = vpop.permute.xlu1 %1107 }
 0x225   : > { %v7544_v6 = vpop.permute.xlu0 %1321  ;;  %11645 = vst [vmem:[#allocation196_spill] sm:$0xff] %v7546_v57 }
 0x226   : > { %11644 = vst [vmem:[#allocation195_spill] sm:$0xff] %v7544_v6  ;;  %1706 = vrot.lane.b32.xlu0 %v6955_v45, %s5849_s23  ;;  %1489 = vrot.lane.b32.xlu1 %v7006_v5, %s5848_s22 }
 0x228   : > { %v7554_v17 = vpop.permute.xlu1 %1323  ;;  %v925_v8 = vpop.f32.mrb[80].mxu0 }
 0x229   : > { %v7552_v11 = vpop.permute.xlu0 %1467  ;;  %11646 = vst [vmem:[#allocation197_spill] sm:$0xff] %v7554_v17  ;;  %v2023_v6 = vrot.slane %v925_v8, 4  ;;  %v2241_v23 = vrot.slane %v925_v8, 5  ;;  %v2459_v57 = vrot.slane %v925_v8, 6  ;;  %v5692_v24 = vpop.f32.mrb[81].mxu0 }
 0x22a   : > { %1923 = vrot.lane.b32.xlu0 %v11647_v54, %s5850_s24  ;;  %1708 = vrot.lane.b32.xlu1 %v7015_v18, %s5849_s23 }
 0x22b   : > { %v7569_v5 = vsel %vm655_vm0, %v2021_v43, %v2023_v6  ;;  %v7572_v18 = vsel %vm2169_vm8, %v2239_v56, %v2241_v23  ;;  %v7575_v17 = vsel %vm2387_vm9, %v2457_v13, %v2459_v57  ;;  %v11649_v57 = vld [vmem:[#allocation111_spill] sm:$0xff] }
 0x22c   : > { %v7562_v45 = vpop.permute.xlu1 %1469 }
 0x22d   : > { %v7560_v41 = vpop.permute.xlu0 %1686 }
 0x22e   : > { %1925 = vrot.lane.b32.xlu1 %v7018_v16, %s5850_s24  ;;  %1129 = vrot.lane.b32.xlu0 %v7037_v46, %s5846_s20 }
 0x230   : > { %v7579_v8 = vpop.permute.xlu1 %1688 }
 0x231   : > { %v7577_v24 = vpop.permute.xlu0 %1903 }
 0x232   : > { %1345 = vrot.lane.b32.xlu0 %v7040_v62, %s5847_s21  ;;  %1131 = vrot.lane.b32.xlu1 %v7095_v39, %s5846_s20 }
 0x234   : > { %v7587_v43 = vpop.permute.xlu1 %1905 }
 0x235   : > { %v7585_v46 = vpop.permute.xlu0 %2049 }
 0x236   : > { %1491 = vrot.lane.b32.xlu0 %v7040_v62, %s5848_s22  ;;  %1347 = vrot.lane.b32.xlu1 %v7098_v53, %s5847_s21 }
 0x238   : > { %v7593_v56 = vpop.permute.xlu1 %2051 }
 0x239   : > { %11648 = vst [vmem:[#allocation94_spill] sm:$0xff] %v7593_v56  ;;  %v7595_v23 = vpop.permute.xlu0 %1109 }
 0x23a   : > { %1710 = vrot.lane.b32.xlu0 %v7047_v14, %s5849_s23  ;;  %1493 = vrot.lane.b32.xlu1 %v7098_v53, %s5848_s22 }
 0x23c   : > { %v7603_v13 = vpop.permute.xlu1 %1111 }
 0x23d   : > { %v7601_v39 = vpop.permute.xlu0 %1325 }
 0x23e   : > { %1927 = vrot.lane.b32.xlu0 %v11649_v57, %s5850_s24  ;;  %1712 = vrot.lane.b32.xlu1 %v7107_v63, %s5849_s23 }
 0x240   : > { %v7611_v6 = vpop.permute.xlu1 %1327 }
 0x241   : > { %v7609_v62 = vpop.permute.xlu0 %1471  ;;  %11650 = vst [vmem:[#allocation111_spill] sm:$0xff] %v7611_v6 }
 0x242   : > { %1929 = vrot.lane.b32.xlu1 %v7110_v36, %s5850_s24  ;;  %1133 = vrot.lane.b32.xlu0 %v7129_v58, %s5846_s20 }
 0x244   : > { %v7619_v53 = vpop.permute.xlu1 %1473 }
 0x245   : > { %v7617_v14 = vpop.permute.xlu0 %1690 }
 0x246   : > { %11651 = vst [vmem:[#allocation198_spill] sm:$0xff] %v7617_v14  ;;  %1349 = vrot.lane.b32.xlu0 %v7132_v32, %s5847_s21  ;;  %1135 = vrot.lane.b32.xlu1 %v7187_v59, %s5846_s20  ;;  %v11656_v14 = vld [vmem:[#allocation128_spill] sm:$0xff] }
 0x248   : > { %v7627_v56 = vpop.permute.xlu1 %1692 }
 0x249   : > { %v7625_v63 = vpop.permute.xlu0 %1907  ;;  %11653 = vst [vmem:[#allocation200_spill] sm:$0xff] %v7627_v56  ;;  %v11658_v56 = vld [vmem:[#allocation129_spill] sm:$0xff] }
 0x24a   : > { %11652 = vst [vmem:[#allocation199_spill] sm:$0xff] %v7625_v63  ;;  %1495 = vrot.lane.b32.xlu0 %v7132_v32, %s5848_s22  ;;  %1351 = vrot.lane.b32.xlu1 %v7190_v60, %s5847_s21 }
 0x24c   : > { %v7635_v6 = vpop.permute.xlu1 %1909 }
 0x24d   : > { %v7633_v58 = vpop.permute.xlu0 %2053  ;;  %11655 = vst [vmem:[#allocation202_spill] sm:$0xff] %v7635_v6 }
 0x24e   : > { %11654 = vst [vmem:[#allocation201_spill] sm:$0xff] %v7633_v58  ;;  %1714 = vrot.lane.b32.xlu0 %v11656_v14, %s5849_s23  ;;  %1497 = vrot.lane.b32.xlu1 %v7190_v60, %s5848_s22 }
 0x250   : > { %v7641_v59 = vpop.permute.xlu1 %2055 }
 0x251   : > { %11657 = vst [vmem:[#allocation128_spill] sm:$0xff] %v7641_v59  ;;  %v7643_v63 = vpop.permute.xlu0 %1113 }
 0x252   : > { %1931 = vrot.lane.b32.xlu0 %v11658_v56, %s5850_s24  ;;  %1716 = vrot.lane.b32.xlu1 %v7199_v9, %s5849_s23 }
 0x254   : > { %v7651_v58 = vpop.permute.xlu1 %1115 }
 0x255   : > { %v7649_v32 = vpop.permute.xlu0 %1329 }
 0x256   : > { %1933 = vrot.lane.b32.xlu1 %v7202_v50, %s5850_s24  ;;  %1137 = vrot.lane.b32.xlu0 %v7221_v34, %s5846_s20 }
 0x258   : > { %v7659_v14 = vpop.permute.xlu1 %1331 }
 0x259   : > { %v7657_v60 = vpop.permute.xlu0 %1475  ;;  %11659 = vst [vmem:[#allocation129_spill] sm:$0xff] %v7659_v14 }
 0x25a   : > { %1353 = vrot.lane.b32.xlu0 %v7224_v33, %s5847_s21  ;;  %1139 = vrot.lane.b32.xlu1 %v7279_v3, %s5846_s20 }
 0x25c   : > { %v7667_v59 = vpop.permute.xlu1 %1477 }
 0x25d   : > { %v7665_v9 = vpop.permute.xlu0 %1694  ;;  %11660 = vst [vmem:[#allocation203_spill] sm:$0xff] %v7667_v59  ;;  %v11664_v59 = vld [vmem:[#allocation146_spill] sm:$0xff] }
 0x25e   : > { %1499 = vrot.lane.b32.xlu0 %v7224_v33, %s5848_s22  ;;  %1355 = vrot.lane.b32.xlu1 %v7282_v26, %s5847_s21 }
 0x260   : > { %v7675_v6 = vpop.permute.xlu1 %1696 }
 0x261   : > { %v7673_v34 = vpop.permute.xlu0 %1911  ;;  %11662 = vst [vmem:[#allocation205_spill] sm:$0xff] %v7675_v6  ;;  %v11666_v6 = vld [vmem:[#allocation158_spill] sm:$0xff] }
 0x262   : > { %11661 = vst [vmem:[#allocation204_spill] sm:$0xff] %v7673_v34  ;;  %1718 = vrot.lane.b32.xlu0 %v7231_v1, %s5849_s23  ;;  %1501 = vrot.lane.b32.xlu1 %v7282_v26, %s5848_s22 }
 0x264   : > { %v7681_v3 = vpop.permute.xlu1 %1913 }
 0x265   : > { %11663 = vst [vmem:[#allocation206_spill] sm:$0xff] %v7681_v3  ;;  %v7683_v14 = vpop.permute.xlu0 %1117  ;;  %v11668_v3 = vrot.slane %v7288_v52, 1 }
 0x266   : > { %1935 = vrot.lane.b32.xlu0 %v11664_v59, %s5850_s24  ;;  %1720 = vrot.lane.b32.xlu1 %v7291_v37, %s5849_s23 }
 0x268   : > { %v7691_v34 = vpop.permute.xlu1 %1119 }
 0x269   : > { %v7689_v33 = vpop.permute.xlu0 %1333 }
 0x26a   : > { %11665 = vst [vmem:[#allocation146_spill] sm:$0xff] %v7689_v33  ;;  %1937 = vrot.lane.b32.xlu1 %v11666_v6, %s5850_s24  ;;  %1141 = vrot.lane.b32.xlu0 %v7317_v44, %s5846_s20 }
 0x26c   : > { %v7699_v26 = vpop.permute.xlu1 %1335 }
 0x26d   : > { %v7697_v1 = vpop.permute.xlu0 %1479  ;;  %11667 = vst [vmem:[#allocation158_spill] sm:$0xff] %v7699_v26 }
 0x26e   : > { %1143 = vrot.lane.b32.xlu1 %v11668_v3, %s5846_s20  ;;  %1357 = vrot.lane.b32.xlu0 %v7321_v15, %s5847_s21 }
 0x270   : > { %v7708_v33 = vpop.permute.xlu1 %1481 }
 0x271   : > { %v7706_v37 = vpop.permute.xlu0 %1698 }
 0x272   : > { %1359 = vrot.lane.b32.xlu1 %v7301_v28, %s5847_s21  ;;  %1503 = vrot.lane.b32.xlu0 %v7321_v15, %s5848_s22 }
 0x274   : > { %v7716_v26 = vpop.permute.xlu1 %1700 }
 0x275   : > { %v7714_v44 = vpop.permute.xlu0 %1915  ;;  %11669 = vst [vmem:[#allocation207_spill] sm:$0xff] %v7716_v26 }
 0x276   : > { %1722 = vrot.lane.b32.xlu0 %v7328_v12, %s5849_s23  ;;  %1505 = vrot.lane.b32.xlu1 %v7377_v35, %s5848_s22 }
 0x278   : > { %v7722_v3 = vpop.permute.xlu1 %1917 }
 0x279   : > { %11670 = vst [vmem:[#allocation208_spill] sm:$0xff] %v7722_v3  ;;  %v7724_v52 = vpop.permute.xlu0 %1121  ;;  %v11672_v3 = vrot.slane %v7403_v0, 2  ;;  %v11676_v0 = vld [vmem:[#allocation59_spill] sm:$0xff] }
 0x27a   : > { %1939 = vrot.lane.b32.xlu0 %v7331_v38, %s5850_s24  ;;  %1724 = vrot.lane.b32.xlu1 %v7380_v61, %s5849_s23 }
 0x27c   : > { %v7732_v15 = vpop.permute.xlu1 %1123 }
 0x27d   : > { %v7730_v28 = vpop.permute.xlu0 %1337 }
 0x27e   : > { %1941 = vrot.lane.b32.xlu1 %v7387_v27, %s5850_s24  ;;  %1507 = vrot.lane.b32.xlu0 %v7417_v47, %s5848_s22 }
 0x280   : > { %v7740_v35 = vpop.permute.xlu1 %1339 }
 0x281   : > { %v7738_v12 = vpop.permute.xlu0 %1483 }
 0x282   : > { %11671 = vst [vmem:[#allocation209_spill] sm:$0xff] %v7738_v12  ;;  %1509 = vrot.lane.b32.xlu1 %v11672_v3, %s5848_s22  ;;  %1726 = vrot.lane.b32.xlu0 %v7420_v40, %s5849_s23 }
 0x284   : > { %v7749_v26 = vpop.permute.xlu1 %1485 }
 0x285   : > { %v7747_v61 = vpop.permute.xlu0 %1702 }
 0x286   : > { %11673 = vst [vmem:[#allocation210_spill] sm:$0xff] %v7747_v61  ;;  %2059 = vrot.lane.b32.xlu1 %v11618_v20, %s5851_s25  ;;  %1943 = vrot.lane.b32.xlu0 %v7427_v25, %s5850_s24 }
 0x288   : > { %v7757_v12 = vpop.permute.xlu1 %1704 }
 0x289   : > { %v7755_v47 = vpop.permute.xlu0 %1919  ;;  %11675 = vst [vmem:[#allocation212_spill] sm:$0xff] %v7757_v12 }
 0x28a   : > { %11674 = vst [vmem:[#allocation211_spill] sm:$0xff] %v7755_v47  ;;  %2057 = vrot.lane.b32.xlu0 %v11676_v0, %s5851_s25  ;;  %1728 = vrot.lane.b32.xlu1 %v7456_v49, %s5849_s23 }
 0x28c   : > { %v7763_v40 = vpop.permute.xlu1 %1921 }
 0x28d   : > { %11677 = vst [vmem:[#allocation59_spill] sm:$0xff] %v7763_v40  ;;  %v7765_v3 = vpop.permute.xlu0 %1125 }
 0x28e   : > { %2061 = vrot.lane.b32.xlu0 %v6788_v2, %s5851_s25  ;;  %1945 = vrot.lane.b32.xlu1 %v7459_v7, %s5850_s24 }
 0x290   : > { %v7773_v47 = vpop.permute.xlu1 %1127 }
 0x291   : > { %v7771_v20 = vpop.permute.xlu0 %1341 }
 0x292   : > { %2065 = vrot.lane.b32.xlu0 %v11637_v30, %s5851_s25  ;;  %2063 = vrot.lane.b32.xlu1 %v11632_v19, %s5851_s25 }
 0x294   : > { %v7781_v0 = vpop.permute.xlu1 %1343 }
 0x295   : > { %v7779_v49 = vpop.permute.xlu0 %1487  ;;  %11679 = vst [vmem:[#allocation214_spill] sm:$0xff] %v7781_v0 }
 0x296   : > { %11678 = vst [vmem:[#allocation213_spill] sm:$0xff] %v7779_v49  ;;  %2069 = vrot.lane.b32.xlu0 %v11647_v54, %s5851_s25  ;;  %2067 = vrot.lane.b32.xlu1 %v6926_v55, %s5851_s25  ;;  %v11887_v49 = vld [vmem:[#allocation136_spill] sm:$0xff] }
 0x298   : > { %v7789_v40 = vpop.permute.xlu1 %1489 }
 0x299   : > { %v7787_v2 = vpop.permute.xlu0 %1706  ;;  %11681 = vst [vmem:[#allocation216_spill] sm:$0xff] %v7789_v40 }
 0x29a   : > { %11680 = vst [vmem:[#allocation215_spill] sm:$0xff] %v7787_v2  ;;  %2073 = vrot.lane.b32.xlu0 %v11649_v57, %s5851_s25  ;;  %2071 = vrot.lane.b32.xlu1 %v7018_v16, %s5851_s25 }
 0x29c   : > { %v7797_v30 = vpop.permute.xlu1 %1708 }
 0x29d   : > { %v7795_v19 = vpop.permute.xlu0 %1923  ;;  %11683 = vst [vmem:[#allocation218_spill] sm:$0xff] %v7797_v30 }
 0x29e   : > { %11682 = vst [vmem:[#allocation217_spill] sm:$0xff] %v7795_v19  ;;  %2077 = vrot.lane.b32.xlu0 %v11658_v56, %s5851_s25  ;;  %2075 = vrot.lane.b32.xlu1 %v7110_v36, %s5851_s25  ;;  %v11834_v19 = vld [vmem:[#allocation5_spill] sm:$0xff] }
 0x2a0   : > { %v7803_v55 = vpop.permute.xlu1 %1925 }
 0x2a1   : > { %11684 = vst [vmem:[#allocation219_spill] sm:$0xff] %v7803_v55  ;;  %v7805_v54 = vpop.permute.xlu0 %1129 }
 0x2a2   : > { %11685 = vst [vmem:[#allocation220_spill] sm:$0xff] %v7805_v54  ;;  %2081 = vrot.lane.b32.xlu0 %v11664_v59, %s5851_s25  ;;  %2079 = vrot.lane.b32.xlu1 %v7202_v50, %s5851_s25  ;;  %v11854_v54 = vld [vmem:[#allocation102_spill] sm:$0xff] }
 0x2a4   : > { %v7813_v57 = vpop.permute.xlu1 %1131 }
 0x2a5   : > { %v7811_v16 = vpop.permute.xlu0 %1345  ;;  %11687 = vst [vmem:[#allocation222_spill] sm:$0xff] %v7813_v57 }
 0x2a6   : > { %11686 = vst [vmem:[#allocation221_spill] sm:$0xff] %v7811_v16  ;;  %2085 = vrot.lane.b32.xlu0 %v7331_v38, %s5851_s25  ;;  %2083 = vrot.lane.b32.xlu1 %v11666_v6, %s5851_s25  ;;  %v11838_v16 = vld [vmem:[#allocation81_spill] sm:$0xff] }
 0x2a8   : > { %v7821_v56 = vpop.permute.xlu1 %1347 }
 0x2a9   : > { %v7819_v36 = vpop.permute.xlu0 %1491  ;;  %11689 = vst [vmem:[#allocation224_spill] sm:$0xff] %v7821_v56 }
 0x2aa   : > { %11688 = vst [vmem:[#allocation223_spill] sm:$0xff] %v7819_v36  ;;  %2089 = vrot.lane.b32.xlu0 %v7427_v25, %s5851_s25  ;;  %2087 = vrot.lane.b32.xlu1 %v7387_v27, %s5851_s25  ;;  %v11694_v25 = vld [vmem:[#allocation10_spill] sm:$0xff] }
 0x2ac   : > { %v7829_v59 = vpop.permute.xlu1 %1493 }
 0x2ad   : > { %v7827_v50 = vpop.permute.xlu0 %1710  ;;  %11691 = vst [vmem:[#allocation226_spill] sm:$0xff] %v7829_v59  ;;  %v11701_v59 = vld [vmem:[#allocation22_spill] sm:$0xff] }
 0x2ae   : > { %11690 = vst [vmem:[#allocation225_spill] sm:$0xff] %v7827_v50  ;;  %2091 = vrot.lane.b32.xlu1 %v7459_v7, %s5851_s25  ;;  %2093 = vrot.lane.b32.xlu0 %v7484_v31, %s5851_s25  ;;  %v11697_v7 = vld [vmem:[#allocation16_spill] sm:$0xff]  ;;  %v11698_v31 = vld [vmem:[#allocation13_spill] sm:$0xff]  ;;  %v11830_v50 = vld [vmem:[#allocation75_spill] sm:$0xff] }
 0x2b0   : > { %v7837_v6 = vpop.permute.xlu1 %1712 }
 0x2b1   : > { %v7835_v38 = vpop.permute.xlu0 %1927  ;;  %11693 = vst [vmem:[#allocation228_spill] sm:$0xff] %v7837_v6 }
 0x2b2   : > { %11692 = vst [vmem:[#allocation227_spill] sm:$0xff] %v7835_v38  ;;  %2243 = vrot.lane.b32.xlu0 %v11694_v25, %s5852_s26  ;;  %2095 = vrot.lane.b32.xlu1 %v7569_v5, %s5851_s25  ;;  %v11702_v25 = vld [vmem:[#allocation19_spill] sm:$0xff] }
 0x2b4   : > { %v7843_v27 = vpop.permute.xlu1 %1929 }
 0x2b5   : > { %11695 = vst [vmem:[#allocation10_spill] sm:$0xff] %v7843_v27  ;;  %v7845_v56 = vpop.permute.xlu0 %1133 }
 0x2b6   : > { %11696 = vst [vmem:[#allocation229_spill] sm:$0xff] %v7845_v56  ;;  %2247 = vrot.lane.b32.xlu0 %v11697_v7, %s5852_s26  ;;  %2245 = vrot.lane.b32.xlu1 %v11698_v31, %s5852_s26  ;;  %v11705_v56 = vld [vmem:[#allocation28_spill] sm:$0xff]  ;;  %v11706_v7 = vld [vmem:[#allocation25_spill] sm:$0xff] }
 0x2b8   : > { %v7853_v6 = vpop.permute.xlu1 %1135 }
 0x2b9   : > { %v7851_v38 = vpop.permute.xlu0 %1349  ;;  %11700 = vst [vmem:[#allocation13_spill] sm:$0xff] %v7853_v6  ;;  %v11709_v6 = vld [vmem:[#allocation34_spill] sm:$0xff] }
 0x2ba   : > { %11699 = vst [vmem:[#allocation16_spill] sm:$0xff] %v7851_v38  ;;  %2251 = vrot.lane.b32.xlu0 %v11701_v59, %s5852_s26  ;;  %2249 = vrot.lane.b32.xlu1 %v11702_v25, %s5852_s26  ;;  %v11710_v59 = vld [vmem:[#allocation31_spill] sm:$0xff] }
 0x2bc   : > { %v7861_v27 = vpop.permute.xlu1 %1351 }
 0x2bd   : > { %v7859_v5 = vpop.permute.xlu0 %1495  ;;  %11704 = vst [vmem:[#allocation19_spill] sm:$0xff] %v7861_v27  ;;  %v11713_v27 = vld [vmem:[#allocation40_spill] sm:$0xff] }
 0x2be   : > { %11703 = vst [vmem:[#allocation22_spill] sm:$0xff] %v7859_v5  ;;  %2255 = vrot.lane.b32.xlu0 %v11705_v56, %s5852_s26  ;;  %2253 = vrot.lane.b32.xlu1 %v11706_v7, %s5852_s26  ;;  %v11714_v56 = vld [vmem:[#allocation37_spill] sm:$0xff] }
 0x2c0   : > { %v7869_v38 = vpop.permute.xlu1 %1497 }
 0x2c1   : > { %v7867_v31 = vpop.permute.xlu0 %1714  ;;  %11708 = vst [vmem:[#allocation25_spill] sm:$0xff] %v7869_v38  ;;  %v11717_v38 = vld [vmem:[#allocation46_spill] sm:$0xff] }
 0x2c2   : > { %11707 = vst [vmem:[#allocation28_spill] sm:$0xff] %v7867_v31  ;;  %2259 = vrot.lane.b32.xlu0 %v11709_v6, %s5852_s26  ;;  %2257 = vrot.lane.b32.xlu1 %v11710_v59, %s5852_s26  ;;  %v11718_v6 = vld [vmem:[#allocation43_spill] sm:$0xff] }
 0x2c4   : > { %v7877_v5 = vpop.permute.xlu1 %1716 }
 0x2c5   : > { %v7875_v25 = vpop.permute.xlu0 %1931  ;;  %11712 = vst [vmem:[#allocation31_spill] sm:$0xff] %v7877_v5  ;;  %v11721_v5 = vld [vmem:[#allocation52_spill] sm:$0xff] }
 0x2c6   : > { %11711 = vst [vmem:[#allocation34_spill] sm:$0xff] %v7875_v25  ;;  %2263 = vrot.lane.b32.xlu0 %v11713_v27, %s5852_s26  ;;  %2261 = vrot.lane.b32.xlu1 %v11714_v56, %s5852_s26  ;;  %v11722_v27 = vld [vmem:[#allocation49_spill] sm:$0xff] }
 0x2c8   : > { %v7883_v7 = vpop.permute.xlu1 %1933 }
 0x2c9   : > { %11715 = vst [vmem:[#allocation40_spill] sm:$0xff] %v7883_v7  ;;  %v7885_v31 = vpop.permute.xlu0 %1137 }
 0x2ca   : > { %11716 = vst [vmem:[#allocation37_spill] sm:$0xff] %v7885_v31  ;;  %2267 = vrot.lane.b32.xlu0 %v11717_v38, %s5852_s26  ;;  %2265 = vrot.lane.b32.xlu1 %v11718_v6, %s5852_s26  ;;  %v11725_v31 = vld [vmem:[#allocation60_spill] sm:$0xff]  ;;  %v11726_v38 = vld [vmem:[#allocation57_spill] sm:$0xff] }
 0x2cc   : > { %v7893_v25 = vpop.permute.xlu1 %1139 }
 0x2cd   : > { %v7891_v59 = vpop.permute.xlu0 %1353  ;;  %11720 = vst [vmem:[#allocation43_spill] sm:$0xff] %v7893_v25  ;;  %v11729_v25 = vld [vmem:[#allocation68_spill] sm:$0xff] }
 0x2ce   : > { %11719 = vst [vmem:[#allocation46_spill] sm:$0xff] %v7891_v59  ;;  %2271 = vrot.lane.b32.xlu0 %v11721_v5, %s5852_s26  ;;  %2269 = vrot.lane.b32.xlu1 %v11722_v27, %s5852_s26  ;;  %v11730_v5 = vld [vmem:[#allocation66_spill] sm:$0xff] }
 0x2d0   : > { %v7901_v7 = vpop.permute.xlu1 %1355 }
 0x2d1   : > { %v7899_v56 = vpop.permute.xlu0 %1499  ;;  %11724 = vst [vmem:[#allocation49_spill] sm:$0xff] %v7901_v7  ;;  %v11733_v7 = vld [vmem:[#allocation78_spill] sm:$0xff] }
 0x2d2   : > { %11723 = vst [vmem:[#allocation52_spill] sm:$0xff] %v7899_v56  ;;  %2275 = vrot.lane.b32.xlu0 %v11725_v31, %s5852_s26  ;;  %2273 = vrot.lane.b32.xlu1 %v11726_v38, %s5852_s26  ;;  %v11734_v31 = vld [vmem:[#allocation73_spill] sm:$0xff] }
 0x2d4   : > { %v7909_v59 = vpop.permute.xlu1 %1501 }
 0x2d5   : > { %v7907_v6 = vpop.permute.xlu0 %1718  ;;  %11728 = vst [vmem:[#allocation57_spill] sm:$0xff] %v7909_v59  ;;  %v11737_v59 = vld [vmem:[#allocation95_spill] sm:$0xff] }
 0x2d6   : > { %11727 = vst [vmem:[#allocation60_spill] sm:$0xff] %v7907_v6  ;;  %2279 = vrot.lane.b32.xlu0 %v11729_v25, %s5852_s26  ;;  %2277 = vrot.lane.b32.xlu1 %v11730_v5, %s5852_s26  ;;  %v11738_v25 = vld [vmem:[#allocation90_spill] sm:$0xff] }
 0x2d8   : > { %v7917_v56 = vpop.permute.xlu1 %1720 }
 0x2d9   : > { %v7915_v27 = vpop.permute.xlu0 %1935  ;;  %11732 = vst [vmem:[#allocation66_spill] sm:$0xff] %v7917_v56  ;;  %v11741_v56 = vld [vmem:[#allocation112_spill] sm:$0xff] }
 0x2da   : > { %11731 = vst [vmem:[#allocation68_spill] sm:$0xff] %v7915_v27  ;;  %2283 = vrot.lane.b32.xlu0 %v11733_v7, %s5852_s26  ;;  %2281 = vrot.lane.b32.xlu1 %v11734_v31, %s5852_s26  ;;  %v11742_v7 = vld [vmem:[#allocation107_spill] sm:$0xff] }
 0x2dc   : > { %v7923_v38 = vpop.permute.xlu1 %1937 }
 0x2dd   : > { %11735 = vst [vmem:[#allocation78_spill] sm:$0xff] %v7923_v38  ;;  %v7925_v6 = vpop.permute.xlu0 %1141 }
 0x2de   : > { %11736 = vst [vmem:[#allocation73_spill] sm:$0xff] %v7925_v6  ;;  %2287 = vrot.lane.b32.xlu0 %v11737_v59, %s5852_s26  ;;  %2285 = vrot.lane.b32.xlu1 %v11738_v25, %s5852_s26  ;;  %v11745_v6 = vld [vmem:[#allocation130_spill] sm:$0xff]  ;;  %v11746_v59 = vld [vmem:[#allocation124_spill] sm:$0xff] }
 0x2e0   : > { %v7931_v5 = vpop.permute.xlu1 %1143 }
 0x2e1   : > { %11739 = vst [vmem:[#allocation95_spill] sm:$0xff] %v7931_v5  ;;  %v7933_v27 = vpop.permute.xlu0 %1357 }
 0x2e2   : > { %11740 = vst [vmem:[#allocation90_spill] sm:$0xff] %v7933_v27  ;;  %2291 = vrot.lane.b32.xlu0 %v11741_v56, %s5852_s26  ;;  %2289 = vrot.lane.b32.xlu1 %v11742_v7, %s5852_s26  ;;  %v11749_v27 = vld [vmem:[#allocation147_spill] sm:$0xff]  ;;  %v11750_v56 = vld [vmem:[#allocation142_spill] sm:$0xff] }
 0x2e4   : > { %v7939_v31 = vpop.permute.xlu1 %1359 }
 0x2e5   : > { %11743 = vst [vmem:[#allocation112_spill] sm:$0xff] %v7939_v31  ;;  %v7941_v38 = vpop.permute.xlu0 %1503 }
 0x2e6   : > { %11744 = vst [vmem:[#allocation107_spill] sm:$0xff] %v7941_v38  ;;  %2295 = vrot.lane.b32.xlu0 %v11745_v6, %s5852_s26  ;;  %2293 = vrot.lane.b32.xlu1 %v11746_v59, %s5852_s26  ;;  %v11753_v38 = vld [vmem:[#allocation55_spill] sm:$0xff] }
 0x2e7   : > { %v11754_v6 = vld [vmem:[#allocation159_spill] sm:$0xff] }
 0x2e8   : > { %v7949_v5 = vpop.permute.xlu1 %1505 }
 0x2e9   : > { %v7947_v25 = vpop.permute.xlu0 %1722  ;;  %11748 = vst [vmem:[#allocation124_spill] sm:$0xff] %v7949_v5  ;;  %v11757_v5 = vld [vmem:[#allocation178_spill] sm:$0xff] }
 0x2ea   : > { %11747 = vst [vmem:[#allocation130_spill] sm:$0xff] %v7947_v25  ;;  %2299 = vrot.lane.b32.xlu0 %v11749_v27, %s5852_s26  ;;  %2297 = vrot.lane.b32.xlu1 %v11750_v56, %s5852_s26  ;;  %v11758_v27 = vld [vmem:[#allocation63_spill] sm:$0xff] }
 0x2ec   : > { %v7957_v31 = vpop.permute.xlu1 %1724 }
 0x2ed   : > { %v7955_v7 = vpop.permute.xlu0 %1939  ;;  %11752 = vst [vmem:[#allocation142_spill] sm:$0xff] %v7957_v31  ;;  %v11828_v31 = vld [vmem:[#allocation82_spill] sm:$0xff] }
 0x2ee   : > { %11751 = vst [vmem:[#allocation147_spill] sm:$0xff] %v7955_v7  ;;  %2303 = vrot.lane.b32.xlu0 %v11753_v38, %s5852_s26  ;;  %2301 = vrot.lane.b32.xlu1 %v11754_v6, %s5852_s26  ;;  %v11761_v38 = vld [vmem:[#allocation186_spill] sm:$0xff] }
 0x2f0   : > { %v7963_v59 = vpop.permute.xlu1 %1941 }
 0x2f1   : > { %11755 = vst [vmem:[#allocation55_spill] sm:$0xff] %v7963_v59  ;;  %v7965_v25 = vpop.permute.xlu0 %1507 }
 0x2f2   : > { %11756 = vst [vmem:[#allocation159_spill] sm:$0xff] %v7965_v25  ;;  %2307 = vrot.lane.b32.xlu0 %v11757_v5, %s5852_s26  ;;  %2305 = vrot.lane.b32.xlu1 %v11758_v27, %s5852_s26  ;;  %v11764_v5 = vld [vmem:[#allocation11_spill] sm:$0xff] }
 0x2f4   : > { %v7971_v56 = vpop.permute.xlu1 %1509 }
 0x2f5   : > { %11759 = vst [vmem:[#allocation178_spill] sm:$0xff] %v7971_v56  ;;  %v7973_v7 = vpop.permute.xlu0 %1726  ;;  %v11771_v56 = vld [vmem:[#allocation23_spill] sm:$0xff] }
 0x2f6   : > { %11760 = vst [vmem:[#allocation63_spill] sm:$0xff] %v7973_v7  ;;  %2311 = vrot.lane.b32.xlu0 %v7491_v22, %s5852_s26  ;;  %2309 = vrot.lane.b32.xlu1 %v11761_v38, %s5852_s26  ;;  %v11767_v22 = vld [vmem:[#allocation17_spill] sm:$0xff]  ;;  %v11768_v38 = vld [vmem:[#allocation14_spill] sm:$0xff] }
 0x2f8   : > { %v7979_v6 = vpop.permute.xlu1 %2059 }
 0x2f9   : > { %11762 = vst [vmem:[#allocation186_spill] sm:$0xff] %v7979_v6  ;;  %v7981_v59 = vpop.permute.xlu0 %1943 }
 0x2fa   : > { %11763 = vst [vmem:[#allocation230_spill] sm:$0xff] %v7981_v59  ;;  %2461 = vrot.lane.b32.xlu0 %v11764_v5, %s5853_s27  ;;  %2313 = vrot.lane.b32.xlu1 %v7572_v18, %s5852_s26  ;;  %v11772_v5 = vld [vmem:[#allocation20_spill] sm:$0xff] }
 0x2fc   : > { %v7989_v7 = vpop.permute.xlu1 %1728 }
 0x2fd   : > { %v7987_v27 = vpop.permute.xlu0 %2057  ;;  %11766 = vst [vmem:[#allocation231_spill] sm:$0xff] %v7989_v7  ;;  %v11775_v7 = vld [vmem:[#allocation29_spill] sm:$0xff] }
 0x2fe   : > { %11765 = vst [vmem:[#allocation11_spill] sm:$0xff] %v7987_v27  ;;  %2465 = vrot.lane.b32.xlu0 %v11767_v22, %s5853_s27  ;;  %2463 = vrot.lane.b32.xlu1 %v11768_v38, %s5853_s27  ;;  %v11776_v22 = vld [vmem:[#allocation26_spill] sm:$0xff] }
 0x300   : > { %v7997_v59 = vpop.permute.xlu1 %1945 }
 0x301   : > { %v7995_v6 = vpop.permute.xlu0 %2061  ;;  %11770 = vst [vmem:[#allocation14_spill] sm:$0xff] %v7997_v59  ;;  %v11779_v59 = vld [vmem:[#allocation35_spill] sm:$0xff] }
 0x302   : > { %11769 = vst [vmem:[#allocation17_spill] sm:$0xff] %v7995_v6  ;;  %2469 = vrot.lane.b32.xlu0 %v11771_v56, %s5853_s27  ;;  %2467 = vrot.lane.b32.xlu1 %v11772_v5, %s5853_s27  ;;  %v11780_v56 = vld [vmem:[#allocation32_spill] sm:$0xff] }
 0x304   : > { %v8005_v27 = vpop.permute.xlu1 %2063 }
 0x305   : > { %v8003_v18 = vpop.permute.xlu0 %2065  ;;  %11774 = vst [vmem:[#allocation20_spill] sm:$0xff] %v8005_v27  ;;  %v11783_v27 = vld [vmem:[#allocation41_spill] sm:$0xff] }
 0x306   : > { %11773 = vst [vmem:[#allocation23_spill] sm:$0xff] %v8003_v18  ;;  %2473 = vrot.lane.b32.xlu0 %v11775_v7, %s5853_s27  ;;  %2471 = vrot.lane.b32.xlu1 %v11776_v22, %s5853_s27  ;;  %v11784_v7 = vld [vmem:[#allocation38_spill] sm:$0xff] }
 0x308   : > { %v8013_v6 = vpop.permute.xlu1 %2067 }
 0x309   : > { %v8011_v38 = vpop.permute.xlu0 %2069  ;;  %11778 = vst [vmem:[#allocation26_spill] sm:$0xff] %v8013_v6 }
 0x30a   : > { %11777 = vst [vmem:[#allocation29_spill] sm:$0xff] %v8011_v38  ;;  %2477 = vrot.lane.b32.xlu0 %v11779_v59, %s5853_s27  ;;  %2475 = vrot.lane.b32.xlu1 %v11780_v56, %s5853_s27  ;;  %v5436_v59 = vld [vmem:[%s11312_s1 + $0x8] sm:$0xff] }
 0x30b   : > { %5694 = vmatpush3.msra.mxu1 %v5436_v59  ;;  %v11787_v56 = vld [vmem:[#allocation47_spill] sm:$0xff]  ;;  %v11795_v59 = vld [vmem:[#allocation61_spill] sm:$0xff] }
 0x30c   : > { %v8021_v18 = vpop.permute.xlu1 %2071 }
 0x30d   : > { %v8019_v5 = vpop.permute.xlu0 %2073  ;;  %11782 = vst [vmem:[#allocation32_spill] sm:$0xff] %v8021_v18  ;;  %v11788_v18 = vld [vmem:[#allocation44_spill] sm:$0xff] }
 0x30e   : > { %11781 = vst [vmem:[#allocation35_spill] sm:$0xff] %v8019_v5  ;;  %2481 = vrot.lane.b32.xlu0 %v11783_v27, %s5853_s27  ;;  %2479 = vrot.lane.b32.xlu1 %v11784_v7, %s5853_s27  ;;  %v11791_v7 = vld [vmem:[#allocation53_spill] sm:$0xff] }
 0x310   : > { %v8029_v38 = vpop.permute.xlu1 %2075 }
 0x311   : > { %v8027_v22 = vpop.permute.xlu0 %2077  ;;  %11786 = vst [vmem:[#allocation38_spill] sm:$0xff] %v8029_v38  ;;  %v11792_v38 = vld [vmem:[#allocation50_spill] sm:$0xff] }
 0x312   : > { %11785 = vst [vmem:[#allocation41_spill] sm:$0xff] %v8027_v22  ;;  %2485 = vrot.lane.b32.xlu0 %v11787_v56, %s5853_s27  ;;  %2483 = vrot.lane.b32.xlu1 %v11788_v18, %s5853_s27  ;;  %v11796_v56 = vld [vmem:[#allocation58_spill] sm:$0xff] }
 0x314   : > { %v8040_v27 = vpop.permute.xlu1 %2079 }
 0x315   : > { %v8038_v5 = vpop.permute.xlu0 %2081  ;;  %11790 = vst [vmem:[#allocation44_spill] sm:$0xff] %v8040_v27  ;;  %v11799_v27 = vld [vmem:[#allocation69_spill] sm:$0xff] }
 0x316   : > { %11789 = vst [vmem:[#allocation47_spill] sm:$0xff] %v8038_v5  ;;  %2489 = vrot.lane.b32.xlu0 %v11791_v7, %s5853_s27  ;;  %2487 = vrot.lane.b32.xlu1 %v11792_v38, %s5853_s27  ;;  %v11800_v7 = vld [vmem:[#allocation67_spill] sm:$0xff] }
 0x318   : > { %v8048_v6 = vpop.permute.xlu1 %2083 }
 0x319   : > { %v8046_v22 = vpop.permute.xlu0 %2085  ;;  %11794 = vst [vmem:[#allocation50_spill] sm:$0xff] %v8048_v6  ;;  %v11803_v6 = vld [vmem:[#allocation79_spill] sm:$0xff] }
 0x31a   : > { %11793 = vst [vmem:[#allocation53_spill] sm:$0xff] %v8046_v22  ;;  %2493 = vrot.lane.b32.xlu0 %v11795_v59, %s5853_s27  ;;  %2491 = vrot.lane.b32.xlu1 %v11796_v56, %s5853_s27  ;;  %v11804_v59 = vld [vmem:[#allocation74_spill] sm:$0xff] }
 0x31c   : > { %v8056_v5 = vpop.permute.xlu1 %2087 }
 0x31d   : > { %v8054_v18 = vpop.permute.xlu0 %2089  ;;  %11798 = vst [vmem:[#allocation58_spill] sm:$0xff] %v8056_v5  ;;  %v11807_v5 = vld [vmem:[#allocation96_spill] sm:$0xff] }
 0x31e   : > { %11797 = vst [vmem:[#allocation61_spill] sm:$0xff] %v8054_v18  ;;  %2497 = vrot.lane.b32.xlu0 %v11799_v27, %s5853_s27  ;;  %2495 = vrot.lane.b32.xlu1 %v11800_v7, %s5853_s27  ;;  %v11808_v27 = vld [vmem:[#allocation93_spill] sm:$0xff] }
 0x320   : > { %v8062_v38 = vpop.permute.xlu1 %2091 }
 0x321   : > { %11801 = vst [vmem:[#allocation69_spill] sm:$0xff] %v8062_v38  ;;  %v8064_v22 = vpop.permute.xlu0 %2093 }
 0x322   : > { %11802 = vst [vmem:[#allocation67_spill] sm:$0xff] %v8064_v22  ;;  %2501 = vrot.lane.b32.xlu0 %v11803_v6, %s5853_s27  ;;  %2499 = vrot.lane.b32.xlu1 %v11804_v59, %s5853_s27  ;;  %v11811_v22 = vld [vmem:[#allocation113_spill] sm:$0xff]  ;;  %v11812_v6 = vld [vmem:[#allocation110_spill] sm:$0xff] }
 0x324   : > { %v8072_v18 = vpop.permute.xlu1 %2095 }
 0x325   : > { %v8070_v56 = vpop.permute.xlu0 %2243  ;;  %11806 = vst [vmem:[#allocation74_spill] sm:$0xff] %v8072_v18  ;;  %v11815_v18 = vld [vmem:[#allocation131_spill] sm:$0xff] }
 0x326   : > { %11805 = vst [vmem:[#allocation79_spill] sm:$0xff] %v8070_v56  ;;  %2505 = vrot.lane.b32.xlu0 %v11807_v5, %s5853_s27  ;;  %2503 = vrot.lane.b32.xlu1 %v11808_v27, %s5853_s27  ;;  %v11816_v5 = vld [vmem:[#allocation127_spill] sm:$0xff] }
 0x327   : > { %v11829_v56 = vld [vmem:[#allocation3_spill] sm:$0xff] }
 0x328   : > { %v8080_v38 = vpop.permute.xlu1 %2245 }
 0x329   : > { %v8078_v7 = vpop.permute.xlu0 %2247  ;;  %11810 = vst [vmem:[#allocation93_spill] sm:$0xff] %v8080_v38  ;;  %v11819_v38 = vld [vmem:[#allocation148_spill] sm:$0xff] }
 0x32a   : > { %11809 = vst [vmem:[#allocation96_spill] sm:$0xff] %v8078_v7  ;;  %2509 = vrot.lane.b32.xlu0 %v11811_v22, %s5853_s27  ;;  %2507 = vrot.lane.b32.xlu1 %v11812_v6, %s5853_s27  ;;  %v11820_v22 = vld [vmem:[#allocation145_spill] sm:$0xff] }
 0x32c   : > { %v8088_v25 = vpop.permute.xlu1 %2249 }
 0x32d   : > { %v8086_v59 = vpop.permute.xlu0 %2251  ;;  %11814 = vst [vmem:[#allocation110_spill] sm:$0xff] %v8088_v25  ;;  %v11823_v25 = vld [vmem:[#allocation163_spill] sm:$0xff] }
 0x32e   : > { %11813 = vst [vmem:[#allocation113_spill] sm:$0xff] %v8086_v59  ;;  %2513 = vrot.lane.b32.xlu0 %v11815_v18, %s5853_s27  ;;  %2511 = vrot.lane.b32.xlu1 %v11816_v5, %s5853_s27  ;;  %v11824_v18 = vld [vmem:[#allocation162_spill] sm:$0xff] }
 0x330   : > { %v8096_v7 = vpop.permute.xlu1 %2253 }
 0x331   : > { %v8094_v27 = vpop.permute.xlu0 %2255  ;;  %11818 = vst [vmem:[#allocation127_spill] sm:$0xff] %v8096_v7  ;;  %v11827_v7 = vld [vmem:[#allocation4_spill] sm:$0xff] }
 0x332   : > { %11817 = vst [vmem:[#allocation131_spill] sm:$0xff] %v8094_v27  ;;  %2517 = vrot.lane.b32.xlu0 %v11819_v38, %s5853_s27  ;;  %2515 = vrot.lane.b32.xlu1 %v11820_v22, %s5853_s27  ;;  %v1182_v38 = vadd.f32 %v11828_v31, %v11827_v7  ;;  %v1181_v22 = vadd.f32 %v11830_v50, %v11829_v56  ;;  %v11839_v7 = vld [vmem:[#allocation84_spill] sm:$0xff]  ;;  %v11840_v50 = vld [vmem:[#allocation6_spill] sm:$0xff]  ;;  %v11841_v56 = vld [vmem:[#allocation85_spill] sm:$0xff] }
 0x333   : > { %v1184_v30 = vadd.f32 %v11841_v56, %v11840_v50  ;;  %v11851_v56 = vld [vmem:[#allocation98_spill] sm:$0xff] }
 0x334   : > { %v8104_v59 = vpop.permute.xlu1 %2257  ;;  %v1398_v31 = vadd.f32 %v11838_v16, %v1182_v38  ;;  %v11847_v38 = vld [vmem:[#allocation91_spill] sm:$0xff] }
 0x335   : > { %v8102_v6 = vpop.permute.xlu0 %2259  ;;  %11822 = vst [vmem:[#allocation145_spill] sm:$0xff] %v8104_v59  ;;  %v11832_v59 = vld [vmem:[#allocation174_spill] sm:$0xff] }
 0x336   : > { %11821 = vst [vmem:[#allocation148_spill] sm:$0xff] %v8102_v6  ;;  %2521 = vrot.lane.b32.xlu0 %v11823_v25, %s5853_s27  ;;  %2519 = vrot.lane.b32.xlu1 %v11824_v18, %s5853_s27  ;;  %v11831_v6 = vld [vmem:[#allocation179_spill] sm:$0xff]  ;;  %v11833_v25 = vld [vmem:[#allocation80_spill] sm:$0xff] }
 0x337   : > { %v1397_v55 = vadd.f32 %v11833_v25, %v1181_v22  ;;  %v11835_v18 = vld [vmem:[#allocation83_spill] sm:$0xff]  ;;  %v11845_v25 = vld [vmem:[#allocation100_spill] sm:$0xff] }
 0x338   : > { %v8112_v27 = vpop.permute.xlu1 %2261  ;;  %v1183_v57 = vadd.f32 %v11835_v18, %v11834_v19  ;;  %v11843_v19 = vld [vmem:[#allocation92_spill] sm:$0xff]  ;;  %v11844_v22 = vld [vmem:[#allocation7_spill] sm:$0xff] }
 0x339   : > { %v8110_v5 = vpop.permute.xlu0 %2263  ;;  %11826 = vst [vmem:[#allocation162_spill] sm:$0xff] %v8112_v27  ;;  %v1185_v18 = vadd.f32 %v11845_v25, %v11844_v22  ;;  %v11856_v22 = vld [vmem:[#allocation108_spill] sm:$0xff] }
 0x33a   : > { %11825 = vst [vmem:[#allocation163_spill] sm:$0xff] %v8110_v5  ;;  %2525 = vrot.lane.b32.xlu0 %v11831_v6, %s5853_s27  ;;  %2523 = vrot.lane.b32.xlu1 %v11832_v59, %s5853_s27  ;;  %v1399_v36 = vadd.f32 %v11839_v7, %v1183_v57  ;;  %v11842_v6 = vld [vmem:[#allocation87_spill] sm:$0xff]  ;;  %v1548_v59 = vadd.f32 %v11843_v19, %v1398_v31  ;;  %v11848_v7 = vld [vmem:[#allocation104_spill] sm:$0xff]  ;;  %v11855_v19 = vld [vmem:[#allocation97_spill] sm:$0xff] }
 0x33b   : > { %v1547_v2 = vadd.f32 %v11842_v6, %v1397_v55  ;;  %v11852_v6 = vld [vmem:[#allocation101_spill] sm:$0xff] }
 0x33c   : > { %v8127_v27 = vpop.permute.xlu1 %2265  ;;  %v1401_v0 = vadd.f32 %v11852_v6, %v1185_v18  ;;  %v11862_v18 = vld [vmem:[#allocation12_spill] sm:$0xff]  ;;  %v11863_v6 = vld [vmem:[#allocation122_spill] sm:$0xff] }
 0x33d   : > { %v8125_v5 = vpop.permute.xlu0 %2267  ;;  %11837 = vst [vmem:[#allocation82_spill] sm:$0xff] %v8127_v27  ;;  %v11846_v27 = vld [vmem:[#allocation88_spill] sm:$0xff]  ;;  %v1766_v57 = vadd.f32 %v11847_v38, %v1547_v2  ;;  %v11858_v2 = vld [vmem:[#allocation9_spill] sm:$0xff]  ;;  %v11859_v38 = vld [vmem:[#allocation119_spill] sm:$0xff] }
 0x33e   : > { %11836 = vst [vmem:[#allocation4_spill] sm:$0xff] %v8125_v5  ;;  %2529 = vrot.lane.b32.xlu0 %v7494_v48, %s5853_s27  ;;  %2527 = vrot.lane.b32.xlu1 %v7469_v10, %s5853_s27  ;;  %v1400_v16 = vadd.f32 %v11846_v27, %v1184_v30  ;;  %v1549_v5 = vadd.f32 %v11848_v7, %v1399_v36  ;;  %v11853_v10 = vld [vmem:[#allocation8_spill] sm:$0xff]  ;;  %v11857_v30 = vld [vmem:[#allocation109_spill] sm:$0xff]  ;;  %v11860_v7 = vld [vmem:[#allocation99_spill] sm:$0xff] }
 0x33f   : > { %v1767_v48 = vadd.f32 %v11851_v56, %v1548_v59  ;;  %v1186_v31 = vadd.f32 %v11854_v54, %v11853_v10  ;;  %v1983_v12 = vadd.f32 %v11855_v19, %v1766_v57  ;;  %v1187_v36 = vadd.f32 %v11859_v38, %v11858_v2  ;;  %v11861_v59 = vld [vmem:[#allocation105_spill] sm:$0xff]  ;;  %v11865_v57 = vld [vmem:[#allocation114_spill] sm:$0xff] }
 0x340   : > { %v8146_v55 = vpop.permute.xlu1 %2269  ;;  %v1768_v25 = vadd.f32 %v11856_v22, %v1549_v5  ;;  %v1550_v27 = vadd.f32 %v11857_v30, %v1400_v16  ;;  %v11864_v54 = vld [vmem:[#allocation125_spill] sm:$0xff]  ;;  %v11866_v5 = vld [vmem:[#allocation115_spill] sm:$0xff]  ;;  %v11867_v16 = vld [vmem:[#allocation116_spill] sm:$0xff] }
 0x341   : > { %v8144_v50 = vpop.permute.xlu0 %2271  ;;  %11850 = vst [vmem:[#allocation75_spill] sm:$0xff] %v8146_v55  ;;  %v1984_v55 = vadd.f32 %v11860_v7, %v1767_v48  ;;  %v1402_v56 = vadd.f32 %v11861_v59, %v1186_v31  ;;  %v1551_v10 = vadd.f32 %v11864_v54, %v1401_v0  ;;  %v8167_v30 = vadd.f32 %v11867_v16, %v1983_v12  ;;  %v11869_v2 = vld [vmem:[#allocation121_spill] sm:$0xff]  ;;  %v11872_v48 = vld [vmem:[#allocation126_spill] sm:$0xff]  ;;  %v11873_v7 = vld [vmem:[#allocation132_spill] sm:$0xff] }
 0x342   : > { %11849 = vst [vmem:[#allocation3_spill] sm:$0xff] %v8144_v50  ;;  %2531 = vrot.lane.b32.xlu1 %v7575_v17, %s5853_s27  ;;  %v1188_v50 = vadd.f32 %v11863_v6, %v11862_v18  ;;  %v1985_v19 = vadd.f32 %v11865_v57, %v1768_v25  ;;  %v1769_v22 = vadd.f32 %v11866_v5, %v1550_v27  ;;  %v11874_v18 = vld [vmem:[#allocation133_spill] sm:$0xff]  ;;  %v11875_v0 = vld [vmem:[#allocation15_spill] sm:$0xff]  ;;  %v11876_v54 = vld [vmem:[#allocation140_spill] sm:$0xff] }
 0x343   : > { %11868 = vst [vmem:[#allocation179_spill] sm:$0xff] %v8167_v30  ;;  %v1403_v38 = vadd.f32 %v11869_v2, %v1187_v36  ;;  %v1770_v59 = vadd.f32 %v11873_v7, %v1551_v10  ;;  %v1552_v6 = vadd.f32 %v11874_v18, %v1402_v56  ;;  %v1189_v25 = vadd.f32 %v11876_v54, %v11875_v0  ;;  %v11877_v57 = vld [vmem:[#allocation117_spill] sm:$0xff]  ;;  %v11878_v5 = vld [vmem:[#allocation118_spill] sm:$0xff]  ;;  %v11881_v36 = vld [vmem:[#allocation144_spill] sm:$0xff] }
 0x344   : > { %v8172_v17 = vpop.permute.xlu1 %2273  ;;  %v1404_v31 = vadd.f32 %v11872_v48, %v1188_v50  ;;  %v1986_v27 = vadd.f32 %v11877_v57, %v1769_v22  ;;  %v8181_v12 = vadd.f32 %v11878_v5, %v1984_v55  ;;  %v11880_v16 = vld [vmem:[#allocation18_spill] sm:$0xff]  ;;  %v11884_v50 = vld [vmem:[#allocation135_spill] sm:$0xff]  ;;  %v11886_v56 = vld [vmem:[#allocation152_spill] sm:$0xff]  ;;  %v8191_v0 = vadd.f32 %v11887_v49, %v1985_v19 }
 0x345   : > { %v8170_v61 = vpop.permute.xlu0 %2275  ;;  %11871 = vst [vmem:[#allocation80_spill] sm:$0xff] %v8172_v17  ;;  %v1190_v2 = vadd.f32 %v11881_v36, %v11880_v16  ;;  %v11883_v17 = vld [vmem:[#allocation134_spill] sm:$0xff]  ;;  %v1771_v48 = vadd.f32 %v11884_v50, %v1552_v6  ;;  %v11885_v10 = vld [vmem:[#allocation143_spill] sm:$0xff]  ;;  %v11890_v5 = vld [vmem:[#allocation21_spill] sm:$0xff] }
 0x346   : > { %11870 = vst [vmem:[#allocation174_spill] sm:$0xff] %v8170_v61  ;;  %11879 = vst [vmem:[#allocation5_spill] sm:$0xff] %v8181_v12  ;;  %v11882_v61 = vld [vmem:[#allocation149_spill] sm:$0xff]  ;;  %v1987_v40 = vadd.f32 %v11883_v17, %v1770_v59  ;;  %v1405_v7 = vadd.f32 %v11885_v10, %v1189_v25  ;;  %v1554_v18 = vadd.f32 %v11886_v56, %v1404_v31  ;;  %v11888_v22 = vld [vmem:[#allocation150_spill] sm:$0xff] }
 0x347   : > { %v1553_v30 = vadd.f32 %v11882_v61, %v1403_v38  ;;  %v1406_v54 = vadd.f32 %v11888_v22, %v1190_v2  ;;  %v11889_v55 = vld [vmem:[#allocation151_spill] sm:$0xff]  ;;  %v11891_v12 = vld [vmem:[#allocation161_spill] sm:$0xff]  ;;  %v11897_v31 = vld [vmem:[#allocation154_spill] sm:$0xff] }
 0x348   : > { %v1191_v16 = vadd.f32 %v11891_v12, %v11890_v5  ;;  %v8199_v61 = vpop.permute.xlu1 %2277  ;;  %v11894_v38 = vld [vmem:[#allocation137_spill] sm:$0xff]  ;;  %v11895_v59 = vld [vmem:[#allocation139_spill] sm:$0xff]  ;;  %v1773_v25 = vadd.f32 %v11897_v31, %v1554_v18  ;;  %v11898_v49 = vld [vmem:[#allocation166_spill] sm:$0xff] }
 0x349   : > { %v1772_v57 = vadd.f32 %v11889_v55, %v1553_v30  ;;  %v8197_v36 = vpop.permute.xlu0 %2279  ;;  %11893 = vst [vmem:[#allocation81_spill] sm:$0xff] %v8199_v61  ;;  %v1988_v17 = vadd.f32 %v11894_v38, %v1771_v48  ;;  %v8203_v6 = vadd.f32 %v11895_v59, %v1986_v27  ;;  %v1555_v19 = vadd.f32 %v11898_v49, %v1405_v7  ;;  %v11899_v50 = vld [vmem:[#allocation153_spill] sm:$0xff]  ;;  %v11900_v10 = vld [vmem:[#allocation164_spill] sm:$0xff] }
 0x34a   : > { %11892 = vst [vmem:[#allocation83_spill] sm:$0xff] %v8197_v36  ;;  %v1407_v30 = vadd.f32 %v11900_v10, %v1191_v16  ;;  %v11901_v56 = vld [vmem:[#allocation24_spill] sm:$0xff]  ;;  %v11902_v22 = vld [vmem:[#allocation165_spill] sm:$0xff] }
 0x34b   : > { %11896 = vst [vmem:[#allocation84_spill] sm:$0xff] %v8203_v6  ;;  %v1989_v2 = vadd.f32 %v11899_v50, %v1772_v57  ;;  %v1192_v12 = vadd.f32 %v11902_v22, %v11901_v56  ;;  %v11903_v55 = vld [vmem:[#allocation169_spill] sm:$0xff]  ;;  %v11904_v36 = vld [vmem:[#allocation156_spill] sm:$0xff]  ;;  %v11907_v6 = vld [vmem:[#allocation27_spill] sm:$0xff] }
 0x34c   : > { %v1556_v5 = vadd.f32 %v11903_v55, %v1406_v54  ;;  %v8213_v61 = vadd.f32 %v11904_v36, %v1987_v40  ;;  %v11905_v48 = vld [vmem:[#allocation157_spill] sm:$0xff]  ;;  %v11906_v27 = vld [vmem:[#allocation168_spill] sm:$0xff]  ;;  %v11911_v57 = vld [vmem:[#allocation167_spill] sm:$0xff]  ;;  %v8227_v40 = vpop.permute.xlu1 %2281 }
 0x34d   : > { %v1990_v38 = vadd.f32 %v11905_v48, %v1773_v25  ;;  %v1774_v59 = vadd.f32 %v11906_v27, %v1555_v19  ;;  %v11908_v18 = vld [vmem:[#allocation176_spill] sm:$0xff]  ;;  %v1408_v16 = vadd.f32 %v11911_v57, %v1192_v12  ;;  %v11912_v50 = vld [vmem:[#allocation171_spill] sm:$0xff]  ;;  %v8225_v54 = vpop.permute.xlu0 %2283  ;;  %11915 = vst [vmem:[#allocation87_spill] sm:$0xff] %v8227_v40  ;;  %v11916_v36 = vld [vmem:[#allocation170_spill] sm:$0xff] }
 0x34e   : > { %v1193_v31 = vadd.f32 %v11908_v18, %v11907_v6  ;;  %v11909_v7 = vld [vmem:[#allocation160_spill] sm:$0xff]  ;;  %v1775_v10 = vadd.f32 %v11912_v50, %v1556_v5  ;;  %11914 = vst [vmem:[#allocation85_spill] sm:$0xff] %v8225_v54  ;;  %v11919_v27 = vld [vmem:[#allocation30_spill] sm:$0xff]  ;;  %v11923_v50 = vld [vmem:[#allocation183_spill] sm:$0xff] }
 0x34f   : > { %v8220_v49 = vadd.f32 %v11909_v7, %v1988_v17  ;;  %v11913_v56 = vld [vmem:[#allocation180_spill] sm:$0xff]  ;;  %v1991_v25 = vadd.f32 %v11916_v36, %v1774_v59  ;;  %v11920_v17 = vld [vmem:[#allocation177_spill] sm:$0xff]  ;;  %v11922_v57 = vld [vmem:[#allocation182_spill] sm:$0xff] }
 0x350   : > { %v1557_v22 = vadd.f32 %v11913_v56, %v1407_v30  ;;  %v11917_v55 = vld [vmem:[#allocation172_spill] sm:$0xff]  ;;  %v1194_v18 = vadd.f32 %v11920_v17, %v11919_v27  ;;  %v11921_v7 = vld [vmem:[#allocation173_spill] sm:$0xff]  ;;  %v1558_v30 = vadd.f32 %v11923_v50, %v1408_v16  ;;  %v11925_v40 = vld [vmem:[#allocation175_spill] sm:$0xff] }
 0x351   : > { %11910 = vst [vmem:[#allocation6_spill] sm:$0xff] %v8220_v49  ;;  %v8231_v19 = vadd.f32 %v11917_v55, %v1989_v2  ;;  %v11918_v48 = vld [vmem:[#allocation64_spill] sm:$0xff]  ;;  %v1992_v12 = vadd.f32 %v11921_v7, %v1775_v10  ;;  %v11924_v56 = vld [vmem:[#allocation33_spill] sm:$0xff]  ;;  %v8242_v49 = vadd.f32 %v11925_v40, %v1990_v38  ;;  %v8256_v38 = vpop.permute.xlu1 %2285 }
 0x352   : > { %v1409_v6 = vadd.f32 %v11918_v48, %v1193_v31  ;;  %v1776_v5 = vadd.f32 %v11922_v57, %v1557_v22  ;;  %v1195_v54 = vadd.f32 %v7481_v42, %v11924_v56  ;;  %v11926_v59 = vld [vmem:[#allocation181_spill] sm:$0xff]  ;;  %v11927_v36 = vld [vmem:[#allocation36_spill] sm:$0xff]  ;;  %v11930_v22 = vld [vmem:[#allocation187_spill] sm:$0xff]  ;;  %v8254_v42 = vpop.permute.xlu0 %2287 }
 0x353   : > { %v1410_v2 = vadd.f32 %v11926_v59, %v1194_v18  ;;  %v1196_v31 = vadd.f32 %v7498_v51, %v11927_v36  ;;  %v11928_v48 = vld [vmem:[#allocation184_spill] sm:$0xff]  ;;  %v11929_v10 = vld [vmem:[#allocation185_spill] sm:$0xff]  ;;  %v8251_v7 = vadd.f32 %v11930_v22, %v1991_v25  ;;  %v11936_v59 = vld [vmem:[#allocation71_spill] sm:$0xff] }
 0x354   : > { %v1559_v55 = vadd.f32 %v7504_v29, %v1409_v6  ;;  %v1993_v27 = vadd.f32 %v11928_v48, %v1776_v5  ;;  %v1777_v17 = vadd.f32 %v11929_v10, %v1558_v30  ;;  %v11931_v16 = vld [vmem:[#allocation189_spill] sm:$0xff]  ;;  %v11932_v51 = vld [vmem:[#allocation76_spill] sm:$0xff]  ;;  %v11933_v29 = vld [vmem:[#allocation39_spill] sm:$0xff]  ;;  %v8265_v25 = vadd.f32 %v11936_v59, %v1992_v12 }
 0x355   : > { %v1411_v57 = vadd.f32 %v11931_v16, %v1195_v54  ;;  %v1412_v40 = vadd.f32 %v7506_v4, %v1196_v31  ;;  %v1560_v50 = vadd.f32 %v11932_v51, %v1410_v2  ;;  %v11934_v6 = vld [vmem:[#allocation194_spill] sm:$0xff]  ;;  %v11935_v56 = vld [vmem:[#allocation188_spill] sm:$0xff]  ;;  %v11939_v22 = vld [vmem:[#allocation77_spill] sm:$0xff] }
 0x356   : > { %v1778_v18 = vadd.f32 %v7512_v21, %v1559_v55  ;;  %v1197_v5 = vadd.f32 %v11934_v6, %v11933_v29  ;;  %v1994_v30 = vadd.f32 %v11935_v56, %v1777_v17  ;;  %v11937_v36 = vld [vmem:[#allocation42_spill] sm:$0xff]  ;;  %v11938_v54 = vld [vmem:[#allocation196_spill] sm:$0xff]  ;;  %v11941_v21 = vld [vmem:[#allocation195_spill] sm:$0xff] }
 0x357   : > { %v1198_v48 = vadd.f32 %v11938_v54, %v11937_v36  ;;  %v1561_v10 = vadd.f32 %v7552_v11, %v1411_v57  ;;  %v11940_v4 = vld [vmem:[#allocation190_spill] sm:$0xff]  ;;  %v1562_v2 = vadd.f32 %v7562_v45, %v1412_v40  ;;  %v11942_v51 = vld [vmem:[#allocation191_spill] sm:$0xff]  ;;  %v11943_v17 = vld [vmem:[#allocation197_spill] sm:$0xff]  ;;  %v8281_v36 = vpop.permute.xlu0 %2291  ;;  %v8283_v11 = vpop.permute.xlu1 %2289 }
 0x358   : > { %v1995_v16 = vadd.f32 %v11939_v22, %v1778_v18  ;;  %v1779_v31 = vadd.f32 %v11940_v4, %v1560_v50  ;;  %v1413_v55 = vadd.f32 %v11941_v21, %v1197_v5  ;;  %v8275_v29 = vadd.f32 %v11942_v51, %v1993_v27  ;;  %v11944_v56 = vld [vmem:[#allocation45_spill] sm:$0xff]  ;;  %v11945_v57 = vld [vmem:[#allocation192_spill] sm:$0xff] }
 0x359   : > { %v1414_v6 = vadd.f32 %v11943_v17, %v1198_v48  ;;  %v1780_v12 = vadd.f32 %v7560_v41, %v1561_v10  ;;  %v1199_v59 = vadd.f32 %v7595_v23, %v11944_v56  ;;  %v11946_v50 = vld [vmem:[#allocation193_spill] sm:$0xff]  ;;  %v1781_v45 = vadd.f32 %v7579_v8, %v1562_v2  ;;  %v11947_v54 = vld [vmem:[#allocation48_spill] sm:$0xff]  ;;  %v11956_v56 = vld [vmem:[#allocation202_spill] sm:$0xff] }
 0x35a   : > { %v1996_v18 = vadd.f32 %v11945_v57, %v1779_v31  ;;  %v8287_v5 = vadd.f32 %v11946_v50, %v1994_v30  ;;  %v1563_v27 = vadd.f32 %v7609_v62, %v1413_v55  ;;  %v1200_v23 = vadd.f32 %v7603_v13, %v11947_v54  ;;  %v11948_v30 = vld [vmem:[#allocation198_spill] sm:$0xff]  ;;  %v11949_v31 = vld [vmem:[#allocation51_spill] sm:$0xff]  ;;  %v11952_v55 = vld [vmem:[#allocation200_spill] sm:$0xff] }
 0x35b   : > { %v1997_v40 = vadd.f32 %v7577_v24, %v1780_v12  ;;  %v1415_v41 = vadd.f32 %v7601_v39, %v1199_v59  ;;  %v1564_v48 = vadd.f32 %v7619_v53, %v1414_v6  ;;  %v8297_v10 = vadd.f32 %v7585_v46, %v1995_v16  ;;  %v11950_v62 = vld [vmem:[#allocation94_spill] sm:$0xff]  ;;  %v11951_v24 = vld [vmem:[#allocation111_spill] sm:$0xff]  ;;  %v8309_v53 = vpop.permute.xlu0 %2295  ;;  %v8311_v46 = vpop.permute.xlu1 %2293  ;;  %v11954_v51 = vld [vmem:[#allocation201_spill] sm:$0xff] }
 0x35c   : > { %v1998_v22 = vadd.f32 %v7587_v43, %v1781_v45  ;;  %v1782_v4 = vadd.f32 %v11948_v30, %v1563_v27  ;;  %v1201_v8 = vadd.f32 %v7643_v63, %v11949_v31  ;;  %v8304_v21 = vadd.f32 %v11950_v62, %v1996_v18  ;;  %v11953_v16 = vld [vmem:[#allocation199_spill] sm:$0xff]  ;;  %v11955_v6 = vld [vmem:[#allocation56_spill] sm:$0xff]  ;;  %v11959_v27 = vld [vmem:[#allocation129_spill] sm:$0xff] }
 0x35d   : > { %v1416_v39 = vadd.f32 %v11951_v24, %v1200_v23  ;;  %v1783_v2 = vadd.f32 %v11952_v55, %v1564_v48  ;;  %v1565_v13 = vadd.f32 %v7657_v60, %v1415_v41  ;;  %v8317_v17 = vadd.f32 %v11954_v51, %v1997_v40  ;;  %v11957_v57 = vld [vmem:[#allocation128_spill] sm:$0xff]  ;;  %v11958_v50 = vld [vmem:[#allocation203_spill] sm:$0xff]  ;;  %v11960_v54 = vld [vmem:[#allocation62_spill] sm:$0xff] }
 0x35e   : > { %v8314_v43 = vadd.f32 %v11953_v16, %v1782_v4  ;;  %v1417_v63 = vadd.f32 %v7649_v32, %v1201_v8  ;;  %v1202_v12 = vadd.f32 %v7651_v58, %v11955_v6  ;;  %v8326_v60 = vadd.f32 %v11957_v57, %v1998_v22  ;;  %v11961_v23 = vld [vmem:[#allocation65_spill] sm:$0xff]  ;;  %v11962_v48 = vld [vmem:[#allocation204_spill] sm:$0xff]  ;;  %v11964_v31 = vld [vmem:[#allocation70_spill] sm:$0xff] }
 0x35f   : > { %v8323_v59 = vadd.f32 %v11956_v56, %v1783_v2  ;;  %v1784_v18 = vadd.f32 %v7665_v9, %v1565_v13  ;;  %v1566_v45 = vadd.f32 %v11958_v50, %v1416_v39  ;;  %v1203_v40 = vadd.f32 %v7683_v14, %v11960_v54  ;;  %v11963_v4 = vld [vmem:[#allocation205_spill] sm:$0xff]  ;;  %v11965_v8 = vld [vmem:[#allocation72_spill] sm:$0xff]  ;;  %v8344_v24 = vpop.permute.xlu0 %2299  ;;  %v8346_v39 = vpop.permute.xlu1 %2297  ;;  %v11966_v14 = vld [vmem:[#allocation146_spill] sm:$0xff] }
 0x360   : > { %v1418_v41 = vadd.f32 %v11959_v27, %v1202_v12  ;;  %v1204_v32 = vadd.f32 %v7691_v34, %v11961_v23  ;;  %v1567_v58 = vadd.f32 %v7697_v1, %v1417_v63  ;;  %v1205_v9 = vadd.f32 %v7724_v52, %v11964_v31  ;;  %v11967_v34 = vld [vmem:[#allocation158_spill] sm:$0xff]  ;;  %v11970_v56 = vld [vmem:[#allocation207_spill] sm:$0xff] }
 0x361   : > { %v8337_v30 = vadd.f32 %v11962_v48, %v1784_v18  ;;  %v1785_v22 = vadd.f32 %v11963_v4, %v1566_v45  ;;  %v1206_v62 = vadd.f32 %v7732_v15, %v11965_v8  ;;  %v1419_v55 = vadd.f32 %v11966_v14, %v1203_v40  ;;  %v11968_v16 = vld [vmem:[#allocation206_spill] sm:$0xff]  ;;  %v11971_v18 = vld [vmem:[#allocation209_spill] sm:$0xff]  ;;  %v11977_v48 = vld [vmem:[#allocation212_spill] sm:$0xff] }
 0x362   : > { %v1420_v2 = vadd.f32 %v11967_v34, %v1204_v32  ;;  %v1786_v1 = vadd.f32 %v7706_v37, %v1567_v58  ;;  %v1568_v13 = vadd.f32 %v7708_v33, %v1418_v41  ;;  %v1421_v52 = vadd.f32 %v7730_v28, %v1205_v9  ;;  %v11969_v15 = vld [vmem:[#allocation86_spill] sm:$0xff]  ;;  %v11972_v45 = vld [vmem:[#allocation89_spill] sm:$0xff]  ;;  %v11978_v4 = vld [vmem:[#allocation103_spill] sm:$0xff] }
 0x363   : > { %v8353_v51 = vadd.f32 %v11968_v16, %v1785_v22  ;;  %v1422_v63 = vadd.f32 %v7740_v35, %v1206_v62  ;;  %v1207_v6 = vadd.f32 %v7765_v3, %v11969_v15  ;;  %v1569_v50 = vadd.f32 %v11971_v18, %v1419_v55  ;;  %v11973_v28 = vld [vmem:[#allocation213_spill] sm:$0xff]  ;;  %v11974_v35 = vld [vmem:[#allocation216_spill] sm:$0xff]  ;;  %v8370_v40 = vpop.permute.xlu0 %2303  ;;  %v8372_v3 = vpop.permute.xlu1 %2301  ;;  %v11976_v32 = vld [vmem:[#allocation210_spill] sm:$0xff] }
 0x364   : > { %v8360_v12 = vadd.f32 %v7714_v44, %v1786_v1  ;;  %v1787_v57 = vadd.f32 %v11970_v56, %v1568_v13  ;;  %v1570_v37 = vadd.f32 %v7749_v26, %v1420_v2  ;;  %v1208_v27 = vadd.f32 %v7773_v47, %v11972_v45  ;;  %v11975_v44 = vld [vmem:[#allocation208_spill] sm:$0xff]  ;;  %v11980_v31 = vld [vmem:[#allocation214_spill] sm:$0xff]  ;;  %v11981_v9 = vld [vmem:[#allocation215_spill] sm:$0xff] }
 0x365   : > { %v1423_v33 = vadd.f32 %v7771_v20, %v1207_v6  ;;  %v1571_v41 = vadd.f32 %v11973_v28, %v1421_v52  ;;  %v1572_v54 = vadd.f32 %v11974_v35, %v1422_v63  ;;  %v1788_v58 = vadd.f32 %v11976_v32, %v1569_v50  ;;  %v11979_v20 = vld [vmem:[#allocation220_spill] sm:$0xff]  ;;  %v11982_v62 = vld [vmem:[#allocation218_spill] sm:$0xff]  ;;  %v11983_v55 = vld [vmem:[#allocation223_spill] sm:$0xff] }
 0x366   : > { %v8375_v23 = vadd.f32 %v11975_v44, %v1787_v57  ;;  %v1789_v26 = vadd.f32 %v11977_v48, %v1570_v37  ;;  %v1209_v22 = vadd.f32 %v11979_v20, %v11978_v4  ;;  %v1424_v47 = vadd.f32 %v11980_v31, %v1208_v27  ;;  %v11984_v2 = vld [vmem:[#allocation211_spill] sm:$0xff]  ;;  %v11986_v52 = vld [vmem:[#allocation221_spill] sm:$0xff]  ;;  %v11987_v15 = vld [vmem:[#allocation106_spill] sm:$0xff] }
 0x367   : > { %v1790_v8 = vadd.f32 %v11981_v9, %v1571_v41  ;;  %v1791_v14 = vadd.f32 %v11982_v62, %v1572_v54  ;;  %v1573_v34 = vadd.f32 %v11983_v55, %v1423_v33  ;;  %v8386_v1 = vadd.f32 %v11984_v2, %v1788_v58  ;;  %v11985_v13 = vld [vmem:[#allocation59_spill] sm:$0xff]  ;;  %v11988_v6 = vld [vmem:[#allocation222_spill] sm:$0xff]  ;;  %v11989_v57 = vld [vmem:[#allocation217_spill] sm:$0xff]  ;;  %v8402_v41 = vpop.permute.xlu0 %2307  ;;  %v8404_v35 = vpop.permute.xlu1 %2305 }
 0x368   : > { %v8389_v16 = vadd.f32 %v11985_v13, %v1789_v26  ;;  %v1425_v63 = vadd.f32 %v11986_v52, %v1209_v22  ;;  %v1210_v56 = vadd.f32 %v11988_v6, %v11987_v15  ;;  %v11990_v50 = vld [vmem:[#allocation219_spill] sm:$0xff]  ;;  %v11991_v45 = vld [vmem:[#allocation225_spill] sm:$0xff]  ;;  %v11992_v33 = vld [vmem:[#allocation226_spill] sm:$0xff]  ;;  %11993 = vst [vmem:[#allocation92_spill] sm:$0xff] %v8404_v35 }
 0x369   : > { %v8395_v18 = vadd.f32 %v11989_v57, %v1790_v8  ;;  %v8398_v37 = vadd.f32 %v11990_v50, %v1791_v14  ;;  %v1792_v27 = vadd.f32 %v11991_v45, %v1573_v34  ;;  %v1574_v28 = vadd.f32 %v11992_v33, %v1424_v47  ;;  %v11994_v54 = vld [vmem:[#allocation224_spill] sm:$0xff]  ;;  %v11996_v58 = vld [vmem:[#allocation229_spill] sm:$0xff]  ;;  %v11997_v26 = vld [vmem:[#allocation123_spill] sm:$0xff] }
 0x36a   : > { %v1426_v44 = vadd.f32 %v11994_v54, %v1210_v56  ;;  %v11995_v32 = vld [vmem:[#allocation120_spill] sm:$0xff]  ;;  %v11998_v4 = vld [vmem:[#allocation13_spill] sm:$0xff]  ;;  %v11999_v22 = vld [vmem:[#allocation22_spill] sm:$0xff] }
 0x36b   : > { %v1211_v48 = vadd.f32 %v11996_v58, %v11995_v32  ;;  %v1212_v20 = vadd.f32 %v11998_v4, %v11997_v26  ;;  %v1575_v31 = vadd.f32 %v11999_v22, %v1425_v63  ;;  %v12000_v9 = vld [vmem:[#allocation227_spill] sm:$0xff]  ;;  %v12001_v62 = vld [vmem:[#allocation228_spill] sm:$0xff]  ;;  %v12002_v47 = vld [vmem:[#allocation138_spill] sm:$0xff] }
 0x36c   : > { %v8413_v8 = vadd.f32 %v12000_v9, %v1792_v27  ;;  %v1793_v14 = vadd.f32 %v12001_v62, %v1574_v28  ;;  %v12003_v55 = vld [vmem:[#allocation37_spill] sm:$0xff]  ;;  %v12005_v13 = vld [vmem:[#allocation43_spill] sm:$0xff]  ;;  %v12006_v15 = vld [vmem:[#allocation16_spill] sm:$0xff]  ;;  %v8431_v62 = vpop.permute.xlu0 %2311 }
 0x36d   : > { %v1213_v34 = vadd.f32 %v12003_v55, %v12002_v47  ;;  %v12004_v2 = vld [vmem:[#allocation141_spill] sm:$0xff]  ;;  %v1427_v6 = vadd.f32 %v12006_v15, %v1211_v48  ;;  %v12007_v56 = vld [vmem:[#allocation19_spill] sm:$0xff]  ;;  %v12008_v50 = vld [vmem:[#allocation28_spill] sm:$0xff]  ;;  %12015 = vst [vmem:[#allocation7_spill] sm:$0xff] %v8431_v62  ;;  %v8433_v47 = vpop.permute.xlu1 %2309 }
 0x36e   : > { %v1214_v52 = vadd.f32 %v12005_v13, %v12004_v2  ;;  %v1428_v57 = vadd.f32 %v12007_v56, %v1212_v20  ;;  %v1794_v45 = vadd.f32 %v12008_v50, %v1575_v31  ;;  %v12009_v33 = vld [vmem:[#allocation25_spill] sm:$0xff]  ;;  %v12010_v63 = vld [vmem:[#allocation10_spill] sm:$0xff]  ;;  %v12013_v4 = vld [vmem:[#allocation155_spill] sm:$0xff]  ;;  %12016 = vst [vmem:[#allocation100_spill] sm:$0xff] %v8433_v47 }
 0x36f   : > { %v1576_v54 = vadd.f32 %v12009_v33, %v1426_v44  ;;  %v8425_v32 = vadd.f32 %v12010_v63, %v1793_v14  ;;  %v12011_v27 = vld [vmem:[#allocation46_spill] sm:$0xff]  ;;  %v12012_v28 = vld [vmem:[#allocation49_spill] sm:$0xff]  ;;  %v12018_v55 = vld [vmem:[#allocation31_spill] sm:$0xff] }
 0x370   : > { %v1429_v58 = vadd.f32 %v12011_v27, %v1213_v34  ;;  %v1430_v26 = vadd.f32 %v12012_v28, %v1214_v52  ;;  %v12014_v22 = vld [vmem:[#allocation73_spill] sm:$0xff]  ;;  %v12017_v48 = vld [vmem:[#allocation34_spill] sm:$0xff]  ;;  %v12019_v2 = vld [vmem:[#allocation52_spill] sm:$0xff] }
 0x371   : > { %v1215_v9 = vadd.f32 %v12014_v22, %v12013_v4  ;;  %v2011_v20 = vadd.f32 %v12017_v48, %v1794_v45  ;;  %v1795_v31 = vadd.f32 %v12018_v55, %v1576_v54  ;;  %v1577_v44 = vadd.f32 %v12019_v2, %v1427_v6  ;;  %v12020_v13 = vld [vmem:[#allocation57_spill] sm:$0xff]  ;;  %v12021_v15 = vld [vmem:[#allocation54_spill] sm:$0xff]  ;;  %v12022_v56 = vld [vmem:[#allocation95_spill] sm:$0xff] }
 0x372   : > { %v1578_v14 = vadd.f32 %v12020_v13, %v1428_v57  ;;  %v1216_v34 = vadd.f32 %v12022_v56, %v12021_v15  ;;  %v12023_v50 = vld [vmem:[#allocation90_spill] sm:$0xff]  ;;  %v12024_v33 = vld [vmem:[#allocation107_spill] sm:$0xff]  ;;  %v12025_v27 = vld [vmem:[#allocation124_spill] sm:$0xff] }
 0x373   : > { %v1431_v52 = vadd.f32 %v12023_v50, %v1215_v9  ;;  %v1579_v63 = vadd.f32 %v12024_v33, %v1429_v58  ;;  %v1580_v28 = vadd.f32 %v12025_v27, %v1430_v26  ;;  %v12026_v4 = vld [vmem:[#allocation40_spill] sm:$0xff]  ;;  %v12028_v48 = vld [vmem:[#allocation66_spill] sm:$0xff]  ;;  %v12029_v55 = vld [vmem:[#allocation179_spill] sm:$0xff] }
 0x374   : > { %v8445_v22 = vadd.f32 %v12026_v4, %v1795_v31  ;;  %v12027_v47 = vld [vmem:[#allocation60_spill] sm:$0xff]  ;;  %v1797_v54 = vadd.f32 %v12028_v48, %v1578_v14  ;;  %v12030_v6 = vld [vmem:[#allocation79_spill] sm:$0xff]  ;;  %v12032_v62 = vld [vmem:[#allocation130_spill] sm:$0xff]  ;;  %v2462_v31 = vpop.permute.xlu0 %2461 }
 0x375   : > { %v1796_v45 = vadd.f32 %v12027_v47, %v1577_v44  ;;  %v2351_v2 = vadd.f32 %v12030_v6, %v12029_v55  ;;  %v12031_v57 = vld [vmem:[#allocation112_spill] sm:$0xff]  ;;  %v1798_v15 = vadd.f32 %v12032_v62, %v1579_v63  ;;  %v12033_v56 = vld [vmem:[#allocation142_spill] sm:$0xff]  ;;  %v12034_v50 = vld [vmem:[#allocation159_spill] sm:$0xff]  ;;  %v8460_v47 = vpop.permute.xlu1 %2313 }
 0x376   : > { %v1432_v13 = vadd.f32 %v12031_v57, %v1216_v34  ;;  %v1799_v9 = vadd.f32 %v12033_v56, %v1580_v28  ;;  %v1581_v58 = vadd.f32 %v12034_v50, %v1431_v52  ;;  %v8458_v26 = vld [vmem:[%s11313_s2] ss:$0 sm:$0xff]  ;;  %12035 = vst [vmem:[#allocation88_spill] sm:$0xff] %v8460_v47  ;;  %v12036_v44 = vld [vmem:[#allocation68_spill] sm:$0xff]  ;;  %v12038_v62 = vld [vmem:[#allocation147_spill] sm:$0xff] }
 0x377   : > { %v2013_v14 = vadd.f32 %v12036_v44, %v1796_v45  ;;  %v12037_v33 = vld [vmem:[#allocation78_spill] sm:$0xff]  ;;  %v2569_v34 = vadd.f32 %v2462_v31, %v2351_v2  ;;  %v8467_v63 = vadd.f32 %v12038_v62, %v1798_v15  ;;  %v12039_v28 = vld [vmem:[#allocation55_spill] sm:$0xff]  ;;  %v12042_v57 = vld [vmem:[#allocation96_spill] sm:$0xff] }
 0x378   : > { %v8464_v27 = vadd.f32 %v12037_v33, %v1797_v54  ;;  %v8470_v52 = vadd.f32 %v12039_v28, %v1799_v9  ;;  %v12040_v4 = vld [vmem:[#allocation178_spill] sm:$0xff]  ;;  %v12041_v55 = vld [vmem:[#allocation63_spill] sm:$0xff]  ;;  %v2353_v56 = vadd.f32 %v12042_v57, %v8191_v0  ;;  %v12043_v50 = vld [vmem:[#allocation5_spill] sm:$0xff]  ;;  %v2466_v0 = vpop.permute.xlu0 %2465 }
 0x379   : > { %v1582_v48 = vadd.f32 %v12040_v4, %v1432_v13  ;;  %v1800_v6 = vadd.f32 %v12041_v55, %v1581_v58  ;;  %v12044_v45 = vld [vmem:[#allocation93_spill] sm:$0xff]  ;;  %v2612_v54 = vadd.f32 %v8458_v26, %v2569_v34  ;;  %v12045_v2 = vld [vmem:[#allocation186_spill] sm:$0xff]  ;;  %v12047_v13 = vld [vmem:[#allocation11_spill] sm:$0xff]  ;;  %v2464_v28 = vpop.permute.xlu1 %2463 }
 0x37a   : > { %v2352_v44 = vadd.f32 %v12044_v45, %v12043_v50  ;;  %v8481_v15 = vadd.f32 %v12045_v2, %v8323_v59  ;;  %v12046_v31 = vld [vmem:[#allocation230_spill] sm:$0xff]  ;;  %v8488_v33 = vadd.f32 %v12047_v13, %v8314_v43  ;;  %v12048_v58 = vld [vmem:[#allocation231_spill] sm:$0xff]  ;;  %v12049_v4 = vld [vmem:[#allocation17_spill] sm:$0xff]  ;;  %v2571_v57 = vadd.f32 %v2466_v0, %v2353_v56 }
 0x37b   : > { %v8484_v9 = vadd.f32 %v12046_v31, %v1800_v6  ;;  %v1801_v62 = vadd.f32 %v12048_v58, %v1582_v48  ;;  %v8493_v55 = vadd.f32 %v12049_v4, %v8337_v30  ;;  %v2648_v34 = vmax.f32 %v2612_v54, 0.0  ;;  %v12050_v59 = vld [vmem:[#allocation14_spill] sm:$0xff]  ;;  %v12052_v6 = vld [vmem:[#allocation23_spill] sm:$0xff]  ;;  %v12053_v43 = vld [vmem:[#allocation20_spill] sm:$0xff] }
 0x37c   : > { %v2570_v50 = vadd.f32 %v2464_v28, %v2352_v44  ;;  %v8500_v2 = vadd.f32 %v12052_v6, %v8360_v12  ;;  %v8504_v31 = vadd.f32 %v12053_v43, %v8353_v51  ;;  %v12054_v48 = vld [vmem:[#allocation29_spill] sm:$0xff]  ;;  %v12057_v12 = vld [vmem:[#allocation35_spill] sm:$0xff]  ;;  %v12058_v51 = vld [vmem:[#allocation84_spill] sm:$0xff]  ;;  %v2470_v6 = vpop.permute.xlu0 %2469 }
 0x37d   : > { %v8496_v45 = vadd.f32 %v12050_v59, %v1801_v62  ;;  %v8508_v13 = vadd.f32 %v12054_v48, %v8386_v1  ;;  %v12055_v30 = vld [vmem:[#allocation113_spill] sm:$0xff]  ;;  %v2685_v56 = vrot.slane %v2648_v34, 1  ;;  %v2688_v44 = vrot.slane %v2648_v34, 7  ;;  %v12056_v62 = vld [vmem:[#allocation26_spill] sm:$0xff]  ;;  %v2468_v43 = vpop.permute.xlu1 %2467 }
 0x37e   : > { %v2355_v54 = vadd.f32 %v12055_v30, %v8213_v61  ;;  %v2613_v58 = vadd.f32 %v8458_v26, %v2570_v50  ;;  %v8515_v0 = vadd.f32 %v12056_v62, %v8375_v23  ;;  %v8519_v28 = vadd.f32 %v12057_v12, %v8395_v18  ;;  %v12059_v4 = vld [vmem:[#allocation110_spill] sm:$0xff]  ;;  %v12060_v61 = vld [vmem:[#allocation32_spill] sm:$0xff]  ;;  %v12061_v30 = vld [vmem:[#allocation41_spill] sm:$0xff] }
 0x37f   : > { %12051 = vst [vmem:[#allocation91_spill] sm:$0xff] %v8496_v45  ;;  %v2354_v59 = vadd.f32 %v12059_v4, %v12058_v51  ;;  %v2614_v1 = vadd.f32 %v8458_v26, %v2571_v57  ;;  %v8526_v34 = vadd.f32 %v12060_v61, %v8389_v16  ;;  %v2696_v50 = vsel %vm207_vm2, %v2685_v56, %v2688_v44  ;;  %v12062_v18 = vld [vmem:[#allocation38_spill] sm:$0xff]  ;;  %v12063_v51 = vld [vmem:[#allocation47_spill] sm:$0xff] }
 0x380   : > { %v2649_v48 = vmax.f32 %v2613_v58, 0.0  ;;  %v2573_v23 = vadd.f32 %v2470_v6, %v2355_v54  ;;  %v8531_v62 = vadd.f32 %v12061_v30, %v8413_v8  ;;  %v8535_v12 = vadd.f32 %v12062_v18, %v8398_v37  ;;  %2699 = vst.msk [vmem:[#allocation2 + $0x12] sm:$0xff] %vm2698_vm10, %v2696_v50  ;;  %v12064_v16 = vld [vmem:[#allocation131_spill] sm:$0xff]  ;;  %v12065_v56 = vld [vmem:[#allocation6_spill] sm:$0xff]  ;;  %v12067_v8 = vld [vmem:[#allocation44_spill] sm:$0xff] }
 0x381   : > { %v8538_v57 = vadd.f32 %v12063_v51, %v2011_v20  ;;  %v2572_v4 = vadd.f32 %v2468_v43, %v2354_v59  ;;  %v2357_v61 = vadd.f32 %v12064_v16, %v8231_v19  ;;  %v12066_v58 = vld [vmem:[#allocation127_spill] sm:$0xff]  ;;  %v8547_v30 = vadd.f32 %v12067_v8, %v8425_v32  ;;  %v2474_v51 = vpop.permute.xlu0 %2473  ;;  %v2472_v50 = vpop.permute.xlu1 %2471 }
 0x382   : > { %v2356_v54 = vadd.f32 %v12066_v58, %v12065_v56  ;;  %v2689_v6 = vrot.slane %v2649_v48, 7  ;;  %v2694_v47 = vrot.slane %v2649_v48, 5  ;;  %v2650_v37 = vmax.f32 %v2614_v1, 0.0  ;;  %v12068_v56 = vld [vmem:[#allocation53_spill] sm:$0xff]  ;;  %v12069_v48 = vld [vmem:[#allocation148_spill] sm:$0xff] }
 0x383   : > { %v2616_v18 = vadd.f32 %v8458_v26, %v2573_v23  ;;  %v2615_v20 = vadd.f32 %v8458_v26, %v2572_v4  ;;  %v2575_v43 = vadd.f32 %v2474_v51, %v2357_v61  ;;  %v8554_v58 = vadd.f32 %v12068_v56, %v2013_v14  ;;  %v12070_v4 = vld [vmem:[#allocation145_spill] sm:$0xff] }
 0x384   : > { %v2690_v59 = vsel %vm207_vm2, %v2688_v44, %v2689_v6  ;;  %v2697_v19 = vsel %vm207_vm2, %v2689_v6, %v2694_v47  ;;  %v2574_v16 = vadd.f32 %v2472_v50, %v2356_v54  ;;  %v2359_v32 = vadd.f32 %v12069_v48, %v8251_v7  ;;  %v12071_v44 = vld [vmem:[#allocation163_spill] sm:$0xff]  ;;  %v12072_v54 = vld [vmem:[#allocation162_spill] sm:$0xff] }
 0x385   : > { %2700 = vst.msk [vmem:[#allocation2 + $0x1a] sm:$0xff] %vm2698_vm10, %v2690_v59  ;;  %v2652_v1 = vmax.f32 %v2616_v18, 0.0  ;;  %v2651_v23 = vmax.f32 %v2615_v20, 0.0  ;;  %v2358_v8 = vadd.f32 %v12070_v4, %v8242_v49  ;;  %v2361_v47 = vadd.f32 %v12071_v44, %v8275_v29  ;;  %v2478_v59 = vpop.permute.xlu0 %2477  ;;  %v12073_v49 = vld [vmem:[#allocation4_spill] sm:$0xff] }
 0x386   : > { %2702 = vst.msk [vmem:[#allocation2 + $0x22] sm:$0x3] %vm2701_vm11, %v2697_v19  ;;  %v2618_v61 = vadd.f32 %v8458_v26, %v2575_v43  ;;  %v2617_v14 = vadd.f32 %v8458_v26, %v2574_v16  ;;  %v2360_v6 = vadd.f32 %v12072_v54, %v8265_v25  ;;  %v2708_v7 = vrot.slane %v2650_v37, 1  ;;  %v2476_v19 = vpop.permute.xlu1 %2475 }
 0x387   : > { %v2711_v51 = vrot.slane %v2652_v1, 1  ;;  %v2716_v50 = vrot.slane %v2652_v1, 7  ;;  %v2709_v18 = vrot.slane %v2651_v23, 1  ;;  %v2577_v48 = vadd.f32 %v2478_v59, %v2359_v32 }
 0x388   : > { %v2654_v20 = vmax.f32 %v2618_v61, 0.0  ;;  %v2653_v56 = vmax.f32 %v2617_v14, 0.0  ;;  %v2363_v4 = vadd.f32 %v12073_v49, %v8297_v10  ;;  %v2704_v29 = vrot.slane %v2650_v37, 3 }
 0x389   : > { %v2719_v43 = vsel %vm207_vm2, %v2711_v51, %v2716_v50  ;;  %v2576_v44 = vadd.f32 %v2476_v19, %v2358_v8  ;;  %v2710_v25 = vsel %vm1001_vm5, %v2708_v7, %v2709_v18  ;;  %v2712_v16 = vsel %vm1001_vm5, %v2709_v18, %v2711_v51  ;;  %v2482_v10 = vpop.permute.xlu0 %2481  ;;  %v12074_v50 = vld [vmem:[#allocation82_spill] sm:$0xff] }
 0x38a   : > { %2722 = vst.msk [vmem:[#allocation2 + $0x34] sm:$0x3] %vm2701_vm11, %v2719_v43  ;;  %v2730_v54 = vrot.slane %v2654_v20, 3  ;;  %v2735_v45 = vrot.slane %v2654_v20, 1  ;;  %v2723_v35 = vrot.slane %v2652_v1, 5  ;;  %v2727_v23 = vrot.slane %v2652_v1, 3  ;;  %v2480_v37 = vpop.permute.xlu1 %2479 }
 0x38b   : > { %v2718_v61 = vsel %vm207_vm2, %v2704_v29, %v2710_v25  ;;  %2721 = vst.msk [vmem:[#allocation2 + $0x2c] sm:$0xff] %vm2698_vm10, %v2712_v16  ;;  %v2728_v32 = vrot.slane %v2653_v56, 3  ;;  %v2620_v14 = vadd.f32 %v8458_v26, %v2577_v48  ;;  %v2619_v7 = vadd.f32 %v8458_v26, %v2576_v44 }
 0x38c   : > { %2720 = vst.msk [vmem:[#allocation2 + $0x24] sm:$0xff] %vm2698_vm10, %v2718_v61  ;;  %v2738_v8 = vsel %vm207_vm2, %v2730_v54, %v2735_v45  ;;  %v2579_v51 = vadd.f32 %v2482_v10, %v2361_v47  ;;  %v2362_v59 = vadd.f32 %v12074_v50, %v8287_v5  ;;  %v2578_v18 = vadd.f32 %v2480_v37, %v2360_v6  ;;  %v12075_v47 = vld [vmem:[#allocation3_spill] sm:$0xff] }
 0x38d   : > { %2741 = vst.msk [vmem:[#allocation2 + $0x46] sm:$0x3] %vm2701_vm11, %v2738_v8  ;;  %v2729_v1 = vsel %vm1584_vm7, %v2727_v23, %v2728_v32  ;;  %v2731_v19 = vsel %vm1584_vm7, %v2728_v32, %v2730_v54  ;;  %v2656_v45 = vmax.f32 %v2620_v14, 0.0  ;;  %v2655_v49 = vmax.f32 %v2619_v7, 0.0  ;;  %v12076_v5 = vld [vmem:[#allocation75_spill] sm:$0xff]  ;;  %v2486_v6 = vpop.permute.xlu0 %2485 }
 0x38e   : > { %v2737_v56 = vsel %vm207_vm2, %v2723_v35, %v2729_v1  ;;  %2740 = vst.msk [vmem:[#allocation2 + $0x3e] sm:$0xff] %vm2698_vm10, %v2731_v19  ;;  %v2622_v48 = vadd.f32 %v8458_v26, %v2579_v51  ;;  %v2365_v29 = vadd.f32 %v12075_v47, %v8317_v17  ;;  %v2364_v43 = vadd.f32 %v12076_v5, %v8304_v21  ;;  %v2484_v16 = vpop.permute.xlu1 %2483  ;;  %v12077_v5 = vld [vmem:[#allocation50_spill] sm:$0xff] }
 0x38f   : > { %v2746_v44 = vrot.slane %v2654_v20, 5  ;;  %2739 = vst.msk [vmem:[#allocation2 + $0x36] sm:$0xff] %vm2698_vm10, %v2737_v56  ;;  %v2621_v25 = vadd.f32 %v8458_v26, %v2578_v18  ;;  %v2749_v35 = vrot.slane %v2656_v45, 5  ;;  %v2754_v54 = vrot.slane %v2656_v45, 3 }
 0x390   : > { %v2747_v23 = vrot.slane %v2655_v49, 5  ;;  %v2658_v61 = vmax.f32 %v2622_v48, 0.0  ;;  %v2742_v32 = vrot.slane %v2654_v20, 7  ;;  %v2581_v37 = vadd.f32 %v2486_v6, %v2363_v4 }
 0x391   : > { %v2657_v10 = vmax.f32 %v2621_v25, 0.0  ;;  %v2580_v8 = vadd.f32 %v2484_v16, %v2362_v59  ;;  %v2988_v14 = vld [vmem:[#allocation2 + $0x34] sm:$0x3]  ;;  %v2757_v17 = vsel %vm207_vm2, %v2749_v35, %v2754_v54  ;;  %v2490_v19 = vpop.permute.xlu0 %2489 }
 0x392   : > { %v2748_v21 = vsel %vm2169_vm8, %v2746_v44, %v2747_v23  ;;  %v2750_v7 = vsel %vm2169_vm8, %v2747_v23, %v2749_v35  ;;  %v2766_v51 = vrot.slane %v2658_v61, 7  ;;  %v2987_v50 = vld [vmem:[#allocation2 + $0x2c] sm:$0xff]  ;;  %2991 = vst.msk [vmem:[#allocation2 + $0x10] sm:$0x3] %vm2701_vm11, %v2988_v14  ;;  %2760 = vst.msk [vmem:[#allocation2 + $0x58] sm:$0x3] %vm2701_vm11, %v2757_v17  ;;  %v2488_v18 = vpop.permute.xlu1 %2487  ;;  %v2624_v45 = vadd.f32 %v8458_v26, %v2581_v37 }
 0x393   : > { %v2756_v1 = vsel %vm207_vm2, %v2742_v32, %v2748_v21  ;;  %2759 = vst.msk [vmem:[#allocation2 + $0x50] sm:$0xff] %vm2698_vm10, %v2750_v7  ;;  %v2771_v20 = vrot.slane %v2658_v61, 5  ;;  %v2762_v4 = vrot.slane %v2657_v10, 1  ;;  %v2765_v59 = vrot.slane %v2657_v10, 7  ;;  %v2986_v56 = vld [vmem:[#allocation2 + $0x24] sm:$0xff]  ;;  %2990 = vst.msk [vmem:[#allocation2 + $0x8] sm:$0xff] %vm2698_vm10, %v2987_v50 }
 0x394   : > { %2758 = vst.msk [vmem:[#allocation2 + $0x48] sm:$0xff] %vm2698_vm10, %v2756_v1  ;;  %v2623_v49 = vadd.f32 %v8458_v26, %v2580_v8  ;;  %v2583_v48 = vadd.f32 %v2490_v19, %v2365_v29  ;;  %v2582_v47 = vadd.f32 %v2488_v18, %v2364_v43  ;;  %2989 = vst.msk [vmem:[#allocation2] sm:$0xff] %vm2698_vm10, %v2986_v56  ;;  %v2660_v29 = vmax.f32 %v2624_v45, 0.0  ;;  %v12079_v61 = vld [vmem:[#allocation58_spill] sm:$0xff]  ;;  %v12081_v8 = vld [vmem:[#allocation80_spill] sm:$0xff] }
 0x395   : > { %v8608_v44 = vadd.f32 %v12077_v5, %v8445_v22  ;;  %v2774_v25 = vsel %vm207_vm2, %v2766_v51, %v2771_v20  ;;  %v2767_v6 = vsel %vm207_vm2, %v2765_v59, %v2766_v51  ;;  %v2773_v16 = vsel %vm207_vm2, %v2762_v4, %v2765_v59  ;;  %v12078_v22 = vld [vmem:[#allocation61_spill] sm:$0xff]  ;;  %v12080_v10 = vld [vmem:[#allocation174_spill] sm:$0xff]  ;;  %v2494_v17 = vpop.permute.xlu0 %2493  ;;  %v12083_v19 = vld [vmem:[#allocation83_spill] sm:$0xff] }
 0x396   : > { %2777 = vst.msk [vmem:[#allocation2 + $0x6a] sm:$0x3] %vm2701_vm11, %v2774_v25  ;;  %v2659_v43 = vmax.f32 %v2623_v49, 0.0  ;;  %v2626_v35 = vadd.f32 %v8458_v26, %v2583_v48  ;;  %v2625_v54 = vadd.f32 %v8458_v26, %v2582_v47  ;;  %v8620_v23 = vadd.f32 %v12078_v22, %v8467_v63  ;;  %v2492_v21 = vpop.permute.xlu1 %2491  ;;  %v12082_v20 = vld [vmem:[#allocation69_spill] sm:$0xff] }
 0x397   : > { %2775 = vst.msk [vmem:[#allocation2 + $0x5a] sm:$0xff] %vm2698_vm10, %v2773_v16  ;;  %2776 = vst.msk [vmem:[#allocation2 + $0x62] sm:$0xff] %vm2698_vm10, %v2767_v6  ;;  %v8624_v32 = vadd.f32 %v12079_v61, %v8464_v27  ;;  %v2367_v37 = vadd.f32 %v12080_v10, %v8488_v33  ;;  %v2366_v14 = vadd.f32 %v12081_v8, %v8326_v60  ;;  %v2784_v7 = vrot.slane %v2660_v29, 1  ;;  %v12084_v33 = vld [vmem:[#allocation81_spill] sm:$0xff] }
 0x398   : > { %v2779_v51 = vrot.slane %v2659_v43, 3  ;;  %v2783_v50 = vrot.slane %v2659_v43, 1  ;;  %v2662_v1 = vmax.f32 %v2626_v35, 0.0  ;;  %v8632_v63 = vadd.f32 %v12082_v20, %v8470_v52  ;;  %v12085_v43 = vld [vmem:[#allocation85_spill] sm:$0xff] }
 0x399   : > { %v2661_v4 = vmax.f32 %v2625_v54, 0.0  ;;  %v2585_v59 = vadd.f32 %v2494_v17, %v2367_v37  ;;  %v2584_v27 = vadd.f32 %v2492_v21, %v2366_v14  ;;  %v2369_v18 = vadd.f32 %v12083_v19, %v8493_v55  ;;  %v2498_v52 = vpop.permute.xlu0 %2497 }
 0x39a   : > { %v2368_v56 = vadd.f32 %v12084_v33, %v8481_v15  ;;  %v2785_v60 = vsel %vm1001_vm5, %v2783_v50, %v2784_v7  ;;  %v2803_v45 = vrot.slane %v2662_v1, 3  ;;  %v2496_v6 = vpop.permute.xlu1 %2495  ;;  %v2371_v35 = vadd.f32 %v12085_v43, %v8500_v2  ;;  %v12087_v2 = vld [vmem:[#allocation87_spill] sm:$0xff] }
 0x39b   : > { %v2793_v49 = vsel %vm207_vm2, %v2779_v51, %v2785_v60  ;;  %v2786_v48 = vrot.slane %v2661_v4, 1  ;;  %v2791_v47 = vrot.slane %v2661_v4, 7  ;;  %v2798_v5 = vrot.slane %v2661_v4, 5  ;;  %v2998_v25 = vld [vmem:[#allocation2] sm:$0xff]  ;;  %v2999_v1 = vld [vmem:[#allocation2 + $0x8] sm:$0xff] }
 0x39c   : > { %2795 = vst.msk [vmem:[#allocation2 + $0x6c] sm:$0xff] %vm2698_vm10, %v2793_v49  ;;  %v2802_v16 = vrot.slane %v2661_v4, 3  ;;  %v2628_v29 = vadd.f32 %v8458_v26, %v2585_v59  ;;  %v2627_v55 = vadd.f32 %v8458_v26, %v2584_v27  ;;  %5696 = vmatmul.mubr.msk.f32.vlgmr.msra.gmra.mrb[0].mxu1 %vm2698_vm10, %v2998_v25  ;;  %v2587_v15 = vadd.f32 %v2498_v52, %v2369_v18 }
 0x39d   : > { %v2787_v54 = vsel %vm1001_vm5, %v2784_v7, %v2786_v48  ;;  %v2794_v22 = vsel %vm207_vm2, %v2786_v48, %v2791_v47  ;;  %v2586_v61 = vadd.f32 %v2496_v6, %v2368_v56  ;;  %v12086_v10 = vmov 0.0   ;;  %v2502_v20 = vpop.permute.xlu0 %2501  ;;  %v3000_v6 = vld [vmem:[#allocation2 + $0x10] sm:$0xff] }
 0x39e   : > { %5698 = vmatprep.mubr.msk.f32.mxu1 %vm5845_vm1, %v12086_v10  ;;  %2796 = vst.msk [vmem:[#allocation2 + $0x74] sm:$0xff] %vm2698_vm10, %v2787_v54  ;;  %v2804_v37 = vsel %vm1584_vm7, %v2802_v16, %v2803_v45  ;;  %v2664_v8 = vmax.f32 %v2628_v29, 0.0  ;;  %v2663_v14 = vmax.f32 %v2627_v55, 0.0  ;;  %v2630_v17 = vadd.f32 %v8458_v26, %v2587_v15  ;;  %v2500_v4 = vpop.permute.xlu1 %2499 }
 0x39f   : > { %2797 = vst.msk [vmem:[#allocation2 + $0x7c] sm:$0x3] %vm2701_vm11, %v2794_v22  ;;  %v2370_v21 = vadd.f32 %v12087_v2, %v8504_v31  ;;  %v2373_v7 = vadd.f32 %v8254_v42, %v8508_v13  ;;  %v2812_v51 = vsel %vm207_vm2, %v2798_v5, %v2804_v37  ;;  %v2629_v50 = vadd.f32 %v8458_v26, %v2586_v61  ;;  %v12088_v22 = vld [vmem:[#allocation67_spill] sm:$0xff] }
 0x3a0   : > { %2814 = vst.msk [vmem:[#allocation2 + $0x7e] sm:$0xff] %vm2698_vm10, %v2812_v51  ;;  %v2822_v59 = vrot.slane %v2664_v8, 5  ;;  %v2805_v27 = vrot.slane %v2663_v14, 3  ;;  %v2810_v19 = vrot.slane %v2663_v14, 1  ;;  %v2817_v18 = vrot.slane %v2663_v14, 7  ;;  %5699 = vmatmul.mubr.msk.f32.gmra.mrb[2].mxu1 %vm2698_vm10, %v2999_v1 }
 0x3a1   : > { %v2821_v33 = vrot.slane %v2663_v14, 5  ;;  %v2666_v31 = vmax.f32 %v2630_v17, 0.0  ;;  %v2665_v56 = vmax.f32 %v2629_v50, 0.0  ;;  %v2589_v60 = vadd.f32 %v2502_v20, %v2371_v35  ;;  %5701 = vmatprep.mubr.msk.f32.mxu1 %vm5845_vm1, %v12086_v10  ;;  %v2506_v16 = vpop.permute.xlu0 %2505 }
 0x3a2   : > { %v2372_v42 = vadd.f32 %v8256_v38, %v8515_v0  ;;  %v2806_v13 = vsel %vm1584_vm7, %v2803_v45, %v2805_v27  ;;  %v2813_v49 = vsel %vm207_vm2, %v2805_v27, %v2810_v19  ;;  %v2588_v48 = vadd.f32 %v2500_v4, %v2370_v21  ;;  %v2504_v29 = vpop.permute.xlu1 %2503 }
 0x3a3   : > { %2815 = vst.msk [vmem:[#allocation2 + $0x86] sm:$0xff] %vm2698_vm10, %v2806_v13  ;;  %v2823_v47 = vsel %vm2169_vm8, %v2821_v33, %v2822_v59  ;;  %v2837_v5 = vrot.slane %v2666_v31, 1  ;;  %v2840_v25 = vrot.slane %v2666_v31, 7  ;;  %v2824_v52 = vrot.slane %v2665_v56, 5 }
 0x3a4   : > { %2816 = vst.msk [vmem:[#allocation2 + $0x8e] sm:$0x3] %vm2701_vm11, %v2813_v49  ;;  %v2831_v55 = vsel %vm207_vm2, %v2817_v18, %v2823_v47  ;;  %v2829_v38 = vrot.slane %v2665_v56, 3  ;;  %v2632_v0 = vadd.f32 %v8458_v26, %v2589_v60  ;;  %v2631_v45 = vadd.f32 %v8458_v26, %v2588_v48  ;;  %5702 = vmatmul.mubr.msk.f32.gmra.mrb[4].mxu1 %vm2698_vm10, %v3000_v6  ;;  %v3003_v6 = vld [vmem:[#allocation2 + $0x28] sm:$0xff] }
 0x3a5   : > { %2833 = vst.msk [vmem:[#allocation2 + $0x90] sm:$0xff] %vm2698_vm10, %v2831_v55  ;;  %v2848_v15 = vsel %vm207_vm2, %v2837_v5, %v2840_v25  ;;  %v2825_v43 = vsel %vm2169_vm8, %v2822_v59, %v2824_v52  ;;  %v2591_v35 = vadd.f32 %v2506_v16, %v2373_v7  ;;  %v2590_v54 = vadd.f32 %v2504_v29, %v2372_v42  ;;  %v3001_v7 = vld [vmem:[#allocation2 + $0x18] sm:$0xff]  ;;  %v2510_v51 = vpop.permute.xlu0 %2509  ;;  %v12089_v55 = vld [vmem:[#allocation92_spill] sm:$0xff] }
 0x3a6   : > { %5704 = vmatprep.mubr.msk.f32.mxu1 %vm5845_vm1, %v12086_v10  ;;  %v8682_v61 = vadd.f32 %v12088_v22, %v8484_v9  ;;  %v2375_v37 = vadd.f32 %v8281_v36, %v8519_v28  ;;  %2850 = vst.msk [vmem:[#allocation2 + $0xa2] sm:$0xff] %vm2698_vm10, %v2848_v15  ;;  %v2832_v8 = vsel %vm207_vm2, %v2824_v52, %v2829_v38  ;;  %2834 = vst.msk [vmem:[#allocation2 + $0x98] sm:$0xff] %vm2698_vm10, %v2825_v43  ;;  %v2508_v36 = vpop.permute.xlu1 %2507 }
 0x3a7   : > { %v2667_v14 = vmax.f32 %v2631_v45, 0.0  ;;  %v2374_v17 = vadd.f32 %v8283_v11, %v8526_v34  ;;  %2835 = vst.msk [vmem:[#allocation2 + $0xa0] sm:$0x3] %vm2701_vm11, %v2832_v8  ;;  %v2668_v2 = vmax.f32 %v2632_v0, 0.0  ;;  %v2634_v21 = vadd.f32 %v8458_v26, %v2591_v35 }
 0x3a8   : > { %v2633_v9 = vadd.f32 %v8458_v26, %v2590_v54  ;;  %v2377_v28 = vadd.f32 %v8309_v53, %v8531_v62  ;;  %v2376_v50 = vadd.f32 %v8311_v46, %v8535_v12  ;;  %5705 = vmatmul.mubr.msk.f32.gmra.mrb[6].mxu1 %vm2698_vm10, %v3001_v7  ;;  %v2593_v4 = vadd.f32 %v2510_v51, %v2375_v37 }
 0x3a9   : > { %v2841_v1 = vrot.slane %v2667_v14, 7  ;;  %v2846_v20 = vrot.slane %v2667_v14, 5  ;;  %v8699_v11 = vmax.f32 %v2634_v21, 0.0  ;;  %v2592_v59 = vadd.f32 %v2508_v36, %v2374_v17  ;;  %5707 = vmatprep.mubr.msk.f32.mxu1 %vm5845_vm1, %v12086_v10  ;;  %v2514_v33 = vpop.permute.xlu0 %2513  ;;  %v3004_v21 = vld [vmem:[#allocation2 + $0x30] sm:$0xff] }
 0x3aa   : > { %v2669_v34 = vmax.f32 %v2633_v9, 0.0  ;;  %v2379_v27 = vadd.f32 %v8344_v24, %v8538_v57  ;;  %v2378_v53 = vadd.f32 %v8346_v39, %v8547_v30  ;;  %v8711_v12 = vadd.f32 %v8370_v40, %v8554_v58  ;;  %v3002_v57 = vld [vmem:[#allocation2 + $0x20] sm:$0xff]  ;;  %v2512_v39 = vpop.permute.xlu1 %2511 }
 0x3ab   : > { %v2842_v46 = vsel %vm207_vm2, %v2840_v25, %v2841_v1  ;;  %v2849_v62 = vsel %vm207_vm2, %v2841_v1, %v2846_v20  ;;  %v2858_v19 = vrot.slane %v2668_v2, 1  ;;  %v2861_v18 = vrot.slane %v8699_v11, 1 }
 0x3ac   : > { %2851 = vst.msk [vmem:[#allocation2 + $0xaa] sm:$0xff] %vm2698_vm10, %v2842_v46  ;;  %v2866_v24 = vrot.slane %v8699_v11, 7  ;;  %v2859_v30 = vrot.slane %v2669_v34, 1  ;;  %v2636_v31 = vadd.f32 %v8458_v26, %v2593_v4  ;;  %v2635_v56 = vadd.f32 %v8458_v26, %v2592_v59  ;;  %5708 = vmatmul.mubr.msk.f32.gmra.mrb[8].mxu1 %vm2698_vm10, %v3002_v57  ;;  %v12090_v46 = vld [vmem:[#allocation7_spill] sm:$0xff] }
 0x3ad   : > { %2852 = vst.msk [vmem:[#allocation2 + $0xb2] sm:$0x3] %vm2701_vm11, %v2849_v62  ;;  %v2595_v40 = vadd.f32 %v2514_v33, %v2377_v28  ;;  %v2380_v58 = vadd.f32 %v8372_v3, %v8608_v44  ;;  %v2854_v60 = vrot.slane %v2668_v2, 3  ;;  %v2594_v13 = vadd.f32 %v2512_v39, %v2376_v50  ;;  %5710 = vmatprep.mubr.msk.f32.mxu1 %vm5845_vm1, %v12086_v10  ;;  %v2518_v16 = vpop.permute.xlu0 %2517 }
 0x3ae   : > { %v2869_v42 = vsel %vm207_vm2, %v2861_v18, %v2866_v24  ;;  %v2860_v49 = vsel %vm1001_vm5, %v2858_v19, %v2859_v30  ;;  %v2862_v48 = vsel %vm1001_vm5, %v2859_v30, %v2861_v18  ;;  %v2672_v47 = vmax.f32 %v2636_v31, 0.0  ;;  %v2516_v29 = vpop.permute.xlu1 %2515  ;;  %v3005_v24 = vld [vmem:[#allocation2 + $0x38] sm:$0xff] }
 0x3af   : > { %2872 = vst.msk [vmem:[#allocation2 + $0xc4] sm:$0x3] %vm2701_vm11, %v2869_v42  ;;  %v2671_v5 = vmax.f32 %v2635_v56, 0.0  ;;  %v8730_v25 = vadd.f32 %v8402_v41, %v8620_v23  ;;  %v2868_v3 = vsel %vm207_vm2, %v2854_v60, %v2860_v49  ;;  %v2638_v44 = vadd.f32 %v8458_v26, %v2595_v40  ;;  %v12091_v42 = vld [vmem:[#allocation100_spill] sm:$0xff] }
 0x3b0   : > { %2871 = vst.msk [vmem:[#allocation2 + $0xbc] sm:$0xff] %vm2698_vm10, %v2862_v48  ;;  %v2637_v52 = vadd.f32 %v8458_v26, %v2594_v13  ;;  %v2382_v38 = vadd.f32 %v12089_v55, %v8624_v32  ;;  %v2877_v0 = vrot.slane %v8699_v11, 3  ;;  %2870 = vst.msk [vmem:[#allocation2 + $0xb4] sm:$0xff] %vm2698_vm10, %v2868_v3  ;;  %v2880_v41 = vrot.slane %v2672_v47, 3  ;;  %5711 = vmatmul.mubr.msk.f32.gmra.mrb[10].mxu1 %vm2698_vm10, %v3003_v6 }
 0x3b1   : > { %v2885_v23 = vrot.slane %v2672_v47, 1  ;;  %v2878_v45 = vrot.slane %v2671_v5, 3  ;;  %v2674_v15 = vmax.f32 %v2638_v44, 0.0  ;;  %v2597_v35 = vadd.f32 %v2518_v16, %v2379_v27  ;;  %5713 = vmatprep.mubr.msk.f32.mxu1 %vm5845_vm1, %v12086_v10  ;;  %v2522_v9 = vpop.permute.xlu0 %2521 }
 0x3b2   : > { %v2673_v43 = vmax.f32 %v2637_v52, 0.0  ;;  %v2873_v54 = vrot.slane %v8699_v11, 5  ;;  %v2896_v32 = vrot.slane %v2672_v47, 5  ;;  %v2596_v37 = vadd.f32 %v2516_v29, %v2378_v53  ;;  %v2520_v7 = vpop.permute.xlu1 %2519  ;;  %v3006_v52 = vld [vmem:[#allocation2 + $0x40] sm:$0xff] }
 0x3b3   : > { %v2888_v22 = vsel %vm207_vm2, %v2880_v41, %v2885_v23  ;;  %v2879_v8 = vsel %vm1584_vm7, %v2877_v0, %v2878_v45  ;;  %v2881_v14 = vsel %vm1584_vm7, %v2878_v45, %v2880_v41  ;;  %v2899_v17 = vrot.slane %v2674_v15, 5  ;;  %v12093_v0 = vld [vmem:[#allocation74_spill] sm:$0xff] }
 0x3b4   : > { %2891 = vst.msk [vmem:[#allocation2 + $0xd6] sm:$0x3] %vm2701_vm11, %v2888_v22  ;;  %v2904_v2 = vrot.slane %v2674_v15, 3  ;;  %v2887_v51 = vsel %vm207_vm2, %v2873_v54, %v2879_v8  ;;  %v2897_v36 = vrot.slane %v2673_v43, 5  ;;  %v2640_v28 = vadd.f32 %v8458_v26, %v2597_v35  ;;  %5714 = vmatmul.mubr.msk.f32.gmra.mrb[12].mxu1 %vm2698_vm10, %v3004_v21  ;;  %v12094_v22 = vld [vmem:[#allocation88_spill] sm:$0xff]  ;;  %v3007_v8 = vld [vmem:[#allocation2 + $0x48] sm:$0xff] }
 0x3b5   : > { %2890 = vst.msk [vmem:[#allocation2 + $0xce] sm:$0xff] %vm2698_vm10, %v2881_v14  ;;  %v2639_v50 = vadd.f32 %v8458_v26, %v2596_v37  ;;  %v2892_v1 = vrot.slane %v2672_v47, 7  ;;  %2889 = vst.msk [vmem:[#allocation2 + $0xc6] sm:$0xff] %vm2698_vm10, %v2887_v51  ;;  %v2599_v11 = vadd.f32 %v2522_v9, %v8711_v12  ;;  %v2598_v34 = vadd.f32 %v2520_v7, %v2380_v58  ;;  %v2526_v57 = vpop.permute.xlu0 %2525 }
 0x3b6   : > { %v2907_v20 = vsel %vm207_vm2, %v2899_v17, %v2904_v2  ;;  %5716 = vmatprep.mubr.msk.f32.mxu1 %vm5845_vm1, %v12086_v10  ;;  %v2898_v4 = vsel %vm2169_vm8, %v2896_v32, %v2897_v36  ;;  %v2900_v59 = vsel %vm2169_vm8, %v2897_v36, %v2899_v17  ;;  %v2676_v27 = vmax.f32 %v2640_v28, 0.0  ;;  %v2524_v33 = vpop.permute.xlu1 %2523 }
 0x3b7   : > { %2910 = vst.msk [vmem:[#allocation2 + $0xe8] sm:$0x3] %vm2701_vm11, %v2907_v20  ;;  %v2675_v53 = vmax.f32 %v2639_v50, 0.0  ;;  %v2385_v62 = vadd.f32 %v12090_v46, %v8682_v61  ;;  %v2906_v19 = vsel %vm207_vm2, %v2892_v1, %v2898_v4  ;;  %v2642_v12 = vadd.f32 %v8458_v26, %v2599_v11 }
 0x3b8   : > { %2909 = vst.msk [vmem:[#allocation2 + $0xe0] sm:$0xff] %vm2698_vm10, %v2900_v59  ;;  %v2641_v18 = vadd.f32 %v8458_v26, %v2598_v34  ;;  %2908 = vst.msk [vmem:[#allocation2 + $0xd8] sm:$0xff] %vm2698_vm10, %v2906_v19  ;;  %v2916_v39 = vrot.slane %v2676_v27, 7  ;;  %v2921_v30 = vrot.slane %v2676_v27, 5  ;;  %5717 = vmatmul.mubr.msk.f32.gmra.mrb[14].mxu1 %vm2698_vm10, %v3005_v24  ;;  %v2601_v58 = vadd.f32 %v2526_v57, %v8730_v25  ;;  %v3008_v59 = vld [vmem:[#allocation2 + $0x50] sm:$0xff]  ;;  %v3009_v57 = vld [vmem:[#allocation2 + $0x58] sm:$0xff] }
 0x3b9   : > { %v2912_v31 = vrot.slane %v2675_v53, 1  ;;  %v2915_v56 = vrot.slane %v2675_v53, 7  ;;  %v2678_v61 = vmax.f32 %v2642_v12, 0.0  ;;  %v2600_v60 = vadd.f32 %v2524_v33, %v2382_v38  ;;  %5719 = vmatprep.mubr.msk.f32.mxu1 %vm5845_vm1, %v12086_v10  ;;  %v2530_v6 = vpop.permute.xlu0 %2529  ;;  %v12092_v38 = vld [vmem:[#allocation91_spill] sm:$0xff] }
 0x3ba   : > { %v2677_v40 = vmax.f32 %v2641_v18, 0.0  ;;  %v2384_v13 = vadd.f32 %v12091_v42, %v8632_v63  ;;  %v2924_v49 = vsel %vm207_vm2, %v2916_v39, %v2921_v30  ;;  %v2644_v44 = vadd.f32 %v8458_v26, %v2601_v58  ;;  %v2528_v63 = vpop.permute.xlu1 %2527  ;;  %v3011_v58 = vld [vmem:[#allocation2 + $0x68] sm:$0xff]  ;;  %v3013_v42 = vld [vmem:[#allocation2 + $0x78] sm:$0xff] }
 0x3bb   : > { %v2917_v48 = vsel %vm207_vm2, %v2915_v56, %v2916_v39  ;;  %v2923_v47 = vsel %vm207_vm2, %v2912_v31, %v2915_v56  ;;  %2927 = vst.msk [vmem:[#allocation2 + $0xfa] sm:$0x3] %vm2701_vm11, %v2924_v49  ;;  %v2934_v5 = vrot.slane %v2678_v61, 1  ;;  %v2643_v16 = vadd.f32 %v8458_v26, %v2600_v60  ;;  %v3010_v31 = vld [vmem:[#allocation2 + $0x60] sm:$0xff]  ;;  %v3012_v60 = vld [vmem:[#allocation2 + $0x70] sm:$0xff]  ;;  %v3015_v49 = vld [vmem:[#allocation2 + $0x88] sm:$0xff] }
 0x3bc   : > { %2925 = vst.msk [vmem:[#allocation2 + $0xea] sm:$0xff] %vm2698_vm10, %v2923_v47  ;;  %2926 = vst.msk [vmem:[#allocation2 + $0xf2] sm:$0xff] %vm2698_vm10, %v2917_v48  ;;  %v2929_v25 = vrot.slane %v2677_v40, 3  ;;  %v2933_v3 = vrot.slane %v2677_v40, 1  ;;  %5720 = vmatmul.mubr.msk.f32.gmra.mrb[16].mxu1 %vm2698_vm10, %v3006_v52  ;;  %v2603_v29 = vadd.f32 %v2530_v6, %v2385_v62  ;;  %v2602_v55 = vadd.f32 %v2528_v63, %v2384_v13  ;;  %v3014_v13 = vld [vmem:[#allocation2 + $0x80] sm:$0xff]  ;;  %v3016_v48 = vld [vmem:[#allocation2 + $0x90] sm:$0xff] }
 0x3bd   : > { %v2168_v41 = vadd.f32 %v12093_v0, %v12092_v38  ;;  %v2680_v45 = vmax.f32 %v2644_v44, 0.0  ;;  %5722 = vmatprep.mubr.msk.f32.mxu1 %vm5845_vm1, %v12086_v10  ;;  %v2679_v43 = vmax.f32 %v2643_v16, 0.0  ;;  %v3017_v47 = vld [vmem:[#allocation2 + $0x98] sm:$0xff]  ;;  %v3022_v52 = vld [vmem:[#allocation2 + $0xc0] sm:$0xff]  ;;  %v3023_v6 = vld [vmem:[#allocation2 + $0xc8] sm:$0xff] }
 0x3be   : > { %v2935_v23 = vsel %vm1001_vm5, %v2933_v3, %v2934_v5  ;;  %v2646_v35 = vadd.f32 %v8458_v26, %v2603_v29  ;;  %v2645_v54 = vadd.f32 %v8458_v26, %v2602_v55  ;;  %v2532_v14 = vpop.permute.xlu1 %2531  ;;  %v3020_v3 = vld [vmem:[#allocation2 + $0xb0] sm:$0xff]  ;;  %v3021_v44 = vld [vmem:[#allocation2 + $0xb8] sm:$0xff] }
 0x3bf   : > { %v2943_v15 = vsel %vm207_vm2, %v2929_v25, %v2935_v23  ;;  %v2386_v32 = vadd.f32 %v12094_v22, %v2168_v41  ;;  %v2953_v37 = vrot.slane %v2680_v45, 3  ;;  %v2936_v17 = vrot.slane %v2679_v43, 1  ;;  %v3019_v25 = vld [vmem:[#allocation2 + $0xa8] sm:$0xff]  ;;  %v3024_v63 = vld [vmem:[#allocation2 + $0xd0] sm:$0xff]  ;;  %v3025_v16 = vld [vmem:[#allocation2 + $0xd8] sm:$0xff] }
 0x3c0   : > { %2945 = vst.msk [vmem:[#allocation2 + $0xfc] sm:$0xff] %vm2698_vm10, %v2943_v15  ;;  %v2941_v2 = vrot.slane %v2679_v43, 7  ;;  %v2948_v21 = vrot.slane %v2679_v43, 5  ;;  %v2952_v9 = vrot.slane %v2679_v43, 3  ;;  %5723 = vmatmul.mubr.msk.f32.gmra.mrb[18].mxu1 %vm2698_vm10, %v3007_v8  ;;  %v2682_v7 = vmax.f32 %v2646_v35, 0.0  ;;  %v3026_v29 = vld [vmem:[#allocation2 + $0xe0] sm:$0xff] }
 0x3c1   : > { %v2681_v51 = vmax.f32 %v2645_v54, 0.0  ;;  %v2604_v36 = vadd.f32 %v2532_v14, %v2386_v32  ;;  %5725 = vmatprep.mubr.msk.f32.mxu1 %vm5845_vm1, %v12086_v10  ;;  %v2937_v28 = vsel %vm1001_vm5, %v2934_v5, %v2936_v17  ;;  %v3018_v5 = vld [vmem:[#allocation2 + $0xa0] sm:$0xff] }
 0x3c2   : > { %v2944_v50 = vsel %vm207_vm2, %v2936_v17, %v2941_v2  ;;  %v2954_v1 = vsel %vm1584_vm7, %v2952_v9, %v2953_v37  ;;  %2946 = vst.msk [vmem:[#allocation2 + $0x104] sm:$0xff] %vm2698_vm10, %v2937_v28  ;;  %v2972_v11 = vrot.slane %v2682_v7, 5 }
 0x3c3   : > { %2947 = vst.msk [vmem:[#allocation2 + $0x10c] sm:$0x3] %vm2701_vm11, %v2944_v50  ;;  %v2962_v20 = vsel %vm207_vm2, %v2948_v21, %v2954_v1  ;;  %v2955_v34 = vrot.slane %v2681_v51, 3  ;;  %v2960_v4 = vrot.slane %v2681_v51, 1  ;;  %v2967_v27 = vrot.slane %v2681_v51, 7  ;;  %v3027_v55 = vld [vmem:[#allocation2 + $0xe8] sm:$0xff] }
 0x3c4   : > { %2964 = vst.msk [vmem:[#allocation2 + $0x10e] sm:$0xff] %vm2698_vm10, %v2962_v20  ;;  %v2971_v53 = vrot.slane %v2681_v51, 5  ;;  %v2647_v46 = vadd.f32 %v8458_v26, %v2604_v36  ;;  %5726 = vmatmul.mubr.msk.f32.gmra.mrb[20].mxu1 %vm2698_vm10, %v3008_v59  ;;  %v3028_v38 = vld [vmem:[#allocation2 + $0xf0] sm:$0xff] }
 0x3c5   : > { %v2956_v62 = vsel %vm1584_vm7, %v2953_v37, %v2955_v34  ;;  %v2963_v19 = vsel %vm207_vm2, %v2955_v34, %v2960_v4  ;;  %5728 = vmatprep.mubr.msk.f32.mxu1 %vm5845_vm1, %v12086_v10 }
 0x3c6   : > { %2965 = vst.msk [vmem:[#allocation2 + $0x116] sm:$0xff] %vm2698_vm10, %v2956_v62  ;;  %v2973_v12 = vsel %vm2169_vm8, %v2971_v53, %v2972_v11  ;;  %v2683_v18 = vmax.f32 %v2647_v46, 0.0 }
 0x3c7   : > { %2966 = vst.msk [vmem:[#allocation2 + $0x11e] sm:$0x3] %vm2701_vm11, %v2963_v19  ;;  %v2981_v24 = vsel %vm207_vm2, %v2967_v27, %v2973_v12  ;;  %v3029_v0 = vld [vmem:[#allocation2 + $0xf8] sm:$0xff] }
 0x3c8   : > { %2983 = vst.msk [vmem:[#allocation2 + $0x120] sm:$0xff] %vm2698_vm10, %v2981_v24  ;;  %v2974_v26 = vrot.slane %v2683_v18, 5  ;;  %v2979_v33 = vrot.slane %v2683_v18, 3  ;;  %5729 = vmatmul.mubr.msk.f32.gmra.mrb[22].mxu1 %vm2698_vm10, %v3009_v57 }
 0x3c9   : > { %5731 = vmatprep.mubr.msk.f32.mxu1 %vm5845_vm1, %v12086_v10  ;;  %v3030_v41 = vld [vmem:[#allocation2 + $0x100] sm:$0xff] }
 0x3ca   : > { %v2975_v39 = vsel %vm2169_vm8, %v2972_v11, %v2974_v26  ;;  %v2982_v30 = vsel %vm207_vm2, %v2974_v26, %v2979_v33 }
 0x3cb   : > { %2984 = vst.msk [vmem:[#allocation2 + $0x128] sm:$0xff] %vm2698_vm10, %v2975_v39  ;;  %v2992_v56 = vld [vmem:[#allocation2 + $0x10e] sm:$0xff] }
 0x3cc   : > { %2985 = vst.msk [vmem:[#allocation2 + $0x130] sm:$0x3] %vm2701_vm11, %v2982_v30  ;;  %5732 = vmatmul.mubr.msk.f32.gmra.mrb[24].mxu1 %vm2698_vm10, %v3010_v31  ;;  %v3031_v23 = vld [vmem:[#allocation2 + $0x108] sm:$0xff] }
 0x3cd   : > { %2995 = vst.msk [vmem:[#allocation2 + $0x132] sm:$0xff] %vm2698_vm10, %v2992_v56  ;;  %5734 = vmatprep.mubr.msk.f32.mxu1 %vm5845_vm1, %v12086_v10  ;;  %v2993_v61 = vld [vmem:[#allocation2 + $0x116] sm:$0xff] }
 0x3ce   : > { %2996 = vst.msk [vmem:[#allocation2 + $0x13a] sm:$0xff] %vm2698_vm10, %v2993_v61  ;;  %v2994_v40 = vld [vmem:[#allocation2 + $0x11e] sm:$0x3]  ;;  %v3032_v45 = vld [vmem:[#allocation2 + $0x110] sm:$0xff] }
 0x3cf   : > { %2997 = vst.msk [vmem:[#allocation2 + $0x142] sm:$0x3] %vm2701_vm11, %v2994_v40  ;;  %v3033_v15 = vld [vmem:[#allocation2 + $0x118] sm:$0xff]  ;;  %v3034_v43 = vld [vmem:[#allocation2 + $0x120] sm:$0xff] }
 0x3d0   : > { %5735 = vmatmul.mubr.msk.f32.gmra.mrb[26].mxu1 %vm2698_vm10, %v3011_v58 }
 0x3d1   : > { %5737 = vmatprep.mubr.msk.f32.mxu1 %vm5845_vm1, %v12086_v10 }
 0x3d2   : > { %v3035_v35 = vld [vmem:[#allocation2 + $0x128] sm:$0xff] }
 0x3d4   : > { %5738 = vmatmul.mubr.msk.f32.gmra.mrb[28].mxu1 %vm2698_vm10, %v3012_v60  ;;  %v3036_v54 = vld [vmem:[#allocation2 + $0x130] sm:$0xff] }
 0x3d5   : > { %5740 = vmatprep.mubr.msk.f32.mxu1 %vm5845_vm1, %v12086_v10  ;;  %v3037_v22 = vld [vmem:[#allocation2 + $0x138] sm:$0xff] }
 0x3d6   : > { %v3038_v32 = vld [vmem:[#allocation2 + $0x140] sm:$0xf] }
 0x3d8   : > { %5741 = vmatmul.mubr.msk.f32.gmra.mrb[30].mxu1 %vm2698_vm10, %v3013_v42 }
 0x3d9   : > { %5743 = vmatprep.mubr.msk.f32.mxu1 %vm5845_vm1, %v12086_v10 }
 0x3dc   : > { %5744 = vmatmul.mubr.msk.f32.gmra.mrb[32].mxu1 %vm2698_vm10, %v3014_v13 }
 0x3dd   : > { %5746 = vmatprep.mubr.msk.f32.mxu1 %vm5845_vm1, %v12086_v10 }
 0x3e0   : > { %5747 = vmatmul.mubr.msk.f32.gmra.mrb[34].mxu1 %vm2698_vm10, %v3015_v49 }
 0x3e1   : > { %5749 = vmatprep.mubr.msk.f32.mxu1 %vm5845_vm1, %v12086_v10 }
 0x3e4   : > { %5750 = vmatmul.mubr.msk.f32.gmra.mrb[36].mxu1 %vm2698_vm10, %v3016_v48 }
 0x3e5   : > { %5752 = vmatprep.mubr.msk.f32.mxu1 %vm5845_vm1, %v12086_v10 }
 0x3e8   : > { %5753 = vmatmul.mubr.msk.f32.gmra.mrb[38].mxu1 %vm2698_vm10, %v3017_v47 }
 0x3e9   : > { %5755 = vmatprep.mubr.msk.f32.mxu1 %vm5845_vm1, %v12086_v10 }
 0x3ec   : > { %5756 = vmatmul.mubr.msk.f32.gmra.mrb[40].mxu1 %vm2698_vm10, %v3018_v5 }
 0x3ed   : > { %5758 = vmatprep.mubr.msk.f32.mxu1 %vm5845_vm1, %v12086_v10 }
 0x3f0   : > { %5759 = vmatmul.mubr.msk.f32.gmra.mrb[42].mxu1 %vm2698_vm10, %v3019_v25 }
 0x3f1   : > { %5761 = vmatprep.mubr.msk.f32.mxu1 %vm5845_vm1, %v12086_v10 }
 0x3f4   : > { %5762 = vmatmul.mubr.msk.f32.gmra.mrb[44].mxu1 %vm2698_vm10, %v3020_v3 }
 0x3f5   : > { %5764 = vmatprep.mubr.msk.f32.mxu1 %vm5845_vm1, %v12086_v10 }
 0x3f8   : > { %5765 = vmatmul.mubr.msk.f32.gmra.mrb[46].mxu1 %vm2698_vm10, %v3021_v44 }
 0x3f9   : > { %5767 = vmatprep.mubr.msk.f32.mxu1 %vm5845_vm1, %v12086_v10 }
 0x3fc   : > { %5768 = vmatmul.mubr.msk.f32.gmra.mrb[48].mxu1 %vm2698_vm10, %v3022_v52 }
 0x3fd   : > { %5770 = vmatprep.mubr.msk.f32.mxu1 %vm5845_vm1, %v12086_v10 }
 0x400   : > { %5771 = vmatmul.mubr.msk.f32.gmra.mrb[50].mxu1 %vm2698_vm10, %v3023_v6 }
 0x401   : > { %5773 = vmatprep.mubr.msk.f32.mxu1 %vm5845_vm1, %v12086_v10 }
 0x404   : > { %5774 = vmatmul.mubr.msk.f32.gmra.mrb[52].mxu1 %vm2698_vm10, %v3024_v63 }
 0x405   : > { %5776 = vmatprep.mubr.msk.f32.mxu1 %vm5845_vm1, %v12086_v10 }
 0x408   : > { %5777 = vmatmul.mubr.msk.f32.gmra.mrb[54].mxu1 %vm2698_vm10, %v3025_v16 }
 0x409   : > { %5779 = vmatprep.mubr.msk.f32.mxu1 %vm5845_vm1, %v12086_v10 }
 0x40c   : > { %5780 = vmatmul.mubr.msk.f32.gmra.mrb[56].mxu1 %vm2698_vm10, %v3026_v29 }
 0x40d   : > { %5782 = vmatprep.mubr.msk.f32.mxu1 %vm5845_vm1, %v12086_v10 }
 0x410   : > { %5783 = vmatmul.mubr.msk.f32.gmra.mrb[58].mxu1 %vm2698_vm10, %v3027_v55 }
 0x411   : > { %5785 = vmatprep.mubr.msk.f32.mxu1 %vm5845_vm1, %v12086_v10 }
 0x414   : > { %5786 = vmatmul.mubr.msk.f32.gmra.mrb[60].mxu1 %vm2698_vm10, %v3028_v38 }
 0x415   : > { %5788 = vmatprep.mubr.msk.f32.mxu1 %vm5845_vm1, %v12086_v10 }
 0x418   : > { %5789 = vmatmul.mubr.msk.f32.gmra.mrb[62].mxu1 %vm2698_vm10, %v3029_v0 }
 0x419   : > { %5791 = vmatprep.mubr.msk.f32.mxu1 %vm5845_vm1, %v12086_v10 }
 0x41c   : > { %5792 = vmatmul.mubr.msk.f32.gmra.mrb[64].mxu1 %vm2698_vm10, %v3030_v41 }
 0x41d   : > { %5794 = vmatprep.mubr.msk.f32.mxu1 %vm5845_vm1, %v12086_v10 }
 0x420   : > { %5795 = vmatmul.mubr.msk.f32.gmra.mrb[66].mxu1 %vm2698_vm10, %v3031_v23 }
 0x421   : > { %5797 = vmatprep.mubr.msk.f32.mxu1 %vm5845_vm1, %v12086_v10 }
 0x424   : > { %5798 = vmatmul.mubr.msk.f32.gmra.mrb[68].mxu1 %vm2698_vm10, %v3032_v45 }
 0x425   : > { %5800 = vmatprep.mubr.msk.f32.mxu1 %vm5845_vm1, %v12086_v10 }
 0x428   : > { %5801 = vmatmul.mubr.msk.f32.gmra.mrb[70].mxu1 %vm2698_vm10, %v3033_v15 }
 0x429   : > { %5803 = vmatprep.mubr.msk.f32.mxu1 %vm5845_vm1, %v12086_v10 }
 0x42c   : > { %5804 = vmatmul.mubr.msk.f32.gmra.mrb[72].mxu1 %vm2698_vm10, %v3034_v43 }
 0x42d   : > { %5806 = vmatprep.mubr.msk.f32.mxu1 %vm5845_vm1, %v12086_v10 }
 0x430   : > { %5807 = vmatmul.mubr.msk.f32.gmra.mrb[74].mxu1 %vm2698_vm10, %v3035_v35 }
 0x431   : > { %5809 = vmatprep.mubr.msk.f32.mxu1 %vm5845_vm1, %v12086_v10 }
 0x434   : > { %5810 = vmatmul.mubr.msk.f32.gmra.mrb[76].mxu1 %vm2698_vm10, %v3036_v54 }
 0x435   : > { %5812 = vmatprep.mubr.msk.f32.mxu1 %vm5845_vm1, %v12086_v10 }
 0x438   : > { %5813 = vmatmul.mubr.msk.f32.gmra.mrb[78].mxu1 %vm2698_vm10, %v3037_v22 }
 0x439   : > { %5815 = vmatprep.mubr.msk.f32.mxu1 %vm5845_vm1, %v12086_v10 }
 0x43c   : > { %5816 = vmatmul.mubr.msk.f32.gmra.mrb[80].mxu1 %vm2698_vm10, %v3038_v32 }
 0x46f   : > { %v8909_v37 = vpop.f32.mrb[0].mxu1 }
 0x470   : > { %12095 = vst [vmem:[#allocation104_spill] sm:$0xff] %v8909_v37  ;;  %v5697_v8 = vpop.f32.mrb[1].mxu1  ;;  %v3506_v17 = vrot.slane %v8909_v37, 1  ;;  %v3721_v2 = vrot.slane %v8909_v37, 2 }
 0x473   : > { %v8911_v14 = vpop.f32.mrb[2].mxu1 }
 0x474   : > { %12096 = vst [vmem:[#allocation98_spill] sm:$0xff] %v8911_v14  ;;  %v3507_v21 = vrot.slane %v8911_v14, 1  ;;  %v3722_v9 = vrot.slane %v8911_v14, 2  ;;  %v5700_v7 = vpop.f32.mrb[3].mxu1 }
 0x476   : > { %v3508_v51 = vsel %vm1001_vm5, %v3506_v17, %v3507_v21  ;;  %v3723_v10 = vsel %vm1217_vm6, %v3721_v2, %v3722_v9 }
 0x477   : > { %3577 = vrot.lane.b32.xlu0 %v3508_v51, %s5846_s20  ;;  %v8920_v36 = vpop.f32.mrb[4].mxu1 }
 0x478   : > { %12097 = vst [vmem:[#allocation101_spill] sm:$0xff] %v8920_v36  ;;  %v5703_v28 = vpop.f32.mrb[5].mxu1  ;;  %v3509_v50 = vrot.slane %v8920_v36, 1  ;;  %v3724_v1 = vrot.slane %v8920_v36, 2  ;;  %v4087_v4 = vrot.slane %v8920_v36, 3  ;;  %v4304_v59 = vrot.slane %v8920_v36, 4 }
 0x47a   : > { %v3510_v20 = vsel %vm1001_vm5, %v3507_v21, %v3509_v50  ;;  %v3725_v11 = vsel %vm1217_vm6, %v3722_v9, %v3724_v1 }
 0x47b   : > { %3792 = vrot.lane.b32.xlu0 %v3723_v10, %s5847_s21  ;;  %3579 = vrot.lane.b32.xlu1 %v3510_v20, %s5846_s20  ;;  %v8928_v34 = vpop.f32.mrb[6].mxu1 }
 0x47c   : > { %12098 = vst [vmem:[#allocation8_spill] sm:$0xff] %v8928_v34  ;;  %v5706_v27 = vpop.f32.mrb[7].mxu1  ;;  %v3511_v53 = vrot.slane %v8928_v34, 1  ;;  %v3726_v46 = vrot.slane %v8928_v34, 2  ;;  %v4088_v62 = vrot.slane %v8928_v34, 3  ;;  %v4305_v19 = vrot.slane %v8928_v34, 4 }
 0x47e   : > { %v3512_v12 = vsel %vm1001_vm5, %v3509_v50, %v3511_v53  ;;  %v3727_v18 = vsel %vm1217_vm6, %v3724_v1, %v3726_v46  ;;  %v8939_v24 = vsel %vm1584_vm7, %v4087_v4, %v4088_v62  ;;  %v8942_v57 = vsel %vm655_vm0, %v4304_v59, %v4305_v19 }
 0x47f   : > { %12099 = vst [vmem:[#allocation102_spill] sm:$0xff] %v8942_v57  ;;  %3794 = vrot.lane.b32.xlu1 %v3725_v11, %s5847_s21  ;;  %3581 = vrot.lane.b32.xlu0 %v3512_v12, %s5846_s20  ;;  %v8946_v26 = vpop.f32.mrb[8].mxu1 }
 0x480   : > { %12100 = vst [vmem:[#allocation97_spill] sm:$0xff] %v8946_v26  ;;  %v5709_v33 = vpop.f32.mrb[9].mxu1  ;;  %v3513_v39 = vrot.slane %v8946_v26, 1  ;;  %v3728_v30 = vrot.slane %v8946_v26, 2  ;;  %v4090_v31 = vrot.slane %v8946_v26, 3  ;;  %v4307_v56 = vrot.slane %v8946_v26, 4 }
 0x481   : > { %v4671_v25 = vrot.slane %v8946_v26, 5  ;;  %v4888_v44 = vrot.slane %v8946_v26, 6 }
 0x482   : > { %v3514_v61 = vsel %vm1001_vm5, %v3511_v53, %v3513_v39  ;;  %v3729_v40 = vsel %vm1217_vm6, %v3726_v46, %v3728_v30  ;;  %v8955_v58 = vsel %vm1584_vm7, %v4088_v62, %v4090_v31  ;;  %v8958_v60 = vsel %vm655_vm0, %v4305_v19, %v4307_v56 }
 0x483   : > { %12101 = vst [vmem:[#allocation108_spill] sm:$0xff] %v8958_v60  ;;  %3796 = vrot.lane.b32.xlu0 %v3727_v18, %s5847_s21  ;;  %3583 = vrot.lane.b32.xlu1 %v3514_v61, %s5846_s20  ;;  %v8962_v42 = vpop.f32.mrb[10].mxu1 }
 0x484   : > { %12102 = vst [vmem:[#allocation109_spill] sm:$0xff] %v8962_v42  ;;  %v5712_v13 = vpop.f32.mrb[11].mxu1  ;;  %v3515_v49 = vrot.slane %v8962_v42, 1  ;;  %v3730_v48 = vrot.slane %v8962_v42, 2  ;;  %v4092_v47 = vrot.slane %v8962_v42, 3  ;;  %v4309_v5 = vrot.slane %v8962_v42, 4 }
 0x485   : > { %v4672_v3 = vrot.slane %v8962_v42, 5  ;;  %v4889_v52 = vrot.slane %v8962_v42, 6 }
 0x486   : > { %v3516_v6 = vsel %vm1001_vm5, %v3513_v39, %v3515_v49  ;;  %v3731_v63 = vsel %vm1217_vm6, %v3728_v30, %v3730_v48  ;;  %v8975_v16 = vsel %vm1584_vm7, %v4090_v31, %v4092_v47  ;;  %v8978_v29 = vsel %vm655_vm0, %v4307_v56, %v4309_v5 }
 0x487   : > { %12103 = vst [vmem:[#allocation9_spill] sm:$0xff] %v8978_v29  ;;  %3942 = vrot.lane.b32.xlu0 %v3727_v18, %s5848_s22  ;;  %3798 = vrot.lane.b32.xlu1 %v3729_v40, %s5847_s21  ;;  %v8982_v55 = vpop.f32.mrb[12].mxu1  ;;  %v8985_v38 = vsel %vm2169_vm8, %v4671_v25, %v4672_v3  ;;  %v8988_v0 = vsel %vm2387_vm9, %v4888_v44, %v4889_v52 }
 0x488   : > { %12104 = vst [vmem:[#allocation119_spill] sm:$0xff] %v8982_v55  ;;  %12105 = vst [vmem:[#allocation99_spill] sm:$0xff] %v8985_v38  ;;  %v5715_v41 = vpop.f32.mrb[13].mxu1  ;;  %v3517_v23 = vrot.slane %v8982_v55, 1  ;;  %v3732_v45 = vrot.slane %v8982_v55, 2  ;;  %v4094_v15 = vrot.slane %v8982_v55, 3 }
 0x489   : > { %12106 = vst [vmem:[#allocation105_spill] sm:$0xff] %v8988_v0  ;;  %v4311_v43 = vrot.slane %v8982_v55, 4  ;;  %v4674_v35 = vrot.slane %v8982_v55, 5  ;;  %v4891_v54 = vrot.slane %v8982_v55, 6 }
 0x48a   : > { %v3518_v22 = vsel %vm1001_vm5, %v3515_v49, %v3517_v23  ;;  %v3733_v32 = vsel %vm1217_vm6, %v3730_v48, %v3732_v45  ;;  %v8999_v8 = vsel %vm1584_vm7, %v4092_v47, %v4094_v15 }
 0x48b   : > { %v9002_v17 = vsel %vm655_vm0, %v4309_v5, %v4311_v43  ;;  %3944 = vrot.lane.b32.xlu1 %v3729_v40, %s5848_s22  ;;  %3585 = vrot.lane.b32.xlu0 %v3516_v6, %s5846_s20  ;;  %v9006_v2 = vpop.f32.mrb[14].mxu1  ;;  %v9009_v21 = vsel %vm2169_vm8, %v4672_v3, %v4674_v35  ;;  %v9012_v9 = vsel %vm2387_vm9, %v4889_v52, %v4891_v54 }
 0x48c   : > { %12107 = vst [vmem:[#allocation12_spill] sm:$0xff] %v9002_v17  ;;  %12108 = vst [vmem:[#allocation122_spill] sm:$0xff] %v9006_v2  ;;  %v5718_v7 = vpop.f32.mrb[15].mxu1  ;;  %v3519_v51 = vrot.slane %v9006_v2, 1  ;;  %v3734_v10 = vrot.slane %v9006_v2, 2  ;;  %v4096_v28 = vrot.slane %v9006_v2, 3 }
 0x48d   : > { %12109 = vst [vmem:[#allocation125_spill] sm:$0xff] %v9009_v21  ;;  %12110 = vst [vmem:[#allocation114_spill] sm:$0xff] %v9012_v9  ;;  %v4313_v50 = vrot.slane %v9006_v2, 4  ;;  %v4676_v1 = vrot.slane %v9006_v2, 5  ;;  %v4893_v20 = vrot.slane %v9006_v2, 6 }
 0x48e   : > { %v3520_v11 = vsel %vm1001_vm5, %v3517_v23, %v3519_v51  ;;  %v9022_v4 = vsel %vm1217_vm6, %v3732_v45, %v3734_v10  ;;  %v9025_v59 = vsel %vm1584_vm7, %v4094_v15, %v4096_v28 }
 0x48f   : > { %v9028_v27 = vsel %vm655_vm0, %v4311_v43, %v4313_v50  ;;  %3800 = vrot.lane.b32.xlu0 %v3731_v63, %s5847_s21  ;;  %3587 = vrot.lane.b32.xlu1 %v3518_v22, %s5846_s20  ;;  %v9032_v53 = vpop.f32.mrb[16].mxu1  ;;  %v9035_v46 = vsel %vm2169_vm8, %v4674_v35, %v4676_v1  ;;  %v9038_v62 = vsel %vm2387_vm9, %v4891_v54, %v4893_v20 }
 0x490   : > { %12111 = vst [vmem:[#allocation115_spill] sm:$0xff] %v9028_v27  ;;  %12112 = vst [vmem:[#allocation116_spill] sm:$0xff] %v9032_v53  ;;  %v5721_v19 = vpop.f32.mrb[17].mxu1  ;;  %v3521_v12 = vrot.slane %v9032_v53, 1  ;;  %v3736_v18 = vrot.slane %v9032_v53, 2  ;;  %v4098_v33 = vrot.slane %v9032_v53, 3 }
 0x491   : > { %12113 = vst [vmem:[#allocation121_spill] sm:$0xff] %v9035_v46  ;;  %12114 = vst [vmem:[#allocation126_spill] sm:$0xff] %v9038_v62  ;;  %v4315_v39 = vrot.slane %v9032_v53, 4  ;;  %v4678_v30 = vrot.slane %v9032_v53, 5  ;;  %v4895_v31 = vrot.slane %v9032_v53, 6 }
 0x492   : > { %v3522_v56 = vsel %vm1001_vm5, %v3519_v51, %v3521_v12  ;;  %v9048_v61 = vsel %vm1217_vm6, %v3734_v10, %v3736_v18  ;;  %v9051_v40 = vsel %vm1584_vm7, %v4096_v28, %v4098_v33 }
 0x493   : > { %v9054_v13 = vsel %vm655_vm0, %v4313_v50, %v4315_v39  ;;  %3946 = vrot.lane.b32.xlu0 %v3731_v63, %s5848_s22  ;;  %3802 = vrot.lane.b32.xlu1 %v3733_v32, %s5847_s21  ;;  %v9058_v49 = vpop.f32.mrb[18].mxu1  ;;  %v9061_v48 = vsel %vm2169_vm8, %v4676_v1, %v4678_v30  ;;  %v9064_v47 = vsel %vm2387_vm9, %v4893_v20, %v4895_v31 }
 0x494   : > { %12115 = vst [vmem:[#allocation132_spill] sm:$0xff] %v9054_v13  ;;  %12116 = vst [vmem:[#allocation133_spill] sm:$0xff] %v9058_v49  ;;  %v5724_v5 = vpop.f32.mrb[19].mxu1  ;;  %v3523_v25 = vrot.slane %v9058_v49, 1  ;;  %v3738_v3 = vrot.slane %v9058_v49, 2  ;;  %v4100_v44 = vrot.slane %v9058_v49, 3 }
 0x495   : > { %12117 = vst [vmem:[#allocation15_spill] sm:$0xff] %v9061_v48  ;;  %12118 = vst [vmem:[#allocation140_spill] sm:$0xff] %v9064_v47  ;;  %v4317_v52 = vrot.slane %v9058_v49, 4  ;;  %v4680_v6 = vrot.slane %v9058_v49, 5  ;;  %v4897_v63 = vrot.slane %v9058_v49, 6 }
 0x496   : > { %v3524_v41 = vsel %vm1001_vm5, %v3521_v12, %v3523_v25  ;;  %v9074_v23 = vsel %vm1217_vm6, %v3736_v18, %v3738_v3  ;;  %v9077_v45 = vsel %vm1584_vm7, %v4098_v33, %v4100_v44 }
 0x497   : > { %v9080_v15 = vsel %vm655_vm0, %v4315_v39, %v4317_v52  ;;  %3948 = vrot.lane.b32.xlu1 %v3733_v32, %s5848_s22  ;;  %3589 = vrot.lane.b32.xlu0 %v3520_v11, %s5846_s20  ;;  %v9084_v43 = vpop.f32.mrb[20].mxu1  ;;  %v9087_v35 = vsel %vm2169_vm8, %v4678_v30, %v4680_v6  ;;  %v9090_v54 = vsel %vm2387_vm9, %v4895_v31, %v4897_v63 }
 0x498   : > { %12119 = vst [vmem:[#allocation117_spill] sm:$0xff] %v9080_v15  ;;  %12120 = vst [vmem:[#allocation118_spill] sm:$0xff] %v9084_v43  ;;  %v5727_v22 = vpop.f32.mrb[21].mxu1  ;;  %v3525_v7 = vrot.slane %v9084_v43, 1  ;;  %v3740_v51 = vrot.slane %v9084_v43, 2  ;;  %v4102_v10 = vrot.slane %v9084_v43, 3 }
 0x499   : > { %12121 = vst [vmem:[#allocation18_spill] sm:$0xff] %v9087_v35  ;;  %12122 = vst [vmem:[#allocation144_spill] sm:$0xff] %v9090_v54  ;;  %v4319_v28 = vrot.slane %v9084_v43, 4  ;;  %v4682_v32 = vrot.slane %v9084_v43, 5  ;;  %v4899_v50 = vrot.slane %v9084_v43, 6 }
 0x49a   : > { %v3526_v1 = vsel %vm1001_vm5, %v3523_v25, %v3525_v7  ;;  %v9100_v20 = vsel %vm1217_vm6, %v3738_v3, %v3740_v51  ;;  %v9103_v11 = vsel %vm1584_vm7, %v4100_v44, %v4102_v10 }
 0x49b   : > { %v9106_v19 = vsel %vm655_vm0, %v4317_v52, %v4319_v28  ;;  %3804 = vrot.lane.b32.xlu0 %v9022_v4, %s5847_s21  ;;  %3591 = vrot.lane.b32.xlu1 %v3522_v56, %s5846_s20  ;;  %v9111_v12 = vpop.f32.mrb[22].mxu1  ;;  %v9114_v18 = vsel %vm2169_vm8, %v4680_v6, %v4682_v32  ;;  %v9117_v33 = vsel %vm2387_vm9, %v4897_v63, %v4899_v50 }
 0x49c   : > { %12123 = vst [vmem:[#allocation149_spill] sm:$0xff] %v9106_v19  ;;  %12124 = vst [vmem:[#allocation134_spill] sm:$0xff] %v9111_v12  ;;  %v5730_v39 = vpop.f32.mrb[23].mxu1  ;;  %v3527_v30 = vrot.slane %v9111_v12, 1  ;;  %v3742_v31 = vrot.slane %v9111_v12, 2  ;;  %v4104_v5 = vrot.slane %v9111_v12, 3 }
 0x49d   : > { %12125 = vst [vmem:[#allocation135_spill] sm:$0xff] %v9114_v18  ;;  %12126 = vst [vmem:[#allocation143_spill] sm:$0xff] %v9117_v33  ;;  %v4321_v25 = vrot.slane %v9111_v12, 4  ;;  %v4684_v3 = vrot.slane %v9111_v12, 5  ;;  %v4901_v56 = vrot.slane %v9111_v12, 6 }
 0x49e   : > { %v9126_v44 = vsel %vm1001_vm5, %v3525_v7, %v3527_v30  ;;  %v9129_v52 = vsel %vm1217_vm6, %v3740_v51, %v3742_v31  ;;  %v9132_v6 = vsel %vm1584_vm7, %v4102_v10, %v4104_v5 }
 0x49f   : > { %v9135_v63 = vsel %vm655_vm0, %v4319_v28, %v4321_v25  ;;  %3950 = vrot.lane.b32.xlu0 %v9022_v4, %s5848_s22  ;;  %3806 = vrot.lane.b32.xlu1 %v9048_v61, %s5847_s21  ;;  %v9141_v22 = vpop.f32.mrb[24].mxu1  ;;  %v9144_v7 = vsel %vm2169_vm8, %v4682_v32, %v4684_v3  ;;  %v9147_v51 = vsel %vm2387_vm9, %v4899_v50, %v4901_v56 }
 0x4a0   : > { %12127 = vst [vmem:[#allocation152_spill] sm:$0xff] %v9135_v63  ;;  %12128 = vst [vmem:[#allocation136_spill] sm:$0xff] %v9141_v22  ;;  %v5733_v39 = vpop.f32.mrb[25].mxu1  ;;  %v3529_v10 = vrot.slane %v9141_v22, 1  ;;  %v3744_v28 = vrot.slane %v9141_v22, 2  ;;  %v4106_v49 = vrot.slane %v9141_v22, 3 }
 0x4a1   : > { %12129 = vst [vmem:[#allocation150_spill] sm:$0xff] %v9144_v7  ;;  %12130 = vst [vmem:[#allocation151_spill] sm:$0xff] %v9147_v51  ;;  %v4323_v4 = vrot.slane %v9141_v22, 4  ;;  %v4686_v53 = vrot.slane %v9141_v22, 5  ;;  %v4903_v2 = vrot.slane %v9141_v22, 6 }
 0x4a2   : > { %v9156_v55 = vsel %vm1001_vm5, %v3527_v30, %v3529_v10  ;;  %v9159_v32 = vsel %vm1217_vm6, %v3742_v31, %v3744_v28  ;;  %v9162_v50 = vsel %vm1584_vm7, %v4104_v5, %v4106_v49 }
 0x4a3   : > { %v9165_v39 = vsel %vm655_vm0, %v4321_v25, %v4323_v4  ;;  %3952 = vrot.lane.b32.xlu1 %v9048_v61, %s5848_s22  ;;  %3593 = vrot.lane.b32.xlu0 %v3524_v41, %s5846_s20  ;;  %v9170_v42 = vpop.f32.mrb[26].mxu1  ;;  %v9173_v26 = vsel %vm2169_vm8, %v4684_v3, %v4686_v53  ;;  %v9176_v30 = vsel %vm2387_vm9, %v4901_v56, %v4903_v2 }
 0x4a4   : > { %12131 = vst [vmem:[#allocation21_spill] sm:$0xff] %v9165_v39  ;;  %12132 = vst [vmem:[#allocation161_spill] sm:$0xff] %v9170_v42  ;;  %v5736_v31 = vpop.f32.mrb[27].mxu1  ;;  %v3531_v5 = vrot.slane %v9170_v42, 1  ;;  %v3746_v34 = vrot.slane %v9170_v42, 2  ;;  %v4108_v25 = vrot.slane %v9170_v42, 3 }
 0x4a5   : > { %12133 = vst [vmem:[#allocation137_spill] sm:$0xff] %v9173_v26  ;;  %12134 = vst [vmem:[#allocation139_spill] sm:$0xff] %v9176_v30  ;;  %v4325_v36 = vrot.slane %v9170_v42, 4  ;;  %v4688_v61 = vrot.slane %v9170_v42, 5  ;;  %v4905_v41 = vrot.slane %v9170_v42, 6 }
 0x4a6   : > { %v9185_v14 = vsel %vm1001_vm5, %v3529_v10, %v3531_v5  ;;  %v9188_v3 = vsel %vm1217_vm6, %v3744_v28, %v3746_v34  ;;  %v9191_v56 = vsel %vm1584_vm7, %v4106_v49, %v4108_v25 }
 0x4a7   : > { %v9194_v31 = vsel %vm655_vm0, %v4323_v4, %v4325_v36  ;;  %3808 = vrot.lane.b32.xlu0 %v9074_v23, %s5847_s21  ;;  %3595 = vrot.lane.b32.xlu1 %v3526_v1, %s5846_s20  ;;  %v9199_v37 = vpop.f32.mrb[28].mxu1  ;;  %v9202_v30 = vsel %vm2169_vm8, %v4686_v53, %v4688_v61  ;;  %v9205_v10 = vsel %vm2387_vm9, %v4903_v2, %v4905_v41 }
 0x4a8   : > { %12135 = vst [vmem:[#allocation154_spill] sm:$0xff] %v9194_v31  ;;  %12136 = vst [vmem:[#allocation166_spill] sm:$0xff] %v9199_v37  ;;  %v5739_v28 = vpop.f32.mrb[29].mxu1  ;;  %v3533_v49 = vrot.slane %v9199_v37, 1  ;;  %v3748_v33 = vrot.slane %v9199_v37, 2  ;;  %v4110_v4 = vrot.slane %v9199_v37, 3 }
 0x4a9   : > { %12137 = vst [vmem:[#allocation153_spill] sm:$0xff] %v9202_v30  ;;  %12138 = vst [vmem:[#allocation164_spill] sm:$0xff] %v9205_v10  ;;  %v4327_v51 = vrot.slane %v9199_v37, 4  ;;  %v4690_v47 = vrot.slane %v9199_v37, 5  ;;  %v4907_v1 = vrot.slane %v9199_v37, 6 }
 0x4aa   : > { %v9214_v54 = vsel %vm1001_vm5, %v3531_v5, %v3533_v49  ;;  %v9217_v53 = vsel %vm1217_vm6, %v3746_v34, %v3748_v33  ;;  %v9220_v2 = vsel %vm1584_vm7, %v4108_v25, %v4110_v4 }
 0x4ab   : > { %v9223_v28 = vsel %vm655_vm0, %v4325_v36, %v4327_v51  ;;  %3954 = vrot.lane.b32.xlu0 %v9074_v23, %s5848_s22  ;;  %3810 = vrot.lane.b32.xlu1 %v9100_v20, %s5847_s21  ;;  %v9229_v10 = vpop.f32.mrb[30].mxu1  ;;  %v9232_v5 = vsel %vm2169_vm8, %v4688_v61, %v4690_v47  ;;  %v9235_v34 = vsel %vm2387_vm9, %v4905_v41, %v4907_v1 }
 0x4ac   : > { %12139 = vst [vmem:[#allocation24_spill] sm:$0xff] %v9223_v28  ;;  %12140 = vst [vmem:[#allocation165_spill] sm:$0xff] %v9229_v10  ;;  %v5742_v9 = vpop.f32.mrb[31].mxu1  ;;  %v3535_v25 = vrot.slane %v9229_v10, 1  ;;  %v3750_v36 = vrot.slane %v9229_v10, 2  ;;  %v4112_v62 = vrot.slane %v9229_v10, 3 }
 0x4ad   : > { %12141 = vst [vmem:[#allocation169_spill] sm:$0xff] %v9232_v5  ;;  %12142 = vst [vmem:[#allocation156_spill] sm:$0xff] %v9235_v34  ;;  %v4329_v23 = vrot.slane %v9229_v10, 4  ;;  %v4692_v0 = vrot.slane %v9229_v10, 5  ;;  %v4909_v37 = vrot.slane %v9229_v10, 6 }
 0x4ae   : > { %v9244_v42 = vsel %vm1001_vm5, %v3533_v49, %v3535_v25  ;;  %v9247_v61 = vsel %vm1217_vm6, %v3748_v33, %v3750_v36  ;;  %v9250_v9 = vsel %vm1584_vm7, %v4110_v4, %v4112_v62 }
 0x4af   : > { %v9253_v41 = vsel %vm655_vm0, %v4327_v51, %v4329_v23  ;;  %3956 = vrot.lane.b32.xlu1 %v9100_v20, %s5848_s22  ;;  %3597 = vrot.lane.b32.xlu0 %v9126_v44, %s5846_s20  ;;  %v9259_v34 = vpop.f32.mrb[32].mxu1  ;;  %v9262_v49 = vsel %vm2169_vm8, %v4690_v47, %v4692_v0  ;;  %v9265_v33 = vsel %vm2387_vm9, %v4907_v1, %v4909_v37 }
 0x4b0   : > { %12143 = vst [vmem:[#allocation157_spill] sm:$0xff] %v9253_v41  ;;  %12144 = vst [vmem:[#allocation168_spill] sm:$0xff] %v9259_v34  ;;  %v5745_v10 = vpop.f32.mrb[33].mxu1  ;;  %v3537_v4 = vrot.slane %v9259_v34, 1  ;;  %v3752_v51 = vrot.slane %v9259_v34, 2  ;;  %v4114_v22 = vrot.slane %v9259_v34, 3 }
 0x4b1   : > { %12145 = vst [vmem:[#allocation27_spill] sm:$0xff] %v9262_v49  ;;  %12146 = vst [vmem:[#allocation176_spill] sm:$0xff] %v9265_v33  ;;  %v4331_v20 = vrot.slane %v9259_v34, 4  ;;  %v4694_v12 = vrot.slane %v9259_v34, 5  ;;  %v4911_v44 = vrot.slane %v9259_v34, 6 }
 0x4b2   : > { %v9274_v43 = vsel %vm1001_vm5, %v3535_v25, %v3537_v4  ;;  %v9277_v47 = vsel %vm1217_vm6, %v3750_v36, %v3752_v51  ;;  %v9280_v10 = vsel %vm1584_vm7, %v4112_v62, %v4114_v22 }
 0x4b3   : > { %v9283_v1 = vsel %vm655_vm0, %v4329_v23, %v4331_v20  ;;  %3812 = vrot.lane.b32.xlu0 %v9129_v52, %s5847_s21  ;;  %3599 = vrot.lane.b32.xlu1 %v9156_v55, %s5846_s20  ;;  %v9289_v33 = vpop.f32.mrb[34].mxu1  ;;  %v9292_v25 = vsel %vm2169_vm8, %v4692_v0, %v4694_v12  ;;  %v9295_v36 = vsel %vm2387_vm9, %v4909_v37, %v4911_v44 }
 0x4b4   : > { %12147 = vst [vmem:[#allocation160_spill] sm:$0xff] %v9283_v1  ;;  %12148 = vst [vmem:[#allocation167_spill] sm:$0xff] %v9289_v33  ;;  %v5748_v34 = vpop.f32.mrb[35].mxu1  ;;  %v3539_v62 = vrot.slane %v9289_v33, 1  ;;  %v3754_v23 = vrot.slane %v9289_v33, 2  ;;  %v4116_v5 = vrot.slane %v9289_v33, 3 }
 0x4b5   : > { %12149 = vst [vmem:[#allocation171_spill] sm:$0xff] %v9292_v25  ;;  %12150 = vst [vmem:[#allocation180_spill] sm:$0xff] %v9295_v36  ;;  %v4333_v49 = vrot.slane %v9289_v33, 4  ;;  %v4696_v26 = vrot.slane %v9289_v33, 5  ;;  %v4913_v55 = vrot.slane %v9289_v33, 6 }
 0x4b6   : > { %v9304_v30 = vsel %vm1001_vm5, %v3537_v4, %v3539_v62  ;;  %v9307_v0 = vsel %vm1217_vm6, %v3752_v51, %v3754_v23  ;;  %v9310_v37 = vsel %vm1584_vm7, %v4114_v22, %v4116_v5 }
 0x4b7   : > { %v9313_v34 = vsel %vm655_vm0, %v4331_v20, %v4333_v49  ;;  %3958 = vrot.lane.b32.xlu0 %v9129_v52, %s5848_s22  ;;  %3814 = vrot.lane.b32.xlu1 %v9159_v32, %s5847_s21  ;;  %v9319_v36 = vpop.f32.mrb[36].mxu1  ;;  %v9322_v4 = vsel %vm2169_vm8, %v4694_v12, %v4696_v26  ;;  %v9325_v51 = vsel %vm2387_vm9, %v4911_v44, %v4913_v55 }
 0x4b8   : > { %12151 = vst [vmem:[#allocation170_spill] sm:$0xff] %v9313_v34  ;;  %12152 = vst [vmem:[#allocation172_spill] sm:$0xff] %v9319_v36  ;;  %v5751_v33 = vpop.f32.mrb[37].mxu1  ;;  %v3541_v22 = vrot.slane %v9319_v36, 1  ;;  %v3756_v20 = vrot.slane %v9319_v36, 2  ;;  %v4118_v25 = vrot.slane %v9319_v36, 3 }
 0x4b9   : > { %12153 = vst [vmem:[#allocation64_spill] sm:$0xff] %v9322_v4  ;;  %12154 = vst [vmem:[#allocation30_spill] sm:$0xff] %v9325_v51  ;;  %v4335_v52 = vrot.slane %v9319_v36, 4  ;;  %v4698_v18 = vrot.slane %v9319_v36, 5  ;;  %v4915_v7 = vrot.slane %v9319_v36, 6 }
 0x4ba   : > { %v9334_v48 = vsel %vm1001_vm5, %v3539_v62, %v3541_v22  ;;  %v9337_v12 = vsel %vm1217_vm6, %v3754_v23, %v3756_v20  ;;  %v9340_v33 = vsel %vm1584_vm7, %v4116_v5, %v4118_v25 }
 0x4bb   : > { %v9343_v44 = vsel %vm655_vm0, %v4333_v49, %v4335_v52  ;;  %3960 = vrot.lane.b32.xlu1 %v9159_v32, %s5848_s22  ;;  %3601 = vrot.lane.b32.xlu0 %v9185_v14, %s5846_s20  ;;  %v9349_v51 = vpop.f32.mrb[38].mxu1  ;;  %v9352_v62 = vsel %vm2169_vm8, %v4696_v26, %v4698_v18  ;;  %v9355_v23 = vsel %vm2387_vm9, %v4913_v55, %v4915_v7 }
 0x4bc   : > { %12155 = vst [vmem:[#allocation177_spill] sm:$0xff] %v9343_v44  ;;  %12156 = vst [vmem:[#allocation173_spill] sm:$0xff] %v9349_v51  ;;  %v5754_v36 = vpop.f32.mrb[39].mxu1  ;;  %v3543_v5 = vrot.slane %v9349_v51, 1  ;;  %v3758_v49 = vrot.slane %v9349_v51, 2  ;;  %v4120_v4 = vrot.slane %v9349_v51, 3 }
 0x4bd   : > { %12157 = vst [vmem:[#allocation182_spill] sm:$0xff] %v9352_v62  ;;  %12158 = vst [vmem:[#allocation183_spill] sm:$0xff] %v9355_v23  ;;  %v4337_v32 = vrot.slane %v9349_v51, 4  ;;  %v4700_v35 = vrot.slane %v9349_v51, 5  ;;  %v4917_v14 = vrot.slane %v9349_v51, 6 }
 0x4be   : > { %v9364_v21 = vsel %vm1001_vm5, %v3541_v22, %v3543_v5  ;;  %v9367_v26 = vsel %vm1217_vm6, %v3756_v20, %v3758_v49  ;;  %v9370_v36 = vsel %vm1584_vm7, %v4118_v25, %v4120_v4 }
 0x4bf   : > { %v9373_v55 = vsel %vm655_vm0, %v4335_v52, %v4337_v32  ;;  %3816 = vrot.lane.b32.xlu0 %v9188_v3, %s5847_s21  ;;  %3603 = vrot.lane.b32.xlu1 %v9214_v54, %s5846_s20  ;;  %v9379_v23 = vpop.f32.mrb[40].mxu1  ;;  %v9382_v22 = vsel %vm2169_vm8, %v4698_v18, %v4700_v35  ;;  %v9385_v20 = vsel %vm2387_vm9, %v4915_v7, %v4917_v14 }
 0x4c0   : > { %12159 = vst [vmem:[#allocation33_spill] sm:$0xff] %v9373_v55  ;;  %12160 = vst [vmem:[#allocation175_spill] sm:$0xff] %v9379_v23  ;;  %v5757_v51 = vpop.f32.mrb[41].mxu1  ;;  %v3545_v25 = vrot.slane %v9379_v23, 1  ;;  %v3760_v52 = vrot.slane %v9379_v23, 2  ;;  %v4122_v62 = vrot.slane %v9379_v23, 3 }
 0x4c1   : > { %12161 = vst [vmem:[#allocation181_spill] sm:$0xff] %v9382_v22  ;;  %12162 = vst [vmem:[#allocation36_spill] sm:$0xff] %v9385_v20  ;;  %v4339_v46 = vrot.slane %v9379_v23, 4  ;;  %v4702_v38 = vrot.slane %v9379_v23, 5  ;;  %v4919_v54 = vrot.slane %v9379_v23, 6 }
 0x4c2   : > { %v9394_v44 = vsel %vm1001_vm5, %v3543_v5, %v3545_v25  ;;  %v9397_v18 = vsel %vm1217_vm6, %v3758_v49, %v3760_v52  ;;  %v9400_v7 = vsel %vm1584_vm7, %v4120_v4, %v4122_v62 }
 0x4c3   : > { %v9403_v51 = vsel %vm655_vm0, %v4337_v32, %v4339_v46  ;;  %3962 = vrot.lane.b32.xlu0 %v9188_v3, %s5848_s22  ;;  %3818 = vrot.lane.b32.xlu1 %v9217_v53, %s5847_s21  ;;  %v9409_v20 = vpop.f32.mrb[42].mxu1  ;;  %v9412_v5 = vsel %vm2169_vm8, %v4700_v35, %v4702_v38  ;;  %v9415_v49 = vsel %vm2387_vm9, %v4917_v14, %v4919_v54 }
 0x4c4   : > { %12163 = vst [vmem:[#allocation184_spill] sm:$0xff] %v9403_v51  ;;  %12164 = vst [vmem:[#allocation185_spill] sm:$0xff] %v9409_v20  ;;  %v5760_v23 = vpop.f32.mrb[43].mxu1  ;;  %v3547_v4 = vrot.slane %v9409_v20, 1  ;;  %v3762_v32 = vrot.slane %v9409_v20, 2  ;;  %v4124_v22 = vrot.slane %v9409_v20, 3 }
 0x4c5   : > { %12165 = vst [vmem:[#allocation187_spill] sm:$0xff] %v9412_v5  ;;  %12166 = vst [vmem:[#allocation189_spill] sm:$0xff] %v9415_v49  ;;  %v4341_v3 = vrot.slane %v9409_v20, 4  ;;  %v4704_v51 = vrot.slane %v9409_v20, 5  ;;  %v4921_v55 = vrot.slane %v9409_v20, 6 }
 0x4c6   : > { %v9424_v1 = vsel %vm1001_vm5, %v3545_v25, %v3547_v4  ;;  %v9427_v35 = vsel %vm1217_vm6, %v3760_v52, %v3762_v32  ;;  %v9430_v23 = vsel %vm1584_vm7, %v4122_v62, %v4124_v22 }
 0x4c7   : > { %v9433_v14 = vsel %vm655_vm0, %v4339_v46, %v4341_v3  ;;  %3964 = vrot.lane.b32.xlu1 %v9217_v53, %s5848_s22  ;;  %3605 = vrot.lane.b32.xlu0 %v9244_v42, %s5846_s20  ;;  %v9439_v49 = vpop.f32.mrb[44].mxu1  ;;  %v9442_v25 = vsel %vm2169_vm8, %v4702_v38, %v4704_v51  ;;  %v9445_v52 = vsel %vm2387_vm9, %v4919_v54, %v4921_v55 }
 0x4c8   : > { %12167 = vst [vmem:[#allocation76_spill] sm:$0xff] %v9433_v14  ;;  %12168 = vst [vmem:[#allocation39_spill] sm:$0xff] %v9439_v49  ;;  %v5763_v20 = vpop.f32.mrb[45].mxu1  ;;  %v3549_v62 = vrot.slane %v9439_v49, 1  ;;  %v3764_v46 = vrot.slane %v9439_v49, 2  ;;  %v4126_v5 = vrot.slane %v9439_v49, 3 }
 0x4c9   : > { %12169 = vst [vmem:[#allocation194_spill] sm:$0xff] %v9442_v25  ;;  %12170 = vst [vmem:[#allocation188_spill] sm:$0xff] %v9445_v52  ;;  %v4343_v53 = vrot.slane %v9439_v49, 4  ;;  %v4706_v14 = vrot.slane %v9439_v49, 5  ;;  %v4923_v42 = vrot.slane %v9439_v49, 6 }
 0x4ca   : > { %v9454_v34 = vsel %vm1001_vm5, %v3547_v4, %v3549_v62  ;;  %v9457_v38 = vsel %vm1217_vm6, %v3762_v32, %v3764_v46  ;;  %v9460_v20 = vsel %vm1584_vm7, %v4124_v22, %v4126_v5 }
 0x4cb   : > { %12171 = vst [vmem:[#allocation71_spill] sm:$0xff] %v9460_v20  ;;  %v9463_v54 = vsel %vm655_vm0, %v4341_v3, %v4343_v53  ;;  %3820 = vrot.lane.b32.xlu0 %v9247_v61, %s5847_s21  ;;  %3607 = vrot.lane.b32.xlu1 %v9274_v43, %s5846_s20  ;;  %v9469_v52 = vpop.f32.mrb[46].mxu1  ;;  %v9472_v4 = vsel %vm2169_vm8, %v4704_v51, %v4706_v14 }
 0x4cc   : > { %12172 = vst [vmem:[#allocation42_spill] sm:$0xff] %v9463_v54  ;;  %12173 = vst [vmem:[#allocation196_spill] sm:$0xff] %v9469_v52  ;;  %v9475_v32 = vsel %vm2387_vm9, %v4921_v55, %v4923_v42  ;;  %v5766_v49 = vpop.f32.mrb[47].mxu1  ;;  %v3551_v22 = vrot.slane %v9469_v52, 1  ;;  %v3766_v3 = vrot.slane %v9469_v52, 2  ;;  %v4128_v25 = vrot.slane %v9469_v52, 3 }
 0x4cd   : > { %12174 = vst [vmem:[#allocation77_spill] sm:$0xff] %v9472_v4  ;;  %12175 = vst [vmem:[#allocation190_spill] sm:$0xff] %v9475_v32  ;;  %v4345_v54 = vrot.slane %v9469_v52, 4  ;;  %v4708_v28 = vrot.slane %v9469_v52, 5  ;;  %v4925_v43 = vrot.slane %v9469_v52, 6 }
 0x4ce   : > { %v9484_v41 = vsel %vm1001_vm5, %v3549_v62, %v3551_v22  ;;  %v9487_v51 = vsel %vm1217_vm6, %v3764_v46, %v3766_v3  ;;  %v9490_v55 = vsel %vm1584_vm7, %v4126_v5, %v4128_v25 }
 0x4cf   : > { %12176 = vst [vmem:[#allocation195_spill] sm:$0xff] %v9490_v55  ;;  %v9493_v49 = vsel %vm655_vm0, %v4343_v53, %v4345_v54  ;;  %3966 = vrot.lane.b32.xlu0 %v9247_v61, %s5848_s22  ;;  %3822 = vrot.lane.b32.xlu1 %v9277_v47, %s5847_s21  ;;  %v9499_v32 = vpop.f32.mrb[48].mxu1  ;;  %v9502_v62 = vsel %vm2169_vm8, %v4706_v14, %v4708_v28 }
 0x4d0   : > { %12177 = vst [vmem:[#allocation191_spill] sm:$0xff] %v9493_v49  ;;  %12178 = vst [vmem:[#allocation197_spill] sm:$0xff] %v9499_v32  ;;  %v9505_v46 = vsel %vm2387_vm9, %v4923_v42, %v4925_v43  ;;  %v5769_v52 = vpop.f32.mrb[49].mxu1  ;;  %v3553_v5 = vrot.slane %v9499_v32, 1  ;;  %v3768_v53 = vrot.slane %v9499_v32, 2  ;;  %v4130_v4 = vrot.slane %v9499_v32, 3 }
 0x4d1   : > { %12179 = vst [vmem:[#allocation45_spill] sm:$0xff] %v9502_v62  ;;  %12180 = vst [vmem:[#allocation192_spill] sm:$0xff] %v9505_v46  ;;  %v4347_v61 = vrot.slane %v9499_v32, 4  ;;  %v4710_v49 = vrot.slane %v9499_v32, 5  ;;  %v4927_v39 = vrot.slane %v9499_v32, 6 }
 0x4d2   : > { %v9514_v31 = vsel %vm1001_vm5, %v3551_v22, %v3553_v5  ;;  %v9517_v14 = vsel %vm1217_vm6, %v3766_v3, %v3768_v53  ;;  %v9520_v52 = vsel %vm1584_vm7, %v4128_v25, %v4130_v4 }
 0x4d3   : > { %12181 = vst [vmem:[#allocation193_spill] sm:$0xff] %v9520_v52  ;;  %v9523_v42 = vsel %vm655_vm0, %v4345_v54, %v4347_v61  ;;  %3968 = vrot.lane.b32.xlu1 %v9277_v47, %s5848_s22  ;;  %3609 = vrot.lane.b32.xlu0 %v9304_v30, %s5846_s20  ;;  %v9529_v46 = vpop.f32.mrb[50].mxu1  ;;  %v9532_v22 = vsel %vm2169_vm8, %v4708_v28, %v4710_v49 }
 0x4d4   : > { %12182 = vst [vmem:[#allocation48_spill] sm:$0xff] %v9523_v42  ;;  %12183 = vst [vmem:[#allocation198_spill] sm:$0xff] %v9529_v46  ;;  %v9535_v3 = vsel %vm2387_vm9, %v4925_v43, %v4927_v39  ;;  %v5772_v32 = vpop.f32.mrb[51].mxu1  ;;  %v3555_v25 = vrot.slane %v9529_v46, 1  ;;  %v3770_v54 = vrot.slane %v9529_v46, 2  ;;  %v4132_v62 = vrot.slane %v9529_v46, 3 }
 0x4d5   : > { %12184 = vst [vmem:[#allocation51_spill] sm:$0xff] %v9532_v22  ;;  %12185 = vst [vmem:[#allocation94_spill] sm:$0xff] %v9535_v3  ;;  %v4349_v47 = vrot.slane %v9529_v46, 4  ;;  %v4712_v42 = vrot.slane %v9529_v46, 5  ;;  %v4929_v30 = vrot.slane %v9529_v46, 6 }
 0x4d6   : > { %v9544_v19 = vsel %vm1001_vm5, %v3553_v5, %v3555_v25  ;;  %v9547_v28 = vsel %vm1217_vm6, %v3768_v53, %v3770_v54  ;;  %v9550_v32 = vsel %vm1584_vm7, %v4130_v4, %v4132_v62 }
 0x4d7   : > { %12186 = vst [vmem:[#allocation111_spill] sm:$0xff] %v9550_v32  ;;  %v9553_v43 = vsel %vm655_vm0, %v4347_v61, %v4349_v47  ;;  %3824 = vrot.lane.b32.xlu0 %v9307_v0, %s5847_s21  ;;  %3611 = vrot.lane.b32.xlu1 %v9334_v48, %s5846_s20  ;;  %v9559_v3 = vpop.f32.mrb[52].mxu1  ;;  %v9562_v5 = vsel %vm2169_vm8, %v4710_v49, %v4712_v42 }
 0x4d8   : > { %12187 = vst [vmem:[#allocation200_spill] sm:$0xff] %v9553_v43  ;;  %12188 = vst [vmem:[#allocation199_spill] sm:$0xff] %v9559_v3  ;;  %v9565_v53 = vsel %vm2387_vm9, %v4927_v39, %v4929_v30  ;;  %v5775_v46 = vpop.f32.mrb[53].mxu1  ;;  %v3557_v4 = vrot.slane %v9559_v3, 1  ;;  %v3772_v61 = vrot.slane %v9559_v3, 2  ;;  %v4134_v22 = vrot.slane %v9559_v3, 3 }
 0x4d9   : > { %12189 = vst [vmem:[#allocation201_spill] sm:$0xff] %v9562_v5  ;;  %12190 = vst [vmem:[#allocation56_spill] sm:$0xff] %v9565_v53  ;;  %v4351_v43 = vrot.slane %v9559_v3, 4  ;;  %v4714_v63 = vrot.slane %v9559_v3, 5  ;;  %v4931_v48 = vrot.slane %v9559_v3, 6 }
 0x4da   : > { %v9574_v13 = vsel %vm1001_vm5, %v3555_v25, %v3557_v4  ;;  %v9577_v49 = vsel %vm1217_vm6, %v3770_v54, %v3772_v61  ;;  %v9580_v39 = vsel %vm1584_vm7, %v4132_v62, %v4134_v22 }
 0x4db   : > { %12191 = vst [vmem:[#allocation202_spill] sm:$0xff] %v9580_v39  ;;  %v9583_v46 = vsel %vm655_vm0, %v4349_v47, %v4351_v43  ;;  %3970 = vrot.lane.b32.xlu0 %v9307_v0, %s5848_s22  ;;  %3826 = vrot.lane.b32.xlu1 %v9337_v12, %s5847_s21  ;;  %v9589_v53 = vpop.f32.mrb[54].mxu1  ;;  %v9592_v25 = vsel %vm2169_vm8, %v4712_v42, %v4714_v63 }
 0x4dc   : > { %12192 = vst [vmem:[#allocation128_spill] sm:$0xff] %v9583_v46  ;;  %12193 = vst [vmem:[#allocation203_spill] sm:$0xff] %v9589_v53  ;;  %v9595_v54 = vsel %vm2387_vm9, %v4929_v30, %v4931_v48  ;;  %v5778_v3 = vpop.f32.mrb[55].mxu1  ;;  %v3559_v62 = vrot.slane %v9589_v53, 1  ;;  %v3774_v47 = vrot.slane %v9589_v53, 2  ;;  %v4136_v5 = vrot.slane %v9589_v53, 3 }
 0x4dd   : > { %12194 = vst [vmem:[#allocation129_spill] sm:$0xff] %v9592_v25  ;;  %12195 = vst [vmem:[#allocation62_spill] sm:$0xff] %v9595_v54  ;;  %v4353_v0 = vrot.slane %v9589_v53, 4  ;;  %v4716_v46 = vrot.slane %v9589_v53, 5  ;;  %v4933_v15 = vrot.slane %v9589_v53, 6 }
 0x4de   : > { %v9604_v17 = vsel %vm1001_vm5, %v3557_v4, %v3559_v62  ;;  %v9607_v42 = vsel %vm1217_vm6, %v3772_v61, %v3774_v47  ;;  %v9610_v3 = vsel %vm1584_vm7, %v4134_v22, %v4136_v5 }
 0x4df   : > { %12196 = vst [vmem:[#allocation65_spill] sm:$0xff] %v9610_v3  ;;  %v9613_v30 = vsel %vm655_vm0, %v4351_v43, %v4353_v0  ;;  %3972 = vrot.lane.b32.xlu1 %v9337_v12, %s5848_s22  ;;  %3613 = vrot.lane.b32.xlu0 %v9364_v21, %s5846_s20  ;;  %v9619_v54 = vpop.f32.mrb[56].mxu1  ;;  %v9622_v4 = vsel %vm2169_vm8, %v4714_v63, %v4716_v46 }
 0x4e0   : > { %12197 = vst [vmem:[#allocation204_spill] sm:$0xff] %v9613_v30  ;;  %12198 = vst [vmem:[#allocation205_spill] sm:$0xff] %v9619_v54  ;;  %v9625_v61 = vsel %vm2387_vm9, %v4931_v48, %v4933_v15  ;;  %v5781_v53 = vpop.f32.mrb[57].mxu1  ;;  %v3561_v22 = vrot.slane %v9619_v54, 1  ;;  %v3776_v43 = vrot.slane %v9619_v54, 2  ;;  %v4138_v25 = vrot.slane %v9619_v54, 3 }
 0x4e1   : > { %12199 = vst [vmem:[#allocation70_spill] sm:$0xff] %v9622_v4  ;;  %12200 = vst [vmem:[#allocation72_spill] sm:$0xff] %v9625_v61  ;;  %v4355_v12 = vrot.slane %v9619_v54, 4  ;;  %v4718_v30 = vrot.slane %v9619_v54, 5  ;;  %v4935_v21 = vrot.slane %v9619_v54, 6 }
 0x4e2   : > { %v9634_v27 = vsel %vm1001_vm5, %v3559_v62, %v3561_v22  ;;  %v9637_v63 = vsel %vm1217_vm6, %v3774_v47, %v3776_v43  ;;  %v9640_v53 = vsel %vm1584_vm7, %v4136_v5, %v4138_v25 }
 0x4e3   : > { %12201 = vst [vmem:[#allocation146_spill] sm:$0xff] %v9640_v53  ;;  %v9643_v48 = vsel %vm655_vm0, %v4353_v0, %v4355_v12  ;;  %3828 = vrot.lane.b32.xlu0 %v9367_v26, %s5847_s21  ;;  %3615 = vrot.lane.b32.xlu1 %v9394_v44, %s5846_s20  ;;  %v9649_v61 = vpop.f32.mrb[58].mxu1  ;;  %v9652_v62 = vsel %vm2169_vm8, %v4716_v46, %v4718_v30 }
 0x4e4   : > { %12202 = vst [vmem:[#allocation158_spill] sm:$0xff] %v9643_v48  ;;  %12203 = vst [vmem:[#allocation206_spill] sm:$0xff] %v9649_v61  ;;  %v9655_v47 = vsel %vm2387_vm9, %v4933_v15, %v4935_v21  ;;  %v5784_v54 = vpop.f32.mrb[59].mxu1  ;;  %v3563_v5 = vrot.slane %v9649_v61, 1  ;;  %v3778_v0 = vrot.slane %v9649_v61, 2  ;;  %v4140_v4 = vrot.slane %v9649_v61, 3 }
 0x4e5   : > { %12204 = vst [vmem:[#allocation86_spill] sm:$0xff] %v9652_v62  ;;  %12205 = vst [vmem:[#allocation207_spill] sm:$0xff] %v9655_v47  ;;  %v4357_v48 = vrot.slane %v9649_v61, 4  ;;  %v4720_v60 = vrot.slane %v9649_v61, 5  ;;  %v4937_v44 = vrot.slane %v9649_v61, 6 }
 0x4e6   : > { %v9664_v29 = vsel %vm1001_vm5, %v3561_v22, %v3563_v5  ;;  %v9667_v46 = vsel %vm1217_vm6, %v3776_v43, %v3778_v0  ;;  %v9670_v15 = vsel %vm1584_vm7, %v4138_v25, %v4140_v4 }
 0x4e7   : > { %12206 = vst [vmem:[#allocation209_spill] sm:$0xff] %v9670_v15  ;;  %v9673_v54 = vsel %vm655_vm0, %v4355_v12, %v4357_v48  ;;  %3974 = vrot.lane.b32.xlu0 %v9367_v26, %s5848_s22  ;;  %3830 = vrot.lane.b32.xlu1 %v9397_v18, %s5847_s21  ;;  %v9679_v47 = vpop.f32.mrb[60].mxu1  ;;  %v9682_v22 = vsel %vm2169_vm8, %v4718_v30, %v4720_v60 }
 0x4e8   : > { %12207 = vst [vmem:[#allocation89_spill] sm:$0xff] %v9673_v54  ;;  %12208 = vst [vmem:[#allocation213_spill] sm:$0xff] %v9679_v47  ;;  %v9685_v43 = vsel %vm2387_vm9, %v4935_v21, %v4937_v44  ;;  %v5787_v61 = vpop.f32.mrb[61].mxu1  ;;  %v3565_v25 = vrot.slane %v9679_v47, 1  ;;  %v3780_v12 = vrot.slane %v9679_v47, 2  ;;  %v4142_v62 = vrot.slane %v9679_v47, 3 }
 0x4e9   : > { %12209 = vst [vmem:[#allocation216_spill] sm:$0xff] %v9682_v22  ;;  %12210 = vst [vmem:[#allocation208_spill] sm:$0xff] %v9685_v43  ;;  %v4359_v26 = vrot.slane %v9679_v47, 4  ;;  %v9691_v54 = vpop.permute.xlu0 %3577  ;;  %v4722_v57 = vrot.slane %v9679_v47, 5  ;;  %v4939_v53 = vrot.slane %v9679_v47, 6 }
 0x4ea   : > { %12211 = vst [vmem:[#allocation210_spill] sm:$0xff] %v9691_v54  ;;  %v9696_v30 = vsel %vm1001_vm5, %v3563_v5, %v3565_v25  ;;  %v9699_v21 = vsel %vm1217_vm6, %v3778_v0, %v3780_v12  ;;  %v9702_v61 = vsel %vm1584_vm7, %v4140_v4, %v4142_v62 }
 0x4eb   : > { %12212 = vst [vmem:[#allocation212_spill] sm:$0xff] %v9702_v61  ;;  %3976 = vrot.lane.b32.xlu1 %v9397_v18, %s5848_s22  ;;  %3617 = vrot.lane.b32.xlu0 %v9424_v1, %s5846_s20  ;;  %v9708_v43 = vpop.f32.mrb[62].mxu1  ;;  %v9711_v54 = vsel %vm655_vm0, %v4357_v48, %v4359_v26  ;;  %v9714_v5 = vsel %vm2169_vm8, %v4720_v60, %v4722_v57 }
 0x4ec   : > { %12213 = vst [vmem:[#allocation103_spill] sm:$0xff] %v9708_v43  ;;  %12214 = vst [vmem:[#allocation220_spill] sm:$0xff] %v9711_v54  ;;  %v9717_v0 = vsel %vm2387_vm9, %v4937_v44, %v4939_v53  ;;  %v5790_v47 = vpop.f32.mrb[63].mxu1  ;;  %v3567_v4 = vrot.slane %v9708_v43, 1  ;;  %v3782_v22 = vrot.slane %v9708_v43, 2  ;;  %v4144_v18 = vrot.slane %v9708_v43, 3 }
 0x4ed   : > { %12215 = vst [vmem:[#allocation214_spill] sm:$0xff] %v9714_v5  ;;  %12216 = vst [vmem:[#allocation215_spill] sm:$0xff] %v9717_v0  ;;  %v4361_v1 = vrot.slane %v9708_v43, 4  ;;  %v9723_v61 = vpop.permute.xlu0 %3792  ;;  %v9725_v15 = vpop.permute.xlu1 %3579  ;;  %v4724_v48 = vrot.slane %v9708_v43, 5  ;;  %v4941_v60 = vrot.slane %v9708_v43, 6 }
 0x4ee   : > { %12217 = vst [vmem:[#allocation218_spill] sm:$0xff] %v9723_v61  ;;  %12218 = vst [vmem:[#allocation223_spill] sm:$0xff] %v9725_v15  ;;  %v9730_v44 = vsel %vm1001_vm5, %v3565_v25, %v3567_v4  ;;  %v9733_v47 = vsel %vm1217_vm6, %v3780_v12, %v3782_v22  ;;  %v9742_v15 = vsel %vm1584_vm7, %v4142_v62, %v4144_v18 }
 0x4ef   : > { %3832 = vrot.lane.b32.xlu0 %v9427_v35, %s5847_s21  ;;  %3619 = vrot.lane.b32.xlu1 %v9454_v34, %s5846_s20  ;;  %v9739_v0 = vpop.f32.mrb[64].mxu1  ;;  %12220 = vst [vmem:[#allocation59_spill] sm:$0xff] %v9742_v15  ;;  %v9745_v61 = vsel %vm655_vm0, %v4359_v26, %v4361_v1  ;;  %v9748_v25 = vsel %vm2169_vm8, %v4722_v57, %v4724_v48 }
 0x4f0   : > { %12219 = vst [vmem:[#allocation211_spill] sm:$0xff] %v9739_v0  ;;  %12221 = vst [vmem:[#allocation221_spill] sm:$0xff] %v9745_v61  ;;  %v5793_v43 = vpop.f32.mrb[65].mxu1  ;;  %v3569_v12 = vrot.slane %v9739_v0, 1  ;;  %v3784_v5 = vrot.slane %v9739_v0, 2  ;;  %v4146_v54 = vrot.slane %v9739_v0, 3  ;;  %v9760_v26 = vsel %vm2387_vm9, %v4939_v53, %v4941_v60 }
 0x4f1   : > { %12222 = vst [vmem:[#allocation106_spill] sm:$0xff] %v9748_v25  ;;  %v4363_v34 = vrot.slane %v9739_v0, 4  ;;  %v9754_v39 = vpop.permute.xlu0 %3581  ;;  %v9756_v3 = vpop.permute.xlu1 %3794  ;;  %v4726_v62 = vrot.slane %v9739_v0, 5  ;;  %12225 = vst [vmem:[#allocation219_spill] sm:$0xff] %v9760_v26  ;;  %v4943_v57 = vrot.slane %v9739_v0, 6 }
 0x4f2   : > { %12223 = vst [vmem:[#allocation222_spill] sm:$0xff] %v9754_v39  ;;  %12224 = vst [vmem:[#allocation217_spill] sm:$0xff] %v9756_v3  ;;  %v9764_v43 = vsel %vm1001_vm5, %v3567_v4, %v3569_v12  ;;  %v9767_v25 = vsel %vm1217_vm6, %v3782_v22, %v3784_v5  ;;  %v9776_v39 = vsel %vm1584_vm7, %v4144_v18, %v4146_v54 }
 0x4f3   : > { %3978 = vrot.lane.b32.xlu0 %v9427_v35, %s5848_s22  ;;  %3834 = vrot.lane.b32.xlu1 %v9457_v38, %s5847_s21  ;;  %v9773_v3 = vpop.f32.mrb[66].mxu1  ;;  %12227 = vst [vmem:[#allocation226_spill] sm:$0xff] %v9776_v39  ;;  %v9779_v53 = vsel %vm655_vm0, %v4361_v1, %v4363_v34  ;;  %v9782_v4 = vsel %vm2169_vm8, %v4724_v48, %v4726_v62 }
 0x4f4   : > { %12226 = vst [vmem:[#allocation225_spill] sm:$0xff] %v9773_v3  ;;  %12228 = vst [vmem:[#allocation224_spill] sm:$0xff] %v9779_v53  ;;  %v5796_v26 = vpop.f32.mrb[67].mxu1  ;;  %v3571_v22 = vrot.slane %v9773_v3, 1  ;;  %v3786_v0 = vrot.slane %v9773_v3, 2  ;;  %v4148_v35 = vrot.slane %v9773_v3, 3  ;;  %v9795_v48 = vsel %vm2387_vm9, %v4941_v60, %v4943_v57 }
 0x4f5   : > { %12229 = vst [vmem:[#allocation120_spill] sm:$0xff] %v9782_v4  ;;  %v4365_v61 = vrot.slane %v9773_v3, 4  ;;  %v9788_v15 = vpop.permute.xlu0 %3796  ;;  %v9790_v52 = vpop.permute.xlu1 %3583  ;;  %v4728_v18 = vrot.slane %v9773_v3, 5  ;;  %v4945_v1 = vrot.slane %v9773_v3, 6  ;;  %12232 = vst [vmem:[#allocation13_spill] sm:$0xff] %v9795_v48 }
 0x4f6   : > { %12230 = vst [vmem:[#allocation229_spill] sm:$0xff] %v9788_v15  ;;  %12231 = vst [vmem:[#allocation123_spill] sm:$0xff] %v9790_v52  ;;  %v9798_v26 = vsel %vm1001_vm5, %v3569_v12, %v3571_v22  ;;  %v9801_v4 = vsel %vm1217_vm6, %v3784_v5, %v3786_v0  ;;  %v9810_v15 = vsel %vm1584_vm7, %v4146_v54, %v4148_v35 }
 0x4f7   : > { %3980 = vrot.lane.b32.xlu1 %v9457_v38, %s5848_s22  ;;  %3621 = vrot.lane.b32.xlu0 %v9484_v41, %s5846_s20  ;;  %v9807_v52 = vpop.f32.mrb[68].mxu1  ;;  %12234 = vst [vmem:[#allocation227_spill] sm:$0xff] %v9810_v15  ;;  %v9813_v60 = vsel %vm655_vm0, %v4363_v34, %v4365_v61  ;;  %v9816_v12 = vsel %vm2169_vm8, %v4726_v62, %v4728_v18 }
 0x4f8   : > { %12233 = vst [vmem:[#allocation22_spill] sm:$0xff] %v9807_v52  ;;  %12235 = vst [vmem:[#allocation228_spill] sm:$0xff] %v9813_v60  ;;  %v5799_v48 = vpop.f32.mrb[69].mxu1  ;;  %v3573_v5 = vrot.slane %v9807_v52, 1  ;;  %v3788_v3 = vrot.slane %v9807_v52, 2  ;;  %v4150_v38 = vrot.slane %v9807_v52, 3  ;;  %v9829_v62 = vsel %vm2387_vm9, %v4943_v57, %v4945_v1 }
 0x4f9   : > { %12236 = vst [vmem:[#allocation138_spill] sm:$0xff] %v9816_v12  ;;  %v4367_v41 = vrot.slane %v9807_v52, 4  ;;  %v9822_v53 = vpop.permute.xlu0 %3942  ;;  %v9824_v39 = vpop.permute.xlu1 %3798  ;;  %v4730_v54 = vrot.slane %v9807_v52, 5  ;;  %v4947_v34 = vrot.slane %v9807_v52, 6  ;;  %12239 = vst [vmem:[#allocation43_spill] sm:$0xff] %v9829_v62 }
 0x4fa   : > { %12237 = vst [vmem:[#allocation37_spill] sm:$0xff] %v9822_v53  ;;  %12238 = vst [vmem:[#allocation141_spill] sm:$0xff] %v9824_v39  ;;  %v9832_v48 = vsel %vm1001_vm5, %v3571_v22, %v3573_v5  ;;  %v9835_v12 = vsel %vm1217_vm6, %v3786_v0, %v3788_v3  ;;  %v9844_v53 = vsel %vm1584_vm7, %v4148_v35, %v4150_v38 }
 0x4fb   : > { %3836 = vrot.lane.b32.xlu0 %v9487_v51, %s5847_s21  ;;  %3623 = vrot.lane.b32.xlu1 %v9514_v31, %s5846_s20  ;;  %v9841_v39 = vpop.f32.mrb[70].mxu1  ;;  %12241 = vst [vmem:[#allocation19_spill] sm:$0xff] %v9844_v53  ;;  %v9847_v57 = vsel %vm655_vm0, %v4365_v61, %v4367_v41  ;;  %v9850_v22 = vsel %vm2169_vm8, %v4728_v18, %v4730_v54 }
 0x4fc   : > { %12240 = vst [vmem:[#allocation16_spill] sm:$0xff] %v9841_v39  ;;  %12242 = vst [vmem:[#allocation28_spill] sm:$0xff] %v9847_v57  ;;  %v5802_v62 = vpop.f32.mrb[71].mxu1  ;;  %v11431_v0 = vrot.slane %v9841_v39, 1  ;;  %v9854_v52 = vrot.slane %v9841_v39, 2  ;;  %v4152_v60 = vrot.slane %v9841_v39, 3  ;;  %v9865_v18 = vsel %vm2387_vm9, %v4945_v1, %v4947_v34 }
 0x4fd   : > { %12243 = vst [vmem:[#allocation25_spill] sm:$0xff] %v9850_v22  ;;  %v4369_v31 = vrot.slane %v9841_v39, 4  ;;  %v9858_v15 = vpop.permute.xlu0 %3585  ;;  %v9860_v35 = vpop.permute.xlu1 %3944  ;;  %v4732_v61 = vrot.slane %v9841_v39, 5  ;;  %v4949_v57 = vrot.slane %v9841_v39, 6  ;;  %12246 = vst [vmem:[#allocation49_spill] sm:$0xff] %v9865_v18 }
 0x4fe   : > { %12244 = vst [vmem:[#allocation10_spill] sm:$0xff] %v9858_v15  ;;  %12245 = vst [vmem:[#allocation46_spill] sm:$0xff] %v9860_v35  ;;  %v9870_v62 = vsel %vm1001_vm5, %v3573_v5, %v11431_v0  ;;  %v9874_v22 = vsel %vm1217_vm6, %v3788_v3, %v9854_v52  ;;  %v9881_v15 = vsel %vm1584_vm7, %v4150_v38, %v4152_v60 }
 0x4ff   : > { %3982 = vrot.lane.b32.xlu0 %v9487_v51, %s5848_s22  ;;  %3838 = vrot.lane.b32.xlu1 %v9517_v14, %s5847_s21  ;;  %v3410_v35 = vpop.f32.mrb[72].mxu1  ;;  %v9884_v1 = vsel %vm655_vm0, %v4367_v41, %v4369_v31  ;;  %v9887_v5 = vsel %vm2169_vm8, %v4730_v54, %v4732_v61  ;;  %v9894_v55 = vsel %vm2387_vm9, %v4947_v34, %v4949_v57 }
 0x500   : > { %12247 = vst [vmem:[#allocation155_spill] sm:$0xff] %v9884_v1  ;;  %12248 = vst [vmem:[#allocation73_spill] sm:$0xff] %v9887_v5  ;;  %v5805_v0 = vpop.f32.mrb[73].mxu1  ;;  %v3938_v18 = vrot.slane %v3410_v35, 2  ;;  %v4154_v3 = vrot.slane %v3410_v35, 3  ;;  %v4371_v53 = vrot.slane %v3410_v35, 4 }
 0x501   : > { %v4734_v32 = vrot.slane %v3410_v35, 5  ;;  %v9889_v20 = vpop.permute.xlu0 %3800  ;;  %v9891_v51 = vpop.permute.xlu1 %3587  ;;  %12251 = vst [vmem:[#allocation52_spill] sm:$0xff] %v9894_v55  ;;  %v4951_v38 = vrot.slane %v3410_v35, 6 }
 0x502   : > { %12249 = vst [vmem:[#allocation34_spill] sm:$0xff] %v9889_v20  ;;  %12250 = vst [vmem:[#allocation31_spill] sm:$0xff] %v9891_v51  ;;  %v9898_v41 = vsel %vm1217_vm6, %v9854_v52, %v3938_v18  ;;  %v9901_v54 = vsel %vm1584_vm7, %v4152_v60, %v4154_v3  ;;  %v9910_v51 = vsel %vm655_vm0, %v4369_v31, %v4371_v53 }
 0x503   : > { %12252 = vst [vmem:[#allocation57_spill] sm:$0xff] %v9901_v54  ;;  %3984 = vrot.lane.b32.xlu1 %v9517_v14, %s5848_s22  ;;  %3625 = vrot.lane.b32.xlu0 %v9544_v19, %s5846_s20  ;;  %v9907_v0 = vpop.f32.mrb[74].mxu1  ;;  %12253 = vst [vmem:[#allocation54_spill] sm:$0xff] %v9910_v51  ;;  %v9913_v34 = vsel %vm2169_vm8, %v4732_v61, %v4734_v32  ;;  %v9916_v35 = vsel %vm2387_vm9, %v4949_v57, %v4951_v38 }
 0x504   : > { %12254 = vst [vmem:[#allocation95_spill] sm:$0xff] %v9913_v34  ;;  %12255 = vst [vmem:[#allocation90_spill] sm:$0xff] %v9916_v35  ;;  %v5808_v55 = vpop.f32.mrb[75].mxu1  ;;  %v11433_v60 = vrot.slane %v9907_v0, 2  ;;  %v4156_v20 = vrot.slane %v9907_v0, 3  ;;  %v4373_v14 = vrot.slane %v9907_v0, 4 }
 0x505   : > { %v4736_v19 = vrot.slane %v9907_v0, 5  ;;  %v9922_v5 = vpop.permute.xlu0 %3946  ;;  %v9924_v1 = vpop.permute.xlu1 %3802  ;;  %v4953_v31 = vrot.slane %v9907_v0, 6 }
 0x506   : > { %12256 = vst [vmem:[#allocation107_spill] sm:$0xff] %v9922_v5  ;;  %12257 = vst [vmem:[#allocation124_spill] sm:$0xff] %v9924_v1  ;;  %v9930_v57 = vsel %vm1217_vm6, %v3938_v18, %v11433_v60  ;;  %v9933_v55 = vsel %vm1584_vm7, %v4154_v3, %v4156_v20  ;;  %v9940_v35 = vsel %vm655_vm0, %v4371_v53, %v4373_v14 }
 0x507   : > { %12258 = vst [vmem:[#allocation40_spill] sm:$0xff] %v9933_v55  ;;  %3840 = vrot.lane.b32.xlu0 %v9547_v28, %s5847_s21  ;;  %3627 = vrot.lane.b32.xlu1 %v9574_v13, %s5846_s20  ;;  %v3420_v61 = vpop.f32.mrb[76].mxu1  ;;  %v9943_v1 = vsel %vm2169_vm8, %v4734_v32, %v4736_v19  ;;  %v9946_v5 = vsel %vm2387_vm9, %v4951_v38, %v4953_v31 }
 0x508   : > { %12259 = vst [vmem:[#allocation60_spill] sm:$0xff] %v9946_v5  ;;  %v4158_v18 = vrot.slane %v3420_v61, 3  ;;  %v4375_v60 = vrot.slane %v3420_v61, 4  ;;  %v4738_v3 = vrot.slane %v3420_v61, 5  ;;  %v4955_v34 = vrot.slane %v3420_v61, 6  ;;  %v5811_v51 = vpop.f32.mrb[77].mxu1 }
 0x509   : > { %v9948_v54 = vpop.permute.xlu0 %3589  ;;  %v9950_v55 = vpop.permute.xlu1 %3948 }
 0x50a   : > { %12260 = vst [vmem:[#allocation66_spill] sm:$0xff] %v9948_v54  ;;  %12261 = vst [vmem:[#allocation179_spill] sm:$0xff] %v9950_v55  ;;  %v9953_v13 = vsel %vm1584_vm7, %v4156_v20, %v4158_v18  ;;  %v9956_v53 = vsel %vm655_vm0, %v4373_v14, %v4375_v60  ;;  %v9963_v38 = vsel %vm2169_vm8, %v4736_v19, %v4738_v3 }
 0x50b   : > { %3986 = vrot.lane.b32.xlu0 %v9547_v28, %s5848_s22  ;;  %3842 = vrot.lane.b32.xlu1 %v9577_v49, %s5847_s21  ;;  %v3425_v32 = vpop.f32.mrb[78].mxu1  ;;  %12262 = vst [vmem:[#allocation79_spill] sm:$0xff] %v9963_v38  ;;  %v9966_v51 = vsel %vm2387_vm9, %v4953_v31, %v4955_v34 }
 0x50c   : > { %12263 = vst [vmem:[#allocation112_spill] sm:$0xff] %v9966_v51  ;;  %v4523_v61 = vrot.slane %v3425_v32, 4  ;;  %v4740_v5 = vrot.slane %v3425_v32, 5  ;;  %v4957_v20 = vrot.slane %v3425_v32, 6  ;;  %v5814_v18 = vpop.f32.mrb[79].mxu1 }
 0x50d   : > { %v9968_v55 = vpop.permute.xlu0 %3804  ;;  %v9970_v14 = vpop.permute.xlu1 %3591 }
 0x50e   : > { %12264 = vst [vmem:[#allocation130_spill] sm:$0xff] %v9968_v55  ;;  %12265 = vst [vmem:[#allocation142_spill] sm:$0xff] %v9970_v14  ;;  %v9973_v28 = vsel %vm655_vm0, %v4375_v60, %v4523_v61  ;;  %v9976_v54 = vsel %vm2169_vm8, %v4738_v3, %v4740_v5  ;;  %v9983_v31 = vsel %vm2387_vm9, %v4955_v34, %v4957_v20 }
 0x50f   : > { %12266 = vst [vmem:[#allocation159_spill] sm:$0xff] %v9976_v54  ;;  %3988 = vrot.lane.b32.xlu1 %v9577_v49, %s5848_s22  ;;  %3629 = vrot.lane.b32.xlu0 %v9604_v17, %s5846_s20  ;;  %v3430_v19 = vpop.f32.mrb[80].mxu1  ;;  %12267 = vst [vmem:[#allocation68_spill] sm:$0xff] %v9983_v31 }
 0x510   : > { %v4525_v32 = vrot.slane %v3430_v19, 4  ;;  %v4742_v18 = vrot.slane %v3430_v19, 5  ;;  %v4959_v51 = vrot.slane %v3430_v19, 6  ;;  %v5817_v14 = vpop.f32.mrb[81].mxu1 }
 0x511   : > { %v9985_v55 = vpop.permute.xlu0 %3950  ;;  %v9987_v60 = vpop.permute.xlu1 %3806 }
 0x512   : > { %12268 = vst [vmem:[#allocation78_spill] sm:$0xff] %v9985_v55  ;;  %12269 = vst [vmem:[#allocation147_spill] sm:$0xff] %v9987_v60  ;;  %v9990_v3 = vsel %vm655_vm0, %v4523_v61, %v4525_v32  ;;  %v9993_v49 = vsel %vm2169_vm8, %v4740_v5, %v4742_v18  ;;  %v10000_v17 = vsel %vm2387_vm9, %v4957_v20, %v4959_v51 }
 0x513   : > { %12270 = vst [vmem:[#allocation55_spill] sm:$0xff] %v9993_v49  ;;  %3844 = vrot.lane.b32.xlu0 %v9607_v42, %s5847_s21  ;;  %3631 = vrot.lane.b32.xlu1 %v9634_v27, %s5846_s20  ;;  %12271 = vst [vmem:[#allocation178_spill] sm:$0xff] %v10000_v17 }
 0x515   : > { %v10002_v34 = vpop.permute.xlu0 %3593  ;;  %v10004_v14 = vpop.permute.xlu1 %3952 }
 0x516   : > { %12272 = vst [vmem:[#allocation63_spill] sm:$0xff] %v10002_v34  ;;  %12273 = vst [vmem:[#allocation96_spill] sm:$0xff] %v10004_v14  ;;  %v12317_v34 = vld [vmem:[#allocation209_spill] sm:$0xff] }
 0x517   : > { %3990 = vrot.lane.b32.xlu0 %v9607_v42, %s5848_s22  ;;  %3846 = vrot.lane.b32.xlu1 %v9637_v63, %s5847_s21 }
 0x519   : > { %v10010_v5 = vpop.permute.xlu0 %3808  ;;  %v10012_v61 = vpop.permute.xlu1 %3595 }
 0x51a   : > { %12274 = vst [vmem:[#allocation5_spill] sm:$0xff] %v10010_v5  ;;  %12275 = vst [vmem:[#allocation93_spill] sm:$0xff] %v10012_v61  ;;  %v12309_v5 = vld [vmem:[#allocation111_spill] sm:$0xff] }
 0x51b   : > { %3992 = vrot.lane.b32.xlu1 %v9637_v63, %s5848_s22  ;;  %3633 = vrot.lane.b32.xlu0 %v9664_v29, %s5846_s20 }
 0x51d   : > { %v10018_v27 = vpop.permute.xlu0 %3954  ;;  %v10020_v51 = vpop.permute.xlu1 %3810 }
 0x51e   : > { %12276 = vst [vmem:[#allocation186_spill] sm:$0xff] %v10018_v27  ;;  %12277 = vst [vmem:[#allocation230_spill] sm:$0xff] %v10020_v51  ;;  %v12313_v27 = vld [vmem:[#allocation65_spill] sm:$0xff] }
 0x51f   : > { %3848 = vrot.lane.b32.xlu0 %v9667_v46, %s5847_s21  ;;  %3635 = vrot.lane.b32.xlu1 %v9696_v30, %s5846_s20 }
 0x521   : > { %v10026_v42 = vpop.permute.xlu0 %3597  ;;  %v10028_v20 = vpop.permute.xlu1 %3956 }
 0x522   : > { %12278 = vst [vmem:[#allocation11_spill] sm:$0xff] %v10028_v20 }
 0x523   : > { %3994 = vrot.lane.b32.xlu0 %v9667_v46, %s5848_s22  ;;  %3850 = vrot.lane.b32.xlu1 %v9699_v21, %s5847_s21 }
 0x525   : > { %v10034_v29 = vpop.permute.xlu0 %3812  ;;  %v10036_v63 = vpop.permute.xlu1 %3599 }
 0x527   : > { %3996 = vrot.lane.b32.xlu1 %v9699_v21, %s5848_s22  ;;  %3637 = vrot.lane.b32.xlu0 %v9730_v44, %s5846_s20 }
 0x529   : > { %v10042_v30 = vpop.permute.xlu0 %3958  ;;  %v10044_v19 = vpop.permute.xlu1 %3814 }
 0x52a   : > { %12279 = vst [vmem:[#allocation231_spill] sm:$0xff] %v10042_v30 }
 0x52b   : > { %3852 = vrot.lane.b32.xlu0 %v9733_v47, %s5847_s21  ;;  %3639 = vrot.lane.b32.xlu1 %v9764_v43, %s5846_s20 }
 0x52d   : > { %v10050_v46 = vpop.permute.xlu0 %3601  ;;  %v10052_v32 = vpop.permute.xlu1 %3960 }
 0x52e   : > { %12280 = vst [vmem:[#allocation17_spill] sm:$0xff] %v10052_v32 }
 0x52f   : > { %3854 = vrot.lane.b32.xlu1 %v9767_v25, %s5847_s21  ;;  %3641 = vrot.lane.b32.xlu0 %v9798_v26, %s5846_s20 }
 0x531   : > { %v10058_v21 = vpop.permute.xlu0 %3816  ;;  %v10060_v44 = vpop.permute.xlu1 %3603 }
 0x533   : > { %3856 = vrot.lane.b32.xlu0 %v9801_v4, %s5847_s21  ;;  %3643 = vrot.lane.b32.xlu1 %v9832_v48, %s5846_s20  ;;  %v12281_v48 = vrot.slane %v9841_v39, 1  ;;  %v12321_v39 = vld [vmem:[#allocation59_spill] sm:$0xff] }
 0x535   : > { %v10066_v43 = vpop.permute.xlu0 %3962  ;;  %v10068_v18 = vpop.permute.xlu1 %3818 }
 0x537   : > { %3858 = vrot.lane.b32.xlu1 %v9835_v12, %s5847_s21  ;;  %3645 = vrot.lane.b32.xlu0 %v9870_v62, %s5846_s20 }
 0x539   : > { %v10074_v26 = vpop.permute.xlu0 %3605  ;;  %v10076_v17 = vpop.permute.xlu1 %3964 }
 0x53b   : > { %3860 = vrot.lane.b32.xlu0 %v9874_v22, %s5847_s21  ;;  %3647 = vrot.lane.b32.xlu1 %v12281_v48, %s5846_s20 }
 0x53d   : > { %v10083_v31 = vpop.permute.xlu0 %3820  ;;  %v10085_v32 = vpop.permute.xlu1 %3607 }
 0x53f   : > { %3998 = vrot.lane.b32.xlu0 %v9733_v47, %s5848_s22  ;;  %3862 = vrot.lane.b32.xlu1 %v9854_v52, %s5847_s21 }
 0x541   : > { %v10091_v62 = vpop.permute.xlu0 %3966  ;;  %v10093_v51 = vpop.permute.xlu1 %3822 }
 0x543   : > { %4002 = vrot.lane.b32.xlu0 %v9801_v4, %s5848_s22  ;;  %4000 = vrot.lane.b32.xlu1 %v9767_v25, %s5848_s22 }
 0x545   : > { %v10099_v48 = vpop.permute.xlu0 %3609  ;;  %v10101_v30 = vpop.permute.xlu1 %3968 }
 0x547   : > { %4006 = vrot.lane.b32.xlu0 %v9874_v22, %s5848_s22  ;;  %4004 = vrot.lane.b32.xlu1 %v9835_v12, %s5848_s22  ;;  %v12284_v12 = vrot.slane %v9907_v0, 2 }
 0x549   : > { %v10107_v52 = vpop.permute.xlu0 %3824  ;;  %v10109_v47 = vpop.permute.xlu1 %3611 }
 0x54a   : > { %12282 = vst [vmem:[#allocation14_spill] sm:$0xff] %v10109_v47 }
 0x54b   : > { %4010 = vrot.lane.b32.xlu0 %v9930_v57, %s5848_s22  ;;  %4008 = vrot.lane.b32.xlu1 %v9898_v41, %s5848_s22 }
 0x54d   : > { %v10115_v25 = vpop.permute.xlu0 %3970  ;;  %v10117_v4 = vpop.permute.xlu1 %3826 }
 0x54e   : > { %12283 = vst [vmem:[#allocation23_spill] sm:$0xff] %v10117_v4 }
 0x54f   : > { %4160 = vrot.lane.b32.xlu0 %v8939_v24, %s5849_s23  ;;  %4012 = vrot.lane.b32.xlu1 %v12284_v12, %s5848_s22  ;;  %v12305_v12 = vld [vmem:[#allocation195_spill] sm:$0xff] }
 0x551   : > { %v10124_v22 = vpop.permute.xlu0 %3613  ;;  %v10126_v20 = vpop.permute.xlu1 %3972 }
 0x552   : > { %12285 = vst [vmem:[#allocation20_spill] sm:$0xff] %v10124_v22  ;;  %12286 = vst [vmem:[#allocation29_spill] sm:$0xff] %v10126_v20 }
 0x553   : > { %4164 = vrot.lane.b32.xlu0 %v8975_v16, %s5849_s23  ;;  %4162 = vrot.lane.b32.xlu1 %v8955_v58, %s5849_s23 }
 0x555   : > { %v10132_v41 = vpop.permute.xlu0 %3828  ;;  %v10134_v57 = vpop.permute.xlu1 %3615 }
 0x556   : > { %12287 = vst [vmem:[#allocation113_spill] sm:$0xff] %v10132_v41  ;;  %12288 = vst [vmem:[#allocation26_spill] sm:$0xff] %v10134_v57  ;;  %v12396_v41 = vld [vmem:[#allocation224_spill] sm:$0xff] }
 0x557   : > { %4168 = vrot.lane.b32.xlu0 %v9025_v59, %s5849_s23  ;;  %4166 = vrot.lane.b32.xlu1 %v8999_v8, %s5849_s23 }
 0x559   : > { %v10140_v24 = vpop.permute.xlu0 %3974  ;;  %v10142_v0 = vpop.permute.xlu1 %3830 }
 0x55a   : > { %12289 = vst [vmem:[#allocation35_spill] sm:$0xff] %v10140_v24  ;;  %12290 = vst [vmem:[#allocation84_spill] sm:$0xff] %v10142_v0  ;;  %v12384_v0 = vld [vmem:[#allocation128_spill] sm:$0xff] }
 0x55b   : > { %4172 = vrot.lane.b32.xlu0 %v9077_v45, %s5849_s23  ;;  %4170 = vrot.lane.b32.xlu1 %v9051_v40, %s5849_s23  ;;  %v12399_v24 = vld [vmem:[#allocation28_spill] sm:$0xff] }
 0x55d   : > { %v10148_v58 = vpop.permute.xlu0 %3617  ;;  %v10150_v16 = vpop.permute.xlu1 %3976 }
 0x55e   : > { %12291 = vst [vmem:[#allocation110_spill] sm:$0xff] %v10148_v58  ;;  %12292 = vst [vmem:[#allocation32_spill] sm:$0xff] %v10150_v16  ;;  %v12388_v16 = vld [vmem:[#allocation158_spill] sm:$0xff]  ;;  %v12392_v58 = vld [vmem:[#allocation220_spill] sm:$0xff] }
 0x55f   : > { %4176 = vrot.lane.b32.xlu0 %v9132_v6, %s5849_s23  ;;  %4174 = vrot.lane.b32.xlu1 %v9103_v11, %s5849_s23 }
 0x561   : > { %v10156_v8 = vpop.permute.xlu0 %3832  ;;  %v10158_v59 = vpop.permute.xlu1 %3619 }
 0x562   : > { %12293 = vst [vmem:[#allocation41_spill] sm:$0xff] %v10156_v8  ;;  %12294 = vst [vmem:[#allocation38_spill] sm:$0xff] %v10158_v59  ;;  %v12380_v59 = vld [vmem:[#allocation48_spill] sm:$0xff] }
 0x563   : > { %4180 = vrot.lane.b32.xlu0 %v9191_v56, %s5849_s23  ;;  %4178 = vrot.lane.b32.xlu1 %v9162_v50, %s5849_s23 }
 0x565   : > { %v10164_v40 = vpop.permute.xlu0 %3978  ;;  %v10166_v45 = vpop.permute.xlu1 %3834 }
 0x566   : > { %12295 = vst [vmem:[#allocation47_spill] sm:$0xff] %v10164_v40  ;;  %12296 = vst [vmem:[#allocation131_spill] sm:$0xff] %v10166_v45  ;;  %v12372_v45 = vld [vmem:[#allocation184_spill] sm:$0xff] }
 0x567   : > { %4184 = vrot.lane.b32.xlu0 %v9250_v9, %s5849_s23  ;;  %4182 = vrot.lane.b32.xlu1 %v9220_v2, %s5849_s23 }
 0x569   : > { %v10172_v11 = vpop.permute.xlu0 %3621  ;;  %v10174_v6 = vpop.permute.xlu1 %3980 }
 0x56a   : > { %12297 = vst [vmem:[#allocation6_spill] sm:$0xff] %v10172_v11  ;;  %12298 = vst [vmem:[#allocation127_spill] sm:$0xff] %v10174_v6  ;;  %v12376_v6 = vld [vmem:[#allocation42_spill] sm:$0xff] }
 0x56b   : > { %4188 = vrot.lane.b32.xlu0 %v9310_v37, %s5849_s23  ;;  %4186 = vrot.lane.b32.xlu1 %v9280_v10, %s5849_s23 }
 0x56d   : > { %v10180_v50 = vpop.permute.xlu0 %3836  ;;  %v10182_v56 = vpop.permute.xlu1 %3623 }
 0x56e   : > { %12299 = vst [vmem:[#allocation44_spill] sm:$0xff] %v10180_v50  ;;  %12300 = vst [vmem:[#allocation53_spill] sm:$0xff] %v10182_v56  ;;  %v12368_v56 = vld [vmem:[#allocation177_spill] sm:$0xff] }
 0x56f   : > { %4192 = vrot.lane.b32.xlu0 %v9370_v36, %s5849_s23  ;;  %4190 = vrot.lane.b32.xlu1 %v9340_v33, %s5849_s23  ;;  %v12306_v36 = vld [vmem:[#allocation71_spill] sm:$0xff] }
 0x571   : > { %v10188_v2 = vpop.permute.xlu0 %3982  ;;  %v10190_v9 = vpop.permute.xlu1 %3838 }
 0x572   : > { %12301 = vst [vmem:[#allocation148_spill] sm:$0xff] %v10188_v2  ;;  %12302 = vst [vmem:[#allocation145_spill] sm:$0xff] %v10190_v9  ;;  %v12360_v9 = vld [vmem:[#allocation24_spill] sm:$0xff] }
 0x573   : > { %4196 = vrot.lane.b32.xlu0 %v9430_v23, %s5849_s23  ;;  %4194 = vrot.lane.b32.xlu1 %v9400_v7, %s5849_s23  ;;  %v12310_v23 = vld [vmem:[#allocation193_spill] sm:$0xff] }
 0x575   : > { %v10196_v10 = vpop.permute.xlu0 %3625  ;;  %v10198_v37 = vpop.permute.xlu1 %3984 }
 0x576   : > { %12303 = vst [vmem:[#allocation163_spill] sm:$0xff] %v10196_v10  ;;  %12304 = vst [vmem:[#allocation162_spill] sm:$0xff] %v10198_v37  ;;  %v12364_v37 = vld [vmem:[#allocation160_spill] sm:$0xff] }
 0x577   : > { %4200 = vrot.lane.b32.xlu0 %v12305_v12, %s5849_s23  ;;  %4198 = vrot.lane.b32.xlu1 %v12306_v36, %s5849_s23  ;;  %v12314_v12 = vld [vmem:[#allocation202_spill] sm:$0xff] }
 0x579   : > { %v10204_v33 = vpop.permute.xlu0 %3840  ;;  %v10206_v61 = vpop.permute.xlu1 %3627 }
 0x57a   : > { %12307 = vst [vmem:[#allocation4_spill] sm:$0xff] %v10204_v33  ;;  %12308 = vst [vmem:[#allocation82_spill] sm:$0xff] %v10206_v61  ;;  %v12356_v61 = vld [vmem:[#allocation21_spill] sm:$0xff] }
 0x57b   : > { %4204 = vrot.lane.b32.xlu0 %v12309_v5, %s5849_s23  ;;  %4202 = vrot.lane.b32.xlu1 %v12310_v23, %s5849_s23  ;;  %v12318_v5 = vld [vmem:[#allocation146_spill] sm:$0xff] }
 0x57d   : > { %v10212_v7 = vpop.permute.xlu0 %3986  ;;  %v10214_v60 = vpop.permute.xlu1 %3842 }
 0x57e   : > { %12311 = vst [vmem:[#allocation3_spill] sm:$0xff] %v10212_v7  ;;  %12312 = vst [vmem:[#allocation75_spill] sm:$0xff] %v10214_v60 }
 0x57f   : > { %4208 = vrot.lane.b32.xlu0 %v12313_v27, %s5849_s23  ;;  %4206 = vrot.lane.b32.xlu1 %v12314_v12, %s5849_s23  ;;  %v12322_v27 = vld [vmem:[#allocation212_spill] sm:$0xff] }
 0x581   : > { %v10220_v36 = vpop.permute.xlu0 %3629  ;;  %v10222_v14 = vpop.permute.xlu1 %3988 }
 0x582   : > { %12315 = vst [vmem:[#allocation50_spill] sm:$0xff] %v10220_v36  ;;  %12316 = vst [vmem:[#allocation61_spill] sm:$0xff] %v10222_v14  ;;  %v12325_v14 = vld [vmem:[#allocation227_spill] sm:$0xff] }
 0x583   : > { %4212 = vrot.lane.b32.xlu0 %v12317_v34, %s5849_s23  ;;  %4210 = vrot.lane.b32.xlu1 %v12318_v5, %s5849_s23  ;;  %v12326_v34 = vld [vmem:[#allocation226_spill] sm:$0xff] }
 0x585   : > { %v10228_v23 = vpop.permute.xlu0 %3844  ;;  %v10230_v55 = vpop.permute.xlu1 %3631 }
 0x586   : > { %12319 = vst [vmem:[#allocation58_spill] sm:$0xff] %v10228_v23  ;;  %12320 = vst [vmem:[#allocation174_spill] sm:$0xff] %v10230_v55 }
 0x587   : > { %4216 = vrot.lane.b32.xlu0 %v12321_v39, %s5849_s23  ;;  %4214 = vrot.lane.b32.xlu1 %v12322_v27, %s5849_s23  ;;  %v12329_v39 = vld [vmem:[#allocation19_spill] sm:$0xff] }
 0x589   : > { %v10236_v12 = vpop.permute.xlu0 %3990  ;;  %v10238_v60 = vpop.permute.xlu1 %3846 }
 0x58a   : > { %12323 = vst [vmem:[#allocation80_spill] sm:$0xff] %v10236_v12  ;;  %12324 = vst [vmem:[#allocation69_spill] sm:$0xff] %v10238_v60  ;;  %v12332_v60 = vld [vmem:[#allocation40_spill] sm:$0xff]  ;;  %v12352_v12 = vld [vmem:[#allocation149_spill] sm:$0xff] }
 0x58b   : > { %4220 = vrot.lane.b32.xlu0 %v12325_v14, %s5849_s23  ;;  %4218 = vrot.lane.b32.xlu1 %v12326_v34, %s5849_s23  ;;  %v12333_v14 = vld [vmem:[#allocation57_spill] sm:$0xff] }
 0x58d   : > { %v10244_v5 = vpop.permute.xlu0 %3633  ;;  %v10246_v23 = vpop.permute.xlu1 %3992 }
 0x58e   : > { %12327 = vst [vmem:[#allocation83_spill] sm:$0xff] %v10244_v5  ;;  %12328 = vst [vmem:[#allocation81_spill] sm:$0xff] %v10246_v23  ;;  %v12336_v23 = vld [vmem:[#allocation102_spill] sm:$0xff] }
 0x58f   : > { %4224 = vrot.lane.b32.xlu0 %v9881_v15, %s5849_s23  ;;  %4222 = vrot.lane.b32.xlu1 %v12329_v39, %s5849_s23 }
 0x591   : > { %v10252_v27 = vpop.permute.xlu0 %3848  ;;  %v10254_v55 = vpop.permute.xlu1 %3635 }
 0x592   : > { %12330 = vst [vmem:[#allocation85_spill] sm:$0xff] %v10252_v27  ;;  %12331 = vst [vmem:[#allocation87_spill] sm:$0xff] %v10254_v55  ;;  %v12339_v55 = vld [vmem:[#allocation9_spill] sm:$0xff] }
 0x593   : > { %4228 = vrot.lane.b32.xlu0 %v12332_v60, %s5849_s23  ;;  %4226 = vrot.lane.b32.xlu1 %v12333_v14, %s5849_s23  ;;  %v12340_v60 = vld [vmem:[#allocation108_spill] sm:$0xff] }
 0x595   : > { %v10260_v34 = vpop.permute.xlu0 %3994  ;;  %v10262_v5 = vpop.permute.xlu1 %3850 }
 0x596   : > { %12334 = vst [vmem:[#allocation67_spill] sm:$0xff] %v10260_v34  ;;  %12335 = vst [vmem:[#allocation92_spill] sm:$0xff] %v10262_v5  ;;  %v12343_v5 = vld [vmem:[#allocation115_spill] sm:$0xff]  ;;  %v12348_v34 = vld [vmem:[#allocation132_spill] sm:$0xff] }
 0x597   : > { %4377 = vrot.lane.b32.xlu0 %v12336_v23, %s5850_s24  ;;  %4230 = vrot.lane.b32.xlu1 %v9953_v13, %s5849_s23  ;;  %v12344_v23 = vld [vmem:[#allocation12_spill] sm:$0xff] }
 0x599   : > { %v10268_v15 = vpop.permute.xlu0 %3637  ;;  %v10270_v39 = vpop.permute.xlu1 %3996 }
 0x59a   : > { %12337 = vst [vmem:[#allocation7_spill] sm:$0xff] %v10268_v15  ;;  %12338 = vst [vmem:[#allocation100_spill] sm:$0xff] %v10270_v39  ;;  %v12347_v39 = vld [vmem:[#allocation117_spill] sm:$0xff] }
 0x59b   : > { %4381 = vrot.lane.b32.xlu0 %v12339_v55, %s5850_s24  ;;  %4379 = vrot.lane.b32.xlu1 %v12340_v60, %s5850_s24 }
 0x59d   : > { %v10276_v14 = vpop.permute.xlu0 %3852  ;;  %v10278_v27 = vpop.permute.xlu1 %3639 }
 0x59e   : > { %12341 = vst [vmem:[#allocation91_spill] sm:$0xff] %v10276_v14  ;;  %12342 = vst [vmem:[#allocation74_spill] sm:$0xff] %v10278_v27  ;;  %v12351_v27 = vld [vmem:[#allocation152_spill] sm:$0xff] }
 0x59f   : > { %4385 = vrot.lane.b32.xlu0 %v12343_v5, %s5850_s24  ;;  %4383 = vrot.lane.b32.xlu1 %v12344_v23, %s5850_s24 }
 0x5a1   : > { %v10284_v13 = vpop.permute.xlu0 %3641  ;;  %v10286_v15 = vpop.permute.xlu1 %3854 }
 0x5a2   : > { %12345 = vst [vmem:[#allocation88_spill] sm:$0xff] %v10284_v13  ;;  %12346 = vst [vmem:[#allocation195_spill] sm:$0xff] %v10286_v15  ;;  %v12355_v15 = vld [vmem:[#allocation154_spill] sm:$0xff] }
 0x5a3   : > { %4389 = vrot.lane.b32.xlu0 %v12347_v39, %s5850_s24  ;;  %4387 = vrot.lane.b32.xlu1 %v12348_v34, %s5850_s24 }
 0x5a5   : > { %v10292_v60 = vpop.permute.xlu0 %3856  ;;  %v10294_v14 = vpop.permute.xlu1 %3643 }
 0x5a6   : > { %12349 = vst [vmem:[#allocation71_spill] sm:$0xff] %v10292_v60  ;;  %12350 = vst [vmem:[#allocation111_spill] sm:$0xff] %v10294_v14  ;;  %v12359_v14 = vld [vmem:[#allocation157_spill] sm:$0xff] }
 0x5a7   : > { %4393 = vrot.lane.b32.xlu0 %v12351_v27, %s5850_s24  ;;  %4391 = vrot.lane.b32.xlu1 %v12352_v12, %s5850_s24 }
 0x5a9   : > { %v10300_v36 = vpop.permute.xlu0 %3645  ;;  %v10302_v13 = vpop.permute.xlu1 %3858 }
 0x5aa   : > { %12353 = vst [vmem:[#allocation193_spill] sm:$0xff] %v10300_v36  ;;  %12354 = vst [vmem:[#allocation65_spill] sm:$0xff] %v10302_v13  ;;  %v12363_v13 = vld [vmem:[#allocation170_spill] sm:$0xff] }
 0x5ab   : > { %4397 = vrot.lane.b32.xlu0 %v12355_v15, %s5850_s24  ;;  %4395 = vrot.lane.b32.xlu1 %v12356_v61, %s5850_s24 }
 0x5ad   : > { %v10308_v33 = vpop.permute.xlu0 %3860  ;;  %v10310_v60 = vpop.permute.xlu1 %3647 }
 0x5ae   : > { %12357 = vst [vmem:[#allocation202_spill] sm:$0xff] %v10308_v33  ;;  %12358 = vst [vmem:[#allocation209_spill] sm:$0xff] %v10310_v60  ;;  %v12367_v60 = vld [vmem:[#allocation33_spill] sm:$0xff] }
 0x5af   : > { %4401 = vrot.lane.b32.xlu0 %v12359_v14, %s5850_s24  ;;  %4399 = vrot.lane.b32.xlu1 %v12360_v9, %s5850_s24 }
 0x5b1   : > { %v10316_v7 = vpop.permute.xlu0 %3998  ;;  %v10318_v36 = vpop.permute.xlu1 %3862 }
 0x5b2   : > { %12361 = vst [vmem:[#allocation146_spill] sm:$0xff] %v10316_v7  ;;  %12362 = vst [vmem:[#allocation59_spill] sm:$0xff] %v10318_v36  ;;  %v12371_v36 = vld [vmem:[#allocation76_spill] sm:$0xff] }
 0x5b3   : > { %4405 = vrot.lane.b32.xlu0 %v12363_v13, %s5850_s24  ;;  %4403 = vrot.lane.b32.xlu1 %v12364_v37, %s5850_s24 }
 0x5b5   : > { %v10324_v10 = vpop.permute.xlu0 %4002  ;;  %v10326_v33 = vpop.permute.xlu1 %4000 }
 0x5b6   : > { %12365 = vst [vmem:[#allocation212_spill] sm:$0xff] %v10324_v10  ;;  %12366 = vst [vmem:[#allocation227_spill] sm:$0xff] %v10326_v33  ;;  %v12375_v33 = vld [vmem:[#allocation191_spill] sm:$0xff] }
 0x5b7   : > { %4409 = vrot.lane.b32.xlu0 %v12367_v60, %s5850_s24  ;;  %4407 = vrot.lane.b32.xlu1 %v12368_v56, %s5850_s24 }
 0x5b9   : > { %v10332_v50 = vpop.permute.xlu0 %4006  ;;  %v10334_v7 = vpop.permute.xlu1 %4004 }
 0x5ba   : > { %12369 = vst [vmem:[#allocation226_spill] sm:$0xff] %v10332_v50  ;;  %12370 = vst [vmem:[#allocation19_spill] sm:$0xff] %v10334_v7  ;;  %v12379_v7 = vld [vmem:[#allocation200_spill] sm:$0xff] }
 0x5bb   : > { %4413 = vrot.lane.b32.xlu0 %v12371_v36, %s5850_s24  ;;  %4411 = vrot.lane.b32.xlu1 %v12372_v45, %s5850_s24 }
 0x5bd   : > { %v10340_v2 = vpop.permute.xlu0 %4010  ;;  %v10342_v10 = vpop.permute.xlu1 %4008 }
 0x5be   : > { %12373 = vst [vmem:[#allocation40_spill] sm:$0xff] %v10340_v2  ;;  %12374 = vst [vmem:[#allocation57_spill] sm:$0xff] %v10342_v10  ;;  %v12383_v10 = vld [vmem:[#allocation204_spill] sm:$0xff] }
 0x5bf   : > { %4417 = vrot.lane.b32.xlu0 %v12375_v33, %s5850_s24  ;;  %4415 = vrot.lane.b32.xlu1 %v12376_v6, %s5850_s24 }
 0x5c1   : > { %v10348_v11 = vpop.permute.xlu0 %4160  ;;  %v10350_v50 = vpop.permute.xlu1 %4012 }
 0x5c2   : > { %12377 = vst [vmem:[#allocation102_spill] sm:$0xff] %v10348_v11  ;;  %12378 = vst [vmem:[#allocation9_spill] sm:$0xff] %v10350_v50  ;;  %v12387_v50 = vld [vmem:[#allocation89_spill] sm:$0xff] }
 0x5c3   : > { %4421 = vrot.lane.b32.xlu0 %v12379_v7, %s5850_s24  ;;  %4419 = vrot.lane.b32.xlu1 %v12380_v59, %s5850_s24 }
 0x5c5   : > { %v10356_v8 = vpop.permute.xlu0 %4164  ;;  %v10358_v2 = vpop.permute.xlu1 %4162 }
 0x5c6   : > { %12381 = vst [vmem:[#allocation108_spill] sm:$0xff] %v10356_v8  ;;  %12382 = vst [vmem:[#allocation115_spill] sm:$0xff] %v10358_v2  ;;  %v12391_v2 = vld [vmem:[#allocation221_spill] sm:$0xff] }
 0x5c7   : > { %4425 = vrot.lane.b32.xlu0 %v12383_v10, %s5850_s24  ;;  %4423 = vrot.lane.b32.xlu1 %v12384_v0, %s5850_s24 }
 0x5c9   : > { %v10364_v40 = vpop.permute.xlu0 %4168  ;;  %v10366_v11 = vpop.permute.xlu1 %4166 }
 0x5ca   : > { %12385 = vst [vmem:[#allocation12_spill] sm:$0xff] %v10364_v40  ;;  %12386 = vst [vmem:[#allocation117_spill] sm:$0xff] %v10366_v11  ;;  %v12395_v11 = vld [vmem:[#allocation228_spill] sm:$0xff] }
 0x5cb   : > { %4429 = vrot.lane.b32.xlu0 %v12387_v50, %s5850_s24  ;;  %4427 = vrot.lane.b32.xlu1 %v12388_v16, %s5850_s24 }
 0x5cd   : > { %v10372_v49 = vpop.permute.xlu0 %4172  ;;  %v10374_v8 = vpop.permute.xlu1 %4170 }
 0x5ce   : > { %12389 = vst [vmem:[#allocation132_spill] sm:$0xff] %v10372_v49  ;;  %12390 = vst [vmem:[#allocation152_spill] sm:$0xff] %v10374_v8  ;;  %v12398_v8 = vld [vmem:[#allocation155_spill] sm:$0xff] }
 0x5cf   : > { %4433 = vrot.lane.b32.xlu0 %v12391_v2, %s5850_s24  ;;  %4431 = vrot.lane.b32.xlu1 %v12392_v58, %s5850_s24 }
 0x5d1   : > { %v10380_v57 = vpop.permute.xlu0 %4176  ;;  %v10382_v40 = vpop.permute.xlu1 %4174 }
 0x5d2   : > { %12393 = vst [vmem:[#allocation149_spill] sm:$0xff] %v10380_v57  ;;  %12394 = vst [vmem:[#allocation154_spill] sm:$0xff] %v10382_v40  ;;  %v12400_v40 = vld [vmem:[#allocation54_spill] sm:$0xff] }
 0x5d3   : > { %4437 = vrot.lane.b32.xlu0 %v12395_v11, %s5850_s24  ;;  %4435 = vrot.lane.b32.xlu1 %v12396_v41, %s5850_s24 }
 0x5d5   : > { %v10388_v4 = vpop.permute.xlu0 %4180  ;;  %v10390_v49 = vpop.permute.xlu1 %4178 }
 0x5d6   : > { %12397 = vst [vmem:[#allocation21_spill] sm:$0xff] %v10390_v49 }
 0x5d7   : > { %4441 = vrot.lane.b32.xlu0 %v12398_v8, %s5850_s24  ;;  %4439 = vrot.lane.b32.xlu1 %v12399_v24, %s5850_s24 }
 0x5d9   : > { %v10396_v20 = vpop.permute.xlu0 %4184  ;;  %v10398_v57 = vpop.permute.xlu1 %4182 }
 0x5db   : > { %4445 = vrot.lane.b32.xlu0 %v9940_v35, %s5850_s24  ;;  %4443 = vrot.lane.b32.xlu1 %v12400_v40, %s5850_s24 }
 0x5dd   : > { %v10404_v38 = vpop.permute.xlu0 %4188  ;;  %v10406_v54 = vpop.permute.xlu1 %4186 }
 0x5de   : > { %12401 = vst [vmem:[#allocation157_spill] sm:$0xff] %v10404_v38 }
 0x5df   : > { %4527 = vrot.lane.b32.xlu0 %v12339_v55, %s5851_s25  ;;  %4447 = vrot.lane.b32.xlu1 %v9956_v53, %s5850_s24 }
 0x5e1   : > { %v10412_v49 = vpop.permute.xlu0 %4192  ;;  %v10414_v22 = vpop.permute.xlu1 %4190 }
 0x5e2   : > { %12402 = vst [vmem:[#allocation24_spill] sm:$0xff] %v10412_v49 }
 0x5e3   : > { %4531 = vrot.lane.b32.xlu0 %v12343_v5, %s5851_s25  ;;  %4529 = vrot.lane.b32.xlu1 %v12344_v23, %s5851_s25 }
 0x5e5   : > { %v10420_v47 = vpop.permute.xlu0 %4196  ;;  %v10422_v38 = vpop.permute.xlu1 %4194 }
 0x5e7   : > { %4535 = vrot.lane.b32.xlu0 %v12347_v39, %s5851_s25  ;;  %4533 = vrot.lane.b32.xlu1 %v12348_v34, %s5851_s25 }
 0x5e9   : > { %v10428_v55 = vpop.permute.xlu0 %4200  ;;  %v10430_v49 = vpop.permute.xlu1 %4198 }
 0x5eb   : > { %4539 = vrot.lane.b32.xlu0 %v12351_v27, %s5851_s25  ;;  %4537 = vrot.lane.b32.xlu1 %v12352_v12, %s5851_s25 }
 0x5ed   : > { %v10436_v5 = vpop.permute.xlu0 %4204  ;;  %v10438_v23 = vpop.permute.xlu1 %4202 }
 0x5ef   : > { %4543 = vrot.lane.b32.xlu0 %v12355_v15, %s5851_s25  ;;  %4541 = vrot.lane.b32.xlu1 %v12356_v61, %s5851_s25 }
 0x5f1   : > { %v10444_v34 = vpop.permute.xlu0 %4208  ;;  %v10446_v39 = vpop.permute.xlu1 %4206 }
 0x5f3   : > { %4547 = vrot.lane.b32.xlu0 %v12359_v14, %s5851_s25  ;;  %4545 = vrot.lane.b32.xlu1 %v12360_v9, %s5851_s25 }
 0x5f5   : > { %v10452_v12 = vpop.permute.xlu0 %4212  ;;  %v10454_v27 = vpop.permute.xlu1 %4210 }
 0x5f7   : > { %4551 = vrot.lane.b32.xlu0 %v12363_v13, %s5851_s25  ;;  %4549 = vrot.lane.b32.xlu1 %v12364_v37, %s5851_s25 }
 0x5f9   : > { %v10460_v61 = vpop.permute.xlu0 %4216  ;;  %v10462_v15 = vpop.permute.xlu1 %4214 }
 0x5fa   : > { %12403 = vst [vmem:[#allocation170_spill] sm:$0xff] %v10462_v15  ;;  %v12468_v15 = vld [vmem:[#allocation136_spill] sm:$0xff] }
 0x5fb   : > { %4555 = vrot.lane.b32.xlu0 %v12367_v60, %s5851_s25  ;;  %4553 = vrot.lane.b32.xlu1 %v12368_v56, %s5851_s25 }
 0x5fd   : > { %v10468_v9 = vpop.permute.xlu0 %4220  ;;  %v10470_v14 = vpop.permute.xlu1 %4218 }
 0x5fe   : > { %12404 = vst [vmem:[#allocation160_spill] sm:$0xff] %v10468_v9  ;;  %12405 = vst [vmem:[#allocation33_spill] sm:$0xff] %v10470_v14  ;;  %v12440_v14 = vld [vmem:[#allocation194_spill] sm:$0xff] }
 0x5ff   : > { %4559 = vrot.lane.b32.xlu0 %v12371_v36, %s5851_s25  ;;  %4557 = vrot.lane.b32.xlu1 %v12372_v45, %s5851_s25 }
 0x601   : > { %v10476_v37 = vpop.permute.xlu0 %4224  ;;  %v10478_v13 = vpop.permute.xlu1 %4222 }
 0x602   : > { %12406 = vst [vmem:[#allocation177_spill] sm:$0xff] %v10476_v37  ;;  %12407 = vst [vmem:[#allocation76_spill] sm:$0xff] %v10478_v13  ;;  %v12436_v13 = vld [vmem:[#allocation181_spill] sm:$0xff] }
 0x603   : > { %4563 = vrot.lane.b32.xlu0 %v12375_v33, %s5851_s25  ;;  %4561 = vrot.lane.b32.xlu1 %v12376_v6, %s5851_s25 }
 0x605   : > { %v10484_v56 = vpop.permute.xlu0 %4228  ;;  %v10486_v60 = vpop.permute.xlu1 %4226 }
 0x606   : > { %12408 = vst [vmem:[#allocation184_spill] sm:$0xff] %v10484_v56  ;;  %12409 = vst [vmem:[#allocation191_spill] sm:$0xff] %v10486_v60  ;;  %v12432_v60 = vld [vmem:[#allocation64_spill] sm:$0xff] }
 0x607   : > { %4567 = vrot.lane.b32.xlu0 %v12379_v7, %s5851_s25  ;;  %4565 = vrot.lane.b32.xlu1 %v12380_v59, %s5851_s25 }
 0x609   : > { %v10492_v45 = vpop.permute.xlu0 %4377  ;;  %v10494_v36 = vpop.permute.xlu1 %4230 }
 0x60a   : > { %12410 = vst [vmem:[#allocation42_spill] sm:$0xff] %v10492_v45  ;;  %12411 = vst [vmem:[#allocation200_spill] sm:$0xff] %v10494_v36  ;;  %v12430_v36 = vld [vmem:[#allocation27_spill] sm:$0xff] }
 0x60b   : > { %4571 = vrot.lane.b32.xlu0 %v12383_v10, %s5851_s25  ;;  %4569 = vrot.lane.b32.xlu1 %v12384_v0, %s5851_s25 }
 0x60d   : > { %v10500_v6 = vpop.permute.xlu0 %4381  ;;  %v10502_v33 = vpop.permute.xlu1 %4379 }
 0x60e   : > { %12412 = vst [vmem:[#allocation48_spill] sm:$0xff] %v10500_v6  ;;  %12413 = vst [vmem:[#allocation204_spill] sm:$0xff] %v10502_v33  ;;  %v12428_v33 = vld [vmem:[#allocation153_spill] sm:$0xff] }
 0x60f   : > { %4575 = vrot.lane.b32.xlu0 %v12387_v50, %s5851_s25  ;;  %4573 = vrot.lane.b32.xlu1 %v12388_v16, %s5851_s25 }
 0x611   : > { %v10508_v59 = vpop.permute.xlu0 %4385  ;;  %v10510_v7 = vpop.permute.xlu1 %4383 }
 0x612   : > { %12414 = vst [vmem:[#allocation128_spill] sm:$0xff] %v10508_v59  ;;  %12415 = vst [vmem:[#allocation89_spill] sm:$0xff] %v10510_v7  ;;  %v12426_v7 = vld [vmem:[#allocation150_spill] sm:$0xff] }
 0x613   : > { %4579 = vrot.lane.b32.xlu0 %v12391_v2, %s5851_s25  ;;  %4577 = vrot.lane.b32.xlu1 %v12392_v58, %s5851_s25 }
 0x615   : > { %v10516_v0 = vpop.permute.xlu0 %4389  ;;  %v10518_v10 = vpop.permute.xlu1 %4387 }
 0x616   : > { %12416 = vst [vmem:[#allocation158_spill] sm:$0xff] %v10516_v0  ;;  %12417 = vst [vmem:[#allocation221_spill] sm:$0xff] %v10518_v10  ;;  %v12424_v10 = vld [vmem:[#allocation18_spill] sm:$0xff] }
 0x617   : > { %4583 = vrot.lane.b32.xlu0 %v12395_v11, %s5851_s25  ;;  %4581 = vrot.lane.b32.xlu1 %v12396_v41, %s5851_s25 }
 0x619   : > { %v10524_v16 = vpop.permute.xlu0 %4393  ;;  %v10526_v50 = vpop.permute.xlu1 %4391 }
 0x61a   : > { %12418 = vst [vmem:[#allocation220_spill] sm:$0xff] %v10524_v16  ;;  %12419 = vst [vmem:[#allocation228_spill] sm:$0xff] %v10526_v50  ;;  %v12422_v50 = vld [vmem:[#allocation121_spill] sm:$0xff] }
 0x61b   : > { %4587 = vrot.lane.b32.xlu0 %v12398_v8, %s5851_s25  ;;  %4585 = vrot.lane.b32.xlu1 %v12399_v24, %s5851_s25 }
 0x61d   : > { %v10532_v58 = vpop.permute.xlu0 %4397  ;;  %v10534_v2 = vpop.permute.xlu1 %4395 }
 0x61e   : > { %12420 = vst [vmem:[#allocation224_spill] sm:$0xff] %v10534_v2  ;;  %v12421_v2 = vld [vmem:[#allocation99_spill] sm:$0xff] }
 0x61f   : > { %4591 = vrot.lane.b32.xlu0 %v9940_v35, %s5851_s25  ;;  %4589 = vrot.lane.b32.xlu1 %v12400_v40, %s5851_s25 }
 0x621   : > { %v10540_v41 = vpop.permute.xlu0 %4401  ;;  %v10542_v11 = vpop.permute.xlu1 %4399 }
 0x623   : > { %4595 = vrot.lane.b32.xlu0 %v9973_v28, %s5851_s25  ;;  %4593 = vrot.lane.b32.xlu1 %v9956_v53, %s5851_s25  ;;  %v12423_v28 = vld [vmem:[#allocation125_spill] sm:$0xff] }
 0x625   : > { %v10548_v24 = vpop.permute.xlu0 %4405  ;;  %v10550_v8 = vpop.permute.xlu1 %4403 }
 0x627   : > { %4744 = vrot.lane.b32.xlu0 %v12421_v2, %s5852_s26  ;;  %4597 = vrot.lane.b32.xlu1 %v9990_v3, %s5851_s25  ;;  %v12425_v2 = vld [vmem:[#allocation15_spill] sm:$0xff] }
 0x629   : > { %v10556_v35 = vpop.permute.xlu0 %4409  ;;  %v10558_v40 = vpop.permute.xlu1 %4407 }
 0x62b   : > { %4748 = vrot.lane.b32.xlu0 %v12422_v50, %s5852_s26  ;;  %4746 = vrot.lane.b32.xlu1 %v12423_v28, %s5852_s26  ;;  %v12427_v50 = vld [vmem:[#allocation135_spill] sm:$0xff] }
 0x62d   : > { %v10564_v53 = vpop.permute.xlu0 %4413  ;;  %v10566_v16 = vpop.permute.xlu1 %4411 }
 0x62f   : > { %4752 = vrot.lane.b32.xlu0 %v12424_v10, %s5852_s26  ;;  %4750 = vrot.lane.b32.xlu1 %v12425_v2, %s5852_s26  ;;  %v12429_v10 = vld [vmem:[#allocation137_spill] sm:$0xff] }
 0x631   : > { %v10572_v3 = vpop.permute.xlu0 %4417  ;;  %v10574_v0 = vpop.permute.xlu1 %4415 }
 0x633   : > { %4756 = vrot.lane.b32.xlu0 %v12426_v7, %s5852_s26  ;;  %4754 = vrot.lane.b32.xlu1 %v12427_v50, %s5852_s26  ;;  %v12431_v7 = vld [vmem:[#allocation169_spill] sm:$0xff] }
 0x635   : > { %v10580_v28 = vpop.permute.xlu0 %4421  ;;  %v10582_v59 = vpop.permute.xlu1 %4419 }
 0x637   : > { %4760 = vrot.lane.b32.xlu0 %v12428_v33, %s5852_s26  ;;  %4758 = vrot.lane.b32.xlu1 %v12429_v10, %s5852_s26  ;;  %v12433_v33 = vld [vmem:[#allocation171_spill] sm:$0xff] }
 0x639   : > { %v10588_v2 = vpop.permute.xlu0 %4425  ;;  %v10590_v6 = vpop.permute.xlu1 %4423 }
 0x63b   : > { %4764 = vrot.lane.b32.xlu0 %v12430_v36, %s5852_s26  ;;  %4762 = vrot.lane.b32.xlu1 %v12431_v7, %s5852_s26  ;;  %v12437_v36 = vld [vmem:[#allocation182_spill] sm:$0xff] }
 0x63d   : > { %v10596_v50 = vpop.permute.xlu0 %4429  ;;  %v10598_v45 = vpop.permute.xlu1 %4427 }
 0x63f   : > { %4768 = vrot.lane.b32.xlu0 %v12432_v60, %s5852_s26  ;;  %4766 = vrot.lane.b32.xlu1 %v12433_v33, %s5852_s26  ;;  %v12441_v60 = vld [vmem:[#allocation187_spill] sm:$0xff] }
 0x641   : > { %v10604_v10 = vpop.permute.xlu0 %4433  ;;  %v10606_v56 = vpop.permute.xlu1 %4431 }
 0x642   : > { %12434 = vst [vmem:[#allocation155_spill] sm:$0xff] %v10604_v10  ;;  %12435 = vst [vmem:[#allocation28_spill] sm:$0xff] %v10606_v56  ;;  %v12444_v56 = vld [vmem:[#allocation45_spill] sm:$0xff] }
 0x643   : > { %4772 = vrot.lane.b32.xlu0 %v12436_v13, %s5852_s26  ;;  %4770 = vrot.lane.b32.xlu1 %v12437_v36, %s5852_s26  ;;  %v12445_v13 = vld [vmem:[#allocation77_spill] sm:$0xff] }
 0x645   : > { %v10612_v7 = vpop.permute.xlu0 %4437  ;;  %v10614_v37 = vpop.permute.xlu1 %4435 }
 0x646   : > { %12438 = vst [vmem:[#allocation54_spill] sm:$0xff] %v10612_v7  ;;  %12439 = vst [vmem:[#allocation99_spill] sm:$0xff] %v10614_v37  ;;  %v12448_v37 = vld [vmem:[#allocation201_spill] sm:$0xff] }
 0x647   : > { %4776 = vrot.lane.b32.xlu0 %v12440_v14, %s5852_s26  ;;  %4774 = vrot.lane.b32.xlu1 %v12441_v60, %s5852_s26  ;;  %v12449_v14 = vld [vmem:[#allocation51_spill] sm:$0xff] }
 0x649   : > { %v10620_v33 = vpop.permute.xlu0 %4441  ;;  %v10622_v9 = vpop.permute.xlu1 %4439 }
 0x64a   : > { %12442 = vst [vmem:[#allocation121_spill] sm:$0xff] %v10620_v33  ;;  %12443 = vst [vmem:[#allocation125_spill] sm:$0xff] %v10622_v9  ;;  %v12452_v9 = vld [vmem:[#allocation70_spill] sm:$0xff] }
 0x64b   : > { %4780 = vrot.lane.b32.xlu0 %v12444_v56, %s5852_s26  ;;  %4778 = vrot.lane.b32.xlu1 %v12445_v13, %s5852_s26  ;;  %v12453_v56 = vld [vmem:[#allocation129_spill] sm:$0xff] }
 0x64d   : > { %v10628_v36 = vpop.permute.xlu0 %4445  ;;  %v10630_v7 = vpop.permute.xlu1 %4443 }
 0x64e   : > { %12446 = vst [vmem:[#allocation18_spill] sm:$0xff] %v10628_v36  ;;  %12447 = vst [vmem:[#allocation15_spill] sm:$0xff] %v10630_v7  ;;  %v12456_v7 = vld [vmem:[#allocation216_spill] sm:$0xff] }
 0x64f   : > { %4784 = vrot.lane.b32.xlu0 %v12448_v37, %s5852_s26  ;;  %4782 = vrot.lane.b32.xlu1 %v12449_v14, %s5852_s26  ;;  %v12457_v37 = vld [vmem:[#allocation86_spill] sm:$0xff] }
 0x651   : > { %v10636_v60 = vpop.permute.xlu0 %4527  ;;  %v10638_v33 = vpop.permute.xlu1 %4447 }
 0x652   : > { %12450 = vst [vmem:[#allocation150_spill] sm:$0xff] %v10636_v60  ;;  %12451 = vst [vmem:[#allocation135_spill] sm:$0xff] %v10638_v33  ;;  %v12460_v33 = vld [vmem:[#allocation106_spill] sm:$0xff] }
 0x653   : > { %4788 = vrot.lane.b32.xlu0 %v12452_v9, %s5852_s26  ;;  %4786 = vrot.lane.b32.xlu1 %v12453_v56, %s5852_s26  ;;  %v12461_v9 = vld [vmem:[#allocation214_spill] sm:$0xff] }
 0x654   : > { %v12462_v56 = vld [vmem:[#allocation118_spill] sm:$0xff] }
 0x655   : > { %v10644_v13 = vpop.permute.xlu0 %4531  ;;  %v10646_v36 = vpop.permute.xlu1 %4529 }
 0x656   : > { %12454 = vst [vmem:[#allocation153_spill] sm:$0xff] %v10644_v13  ;;  %12455 = vst [vmem:[#allocation137_spill] sm:$0xff] %v10646_v36  ;;  %v3695_v13 = vadd.f32 %v10026_v42, %v12462_v56 }
 0x657   : > { %4792 = vrot.lane.b32.xlu0 %v12456_v7, %s5852_s26  ;;  %4790 = vrot.lane.b32.xlu1 %v12457_v37, %s5852_s26  ;;  %v12465_v37 = vld [vmem:[#allocation138_spill] sm:$0xff] }
 0x658   : > { %v3910_v7 = vadd.f32 %v10034_v29, %v3695_v13 }
 0x659   : > { %v10652_v14 = vpop.permute.xlu0 %4535  ;;  %v10654_v60 = vpop.permute.xlu1 %4533 }
 0x65a   : > { %12458 = vst [vmem:[#allocation27_spill] sm:$0xff] %v10652_v14  ;;  %12459 = vst [vmem:[#allocation169_spill] sm:$0xff] %v10654_v60  ;;  %v12466_v60 = vld [vmem:[#allocation120_spill] sm:$0xff]  ;;  %v12467_v14 = vld [vmem:[#allocation134_spill] sm:$0xff]  ;;  %v4060_v42 = vadd.f32 %v10066_v43, %v3910_v7 }
 0x65b   : > { %4796 = vrot.lane.b32.xlu0 %v12460_v33, %s5852_s26  ;;  %4794 = vrot.lane.b32.xlu1 %v12461_v9, %s5852_s26  ;;  %v3696_v33 = vadd.f32 %v10036_v63, %v12467_v14  ;;  %v3697_v9 = vadd.f32 %v10050_v46, %v12468_v15  ;;  %v12470_v63 = vld [vmem:[#allocation73_spill] sm:$0xff]  ;;  %v12472_v43 = vld [vmem:[#allocation166_spill] sm:$0xff] }
 0x65c   : > { %v12471_v46 = vld [vmem:[#allocation25_spill] sm:$0xff]  ;;  %v3699_v15 = vadd.f32 %v10074_v26, %v12472_v43 }
 0x65d   : > { %v10662_v36 = vpop.permute.xlu0 %4539  ;;  %v10664_v10 = vpop.permute.xlu1 %4537  ;;  %v3911_v29 = vadd.f32 %v10044_v19, %v3696_v33  ;;  %v3912_v13 = vadd.f32 %v10058_v21, %v3697_v9  ;;  %v12473_v26 = vld [vmem:[#allocation165_spill] sm:$0xff] }
 0x65e   : > { %12463 = vst [vmem:[#allocation64_spill] sm:$0xff] %v10662_v36  ;;  %12464 = vst [vmem:[#allocation171_spill] sm:$0xff] %v10664_v10  ;;  %v12469_v10 = vld [vmem:[#allocation161_spill] sm:$0xff] }
 0x65f   : > { %4800 = vrot.lane.b32.xlu0 %v12465_v37, %s5852_s26  ;;  %4798 = vrot.lane.b32.xlu1 %v12466_v60, %s5852_s26  ;;  %v4278_v37 = vadd.f32 %v10388_v4, %v4060_v42  ;;  %v3698_v60 = vadd.f32 %v10060_v44, %v12469_v10  ;;  %v4061_v14 = vadd.f32 %v10076_v17, %v3911_v29  ;;  %v12474_v29 = vld [vmem:[#allocation168_spill] sm:$0xff] }
 0x660   : > { %v4062_v19 = vadd.f32 %v10091_v62, %v3912_v13  ;;  %v3914_v44 = vadd.f32 %v10083_v31, %v3699_v15  ;;  %v3700_v17 = vadd.f32 %v10085_v32, %v12473_v26  ;;  %v3701_v62 = vadd.f32 %v10099_v48, %v12474_v29  ;;  %v12486_v26 = vld [vmem:[#allocation113_spill] sm:$0xff] }
 0x661   : > { %v10676_v56 = vpop.permute.xlu0 %4543  ;;  %v10678_v36 = vpop.permute.xlu1 %4541  ;;  %v4495_v21 = vadd.f32 %v10532_v58, %v4278_v37  ;;  %v3913_v4 = vadd.f32 %v10068_v18, %v3698_v60  ;;  %v4279_v9 = vadd.f32 %v10398_v57, %v4061_v14  ;;  %v12475_v18 = vld [vmem:[#allocation95_spill] sm:$0xff]  ;;  %v12476_v60 = vld [vmem:[#allocation157_spill] sm:$0xff]  ;;  %v12480_v14 = vld [vmem:[#allocation20_spill] sm:$0xff] }
 0x662   : > { %v4280_v10 = vadd.f32 %v10396_v20, %v4062_v19  ;;  %v4064_v20 = vadd.f32 %v10115_v25, %v3914_v44  ;;  %v3915_v13 = vadd.f32 %v10093_v51, %v3700_v17  ;;  %v3916_v32 = vadd.f32 %v10107_v52, %v3701_v62  ;;  %v12478_v25 = vld [vmem:[#allocation14_spill] sm:$0xff]  ;;  %v12481_v51 = vld [vmem:[#allocation159_spill] sm:$0xff]  ;;  %v12483_v19 = vld [vmem:[#allocation29_spill] sm:$0xff] }
 0x663   : > { %4804 = vrot.lane.b32.xlu0 %v12470_v63, %s5852_s26  ;;  %4802 = vrot.lane.b32.xlu1 %v12471_v46, %s5852_s26  ;;  %v4063_v31 = vadd.f32 %v10101_v30, %v3913_v4  ;;  %v4496_v58 = vadd.f32 %v10542_v11, %v4279_v9  ;;  %v12477_v30 = vld [vmem:[#allocation167_spill] sm:$0xff] }
 0x664   : > { %v4497_v57 = vadd.f32 %v10540_v41, %v4280_v10  ;;  %v4282_v63 = vadd.f32 %v12476_v60, %v4064_v20  ;;  %v3702_v15 = vadd.f32 %v12478_v25, %v12477_v30  ;;  %v12479_v41 = vld [vmem:[#allocation172_spill] sm:$0xff]  ;;  %v12482_v52 = vld [vmem:[#allocation79_spill] sm:$0xff]  ;;  %v12492_v60 = vld [vmem:[#allocation105_spill] sm:$0xff] }
 0x665   : > { %v4548_v7 = vpop.permute.xlu0 %4547  ;;  %v10695_v33 = vpop.permute.xlu1 %4545  ;;  %v3703_v11 = vadd.f32 %v12480_v14, %v12479_v41  ;;  %v12484_v4 = vld [vmem:[#allocation35_spill] sm:$0xff]  ;;  %v12496_v14 = vld [vmem:[#allocation84_spill] sm:$0xff] }
 0x666   : > { %v10700_v42 = vadd.f32 %v4548_v7, %v4495_v21  ;;  %v4065_v21 = vadd.f32 %v12483_v19, %v3915_v13  ;;  %v4499_v7 = vadd.f32 %v10548_v24, %v4282_v63  ;;  %v12485_v10 = vld [vmem:[#allocation23_spill] sm:$0xff]  ;;  %v12488_v13 = vld [vmem:[#allocation173_spill] sm:$0xff] }
 0x667   : > { %4808 = vrot.lane.b32.xlu0 %v9943_v1, %s5852_s26  ;;  %4806 = vrot.lane.b32.xlu1 %v12475_v18, %s5852_s26  ;;  %v4281_v1 = vadd.f32 %v10406_v54, %v4063_v31  ;;  %v4066_v54 = vadd.f32 %v12484_v4, %v3916_v32  ;;  %v3917_v9 = vadd.f32 %v12485_v10, %v3702_v15  ;;  %v12487_v18 = vld [vmem:[#allocation24_spill] sm:$0xff]  ;;  %v12489_v32 = vld [vmem:[#allocation26_spill] sm:$0xff]  ;;  %v12490_v24 = vld [vmem:[#allocation175_spill] sm:$0xff] }
 0x668   : > { %v3918_v17 = vadd.f32 %v12486_v26, %v3703_v11  ;;  %v4283_v20 = vadd.f32 %v10414_v22, %v4065_v21  ;;  %v12493_v63 = vld [vmem:[#allocation55_spill] sm:$0xff]  ;;  %v12498_v10 = vld [vmem:[#allocation185_spill] sm:$0xff] }
 0x669   : > { %v4552_v37 = vpop.permute.xlu0 %4551  ;;  %v4550_v48 = vpop.permute.xlu1 %4549  ;;  %v4498_v44 = vadd.f32 %v10550_v8, %v4281_v1  ;;  %v4284_v31 = vadd.f32 %v12487_v18, %v4066_v54  ;;  %v12494_v1 = vld [vmem:[#allocation32_spill] sm:$0xff]  ;;  %v12495_v25 = vld [vmem:[#allocation47_spill] sm:$0xff] }
 0x66a   : > { %v10718_v46 = vadd.f32 %v4552_v37, %v4497_v57  ;;  %v10720_v43 = vadd.f32 %v4550_v48, %v4496_v58  ;;  %v3704_v37 = vadd.f32 %v12489_v32, %v12488_v13  ;;  %v12491_v48 = vld [vmem:[#allocation110_spill] sm:$0xff]  ;;  %v4067_v30 = vadd.f32 %v12494_v1, %v3917_v9  ;;  %v12504_v18 = vld [vmem:[#allocation127_spill] sm:$0xff] }
 0x66b   : > { %4812 = vrot.lane.b32.xlu0 %v12481_v51, %s5852_s26  ;;  %4810 = vrot.lane.b32.xlu1 %v12482_v52, %s5852_s26  ;;  %v3705_v8 = vadd.f32 %v12491_v48, %v12490_v24  ;;  %v4068_v22 = vadd.f32 %v12495_v25, %v3918_v17  ;;  %v4501_v15 = vadd.f32 %v10556_v35, %v4284_v31  ;;  %v12497_v51 = vld [vmem:[#allocation41_spill] sm:$0xff]  ;;  %v12499_v9 = vld [vmem:[#allocation38_spill] sm:$0xff]  ;;  %v12500_v35 = vld [vmem:[#allocation39_spill] sm:$0xff] }
 0x66c   : > { %v4500_v41 = vadd.f32 %v10558_v40, %v4283_v20  ;;  %v3919_v11 = vadd.f32 %v12496_v14, %v3704_v37  ;;  %v4285_v54 = vadd.f32 %v10422_v38, %v4067_v30  ;;  %v3706_v26 = vadd.f32 %v12499_v9, %v12498_v10  ;;  %v12501_v17 = vld [vmem:[#allocation6_spill] sm:$0xff]  ;;  %v12505_v31 = vld [vmem:[#allocation148_spill] sm:$0xff]  ;;  %v12506_v32 = vld [vmem:[#allocation131_spill] sm:$0xff] }
 0x66d   : > { %v4556_v29 = vpop.permute.xlu0 %4555  ;;  %v4554_v62 = vpop.permute.xlu1 %4553  ;;  %v3920_v52 = vadd.f32 %v12497_v51, %v3705_v8  ;;  %v4286_v4 = vadd.f32 %v10420_v47, %v4068_v22  ;;  %v3707_v40 = vadd.f32 %v12501_v17, %v12500_v35  ;;  %v12507_v24 = vld [vmem:[#allocation44_spill] sm:$0xff]  ;;  %v12511_v14 = vld [vmem:[#allocation163_spill] sm:$0xff] }
 0x66e   : > { %v10738_v57 = vadd.f32 %v4556_v29, %v4499_v7  ;;  %v10740_v58 = vadd.f32 %v4554_v62, %v4498_v44  ;;  %v12502_v29 = vld [vmem:[#allocation126_spill] sm:$0xff]  ;;  %v4069_v47 = vadd.f32 %v12504_v18, %v3919_v11  ;;  %v4502_v13 = vadd.f32 %v10566_v16, %v4285_v54  ;;  %v12508_v22 = vld [vmem:[#allocation196_spill] sm:$0xff]  ;;  %v12516_v54 = vld [vmem:[#allocation145_spill] sm:$0xff] }
 0x66f   : > { %4961 = vrot.lane.b32.xlu0 %v12492_v60, %s5853_s27  ;;  %4814 = vrot.lane.b32.xlu1 %v12493_v63, %s5852_s26  ;;  %v12503_v62 = vld [vmem:[#allocation114_spill] sm:$0xff]  ;;  %v4070_v38 = vadd.f32 %v12505_v31, %v3920_v52  ;;  %v4503_v20 = vadd.f32 %v10564_v53, %v4286_v4  ;;  %v3921_v37 = vadd.f32 %v12506_v32, %v3706_v26  ;;  %v12510_v53 = vld [vmem:[#allocation197_spill] sm:$0xff]  ;;  %v12512_v11 = vld [vmem:[#allocation144_spill] sm:$0xff] }
 0x670   : > { %v3922_v48 = vadd.f32 %v12507_v24, %v3707_v40  ;;  %v4287_v1 = vadd.f32 %v10430_v49, %v4069_v47  ;;  %v3709_v16 = vadd.f32 %v12511_v14, %v12510_v53  ;;  %v12513_v51 = vld [vmem:[#allocation140_spill] sm:$0xff]  ;;  %v12514_v52 = vld [vmem:[#allocation162_spill] sm:$0xff]  ;;  %v12523_v32 = vld [vmem:[#allocation143_spill] sm:$0xff] }
 0x671   : > { %v4560_v19 = vpop.permute.xlu0 %4559  ;;  %v4558_v21 = vpop.permute.xlu1 %4557  ;;  %v4288_v63 = vadd.f32 %v10428_v55, %v4070_v38  ;;  %v4071_v55 = vadd.f32 %v12514_v52, %v3921_v37  ;;  %v12517_v9 = vld [vmem:[#allocation4_spill] sm:$0xff]  ;;  %v12518_v47 = vld [vmem:[#allocation198_spill] sm:$0xff]  ;;  %v12524_v37 = vld [vmem:[#allocation61_spill] sm:$0xff] }
 0x672   : > { %v10758_v7 = vadd.f32 %v4560_v19, %v4501_v15  ;;  %v10760_v44 = vadd.f32 %v4558_v21, %v4500_v41  ;;  %v12509_v15 = vld [vmem:[#allocation53_spill] sm:$0xff]  ;;  %v12515_v19 = vld [vmem:[#allocation3_spill] sm:$0xff]  ;;  %v4504_v4 = vadd.f32 %v10574_v0, %v4287_v1  ;;  %v3924_v26 = vadd.f32 %v12517_v9, %v3709_v16  ;;  %v12519_v31 = vld [vmem:[#allocation82_spill] sm:$0xff] }
 0x673   : > { %4965 = vrot.lane.b32.xlu0 %v12502_v29, %s5853_s27  ;;  %4963 = vrot.lane.b32.xlu1 %v12503_v62, %s5853_s27  ;;  %v3708_v41 = vadd.f32 %v12509_v15, %v12508_v22  ;;  %v4072_v49 = vadd.f32 %v12515_v19, %v3922_v48  ;;  %v4505_v21 = vadd.f32 %v10572_v3, %v4288_v63  ;;  %v12520_v3 = vld [vmem:[#allocation199_spill] sm:$0xff]  ;;  %v12525_v24 = vld [vmem:[#allocation80_spill] sm:$0xff]  ;;  %v12527_v1 = vld [vmem:[#allocation58_spill] sm:$0xff] }
 0x674   : > { %v4289_v29 = vadd.f32 %v10438_v23, %v4071_v55  ;;  %v3710_v38 = vadd.f32 %v12519_v31, %v12518_v47  ;;  %v4074_v23 = vadd.f32 %v12525_v24, %v3924_v26  ;;  %v12529_v52 = vld [vmem:[#allocation174_spill] sm:$0xff]  ;;  %v12531_v19 = vld [vmem:[#allocation83_spill] sm:$0xff]  ;;  %v12536_v26 = vld [vmem:[#allocation69_spill] sm:$0xff] }
 0x675   : > { %v4564_v8 = vpop.permute.xlu0 %4563  ;;  %v4562_v60 = vpop.permute.xlu1 %4561  ;;  %v3923_v10 = vadd.f32 %v12516_v54, %v3708_v41  ;;  %v4290_v40 = vadd.f32 %v10436_v5, %v4072_v49  ;;  %v12532_v49 = vld [vmem:[#allocation164_spill] sm:$0xff]  ;;  %v12535_v54 = vld [vmem:[#allocation67_spill] sm:$0xff] }
 0x676   : > { %v10778_v30 = vadd.f32 %v4564_v8, %v4503_v20  ;;  %v10780_v25 = vadd.f32 %v4562_v60, %v4502_v13  ;;  %v12521_v20 = vld [vmem:[#allocation50_spill] sm:$0xff]  ;;  %v12522_v13 = vld [vmem:[#allocation151_spill] sm:$0xff]  ;;  %v4506_v8 = vadd.f32 %v10582_v59, %v4289_v29  ;;  %v4292_v53 = vadd.f32 %v10444_v34, %v4074_v23  ;;  %v12543_v24 = vld [vmem:[#allocation180_spill] sm:$0xff] }
 0x677   : > { %4969 = vrot.lane.b32.xlu0 %v12512_v11, %s5853_s27  ;;  %4967 = vrot.lane.b32.xlu1 %v12513_v51, %s5853_s27  ;;  %v3711_v0 = vadd.f32 %v12521_v20, %v12520_v3  ;;  %v4073_v5 = vadd.f32 %v12524_v37, %v3923_v10  ;;  %v4507_v48 = vadd.f32 %v10580_v28, %v4290_v40  ;;  %v12526_v60 = vld [vmem:[#allocation75_spill] sm:$0xff]  ;;  %v12530_v28 = vld [vmem:[#allocation205_spill] sm:$0xff]  ;;  %v12544_v23 = vld [vmem:[#allocation100_spill] sm:$0xff] }
 0x678   : > { %v3925_v63 = vadd.f32 %v12526_v60, %v3710_v38  ;;  %v12528_v51 = vld [vmem:[#allocation203_spill] sm:$0xff]  ;;  %v3713_v59 = vadd.f32 %v12531_v19, %v12530_v28  ;;  %v4509_v10 = vadd.f32 %v10588_v2, %v4292_v53  ;;  %v12540_v2 = vld [vmem:[#allocation213_spill] sm:$0xff] }
 0x679   : > { %v4568_v35 = vpop.permute.xlu0 %4567  ;;  %v4566_v17 = vpop.permute.xlu1 %4565  ;;  %v3926_v22 = vadd.f32 %v12527_v1, %v3711_v0  ;;  %v4291_v14 = vadd.f32 %v10446_v39, %v4073_v5  ;;  %v3712_v55 = vadd.f32 %v12529_v52, %v12528_v51  ;;  %v12538_v0 = vld [vmem:[#allocation206_spill] sm:$0xff]  ;;  %v12541_v37 = vld [vmem:[#allocation7_spill] sm:$0xff] }
 0x67a   : > { %v10798_v62 = vadd.f32 %v4568_v35, %v4505_v21  ;;  %v10800_v18 = vadd.f32 %v4566_v17, %v4504_v4  ;;  %v12533_v21 = vld [vmem:[#allocation139_spill] sm:$0xff]  ;;  %v12534_v4 = vld [vmem:[#allocation81_spill] sm:$0xff]  ;;  %v12542_v5 = vld [vmem:[#allocation30_spill] sm:$0xff] }
 0x67b   : > { %4973 = vrot.lane.b32.xlu0 %v12522_v13, %s5853_s27  ;;  %4971 = vrot.lane.b32.xlu1 %v12523_v32, %s5853_s27  ;;  %v4075_v34 = vadd.f32 %v12534_v4, %v3925_v63  ;;  %v4076_v39 = vadd.f32 %v12535_v54, %v3926_v22  ;;  %v4508_v9 = vadd.f32 %v10590_v6, %v4291_v14  ;;  %v12537_v17 = vld [vmem:[#allocation85_spill] sm:$0xff]  ;;  %v12539_v13 = vld [vmem:[#allocation87_spill] sm:$0xff]  ;;  %v12546_v63 = vld [vmem:[#allocation92_spill] sm:$0xff] }
 0x67c   : > { %v3927_v35 = vadd.f32 %v12536_v26, %v3712_v55  ;;  %v3928_v40 = vadd.f32 %v12537_v17, %v3713_v59  ;;  %v3714_v32 = vadd.f32 %v12539_v13, %v12538_v0  ;;  %v3715_v6 = vadd.f32 %v12541_v37, %v12540_v2  ;;  %v12547_v22 = vld [vmem:[#allocation91_spill] sm:$0xff]  ;;  %v12548_v51 = vld [vmem:[#allocation170_spill] sm:$0xff]  ;;  %v12553_v4 = vld [vmem:[#allocation36_spill] sm:$0xff] }
 0x67d   : > { %v4572_v15 = vpop.permute.xlu0 %4571  ;;  %v4570_v41 = vpop.permute.xlu1 %4569  ;;  %v4294_v31 = vadd.f32 %v10452_v12, %v4076_v39  ;;  %v4293_v38 = vadd.f32 %v10454_v27, %v4075_v34  ;;  %v12549_v19 = vld [vmem:[#allocation103_spill] sm:$0xff]  ;;  %v12550_v59 = vld [vmem:[#allocation74_spill] sm:$0xff]  ;;  %v12555_v54 = vld [vmem:[#allocation212_spill] sm:$0xff] }
 0x67e   : > { %v10818_v16 = vadd.f32 %v4572_v15, %v4507_v48  ;;  %v10820_v11 = vadd.f32 %v4570_v41, %v4506_v8  ;;  %v4077_v12 = vadd.f32 %v12544_v23, %v3927_v35  ;;  %v12545_v48 = vld [vmem:[#allocation146_spill] sm:$0xff]  ;;  %v3929_v1 = vadd.f32 %v12546_v63, %v3714_v32  ;;  %v12554_v34 = vld [vmem:[#allocation183_spill] sm:$0xff]  ;;  %v12558_v35 = vld [vmem:[#allocation28_spill] sm:$0xff] }
 0x67f   : > { %4977 = vrot.lane.b32.xlu0 %v12532_v49, %s5853_s27  ;;  %4975 = vrot.lane.b32.xlu1 %v12533_v21, %s5853_s27  ;;  %v4078_v27 = vadd.f32 %v12545_v48, %v3928_v40  ;;  %v4511_v8 = vadd.f32 %v10596_v50, %v4294_v31  ;;  %v4510_v60 = vadd.f32 %v10598_v45, %v4293_v38  ;;  %v12551_v50 = vld [vmem:[#allocation211_spill] sm:$0xff]  ;;  %v12552_v21 = vld [vmem:[#allocation88_spill] sm:$0xff]  ;;  %v12562_v2 = vld [vmem:[#allocation33_spill] sm:$0xff] }
 0x680   : > { %v3930_v15 = vadd.f32 %v12547_v22, %v3715_v6  ;;  %v4295_v52 = vadd.f32 %v12548_v51, %v4077_v12  ;;  %v3716_v49 = vadd.f32 %v12550_v59, %v12549_v19  ;;  %v3717_v45 = vadd.f32 %v12552_v21, %v12551_v50  ;;  %v12556_v39 = vld [vmem:[#allocation227_spill] sm:$0xff]  ;;  %v12561_v13 = vld [vmem:[#allocation160_spill] sm:$0xff]  ;;  %v12565_v48 = vld [vmem:[#allocation22_spill] sm:$0xff] }
 0x681   : > { %v4576_v29 = vpop.permute.xlu0 %4575  ;;  %v4574_v47 = vpop.permute.xlu1 %4573  ;;  %v4296_v14 = vadd.f32 %v10460_v61, %v4078_v27  ;;  %v12559_v40 = vld [vmem:[#allocation195_spill] sm:$0xff]  ;;  %v12566_v27 = vld [vmem:[#allocation193_spill] sm:$0xff]  ;;  %v12573_v19 = vld [vmem:[#allocation104_spill] sm:$0xff] }
 0x682   : > { %v10838_v3 = vadd.f32 %v4576_v29, %v4509_v10  ;;  %v10840_v20 = vadd.f32 %v4574_v47, %v4508_v9  ;;  %v4080_v61 = vadd.f32 %v12555_v54, %v3930_v15  ;;  %v4079_v10 = vadd.f32 %v12556_v39, %v3929_v1  ;;  %v12557_v9 = vld [vmem:[#allocation155_spill] sm:$0xff]  ;;  %v12568_v63 = vld [vmem:[#allocation189_spill] sm:$0xff]  ;;  %v12569_v1 = vld [vmem:[#allocation226_spill] sm:$0xff] }
 0x683   : > { %4985 = vrot.lane.b32.xlu0 %v12542_v5, %s5853_s27  ;;  %4983 = vrot.lane.b32.xlu1 %v12543_v24, %s5853_s27  ;;  %v4513_v26 = vadd.f32 %v12557_v9, %v4296_v14  ;;  %v4512_v17 = vadd.f32 %v12558_v35, %v4295_v52  ;;  %v3931_v29 = vadd.f32 %v12559_v40, %v3716_v49  ;;  %v12560_v47 = vld [vmem:[#allocation71_spill] sm:$0xff]  ;;  %v12563_v24 = vld [vmem:[#allocation225_spill] sm:$0xff]  ;;  %v12574_v59 = vld [vmem:[#allocation210_spill] sm:$0xff] }
 0x684   : > { %v3932_v31 = vadd.f32 %v12560_v47, %v3717_v45  ;;  %v4298_v32 = vadd.f32 %v12561_v13, %v4080_v61  ;;  %v4297_v37 = vadd.f32 %v12562_v2, %v4079_v10  ;;  %v12564_v23 = vld [vmem:[#allocation111_spill] sm:$0xff]  ;;  %v3685_v49 = vadd.f32 %v12574_v59, %v12573_v19  ;;  %v12575_v50 = vld [vmem:[#allocation65_spill] sm:$0xff]  ;;  %v12576_v45 = vld [vmem:[#allocation202_spill] sm:$0xff] }
 0x685   : > { %v4580_v41 = vpop.permute.xlu0 %4579  ;;  %v4578_v53 = vpop.permute.xlu1 %4577  ;;  %v3718_v12 = vadd.f32 %v12564_v23, %v12563_v24  ;;  %v12570_v15 = vld [vmem:[#allocation19_spill] sm:$0xff]  ;;  %v12577_v61 = vld [vmem:[#allocation177_spill] sm:$0xff]  ;;  %v12578_v10 = vld [vmem:[#allocation76_spill] sm:$0xff] }
 0x686   : > { %v10858_v55 = vadd.f32 %v4580_v41, %v4511_v8  ;;  %v10860_v28 = vadd.f32 %v4578_v53, %v4510_v60  ;;  %v3719_v8 = vadd.f32 %v12566_v27, %v12565_v48  ;;  %v12567_v60 = vld [vmem:[#allocation188_spill] sm:$0xff]  ;;  %v4082_v22 = vadd.f32 %v12569_v1, %v3932_v31  ;;  %v12571_v53 = vld [vmem:[#allocation54_spill] sm:$0xff]  ;;  %v12572_v51 = vld [vmem:[#allocation99_spill] sm:$0xff] }
 0x687   : > { %4989 = vrot.lane.b32.xlu0 %v12553_v4, %s5853_s27  ;;  %4987 = vrot.lane.b32.xlu1 %v12554_v34, %s5853_s27  ;;  %v4081_v41 = vadd.f32 %v12570_v15, %v3931_v29  ;;  %v4515_v14 = vadd.f32 %v12571_v53, %v4298_v32  ;;  %v4514_v52 = vadd.f32 %v12572_v51, %v4297_v37  ;;  %v12580_v29 = vld [vmem:[#allocation16_spill] sm:$0xff]  ;;  %v12581_v47 = vld [vmem:[#allocation209_spill] sm:$0xff]  ;;  %v12588_v27 = vld [vmem:[#allocation98_spill] sm:$0xff] }
 0x688   : > { %v3933_v21 = vadd.f32 %v12575_v50, %v3718_v12  ;;  %v3934_v4 = vadd.f32 %v12576_v45, %v3719_v8  ;;  %v4300_v39 = vadd.f32 %v12577_v61, %v4082_v22  ;;  %v3720_v31 = vadd.f32 %v12581_v47, %v12580_v29  ;;  %v12584_v13 = vld [vmem:[#allocation40_spill] sm:$0xff]  ;;  %v12585_v2 = vld [vmem:[#allocation57_spill] sm:$0xff]  ;;  %v12589_v8 = vld [vmem:[#allocation223_spill] sm:$0xff] }
 0x689   : > { %v4584_v38 = vpop.permute.xlu0 %4583  ;;  %v4582_v0 = vpop.permute.xlu1 %4581  ;;  %v4299_v9 = vadd.f32 %v12578_v10, %v4081_v41  ;;  %v12586_v24 = vld [vmem:[#allocation121_spill] sm:$0xff]  ;;  %v12591_v1 = vld [vmem:[#allocation222_spill] sm:$0xff]  ;;  %v12593_v53 = vld [vmem:[#allocation59_spill] sm:$0xff] }
 0x68a   : > { %v10878_v6 = vadd.f32 %v4584_v38, %v4513_v26  ;;  %v10880_v5 = vadd.f32 %v4582_v0, %v4512_v17  ;;  %v12579_v17 = vld [vmem:[#allocation218_spill] sm:$0xff]  ;;  %v12582_v38 = vld [vmem:[#allocation56_spill] sm:$0xff]  ;;  %v4084_v32 = vadd.f32 %v12584_v13, %v3934_v4  ;;  %v4083_v37 = vadd.f32 %v12585_v2, %v3933_v21  ;;  %v12587_v12 = vld [vmem:[#allocation125_spill] sm:$0xff] }
 0x68b   : > { %4993 = vrot.lane.b32.xlu0 %v12567_v60, %s5853_s27  ;;  %4991 = vrot.lane.b32.xlu1 %v12568_v63, %s5853_s27  ;;  %v3900_v40 = vadd.f32 %v12579_v17, %v3685_v49  ;;  %v12583_v0 = vld [vmem:[#allocation190_spill] sm:$0xff]  ;;  %v4517_v23 = vadd.f32 %v12586_v24, %v4300_v39  ;;  %v4516_v48 = vadd.f32 %v12587_v12, %v4299_v9  ;;  %v12590_v63 = vld [vmem:[#allocation101_spill] sm:$0xff]  ;;  %v12594_v19 = vld [vmem:[#allocation184_spill] sm:$0xff] }
 0x68c   : > { %v3686_v60 = vadd.f32 %v12589_v8, %v12588_v27  ;;  %v3687_v22 = vadd.f32 %v12591_v1, %v12590_v63  ;;  %v12592_v15 = vld [vmem:[#allocation37_spill] sm:$0xff]  ;;  %v4302_v59 = vadd.f32 %v12594_v19, %v4084_v32  ;;  %v12595_v49 = vld [vmem:[#allocation191_spill] sm:$0xff]  ;;  %v12598_v39 = vld [vmem:[#allocation72_spill] sm:$0xff] }
 0x68d   : > { %v4588_v34 = vpop.permute.xlu0 %4587  ;;  %v4586_v54 = vpop.permute.xlu1 %4585  ;;  %v4050_v41 = vadd.f32 %v12592_v15, %v3900_v40  ;;  %v4301_v50 = vadd.f32 %v12595_v49, %v4083_v37  ;;  %v12596_v4 = vld [vmem:[#allocation217_spill] sm:$0xff]  ;;  %v12599_v10 = vld [vmem:[#allocation62_spill] sm:$0xff]  ;;  %v12604_v13 = vld [vmem:[#allocation8_spill] sm:$0xff] }
 0x68e   : > { %v10900_v26 = vadd.f32 %v4588_v34, %v4515_v14  ;;  %v10902_v35 = vadd.f32 %v4586_v54, %v4514_v52  ;;  %v3935_v14 = vadd.f32 %v12593_v53, %v3720_v31  ;;  %v3901_v34 = vadd.f32 %v12596_v4, %v3686_v60  ;;  %v12597_v54 = vld [vmem:[#allocation229_spill] sm:$0xff]  ;;  %v12600_v9 = vld [vmem:[#allocation102_spill] sm:$0xff]  ;;  %v12605_v32 = vld [vmem:[#allocation123_spill] sm:$0xff] }
 0x68f   : > { %5001 = vrot.lane.b32.xlu0 %v12582_v38, %s5853_s27  ;;  %4995 = vrot.lane.b32.xlu1 %v12583_v0, %s5853_s27  ;;  %v3902_v61 = vadd.f32 %v12597_v54, %v3687_v22  ;;  %v4268_v17 = vadd.f32 %v12600_v9, %v4050_v41  ;;  %v12601_v40 = vld [vmem:[#allocation9_spill] sm:$0xff]  ;;  %v12602_v47 = vld [vmem:[#allocation18_spill] sm:$0xff]  ;;  %v12603_v38 = vld [vmem:[#allocation15_spill] sm:$0xff]  ;;  %v3688_v2 = vadd.f32 %v12605_v32, %v12604_v13 }
 0x690   : > { %v4085_v29 = vadd.f32 %v12601_v40, %v3935_v14  ;;  %v4519_v31 = vadd.f32 %v12602_v47, %v4302_v59  ;;  %v4518_v0 = vadd.f32 %v12603_v38, %v4301_v50  ;;  %v12606_v37 = vld [vmem:[#allocation97_spill] sm:$0xff]  ;;  %v12607_v24 = vld [vmem:[#allocation10_spill] sm:$0xff]  ;;  %v12609_v27 = vld [vmem:[#allocation107_spill] sm:$0xff] }
 0x691   : > { %v4592_v51 = vpop.permute.xlu0 %4591  ;;  %v4590_v52 = vpop.permute.xlu1 %4589  ;;  %v12608_v12 = vld [vmem:[#allocation46_spill] sm:$0xff]  ;;  %v4052_v8 = vadd.f32 %v12609_v27, %v3902_v61  ;;  %v12611_v15 = vld [vmem:[#allocation200_spill] sm:$0xff]  ;;  %v12615_v50 = vld [vmem:[#allocation207_spill] sm:$0xff] }
 0x692   : > { %v10923_v21 = vadd.f32 %v4592_v51, %v4517_v23  ;;  %v10925_v45 = vadd.f32 %v4590_v52, %v4516_v48  ;;  %v3689_v23 = vadd.f32 %v12607_v24, %v12606_v37  ;;  %v4051_v48 = vadd.f32 %v12608_v12, %v3901_v34  ;;  %v12610_v1 = vld [vmem:[#allocation42_spill] sm:$0xff]  ;;  %v12612_v51 = vld [vmem:[#allocation141_spill] sm:$0xff]  ;;  %v12614_v49 = vld [vmem:[#allocation208_spill] sm:$0xff] }
 0x693   : > { %5005 = vrot.lane.b32.xlu0 %v12598_v39, %s5853_s27  ;;  %5003 = vrot.lane.b32.xlu1 %v12599_v10, %s5853_s27  ;;  %v4485_v22 = vadd.f32 %v12610_v1, %v4268_v17  ;;  %v4303_v41 = vadd.f32 %v12611_v15, %v4085_v29  ;;  %v3903_v52 = vadd.f32 %v12612_v51, %v3688_v2  ;;  %v12613_v19 = vld [vmem:[#allocation34_spill] sm:$0xff]  ;;  %v12616_v4 = vld [vmem:[#allocation108_spill] sm:$0xff]  ;;  %v12617_v54 = vld [vmem:[#allocation115_spill] sm:$0xff] }
 0x694   : > { %v3904_v59 = vadd.f32 %v12613_v19, %v3689_v23  ;;  %v4270_v34 = vadd.f32 %v12616_v4, %v4052_v8  ;;  %v4269_v61 = vadd.f32 %v12617_v54, %v4051_v48  ;;  %v12618_v39 = vld [vmem:[#allocation150_spill] sm:$0xff]  ;;  %v12619_v9 = vld [vmem:[#allocation135_spill] sm:$0xff]  ;;  %v12620_v40 = vld [vmem:[#allocation109_spill] sm:$0xff] }
 0x695   : > { %v4596_v60 = vpop.permute.xlu0 %4595  ;;  %v4594_v63 = vpop.permute.xlu1 %4593  ;;  %v4635_v10 = vadd.f32 %v12618_v39, %v4485_v22  ;;  %v4520_v17 = vadd.f32 %v12619_v9, %v4303_v41  ;;  %v12621_v29 = vld [vmem:[#allocation31_spill] sm:$0xff]  ;;  %v12623_v38 = vld [vmem:[#allocation66_spill] sm:$0xff]  ;;  %v12626_v12 = vld [vmem:[#allocation48_spill] sm:$0xff] }
 0x696   : > { %v10945_v53 = vadd.f32 %v4596_v60, %v4519_v31  ;;  %v10947_v14 = vadd.f32 %v4594_v63, %v4518_v0  ;;  %v3690_v47 = vadd.f32 %v12621_v29, %v12620_v40  ;;  %v12622_v31 = vld [vmem:[#allocation119_spill] sm:$0xff]  ;;  %v12625_v2 = vld [vmem:[#allocation78_spill] sm:$0xff]  ;;  %v4487_v27 = vadd.f32 %v12626_v12, %v4270_v34  ;;  %v12627_v8 = vld [vmem:[#allocation204_spill] sm:$0xff] }
 0x697   : > { %5009 = vrot.lane.b32.xlu0 %v12614_v49, %s5853_s27  ;;  %5007 = vrot.lane.b32.xlu1 %v12615_v50, %s5853_s27  ;;  %v3691_v0 = vadd.f32 %v12623_v38, %v12622_v31  ;;  %v12624_v13 = vld [vmem:[#allocation179_spill] sm:$0xff]  ;;  %v4054_v37 = vadd.f32 %v12625_v2, %v3904_v59  ;;  %v4486_v48 = vadd.f32 %v12627_v8, %v4269_v61  ;;  %v12628_v1 = vld [vmem:[#allocation124_spill] sm:$0xff]  ;;  %v12629_v15 = vld [vmem:[#allocation130_spill] sm:$0xff] }
 0x698   : > { %v4053_v32 = vadd.f32 %v12624_v13, %v3903_v52  ;;  %v3905_v22 = vadd.f32 %v12628_v1, %v3690_v47  ;;  %v12630_v51 = vld [vmem:[#allocation219_spill] sm:$0xff]  ;;  %v12632_v19 = vld [vmem:[#allocation12_spill] sm:$0xff]  ;;  %v12633_v49 = vld [vmem:[#allocation117_spill] sm:$0xff] }
 0x699   : > { %v4745_v24 = vpop.permute.xlu0 %4744  ;;  %v4598_v23 = vpop.permute.xlu1 %4597  ;;  %v3906_v41 = vadd.f32 %v12629_v15, %v3691_v0  ;;  %v12631_v52 = vld [vmem:[#allocation215_spill] sm:$0xff]  ;;  %v4272_v59 = vadd.f32 %v12632_v19, %v4054_v37  ;;  %v12634_v4 = vld [vmem:[#allocation153_spill] sm:$0xff]  ;;  %v12636_v39 = vld [vmem:[#allocation122_spill] sm:$0xff] }
 0x69a   : > { %v10967_v60 = vadd.f32 %v4745_v24, %v4635_v10  ;;  %v10969_v63 = vadd.f32 %v4598_v23, %v4520_v17  ;;  %v4271_v50 = vadd.f32 %v12633_v49, %v4053_v32  ;;  %v4637_v34 = vadd.f32 %v12634_v4, %v4487_v27  ;;  %v12635_v54 = vld [vmem:[#allocation137_spill] sm:$0xff]  ;;  %v12637_v10 = vld [vmem:[#allocation142_spill] sm:$0xff]  ;;  %v12638_v17 = vld [vmem:[#allocation116_spill] sm:$0xff] }
 0x69b   : > { %5013 = vrot.lane.b32.xlu0 %v12630_v51, %s5853_s27  ;;  %5011 = vrot.lane.b32.xlu1 %v12631_v52, %s5853_s27  ;;  %v4636_v61 = vadd.f32 %v12635_v54, %v4486_v48  ;;  %v3692_v9 = vadd.f32 %v12637_v10, %v12636_v39  ;;  %v12639_v40 = vld [vmem:[#allocation63_spill] sm:$0xff]  ;;  %v12640_v47 = vld [vmem:[#allocation96_spill] sm:$0xff]  ;;  %v12641_v38 = vld [vmem:[#allocation186_spill] sm:$0xff] }
 0x69c   : > { %v3693_v29 = vadd.f32 %v12639_v40, %v12638_v17  ;;  %v4055_v31 = vadd.f32 %v12640_v47, %v3905_v22  ;;  %v4056_v0 = vadd.f32 %v12641_v38, %v3906_v41  ;;  %v12642_v24 = vld [vmem:[#allocation128_spill] sm:$0xff]  ;;  %v12643_v23 = vld [vmem:[#allocation89_spill] sm:$0xff]  ;;  %v12644_v8 = vld [vmem:[#allocation147_spill] sm:$0xff] }
 0x69d   : > { %v4749_v13 = vpop.permute.xlu0 %4748  ;;  %v4747_v2 = vpop.permute.xlu1 %4746  ;;  %v4489_v37 = vadd.f32 %v12642_v24, %v4272_v59  ;;  %v4488_v32 = vadd.f32 %v12643_v23, %v4271_v50  ;;  %v3907_v48 = vadd.f32 %v12644_v8, %v3692_v9  ;;  %v12645_v1 = vld [vmem:[#allocation5_spill] sm:$0xff]  ;;  %v12646_v51 = vld [vmem:[#allocation52_spill] sm:$0xff]  ;;  %v12650_v49 = vld [vmem:[#allocation27_spill] sm:$0xff] }
 0x69e   : > { %v10989_v12 = vadd.f32 %v4749_v13, %v4637_v34  ;;  %v10991_v27 = vadd.f32 %v4747_v2, %v4636_v61  ;;  %v3908_v15 = vadd.f32 %v12645_v1, %v3693_v29  ;;  %v12647_v22 = vld [vmem:[#allocation49_spill] sm:$0xff]  ;;  %v12648_v41 = vld [vmem:[#allocation132_spill] sm:$0xff]  ;;  %v12654_v10 = vld [vmem:[#allocation11_spill] sm:$0xff] }
 0x69f   : > { %5021 = vrot.lane.b32.xlu0 %v12646_v51, %s5853_s27  ;;  %5019 = vrot.lane.b32.xlu1 %v12647_v22, %s5853_s27  ;;  %v4274_v52 = vadd.f32 %v12648_v41, %v4056_v0  ;;  %v12649_v19 = vld [vmem:[#allocation152_spill] sm:$0xff]  ;;  %v4639_v50 = vadd.f32 %v12650_v49, %v4489_v37  ;;  %v12651_v4 = vld [vmem:[#allocation169_spill] sm:$0xff]  ;;  %v4057_v9 = vadd.f32 %v12654_v10, %v3907_v48  ;;  %v12655_v17 = vld [vmem:[#allocation231_spill] sm:$0xff] }
 0x6a0   : > { %v4273_v59 = vadd.f32 %v12649_v19, %v4055_v31  ;;  %v4638_v34 = vadd.f32 %v12651_v4, %v4488_v32  ;;  %v12652_v54 = vld [vmem:[#allocation133_spill] sm:$0xff]  ;;  %v4058_v40 = vadd.f32 %v12655_v17, %v3908_v15  ;;  %v12656_v38 = vld [vmem:[#allocation158_spill] sm:$0xff]  ;;  %v12659_v32 = vld [vmem:[#allocation60_spill] sm:$0xff] }
 0x6a1   : > { %v12653_v61 = vld [vmem:[#allocation93_spill] sm:$0xff]  ;;  %v4753_v29 = vpop.permute.xlu0 %4752  ;;  %v4751_v47 = vpop.permute.xlu1 %4750  ;;  %v4491_v13 = vadd.f32 %v12656_v38, %v4274_v52  ;;  %v12658_v37 = vld [vmem:[#allocation230_spill] sm:$0xff]  ;;  %v12663_v22 = vld [vmem:[#allocation64_spill] sm:$0xff] }
 0x6a2   : > { %v3694_v39 = vadd.f32 %v12653_v61, %v12652_v54  ;;  %v12657_v2 = vld [vmem:[#allocation221_spill] sm:$0xff]  ;;  %v11009_v0 = vadd.f32 %v4753_v29, %v4639_v50  ;;  %v11011_v31 = vadd.f32 %v4751_v47, %v4638_v34  ;;  %v12660_v8 = vld [vmem:[#allocation90_spill] sm:$0xff]  ;;  %v12664_v52 = vld [vmem:[#allocation171_spill] sm:$0xff] }
 0x6a3   : > { %v4490_v24 = vadd.f32 %v12657_v2, %v4273_v59  ;;  %5025 = vrot.lane.b32.xlu0 %v12659_v32, %s5853_s27  ;;  %5023 = vrot.lane.b32.xlu1 %v12660_v8, %s5853_s27  ;;  %v12661_v48 = vld [vmem:[#allocation149_spill] sm:$0xff]  ;;  %v12662_v15 = vld [vmem:[#allocation154_spill] sm:$0xff]  ;;  %v4641_v41 = vadd.f32 %v12663_v22, %v4491_v13  ;;  %v12666_v34 = vld [vmem:[#allocation220_spill] sm:$0xff] }
 0x6a4   : > { %v3909_v23 = vadd.f32 %v12658_v37, %v3694_v39  ;;  %v4276_v1 = vadd.f32 %v12661_v48, %v4058_v40  ;;  %v4275_v51 = vadd.f32 %v12662_v15, %v4057_v9  ;;  %v12665_v59 = vld [vmem:[#allocation17_spill] sm:$0xff]  ;;  %v12667_v61 = vld [vmem:[#allocation228_spill] sm:$0xff] }
 0x6a5   : > { %v4640_v19 = vadd.f32 %v12664_v52, %v4490_v24  ;;  %v4757_v50 = vpop.permute.xlu0 %4756  ;;  %v4755_v4 = vpop.permute.xlu1 %4754  ;;  %v12668_v40 = vld [vmem:[#allocation68_spill] sm:$0xff]  ;;  %v12670_v29 = vld [vmem:[#allocation21_spill] sm:$0xff] }
 0x6a6   : > { %v4059_v49 = vadd.f32 %v12665_v59, %v3909_v23  ;;  %v4493_v54 = vadd.f32 %v12666_v34, %v4276_v1  ;;  %v4492_v39 = vadd.f32 %v12667_v61, %v4275_v51  ;;  %v11025_v10 = vadd.f32 %v4757_v50, %v4641_v41  ;;  %v12669_v9 = vld [vmem:[#allocation112_spill] sm:$0xff]  ;;  %v12673_v1 = vld [vmem:[#allocation178_spill] sm:$0xff]  ;;  %v12676_v50 = vld [vmem:[#allocation13_spill] sm:$0xff] }
 0x6a7   : > { %v11027_v17 = vadd.f32 %v4755_v4, %v4640_v19  ;;  %5029 = vrot.lane.b32.xlu0 %v12668_v40, %s5853_s27  ;;  %5027 = vrot.lane.b32.xlu1 %v12669_v9, %s5853_s27  ;;  %v12671_v37 = vld [vmem:[#allocation224_spill] sm:$0xff] }
 0x6a8   : > { %v4277_v47 = vadd.f32 %v12670_v29, %v4059_v49  ;;  %v4643_v38 = vadd.f32 %v10676_v56, %v4493_v54  ;;  %v4642_v13 = vadd.f32 %v10678_v36, %v4492_v39  ;;  %v12672_v48 = vld [vmem:[#allocation156_spill] sm:$0xff] }
 0x6a9   : > { %v4761_v2 = vpop.permute.xlu0 %4760  ;;  %v4759_v24 = vpop.permute.xlu1 %4758  ;;  %v12674_v41 = vld [vmem:[#allocation192_spill] sm:$0xff] }
 0x6aa   : > { %v4494_v23 = vadd.f32 %v12671_v37, %v4277_v47  ;;  %v11037_v32 = vadd.f32 %v4761_v2, %v4643_v38  ;;  %v11039_v8 = vadd.f32 %v4759_v24, %v4642_v13  ;;  %v12675_v52 = vld [vmem:[#allocation176_spill] sm:$0xff] }
 0x6ab   : > { %4979 = vrot.lane.b32.xlu0 %v12672_v48, %s5853_s27  ;;  %5031 = vrot.lane.b32.xlu1 %v12673_v1, %s5853_s27 }
 0x6ac   : > { %v4644_v15 = vadd.f32 %v10695_v33, %v4494_v23 }
 0x6ad   : > { %v4765_v51 = vpop.permute.xlu0 %4764  ;;  %v4763_v56 = vpop.permute.xlu1 %4762 }
 0x6ae   : > { %v11047_v36 = vadd.f32 %v4765_v51, %v10700_v42  ;;  %v11049_v22 = vadd.f32 %v4763_v56, %v4644_v15  ;;  %v12677_v42 = vld [vmem:[#allocation94_spill] sm:$0xff] }
 0x6af   : > { %4997 = vrot.lane.b32.xlu0 %v12674_v41, %s5853_s27  ;;  %4981 = vrot.lane.b32.xlu1 %v12675_v52, %s5853_s27 }
 0x6b1   : > { %v4769_v19 = vpop.permute.xlu0 %4768  ;;  %v4767_v59 = vpop.permute.xlu1 %4766 }
 0x6b2   : > { %v11056_v49 = vadd.f32 %v4769_v19, %v10718_v46  ;;  %v11059_v33 = vadd.f32 %v4767_v59, %v10720_v43  ;;  %v12678_v46 = vld [vmem:[#allocation43_spill] sm:$0xff] }
 0x6b3   : > { %5015 = vrot.lane.b32.xlu0 %v12676_v50, %s5853_s27  ;;  %4999 = vrot.lane.b32.xlu1 %v12677_v42, %s5853_s27 }
 0x6b5   : > { %v4773_v4 = vpop.permute.xlu0 %4772  ;;  %v4771_v34 = vpop.permute.xlu1 %4770 }
 0x6b6   : > { %v11066_v54 = vadd.f32 %v4773_v4, %v10738_v57  ;;  %v11069_v61 = vadd.f32 %v4771_v34, %v10740_v58 }
 0x6b7   : > { %5017 = vrot.lane.b32.xlu1 %v12678_v46, %s5853_s27 }
 0x6b9   : > { %v4777_v39 = vpop.permute.xlu0 %4776  ;;  %v4775_v43 = vpop.permute.xlu1 %4774 }
 0x6ba   : > { %v11074_v40 = vadd.f32 %v4777_v39, %v10758_v7  ;;  %v11077_v9 = vadd.f32 %v4775_v43, %v10760_v44 }
 0x6bd   : > { %v4781_v29 = vpop.permute.xlu0 %4780  ;;  %v4779_v47 = vpop.permute.xlu1 %4778 }
 0x6be   : > { %v11080_v38 = vadd.f32 %v4781_v29, %v10778_v30  ;;  %v11083_v57 = vadd.f32 %v4779_v47, %v10780_v25 }
 0x6c1   : > { %v4785_v58 = vpop.permute.xlu0 %4784  ;;  %v4783_v13 = vpop.permute.xlu1 %4782 }
 0x6c2   : > { %v11086_v2 = vadd.f32 %v4785_v58, %v10798_v62  ;;  %v11089_v24 = vadd.f32 %v4783_v13, %v10800_v18 }
 0x6c5   : > { %v11091_v7 = vpop.permute.xlu0 %4788  ;;  %v11093_v44 = vpop.permute.xlu1 %4786 }
 0x6c9   : > { %v11095_v37 = vpop.permute.xlu0 %4792  ;;  %v11097_v23 = vpop.permute.xlu1 %4790 }
 0x6cd   : > { %v11099_v30 = vpop.permute.xlu0 %4796  ;;  %v11101_v25 = vpop.permute.xlu1 %4794 }
 0x6d1   : > { %v4801_v48 = vpop.permute.xlu0 %4800  ;;  %v4799_v1 = vpop.permute.xlu1 %4798 }
 0x6d2   : > { %v11104_v62 = vadd.f32 %v4801_v48, %v10878_v6  ;;  %v11107_v18 = vadd.f32 %v4799_v1, %v10880_v5  ;;  %v11124_v6 = vld [vmem:[%s11313_s2 + $0x1] ss:$0 sm:$0xff] }
 0x6d5   : > { %v11109_v15 = vpop.permute.xlu0 %4804  ;;  %v11111_v51 = vpop.permute.xlu1 %4802 }
 0x6d9   : > { %v11113_v56 = vpop.permute.xlu0 %4808  ;;  %v11115_v41 = vpop.permute.xlu1 %4806 }
 0x6dd   : > { %v11117_v52 = vpop.permute.xlu0 %4812  ;;  %v11119_v19 = vpop.permute.xlu1 %4810 }
 0x6e1   : > { %v4962_v59 = vpop.permute.xlu0 %4961  ;;  %v11126_v5 = vpop.permute.xlu1 %4814 }
 0x6e2   : > { %v5069_v50 = vadd.f32 %v4962_v59, %v10967_v60 }
 0x6e4   : > { %v5113_v42 = vadd.f32 %v11124_v6, %v5069_v50 }
 0x6e5   : > { %v4966_v4 = vpop.permute.xlu0 %4965  ;;  %v4964_v34 = vpop.permute.xlu1 %4963 }
 0x6e6   : > { %v5149_v46 = vmax.f32 %v5113_v42, 0.0  ;;  %v5071_v39 = vadd.f32 %v4966_v4, %v10989_v12  ;;  %v5070_v43 = vadd.f32 %v4964_v34, %v10991_v27 }
 0x6e8   : > { %5297 = vst.msk [vmem:[%s11135_s9] sm:$0xff] %vm2698_vm10, %v5149_v46  ;;  %v5115_v60 = vadd.f32 %v11124_v6, %v5071_v39  ;;  %v5114_v29 = vadd.f32 %v11124_v6, %v5070_v43 }
 0x6e9   : > { %v4970_v47 = vpop.permute.xlu0 %4969  ;;  %v4968_v58 = vpop.permute.xlu1 %4967 }
 0x6ea   : > { %v5150_v13 = vmax.f32 %v5114_v29, 0.0  ;;  %v5073_v48 = vadd.f32 %v4970_v47, %v11009_v0  ;;  %v5072_v1 = vadd.f32 %v4968_v58, %v11011_v31  ;;  %v5151_v59 = vmax.f32 %v5115_v60, 0.0 }
 0x6ec   : > { %5298 = vst.msk [vmem:[%s11135_s9 + $0x8] sm:$0xff] %vm2698_vm10, %v5150_v13  ;;  %v5117_v12 = vadd.f32 %v11124_v6, %v5073_v48  ;;  %v5116_v27 = vadd.f32 %v11124_v6, %v5072_v1  ;;  %v5188_v0 = vrot.slane %v5151_v59, 2 }
 0x6ed   : > { %v4974_v50 = vpop.permute.xlu0 %4973  ;;  %v4972_v42 = vpop.permute.xlu1 %4971 }
 0x6ee   : > { %v5153_v4 = vmax.f32 %v5117_v12, 0.0  ;;  %v5152_v34 = vmax.f32 %v5116_v27, 0.0  ;;  %v5075_v46 = vadd.f32 %v4974_v50, %v11025_v10  ;;  %v5074_v39 = vadd.f32 %v4972_v42, %v11027_v17 }
 0x6f0   : > { %v5191_v43 = vrot.slane %v5153_v4, 2  ;;  %v5189_v31 = vrot.slane %v5152_v34, 2  ;;  %v5119_v60 = vadd.f32 %v11124_v6, %v5075_v46  ;;  %v5118_v29 = vadd.f32 %v11124_v6, %v5074_v39 }
 0x6f1   : > { %v4978_v47 = vpop.permute.xlu0 %4977  ;;  %v4976_v58 = vpop.permute.xlu1 %4975  ;;  %v5197_v50 = vrot.slane %v5153_v4, 4 }
 0x6f2   : > { %v5190_v13 = vsel %vm1217_vm6, %v5188_v0, %v5189_v31  ;;  %v5192_v48 = vsel %vm1217_vm6, %v5189_v31, %v5191_v43  ;;  %v5155_v1 = vmax.f32 %v5119_v60, 0.0  ;;  %v5077_v12 = vadd.f32 %v4978_v47, %v11037_v32 }
 0x6f3   : > { %5299 = vst.msk [vmem:[%s11135_s9 + $0x10] sm:$0xff] %vm2698_vm10, %v5190_v13  ;;  %5300 = vst.msk [vmem:[%s11135_s9 + $0x18] sm:$0xff] %vm2698_vm10, %v5192_v48  ;;  %v5154_v10 = vmax.f32 %v5118_v29, 0.0  ;;  %v5076_v17 = vadd.f32 %v4976_v58, %v11039_v8 }
 0x6f4   : > { %v5200_v59 = vrot.slane %v5155_v1, 4  ;;  %v5121_v27 = vadd.f32 %v11124_v6, %v5077_v12  ;;  %v5206_v58 = vrot.slane %v5155_v1, 6 }
 0x6f5   : > { %v5198_v42 = vrot.slane %v5154_v10, 4  ;;  %v5120_v34 = vadd.f32 %v11124_v6, %v5076_v17  ;;  %v4986_v46 = vpop.permute.xlu0 %4985  ;;  %v4984_v39 = vpop.permute.xlu1 %4983 }
 0x6f6   : > { %v5157_v0 = vmax.f32 %v5121_v27, 0.0  ;;  %v5081_v32 = vadd.f32 %v4986_v46, %v11056_v49  ;;  %v5080_v43 = vadd.f32 %v4984_v39, %v11059_v33 }
 0x6f7   : > { %v5199_v31 = vsel %vm655_vm0, %v5197_v50, %v5198_v42  ;;  %v5201_v60 = vsel %vm655_vm0, %v5198_v42, %v5200_v59  ;;  %v5156_v29 = vmax.f32 %v5120_v34, 0.0 }
 0x6f8   : > { %5301 = vst.msk [vmem:[%s11135_s9 + $0x20] sm:$0xff] %vm2698_vm10, %v5199_v31  ;;  %5302 = vst.msk [vmem:[%s11135_s9 + $0x28] sm:$0xff] %vm2698_vm10, %v5201_v60  ;;  %v5209_v8 = vrot.slane %v5157_v0, 6  ;;  %v5125_v4 = vadd.f32 %v11124_v6, %v5081_v32  ;;  %v5124_v47 = vadd.f32 %v11124_v6, %v5080_v43 }
 0x6f9   : > { %v5207_v49 = vrot.slane %v5156_v29, 6  ;;  %v4990_v13 = vpop.permute.xlu0 %4989  ;;  %v4988_v33 = vpop.permute.xlu1 %4987 }
 0x6fa   : > { %v5161_v48 = vmax.f32 %v5125_v4, 0.0  ;;  %v5160_v12 = vmax.f32 %v5124_v47, 0.0  ;;  %v5083_v10 = vadd.f32 %v4990_v13, %v11066_v54  ;;  %v5082_v17 = vadd.f32 %v4988_v33, %v11069_v61 }
 0x6fb   : > { %v5208_v59 = vsel %vm2387_vm9, %v5206_v58, %v5207_v49  ;;  %v5210_v27 = vsel %vm2387_vm9, %v5207_v49, %v5209_v8 }
 0x6fc   : > { %5303 = vst.msk [vmem:[%s11135_s9 + $0x30] sm:$0xff] %vm2698_vm10, %v5208_v59  ;;  %5304 = vst.msk [vmem:[%s11135_s9 + $0x38] sm:$0xff] %vm2698_vm10, %v5210_v27  ;;  %v5217_v50 = vrot.slane %v5161_v48, 2  ;;  %v5216_v1 = vrot.slane %v5160_v12, 2  ;;  %v5127_v42 = vadd.f32 %v11124_v6, %v5083_v10  ;;  %v5126_v34 = vadd.f32 %v11124_v6, %v5082_v17 }
 0x6fd   : > { %v4994_v46 = vpop.permute.xlu0 %4993  ;;  %v4992_v39 = vpop.permute.xlu1 %4991  ;;  %v4874_v12 = vadd.f32 %v11091_v7, %v10818_v16  ;;  %v4873_v10 = vadd.f32 %v11093_v44, %v10820_v11  ;;  %v4875_v44 = vadd.f32 %v11097_v23, %v10840_v20  ;;  %v4878_v20 = vadd.f32 %v11099_v30, %v10858_v55 }
 0x6fe   : > { %v5218_v54 = vsel %vm1217_vm6, %v5216_v1, %v5217_v50  ;;  %v5163_v0 = vmax.f32 %v5127_v42, 0.0  ;;  %v5162_v61 = vmax.f32 %v5126_v34, 0.0  ;;  %v5085_v32 = vadd.f32 %v4994_v46, %v11074_v40 }
 0x6ff   : > { %5307 = vst.msk [vmem:[%s11135_s9 + $0x50] sm:$0xff] %vm2698_vm10, %v5218_v54  ;;  %v5084_v43 = vadd.f32 %v4992_v39, %v11077_v9 }
 0x700   : > { %v5226_v31 = vrot.slane %v5163_v0, 4  ;;  %v5219_v60 = vrot.slane %v5162_v61, 2  ;;  %v5225_v29 = vrot.slane %v5162_v61, 4  ;;  %v5129_v8 = vadd.f32 %v11124_v6, %v5085_v32 }
 0x701   : > { %v5128_v4 = vadd.f32 %v11124_v6, %v5084_v43  ;;  %v5002_v47 = vpop.permute.xlu0 %5001  ;;  %v4996_v58 = vpop.permute.xlu1 %4995 }
 0x702   : > { %v5220_v49 = vsel %vm1217_vm6, %v5217_v50, %v5219_v60  ;;  %v5227_v13 = vsel %vm655_vm0, %v5225_v29, %v5226_v31  ;;  %v5165_v33 = vmax.f32 %v5129_v8, 0.0  ;;  %v5089_v40 = vadd.f32 %v5002_v47, %v11086_v2 }
 0x703   : > { %5308 = vst.msk [vmem:[%s11135_s9 + $0x58] sm:$0xff] %vm2698_vm10, %v5220_v49  ;;  %5309 = vst.msk [vmem:[%s11135_s9 + $0x60] sm:$0xff] %vm2698_vm10, %v5227_v13  ;;  %v5164_v9 = vmax.f32 %v5128_v4, 0.0  ;;  %v5086_v48 = vadd.f32 %v4996_v58, %v11083_v57  ;;  %v4876_v57 = vadd.f32 %v11095_v37, %v10838_v3  ;;  %v4877_v58 = vadd.f32 %v11101_v25, %v10860_v28 }
 0x704   : > { %v5235_v17 = vrot.slane %v5165_v33, 6  ;;  %v5133_v59 = vadd.f32 %v11124_v6, %v5089_v40  ;;  %v4881_v28 = vadd.f32 %v11111_v51, %v10902_v35 }
 0x705   : > { %v5228_v27 = vrot.slane %v5164_v9, 4  ;;  %v5234_v2 = vrot.slane %v5164_v9, 6  ;;  %v5130_v50 = vadd.f32 %v11124_v6, %v5086_v48  ;;  %v5006_v1 = vpop.permute.xlu0 %5005  ;;  %v5004_v42 = vpop.permute.xlu1 %5003 }
 0x706   : > { %v5091_v34 = vadd.f32 %v5006_v1, %v4874_v12  ;;  %v5090_v46 = vadd.f32 %v5004_v42, %v4873_v10  ;;  %v5169_v39 = vmax.f32 %v5133_v59, 0.0  ;;  %v4882_v10 = vadd.f32 %v11109_v15, %v10900_v26 }
 0x707   : > { %v5229_v16 = vsel %vm655_vm0, %v5226_v31, %v5228_v27  ;;  %v5236_v7 = vsel %vm2387_vm9, %v5234_v2, %v5235_v17  ;;  %v5166_v11 = vmax.f32 %v5130_v50, 0.0  ;;  %v4884_v26 = vadd.f32 %v11113_v56, %v10923_v21 }
 0x708   : > { %5310 = vst.msk [vmem:[%s11135_s9 + $0x68] sm:$0xff] %vm2698_vm10, %v5229_v16  ;;  %5311 = vst.msk [vmem:[%s11135_s9 + $0x70] sm:$0xff] %vm2698_vm10, %v5236_v7  ;;  %v5135_v54 = vadd.f32 %v11124_v6, %v5091_v34  ;;  %v5134_v0 = vadd.f32 %v11124_v6, %v5090_v46  ;;  %v5244_v29 = vrot.slane %v5169_v39, 2 }
 0x709   : > { %v5237_v61 = vrot.slane %v5166_v11, 6  ;;  %v5010_v3 = vpop.permute.xlu0 %5009  ;;  %v5008_v37 = vpop.permute.xlu1 %5007 }
 0x70a   : > { %v5171_v32 = vmax.f32 %v5135_v54, 0.0  ;;  %v5170_v43 = vmax.f32 %v5134_v0, 0.0  ;;  %v5093_v31 = vadd.f32 %v5010_v3, %v4876_v57  ;;  %v5092_v60 = vadd.f32 %v5008_v37, %v4875_v44 }
 0x70b   : > { %v5238_v23 = vsel %vm2387_vm9, %v5235_v17, %v5237_v61  ;;  %v4883_v57 = vadd.f32 %v11115_v41, %v10925_v45  ;;  %v4886_v45 = vadd.f32 %v11117_v52, %v10945_v53 }
 0x70c   : > { %5312 = vst.msk [vmem:[%s11135_s9 + $0x78] sm:$0xff] %vm2698_vm10, %v5238_v23  ;;  %v5247_v8 = vrot.slane %v5171_v32, 2  ;;  %v5245_v4 = vrot.slane %v5170_v43, 2  ;;  %v5137_v47 = vadd.f32 %v11124_v6, %v5093_v31  ;;  %v5136_v49 = vadd.f32 %v11124_v6, %v5092_v60 }
 0x70d   : > { %v5014_v13 = vpop.permute.xlu0 %5013  ;;  %v5012_v33 = vpop.permute.xlu1 %5011  ;;  %v5253_v59 = vrot.slane %v5171_v32, 4 }
 0x70e   : > { %v5246_v40 = vsel %vm1217_vm6, %v5244_v29, %v5245_v4  ;;  %v5248_v55 = vsel %vm1217_vm6, %v5245_v4, %v5247_v8  ;;  %v5173_v30 = vmax.f32 %v5137_v47, 0.0  ;;  %v5095_v9 = vadd.f32 %v5014_v13, %v4878_v20 }
 0x70f   : > { %5315 = vst.msk [vmem:[%s11135_s9 + $0x90] sm:$0xff] %vm2698_vm10, %v5246_v40  ;;  %5316 = vst.msk [vmem:[%s11135_s9 + $0x98] sm:$0xff] %vm2698_vm10, %v5248_v55  ;;  %v5172_v48 = vmax.f32 %v5136_v49, 0.0  ;;  %v5094_v12 = vadd.f32 %v5012_v33, %v4877_v58  ;;  %v4885_v20 = vadd.f32 %v11119_v19, %v10947_v14  ;;  %v4887_v14 = vadd.f32 %v11126_v5, %v10969_v63 }
 0x710   : > { %v5256_v25 = vrot.slane %v5173_v30, 4  ;;  %v5139_v17 = vadd.f32 %v11124_v6, %v5095_v9  ;;  %v5262_v21 = vrot.slane %v5173_v30, 6 }
 0x711   : > { %v5254_v27 = vrot.slane %v5172_v48, 4  ;;  %v5138_v2 = vadd.f32 %v11124_v6, %v5094_v12  ;;  %v5022_v50 = vpop.permute.xlu0 %5021  ;;  %v5020_v1 = vpop.permute.xlu1 %5019 }
 0x712   : > { %v5175_v42 = vmax.f32 %v5139_v17, 0.0  ;;  %v5099_v34 = vadd.f32 %v5022_v50, %v4882_v10  ;;  %v5098_v46 = vadd.f32 %v5020_v1, %v4881_v28 }
 0x713   : > { %v5255_v15 = vsel %vm655_vm0, %v5253_v59, %v5254_v27  ;;  %v5257_v35 = vsel %vm655_vm0, %v5254_v27, %v5256_v25  ;;  %v5174_v51 = vmax.f32 %v5138_v2, 0.0 }
 0x714   : > { %5317 = vst.msk [vmem:[%s11135_s9 + $0xa0] sm:$0xff] %vm2698_vm10, %v5255_v15  ;;  %5318 = vst.msk [vmem:[%s11135_s9 + $0xa8] sm:$0xff] %vm2698_vm10, %v5257_v35  ;;  %v5265_v16 = vrot.slane %v5175_v42, 6  ;;  %v5143_v7 = vadd.f32 %v11124_v6, %v5099_v34  ;;  %v5142_v11 = vadd.f32 %v11124_v6, %v5098_v46 }
 0x715   : > { %v5263_v56 = vrot.slane %v5174_v51, 6  ;;  %v5026_v44 = vpop.permute.xlu0 %5025  ;;  %v5024_v39 = vpop.permute.xlu1 %5023 }
 0x716   : > { %v5179_v54 = vmax.f32 %v5143_v7, 0.0  ;;  %v5178_v0 = vmax.f32 %v5142_v11, 0.0  ;;  %v5101_v61 = vadd.f32 %v5026_v44, %v4884_v26  ;;  %v5100_v3 = vadd.f32 %v5024_v39, %v4883_v57 }
 0x717   : > { %v5264_v41 = vsel %vm2387_vm9, %v5262_v21, %v5263_v56  ;;  %v5266_v37 = vsel %vm2387_vm9, %v5263_v56, %v5265_v16 }
 0x718   : > { %5319 = vst.msk [vmem:[%s11135_s9 + $0xb0] sm:$0xff] %vm2698_vm10, %v5264_v41  ;;  %5320 = vst.msk [vmem:[%s11135_s9 + $0xb8] sm:$0xff] %vm2698_vm10, %v5266_v37  ;;  %v5273_v32 = vrot.slane %v5179_v54, 2  ;;  %v5272_v43 = vrot.slane %v5178_v0, 2  ;;  %v5145_v31 = vadd.f32 %v11124_v6, %v5101_v61  ;;  %v5144_v60 = vadd.f32 %v11124_v6, %v5100_v3 }
 0x719   : > { %v5030_v23 = vpop.permute.xlu0 %5029  ;;  %v5028_v53 = vpop.permute.xlu1 %5027 }
 0x71a   : > { %v5274_v52 = vsel %vm1217_vm6, %v5272_v43, %v5273_v32  ;;  %v5181_v29 = vmax.f32 %v5145_v31, 0.0  ;;  %v5180_v8 = vmax.f32 %v5144_v60, 0.0  ;;  %v5103_v4 = vadd.f32 %v5030_v23, %v4886_v45 }
 0x71b   : > { %5323 = vst.msk [vmem:[%s11135_s9 + $0xd0] sm:$0xff] %vm2698_vm10, %v5274_v52  ;;  %v5102_v47 = vadd.f32 %v5028_v53, %v4885_v20 }
 0x71c   : > { %v5282_v58 = vrot.slane %v5181_v29, 4  ;;  %v5275_v49 = vrot.slane %v5180_v8, 2  ;;  %v5281_v13 = vrot.slane %v5180_v8, 4  ;;  %v5147_v33 = vadd.f32 %v11124_v6, %v5103_v4 }
 0x71d   : > { %v5146_v19 = vadd.f32 %v11124_v6, %v5102_v47  ;;  %v4980_v40 = vpop.permute.xlu0 %4979  ;;  %v5032_v55 = vpop.permute.xlu1 %5031 }
 0x71e   : > { %v5276_v30 = vsel %vm1217_vm6, %v5273_v32, %v5275_v49  ;;  %v5283_v9 = vsel %vm655_vm0, %v5281_v13, %v5282_v58  ;;  %v5183_v48 = vmax.f32 %v5147_v33, 0.0  ;;  %v5078_v12 = vadd.f32 %v4980_v40, %v11049_v22 }
 0x71f   : > { %5324 = vst.msk [vmem:[%s11135_s9 + $0xd8] sm:$0xff] %vm2698_vm10, %v5276_v30  ;;  %5325 = vst.msk [vmem:[%s11135_s9 + $0xe0] sm:$0xff] %vm2698_vm10, %v5283_v9  ;;  %v5182_v10 = vmax.f32 %v5146_v19, 0.0  ;;  %v5104_v28 = vadd.f32 %v5032_v55, %v4887_v14 }
 0x720   : > { %v5291_v63 = vrot.slane %v5183_v48, 6  ;;  %v5122_v5 = vadd.f32 %v11124_v6, %v5078_v12 }
 0x721   : > { %v5284_v25 = vrot.slane %v5182_v10, 4  ;;  %v5290_v17 = vrot.slane %v5182_v10, 6  ;;  %v5148_v59 = vadd.f32 %v11124_v6, %v5104_v28  ;;  %v4998_v27 = vpop.permute.xlu0 %4997  ;;  %v4982_v2 = vpop.permute.xlu1 %4981 }
 0x722   : > { %v5158_v50 = vmax.f32 %v5122_v5, 0.0  ;;  %v5087_v22 = vadd.f32 %v4998_v27, %v11080_v38  ;;  %v5079_v1 = vadd.f32 %v4982_v2, %v11047_v36 }
 0x723   : > { %v5285_v42 = vsel %vm655_vm0, %v5282_v58, %v5284_v25  ;;  %v5292_v34 = vsel %vm2387_vm9, %v5290_v17, %v5291_v63  ;;  %v5184_v46 = vmax.f32 %v5148_v59, 0.0 }
 0x724   : > { %5326 = vst.msk [vmem:[%s11135_s9 + $0xe8] sm:$0xff] %vm2698_vm10, %v5285_v42  ;;  %5327 = vst.msk [vmem:[%s11135_s9 + $0xf0] sm:$0xff] %vm2698_vm10, %v5292_v34  ;;  %v5131_v26 = vadd.f32 %v11124_v6, %v5087_v22  ;;  %v5123_v38 = vadd.f32 %v11124_v6, %v5079_v1 }
 0x725   : > { %5305 = vst.msk [vmem:[%s11135_s9 + $0x40] sm:$0xff] %vm2698_vm10, %v5158_v50  ;;  %v5293_v15 = vrot.slane %v5184_v46, 6  ;;  %v5016_v36 = vpop.permute.xlu0 %5015  ;;  %v5000_v35 = vpop.permute.xlu1 %4999 }
 0x726   : > { %v5167_v51 = vmax.f32 %v5131_v26, 0.0  ;;  %v5159_v57 = vmax.f32 %v5123_v38, 0.0  ;;  %v5096_v16 = vadd.f32 %v5016_v36, %v11107_v18  ;;  %v5088_v7 = vadd.f32 %v5000_v35, %v11089_v24 }
 0x727   : > { %v5294_v11 = vsel %vm2387_vm9, %v5291_v63, %v5293_v15 }
 0x728   : > { %5328 = vst.msk [vmem:[%s11135_s9 + $0xf8] sm:$0xff] %vm2698_vm10, %v5294_v11  ;;  %5313 = vst.msk [vmem:[%s11135_s9 + $0x80] sm:$0xff] %vm2698_vm10, %v5167_v51  ;;  %v5140_v21 = vadd.f32 %v11124_v6, %v5096_v16  ;;  %v5132_v56 = vadd.f32 %v11124_v6, %v5088_v7 }
 0x729   : > { %5306 = vst.msk [vmem:[%s11135_s9 + $0x48] sm:$0xff] %vm2698_vm10, %v5159_v57  ;;  %v5018_v44 = vpop.permute.xlu1 %5017 }
 0x72a   : > { %v5176_v39 = vmax.f32 %v5140_v21, 0.0  ;;  %v5168_v54 = vmax.f32 %v5132_v56, 0.0  ;;  %v5097_v18 = vadd.f32 %v5018_v44, %v11104_v62 }
 0x72c   : > { %5321 = vst.msk [vmem:[%s11135_s9 + $0xc0] sm:$0xff] %vm2698_vm10, %v5176_v39  ;;  %5314 = vst.msk [vmem:[%s11135_s9 + $0x88] sm:$0xff] %vm2698_vm10, %v5168_v54  ;;  %v5141_v24 = vadd.f32 %v11124_v6, %v5097_v18 }
 0x72e   : > { %v5177_v0 = vmax.f32 %v5141_v24, 0.0 }
 0x730   : > { %5322 = vst.msk [vmem:[%s11135_s9 + $0xc8] sm:$0xff] %vm2698_vm10, %v5177_v0 }
 0x731 PF: > { %s13_s12 = sadd.s32 1, %s5842_s12  }
 0x732   : > { %p10_p4 = scmp.ge.s32.totalorder %s13_s12, 4  }
 0x734   :  { %12 = sbr.rel (!%p10_p4) target bundleno = 1 (0x1), region = 64 }

</bundles_post_ra>
